<compile_context>
chip_gen: v7x
topology: tpu7x:2x2x1
jax: 0.10.0
libtpu: 0.0.40
codegen_flags: <defaults>
</compile_context>

<pallas_src>
import jax
import jax.numpy as jnp
from jax.experimental import pallas as pl
from jax.experimental.pallas import tpu as pltpu

_HI = jax.lax.Precision.HIGHEST

# MXU operand dtype: bf16 inputs + f32 accumulation doubles MXU rate on v5e/v6e/v7x
# and halves HBM traffic for h.  Set to jnp.float32 for bit-closer f32 parity.
_MM = jnp.bfloat16

_LANES = 128     # pad the points axis to a multiple of this
_RCHUNK = 16     # sublane-multiple row chunk for the VPU max fold


def _chip_defaults():
    """(point-tile cap, scoped-VMEM limit) tuned per TPU generation."""
    nt_cap, vmem = 1024, 48 * 1024 * 1024              # v7x-safe (64 MiB physical)
    try:
        cap = getattr(pltpu.get_tpu_info(), "vmem_capacity_bytes", None)
        if cap is not None and cap >= 96 * 1024 * 1024:  # v5e / v6e: 128 MiB VMEM
            nt_cap, vmem = 2048, 64 * 1024 * 1024
    except Exception:
        pass
    return nt_cap, vmem


_NT_CAP, _VMEM_LIMIT = _chip_defaults()


def _pick_point_tile(n_padded):
    """Largest lane-aligned tile (<= generation cap) dividing the padded N."""
    for cand in (2048, 1024, 512, 256, 128):
        if cand <= _NT_CAP and n_padded % cand == 0:
            return cand
    return n_padded   # unreachable once N is padded to a multiple of 128


def _fold_rows_max(z):
    """VPU-only fold of the (nt, C) rows into a (_RCHUNK, C) running max."""
    nt = z.shape[0]
    folded = z[0:_RCHUNK, :]
    for j in range(1, nt // _RCHUNK):
        folded = jnp.maximum(folded, z[j * _RCHUNK:(j + 1) * _RCHUNK, :])
    return folded


# ----------------------------------------------------------------------------
# Kernel 1: T-Net shared MLP (conv1x1 3->64->128->1024 + ReLU) + max over points
#           (points-first: rows = points, lanes = channels)
# ----------------------------------------------------------------------------
def _tnet_conv_max_kernel(x_ref, w1_ref, b1_ref, w2_ref, b2_ref, w3_ref, b3_ref,
                          g_ref, acc_ref):
    t = pl.program_id(1)

    xt = x_ref[0]                                                   # (nt, cin) f32
    h = jnp.dot(xt.astype(_MM), w1_ref[...],
                preferred_element_type=jnp.float32) + b1_ref[...]
    h = jnp.maximum(h, 0.0)
    h = jnp.dot(h.astype(_MM), w2_ref[...],
                preferred_element_type=jnp.float32) + b2_ref[...]
    h = jnp.maximum(h, 0.0)
    h = jnp.dot(h.astype(_MM), w3_ref[...],
                preferred_element_type=jnp.float32) + b3_ref[...]
    h = jnp.maximum(h, 0.0)                                         # (nt, 1024) f32

    folded = _fold_rows_max(h)                                      # VPU only

    @pl.when(t == 0)
    def _():                      # first tile writes directly (no -inf fill + max)
        acc_ref[...] = folded

    @pl.when(t > 0)
    def _():
        acc_ref[...] = jnp.maximum(acc_ref[...], folded)

    @pl.when(t == pl.num_programs(1) - 1)
    def _():                      # single sublane reduce + lane-dense store, once
        g_ref[0] = jnp.max(acc_ref[...], axis=0, keepdims=True).astype(g_ref.dtype)


def tnet_conv_max(x_t, w1, b1, w2, b2, w3, b3, *, nt):
    """x_t: (B, Np, cin) points-first.  Returns the (B, 1024) global feature."""
    B, Np, cin = x_t.shape
    c1, c2, c3 = w1.shape[0], w2.shape[0], w3.shape[0]
    # TODO(synk): mark grid-invariant weight specs with pipeline_mode=pl.Buffered(1)
    # to reclaim their double-buffer VMEM once verified on all target generations.
    # TODO(synk): for B == 1 on v7x, split the point range on a size-2 "parallel"
    # axis (partial maxes combined in the wrapper) so both TensorCores are fed.
    out = pl.pallas_call(
        _tnet_conv_max_kernel,
        out_shape=jax.ShapeDtypeStruct((B, 1, c3), jnp.float32),
        grid=(B, Np // nt),
        in_specs=[
            pl.BlockSpec((1, nt, cin), lambda b, t: (b, t, 0)),
            pl.BlockSpec((cin, c1), lambda b, t: (0, 0)),
            pl.BlockSpec((1, c1), lambda b, t: (0, 0)),
            pl.BlockSpec((c1, c2), lambda b, t: (0, 0)),
            pl.BlockSpec((1, c2), lambda b, t: (0, 0)),
            pl.BlockSpec((c2, c3), lambda b, t: (0, 0)),
            pl.BlockSpec((1, c3), lambda b, t: (0, 0)),
        ],
        out_specs=pl.BlockSpec((1, 1, c3), lambda b, t: (b, 0, 0)),
        scratch_shapes=[pltpu.VMEM((_RCHUNK, c3), jnp.float32)],
        compiler_params=pltpu.CompilerParams(
            dimension_semantics=("parallel", "arbitrary"),
            vmem_limit_bytes=_VMEM_LIMIT),
    )(x_t,
      w1.T.astype(_MM), b1.reshape(1, -1),
      w2.T.astype(_MM), b2.reshape(1, -1),
      w3.T.astype(_MM), b3.reshape(1, -1))
    return out[:, 0, :]                                             # (B, 1024)


# ----------------------------------------------------------------------------
# Kernel 2: T-Net FC head (Linear 1024->512->256->k^2 with ReLUs), single call
# ----------------------------------------------------------------------------
def _tnet_fc_kernel(g_ref, w1_ref, b1_ref, w2_ref, b2_ref, w3_ref, b3_ref, o_ref):
    h = jnp.dot(g_ref[...].astype(_MM), w1_ref[...],
                preferred_element_type=jnp.float32) + b1_ref[...]
    h = jnp.maximum(h, 0.0)
    h = jnp.dot(h.astype(_MM), w2_ref[...],
                preferred_element_type=jnp.float32) + b2_ref[...]
    h = jnp.maximum(h, 0.0)
    y = jnp.dot(h.astype(_MM), w3_ref[...],
                preferred_element_type=jnp.float32) + b3_ref[...]
    o_ref[...] = y.astype(o_ref.dtype)


def tnet_fc(g, w1, b1, w2, b2, w3, b3, k):
    B, d0 = g.shape
    d1, d2, d3 = w1.shape[0], w2.shape[0], w3.shape[0]              # d3 == k*k
    out = pl.pallas_call(
        _tnet_fc_kernel,
        out_shape=jax.ShapeDtypeStruct((B, d3), jnp.float32),
        in_specs=[
            pl.BlockSpec((B, d0), lambda: (0, 0)),
            pl.BlockSpec((d0, d1), lambda: (0, 0)),
            pl.BlockSpec((1, d1), lambda: (0, 0)),
            pl.BlockSpec((d1, d2), lambda: (0, 0)),
            pl.BlockSpec((1, d2), lambda: (0, 0)),
            pl.BlockSpec((d2, d3), lambda: (0, 0)),
            pl.BlockSpec((1, d3), lambda: (0, 0)),
        ],
        out_specs=pl.BlockSpec((B, d3), lambda: (0, 0)),
        compiler_params=pltpu.CompilerParams(vmem_limit_bytes=_VMEM_LIMIT),
    )(g,
      w1.T.astype(_MM), b1.reshape(1, -1),
      w2.T.astype(_MM), b2.reshape(1, -1),
      w3.T.astype(_MM), b3.reshape(1, -1))
    # tiny (B, k, k) identity add stays in plain JAX
    return out.reshape(B, k, k) + jnp.eye(k, dtype=out.dtype)[None]


# ----------------------------------------------------------------------------
# Kernel 3: fused local shared MLP (3->64->64, 3x3 transform folded into conv1)
#           + T-Net-64 shared MLP (64->128->1024) + running max over points
# ----------------------------------------------------------------------------
def _local_mlp_tnet64_kernel(x_ref, w1p_ref, b1_ref, w2_ref, b2_ref,
                             v1_ref, vb1_ref, v2_ref, vb2_ref, v3_ref, vb3_ref,
                             h_ref, g_ref, acc_ref):
    t = pl.program_id(1)

    # ---- local shared MLP, points-first -------------------------------------
    xt = x_ref[0]                                                   # (nt, 3) f32
    h = jnp.dot(xt.astype(_MM), w1p_ref[0],
                preferred_element_type=jnp.float32) + b1_ref[...]
    h = jnp.maximum(h, 0.0)                                         # (nt, 64)
    h = jnp.dot(h.astype(_MM), w2_ref[...],
                preferred_element_type=jnp.float32) + b2_ref[...]
    h = jnp.maximum(h, 0.0)                                         # (nt, 64) f32

    # store h channels-first (points on lanes -> lane-dense stores; this is the
    # layout the final bmm and the module output need)
    h_ref[0] = h.T.astype(h_ref.dtype)                              # (64, nt)

    # ---- fused T-Net-64 shared MLP + running point max (no HBM re-read of h) ----
    z = jnp.dot(h.astype(_MM), v1_ref[...],
                preferred_element_type=jnp.float32) + vb1_ref[...]
    z = jnp.maximum(z, 0.0)
    z = jnp.dot(z.astype(_MM), v2_ref[...],
                preferred_element_type=jnp.float32) + vb2_ref[...]
    z = jnp.maximum(z, 0.0)
    z = jnp.dot(z.astype(_MM), v3_ref[...],
                preferred_element_type=jnp.float32) + vb3_ref[...]
    z = jnp.maximum(z, 0.0)                                         # (nt, 1024)

    folded = _fold_rows_max(z)

    @pl.when(t == 0)
    def _():
        acc_ref[...] = folded

    @pl.when(t > 0)
    def _():
        acc_ref[...] = jnp.maximum(acc_ref[...], folded)

    @pl.when(t == pl.num_programs(1) - 1)
    def _():
        g_ref[0] = jnp.max(acc_ref[...], axis=0, keepdims=True).astype(g_ref.dtype)


def local_mlp_tnet64(x_t, w1p_t, b1, w2, b2, v1, vb1, v2, vb2, v3, vb3, *, nt):
    """x_t: (B, Np, 3); w1p_t: (B, 3, 64) per-batch folded weight (t3^T @ W1^T).

    Returns h: (B, 64, Np) in _MM dtype, and g64: (B, 1024) f32 (global feature).
    """
    B, Np, cin = x_t.shape
    d1 = w1p_t.shape[2]                                             # 64
    d2 = w2.shape[0]                                                # 64
    e1, e2, e3 = v1.shape[0], v2.shape[0], v3.shape[0]              # 64, 128, 1024
    h_out, g_out = pl.pallas_call(
        _local_mlp_tnet64_kernel,
        out_shape=(jax.ShapeDtypeStruct((B, d2, Np), _MM),
                   jax.ShapeDtypeStruct((B, 1, e3), jnp.float32)),
        grid=(B, Np // nt),
        in_specs=[
            pl.BlockSpec((1, nt, cin), lambda b, t: (b, t, 0)),
            pl.BlockSpec((1, cin, d1), lambda b, t: (b, 0, 0)),
            pl.BlockSpec((1, d1), lambda b, t: (0, 0)),
            pl.BlockSpec((d1, d2), lambda b, t: (0, 0)),
            pl.BlockSpec((1, d2), lambda b, t: (0, 0)),
            pl.BlockSpec((d2, e1), lambda b, t: (0, 0)),
            pl.BlockSpec((1, e1), lambda b, t: (0, 0)),
            pl.BlockSpec((e1, e2), lambda b, t: (0, 0)),
            pl.BlockSpec((1, e2), lambda b, t: (0, 0)),
            pl.BlockSpec((e2, e3), lambda b, t: (0, 0)),
            pl.BlockSpec((1, e3), lambda b, t: (0, 0)),
        ],
        out_specs=(pl.BlockSpec((1, d2, nt), lambda b, t: (b, 0, t)),
                   pl.BlockSpec((1, 1, e3), lambda b, t: (b, 0, 0))),
        scratch_shapes=[pltpu.VMEM((_RCHUNK, e3), jnp.float32)],
        compiler_params=pltpu.CompilerParams(
            dimension_semantics=("parallel", "arbitrary"),
            vmem_limit_bytes=_VMEM_LIMIT),
    )(x_t,
      w1p_t.astype(_MM), b1.reshape(1, -1),
      w2.T.astype(_MM), b2.reshape(1, -1),
      v1.T.astype(_MM), vb1.reshape(1, -1),
      v2.T.astype(_MM), vb2.reshape(1, -1),
      v3.T.astype(_MM), vb3.reshape(1, -1))
    return h_out, g_out[:, 0, :]


# ----------------------------------------------------------------------------
# Kernel 4: feature transform  local[b] = t64[b] @ h[b]   (torch.bmm)
# ----------------------------------------------------------------------------
def _apply_transform_kernel(t_ref, h_ref, o_ref):
    o_ref[0] = jnp.dot(t_ref[0], h_ref[0],
                       preferred_element_type=jnp.float32).astype(o_ref.dtype)


def apply_transform(t64, h, *, nt):
    B, C, Np = h.shape
    K = t64.shape[1]
    return pl.pallas_call(
        _apply_transform_kernel,
        out_shape=jax.ShapeDtypeStruct((B, K, Np), jnp.float32),
        grid=(B, Np // nt),
        in_specs=[
            pl.BlockSpec((1, K, C), lambda b, j: (b, 0, 0)),
            pl.BlockSpec((1, C, nt), lambda b, j: (b, 0, j)),
        ],
        out_specs=pl.BlockSpec((1, K, nt), lambda b, j: (b, 0, j)),
        compiler_params=pltpu.CompilerParams(
            dimension_semantics=("parallel", "parallel"),
            vmem_limit_bytes=_VMEM_LIMIT),
    )(t64.astype(_MM), h)


# ----------------------------------------------------------------------------
# Parameter init (deterministic; mimics PyTorch U(-1/sqrt(fan_in), 1/sqrt(fan_in)))
# ----------------------------------------------------------------------------
def _layer(key, cout, cin):
    k1, k2 = jax.random.split(key)
    bound = 1.0 / jnp.sqrt(jnp.float32(cin))
    w = jax.random.uniform(k1, (cout, cin), jnp.float32, -bound, bound)
    b = jax.random.uniform(k2, (cout,), jnp.float32, -bound, bound)
    return w, b


def init_tnet(key, k):
    ks = jax.random.split(key, 6)
    return {
        "c1": _layer(ks[0], 64, k),
        "c2": _layer(ks[1], 128, 64),
        "c3": _layer(ks[2], 1024, 128),
        "l1": _layer(ks[3], 512, 1024),
        "l2": _layer(ks[4], 256, 512),
        "l3": _layer(ks[5], k * k, 256),
    }


def init_pointnet_local_features(key):
    ks = jax.random.split(key, 4)
    return {
        "tnet3": init_tnet(ks[0], 3),
        "tnet64": init_tnet(ks[1], 64),
        "lf_c1": _layer(ks[2], 64, 3),
        "lf_c2": _layer(ks[3], 64, 64),
    }


# ----------------------------------------------------------------------------
# Forward pass (bn=False -> Identity slots)
# ----------------------------------------------------------------------------
def pointnet_local_features_forward(params, x):
    B, cin, N = x.shape
    n_pad = (-N) % _LANES
    # Pad the points axis with duplicates of the last point: max-pool invariant,
    # keeps every block (8, 128)-aligned.  (Zero padding would be WRONG: the
    # ReLU(b) of a padded zero column could exceed the true per-channel max.)
    x_p = jnp.pad(x, ((0, 0), (0, 0), (0, n_pad)), mode="edge") if n_pad else x
    Np = N + n_pad
    nt = _pick_point_tile(Np)
    x_t = jnp.transpose(x_p, (0, 2, 1))                             # (B, Np, 3)

    # ---- input T-Net (k = 3) ----
    p3 = params["tnet3"]
    g3 = tnet_conv_max(x_t, *p3["c1"], *p3["c2"], *p3["c3"], nt=nt)  # (B, 1024)
    t3 = tnet_fc(g3, *p3["l1"], *p3["l2"], *p3["l3"], 3)             # (B, 3, 3)

    # Fold the 3x3 input transform into the first local conv:
    #   W1 @ (t3 @ x) == (W1 @ t3) @ x  ->  points-first weight  t3^T @ W1^T.
    w1, b1 = params["lf_c1"]
    w1p_t = jnp.einsum("bji,oj->bio", t3, w1, precision=_HI)         # (B, 3, 64)
    w2, b2 = params["lf_c2"]

    # ---- fused local shared MLP + T-Net-64 conv/max (one pass over the points) ----
    p64 = params["tnet64"]
    h, g64 = local_mlp_tnet64(x_t, w1p_t, b1, w2, b2,
                              *p64["c1"], *p64["c2"], *p64["c3"], nt=nt)
    t64 = tnet_fc(g64, *p64["l1"], *p64["l2"], *p64["l3"], 64)       # (B, 64, 64)

    # ---- feature transform (torch.bmm) ----
    local = apply_transform(t64, h, nt=nt)                           # (B, 64, Np)
    if n_pad:
        local = local[:, :, :N]
    return local, t64


# ----------------------------------------------------------------------------
# Pure-JAX f32 reference (for correctness check)
# ----------------------------------------------------------------------------
def _ref_conv_relu(x, w, b):
    return jax.nn.relu(jnp.einsum("oc,bcn->bon", w, x, precision=_HI)
                       + b[None, :, None])


def _ref_linear(x, w, b):
    return jnp.einsum("bi,oi->bo", x, w, precision=_HI) + b[None, :]


def _ref_tnet(p, x, k):
    B = x.shape[0]
    h = _ref_conv_relu(x, *p["c1"])
    h = _ref_conv_relu(h, *p["c2"])
    h = _ref_conv_relu(h, *p["c3"])
    g = jnp.max(h, axis=-1)
    h = jax.nn.relu(_ref_linear(g, *p["l1"]))
    h = jax.nn.relu(_ref_linear(h, *p["l2"]))
    y = _ref_linear(h, *p["l3"])
    return y.reshape(B, k, k) + jnp.eye(k, dtype=y.dtype)[None]


def _ref_forward(params, x):
    t3 = _ref_tnet(params["tnet3"], x, 3)
    xt = jnp.einsum("bij,bjn->bin", t3, x, precision=_HI)
    h = _ref_conv_relu(xt, *params["lf_c1"])
    h = _ref_conv_relu(h, *params["lf_c2"])
    t64 = _ref_tnet(params["tnet64"], h, 64)
    local = jnp.einsum("bij,bjn->bin", t64, h, precision=_HI)
    return local, t64


# ----------------------------------------------------------------------------
if __name__ == "__main__":
    B, C_IN, N_POINTS = 2, 3, 16

    key = jax.random.PRNGKey(0)
    pkey, xkey = jax.random.split(key)
    params = init_pointnet_local_features(pkey)
    x = jax.random.normal(xkey, (B, C_IN, N_POINTS), jnp.float32)

    fwd = jax.jit(pointnet_local_features_forward)
    local, t64 = fwd(params, x)
    local = jax.block_until_ready(local)
    t64 = jax.block_until_ready(t64)

    assert local.shape == (B, 64, N_POINTS)
    assert t64.shape == (B, 64, 64)
    assert bool(jnp.all(jnp.isfinite(local)))
    assert bool(jnp.all(jnp.isfinite(t64)))

    ref_local, ref_t64 = _ref_forward(params, x)
    if _MM is jnp.bfloat16:
        tol = dict(atol=2e-2, rtol=2e-2)     # bf16 MXU operands, f32 accumulate
    else:
        tol = dict(atol=2e-3, rtol=2e-3)
    assert bool(jnp.allclose(t64, ref_t64, **tol)), "t64 mismatch vs reference"
    assert bool(jnp.allclose(local, ref_local, **tol)), "local mismatch vs reference"

    print("KERNEL_OK")
</pallas_src>

<mosaic_0001>
module attributes {stable_mosaic.version = 11 : i64} {
  func.func @_tnet_conv_max_kernel(%arg0: i32, %arg1: i32, %arg2: memref<1x128x3xf32, #tpu.memory_space<vmem>>, %arg3: memref<3x64xbf16, #tpu.memory_space<vmem>>, %arg4: memref<1x64xf32, #tpu.memory_space<vmem>>, %arg5: memref<64x128xbf16, #tpu.memory_space<vmem>>, %arg6: memref<1x128xf32, #tpu.memory_space<vmem>>, %arg7: memref<128x1024xbf16, #tpu.memory_space<vmem>>, %arg8: memref<1x1024xf32, #tpu.memory_space<vmem>>, %arg9: memref<1x1x1024xf32, #tpu.memory_space<vmem>>, %arg10: memref<16x1024xf32, #tpu.memory_space<vmem>>) attributes {dimension_semantics = [#tpu.dimension_semantics<parallel>, #tpu.dimension_semantics<arbitrary>], iteration_bounds = array<i64: 2, 1>, scalar_prefetch = 0 : i64, scratch_operands = 1 : i64, tpu.core_type = #tpu.core_type<tc>, window_params = [{transform_indices = @transform_0, window_bounds = array<i64: 1, 128, 3>}, {pipeline_mode = #tpu.pipeline_mode<synchronous>, transform_indices = @transform_1, window_bounds = array<i64: 3, 64>}, {pipeline_mode = #tpu.pipeline_mode<synchronous>, transform_indices = @transform_2, window_bounds = array<i64: 1, 64>}, {pipeline_mode = #tpu.pipeline_mode<synchronous>, transform_indices = @transform_3, window_bounds = array<i64: 64, 128>}, {pipeline_mode = #tpu.pipeline_mode<synchronous>, transform_indices = @transform_4, window_bounds = array<i64: 1, 128>}, {pipeline_mode = #tpu.pipeline_mode<synchronous>, transform_indices = @transform_5, window_bounds = array<i64: 128, 1024>}, {pipeline_mode = #tpu.pipeline_mode<synchronous>, transform_indices = @transform_6, window_bounds = array<i64: 1, 1024>}, {transform_indices = @transform_7, window_bounds = array<i64: 1, 1, 1024>}]} {
    %c0 = arith.constant 0 : index
    %c0_0 = arith.constant 0 : index
    %c0_1 = arith.constant 0 : index
    %0 = vector.load %arg2[%c0, %c0_0, %c0_1] : memref<1x128x3xf32, #tpu.memory_space<vmem>>, vector<1x128x3xf32>
    %1 = vector.shape_cast %0 : vector<1x128x3xf32> to vector<128x3xf32>
    %2 = arith.truncf %1 : vector<128x3xf32> to vector<128x3xbf16>
    %c0_2 = arith.constant 0 : index
    %c0_3 = arith.constant 0 : index
    %3 = vector.load %arg3[%c0_2, %c0_3] : memref<3x64xbf16, #tpu.memory_space<vmem>>, vector<3x64xbf16>
    %cst = arith.constant dense<0.000000e+00> : vector<128x64xf32>
    %4 = tpu.matmul %2, %3, %cst {dimension_numbers = #tpu.dot_dimension_numbers<[1], [0], [0], [1], [0, 0, 1, 1], [], []>} : vector<128x3xbf16>, vector<3x64xbf16>, vector<128x64xf32> -> vector<128x64xf32>
    %c0_4 = arith.constant 0 : index
    %c0_5 = arith.constant 0 : index
    %5 = vector.load %arg4[%c0_4, %c0_5] : memref<1x64xf32, #tpu.memory_space<vmem>>, vector<1x64xf32>
    %6 = vector.broadcast %5 : vector<1x64xf32> to vector<128x64xf32>
    %7 = arith.addf %4, %6 : vector<128x64xf32>
    %cst_6 = arith.constant 0.000000e+00 : f32
    %8 = vector.broadcast %cst_6 : f32 to vector<128x64xf32>
    %9 = arith.maximumf %7, %8 : vector<128x64xf32>
    %10 = arith.truncf %9 : vector<128x64xf32> to vector<128x64xbf16>
    %c0_7 = arith.constant 0 : index
    %c0_8 = arith.constant 0 : index
    %11 = vector.load %arg5[%c0_7, %c0_8] : memref<64x128xbf16, #tpu.memory_space<vmem>>, vector<64x128xbf16>
    %cst_9 = arith.constant dense<0.000000e+00> : vector<128x128xf32>
    %12 = tpu.matmul %10, %11, %cst_9 {dimension_numbers = #tpu.dot_dimension_numbers<[1], [0], [0], [1], [0, 0, 1, 1], [], []>} : vector<128x64xbf16>, vector<64x128xbf16>, vector<128x128xf32> -> vector<128x128xf32>
    %c0_10 = arith.constant 0 : index
    %c0_11 = arith.constant 0 : index
    %13 = vector.load %arg6[%c0_10, %c0_11] : memref<1x128xf32, #tpu.memory_space<vmem>>, vector<1x128xf32>
    %14 = vector.broadcast %13 : vector<1x128xf32> to vector<128x128xf32>
    %15 = arith.addf %12, %14 : vector<128x128xf32>
    %cst_12 = arith.constant 0.000000e+00 : f32
    %16 = vector.broadcast %cst_12 : f32 to vector<128x128xf32>
    %17 = arith.maximumf %15, %16 : vector<128x128xf32>
    %18 = arith.truncf %17 : vector<128x128xf32> to vector<128x128xbf16>
    %c0_13 = arith.constant 0 : index
    %c0_14 = arith.constant 0 : index
    %19 = vector.load %arg7[%c0_13, %c0_14] : memref<128x1024xbf16, #tpu.memory_space<vmem>>, vector<128x1024xbf16>
    %cst_15 = arith.constant dense<0.000000e+00> : vector<128x1024xf32>
    %20 = tpu.matmul %18, %19, %cst_15 {dimension_numbers = #tpu.dot_dimension_numbers<[1], [0], [0], [1], [0, 0, 1, 1], [], []>} : vector<128x128xbf16>, vector<128x1024xbf16>, vector<128x1024xf32> -> vector<128x1024xf32>
    %c0_16 = arith.constant 0 : index
    %c0_17 = arith.constant 0 : index
    %21 = vector.load %arg8[%c0_16, %c0_17] : memref<1x1024xf32, #tpu.memory_space<vmem>>, vector<1x1024xf32>
    %22 = vector.broadcast %21 : vector<1x1024xf32> to vector<128x1024xf32>
    %23 = arith.addf %20, %22 : vector<128x1024xf32>
    %cst_18 = arith.constant 0.000000e+00 : f32
    %24 = vector.broadcast %cst_18 : f32 to vector<128x1024xf32>
    %25 = arith.maximumf %23, %24 : vector<128x1024xf32>
    %26 = vector.extract_strided_slice %25 {offsets = [0, 0], sizes = [16, 1024], strides = [1, 1]} : vector<128x1024xf32> to vector<16x1024xf32>
    %27 = vector.extract_strided_slice %25 {offsets = [16, 0], sizes = [16, 1024], strides = [1, 1]} : vector<128x1024xf32> to vector<16x1024xf32>
    %28 = arith.maximumf %26, %27 : vector<16x1024xf32>
    %29 = vector.extract_strided_slice %25 {offsets = [32, 0], sizes = [16, 1024], strides = [1, 1]} : vector<128x1024xf32> to vector<16x1024xf32>
    %30 = arith.maximumf %28, %29 : vector<16x1024xf32>
    %31 = vector.extract_strided_slice %25 {offsets = [48, 0], sizes = [16, 1024], strides = [1, 1]} : vector<128x1024xf32> to vector<16x1024xf32>
    %32 = arith.maximumf %30, %31 : vector<16x1024xf32>
    %33 = vector.extract_strided_slice %25 {offsets = [64, 0], sizes = [16, 1024], strides = [1, 1]} : vector<128x1024xf32> to vector<16x1024xf32>
    %34 = arith.maximumf %32, %33 : vector<16x1024xf32>
    %35 = vector.extract_strided_slice %25 {offsets = [80, 0], sizes = [16, 1024], strides = [1, 1]} : vector<128x1024xf32> to vector<16x1024xf32>
    %36 = arith.maximumf %34, %35 : vector<16x1024xf32>
    %37 = vector.extract_strided_slice %25 {offsets = [96, 0], sizes = [16, 1024], strides = [1, 1]} : vector<128x1024xf32> to vector<16x1024xf32>
    %38 = arith.maximumf %36, %37 : vector<16x1024xf32>
    %39 = vector.extract_strided_slice %25 {offsets = [112, 0], sizes = [16, 1024], strides = [1, 1]} : vector<128x1024xf32> to vector<16x1024xf32>
    %40 = arith.maximumf %38, %39 : vector<16x1024xf32>
    %c0_i32 = arith.constant 0 : i32
    %41 = arith.cmpi eq, %arg1, %c0_i32 : i32
    %42 = arith.extui %41 : i1 to i32
    %c0_i32_19 = arith.constant 0 : i32
    %43 = arith.cmpi ne, %42, %c0_i32_19 : i32
    scf.if %43 {
      %c0_24 = arith.constant 0 : index
      %c0_25 = arith.constant 0 : index
      %50 = vector.load %arg10[%c0_24, %c0_25] : memref<16x1024xf32, #tpu.memory_space<vmem>>, vector<16x1024xf32>
      tpu.vector_store %arg10[%c0_24, %c0_25], %40 {strides = array<i32>} : memref<16x1024xf32, #tpu.memory_space<vmem>>, vector<16x1024xf32>,
    } else {
    }
    %c0_i32_20 = arith.constant 0 : i32
    %44 = arith.cmpi sgt, %arg1, %c0_i32_20 : i32
    %45 = arith.extui %44 : i1 to i32
    %c0_i32_21 = arith.constant 0 : i32
    %46 = arith.cmpi ne, %45, %c0_i32_21 : i32
    scf.if %46 {
      %c0_24 = arith.constant 0 : index
      %c0_25 = arith.constant 0 : index
      %50 = vector.load %arg10[%c0_24, %c0_25] : memref<16x1024xf32, #tpu.memory_space<vmem>>, vector<16x1024xf32>
      %51 = arith.maximumf %50, %40 : vector<16x1024xf32>
      %c0_26 = arith.constant 0 : index
      %c0_27 = arith.constant 0 : index
      %52 = vector.load %arg10[%c0_26, %c0_27] : memref<16x1024xf32, #tpu.memory_space<vmem>>, vector<16x1024xf32>
      tpu.vector_store %arg10[%c0_26, %c0_27], %51 {strides = array<i32>} : memref<16x1024xf32, #tpu.memory_space<vmem>>, vector<16x1024xf32>,
    } else {
    }
    %c0_i32_22 = arith.constant 0 : i32
    %47 = arith.cmpi eq, %arg1, %c0_i32_22 : i32
    %48 = arith.extui %47 : i1 to i32
    %c0_i32_23 = arith.constant 0 : i32
    %49 = arith.cmpi ne, %48, %c0_i32_23 : i32
    scf.if %49 {
      %c0_24 = arith.constant 0 : index
      %c0_25 = arith.constant 0 : index
      %50 = vector.load %arg10[%c0_24, %c0_25] : memref<16x1024xf32, #tpu.memory_space<vmem>>, vector<16x1024xf32>
      %cst_26 = arith.constant dense<0xFF800000> : vector<1024xf32>
      %51 = vector.multi_reduction <maximumf>, %50, %cst_26 [0] : vector<16x1024xf32> to vector<1024xf32>
      %52 = vector.shape_cast %51 : vector<1024xf32> to vector<1x1024xf32>
      %c0_27 = arith.constant 0 : index
      %c0_28 = arith.constant 0 : index
      %c0_29 = arith.constant 0 : index
      %53 = vector.load %arg9[%c0_27, %c0_28, %c0_29] : memref<1x1x1024xf32, #tpu.memory_space<vmem>>, vector<1x1x1024xf32>
      %54 = vector.shape_cast %53 : vector<1x1x1024xf32> to vector<1x1024xf32>
      %55 = vector.shape_cast %52 : vector<1x1024xf32> to vector<1x1x1024xf32>
      tpu.vector_store %arg9[%c0_27, %c0_28, %c0_29], %55 {strides = array<i32>} : memref<1x1x1024xf32, #tpu.memory_space<vmem>>, vector<1x1x1024xf32>,
    } else {
    }
    return
  }
  func.func @transform_0(%arg0: i32, %arg1: i32) -> (i32, i32, i32) {
    %c0_i32 = arith.constant 0 : i32
    %c0_i32_0 = arith.constant 0 : i32
    return %arg0, %arg1, %c0_i32 : i32, i32, i32
  }
  func.func @transform_1(%arg0: i32, %arg1: i32) -> (i32, i32) {
    %c0_i32 = arith.constant 0 : i32
    %c0_i32_0 = arith.constant 0 : i32
    %c0_i32_1 = arith.constant 0 : i32
    return %c0_i32, %c0_i32_0 : i32, i32
  }
  func.func @transform_2(%arg0: i32, %arg1: i32) -> (i32, i32) {
    %c0_i32 = arith.constant 0 : i32
    %c0_i32_0 = arith.constant 0 : i32
    %c0_i32_1 = arith.constant 0 : i32
    return %c0_i32, %c0_i32_0 : i32, i32
  }
  func.func @transform_3(%arg0: i32, %arg1: i32) -> (i32, i32) {
    %c0_i32 = arith.constant 0 : i32
    %c0_i32_0 = arith.constant 0 : i32
    %c0_i32_1 = arith.constant 0 : i32
    return %c0_i32, %c0_i32_0 : i32, i32
  }
  func.func @transform_4(%arg0: i32, %arg1: i32) -> (i32, i32) {
    %c0_i32 = arith.constant 0 : i32
    %c0_i32_0 = arith.constant 0 : i32
    %c0_i32_1 = arith.constant 0 : i32
    return %c0_i32, %c0_i32_0 : i32, i32
  }
  func.func @transform_5(%arg0: i32, %arg1: i32) -> (i32, i32) {
    %c0_i32 = arith.constant 0 : i32
    %c0_i32_0 = arith.constant 0 : i32
    %c0_i32_1 = arith.constant 0 : i32
    return %c0_i32, %c0_i32_0 : i32, i32
  }
  func.func @transform_6(%arg0: i32, %arg1: i32) -> (i32, i32) {
    %c0_i32 = arith.constant 0 : i32
    %c0_i32_0 = arith.constant 0 : i32
    %c0_i32_1 = arith.constant 0 : i32
    return %c0_i32, %c0_i32_0 : i32, i32
  }
  func.func @transform_7(%arg0: i32, %arg1: i32) -> (i32, i32, i32) {
    %c0_i32 = arith.constant 0 : i32
    %c0_i32_0 = arith.constant 0 : i32
    %c0_i32_1 = arith.constant 0 : i32
    return %arg0, %c0_i32, %c0_i32_0 : i32, i32, i32
  }
}

module attributes {stable_mosaic.version = 11 : i64} {
  func.func @_tnet_fc_kernel(%arg0: memref<2x1024xf32, #tpu.memory_space<vmem>>, %arg1: memref<1024x512xbf16, #tpu.memory_space<vmem>>, %arg2: memref<1x512xf32, #tpu.memory_space<vmem>>, %arg3: memref<512x256xbf16, #tpu.memory_space<vmem>>, %arg4: memref<1x256xf32, #tpu.memory_space<vmem>>, %arg5: memref<256x9xbf16, #tpu.memory_space<vmem>>, %arg6: memref<1x9xf32, #tpu.memory_space<vmem>>, %arg7: memref<2x9xf32, #tpu.memory_space<vmem>>) attributes {dimension_semantics = [], scalar_prefetch = 0 : i64, scratch_operands = 0 : i64, tpu.core_type = #tpu.core_type<tc>} {
    %c0 = arith.constant 0 : index
    %c0_0 = arith.constant 0 : index
    %0 = vector.load %arg0[%c0, %c0_0] : memref<2x1024xf32, #tpu.memory_space<vmem>>, vector<2x1024xf32>
    %1 = arith.truncf %0 : vector<2x1024xf32> to vector<2x1024xbf16>
    %c0_1 = arith.constant 0 : index
    %c0_2 = arith.constant 0 : index
    %2 = vector.load %arg1[%c0_1, %c0_2] : memref<1024x512xbf16, #tpu.memory_space<vmem>>, vector<1024x512xbf16>
    %cst = arith.constant dense<0.000000e+00> : vector<2x512xf32>
    %3 = tpu.matmul %1, %2, %cst {dimension_numbers = #tpu.dot_dimension_numbers<[1], [0], [0], [1], [0, 0, 1, 1], [], []>} : vector<2x1024xbf16>, vector<1024x512xbf16>, vector<2x512xf32> -> vector<2x512xf32>
    %c0_3 = arith.constant 0 : index
    %c0_4 = arith.constant 0 : index
    %4 = vector.load %arg2[%c0_3, %c0_4] : memref<1x512xf32, #tpu.memory_space<vmem>>, vector<1x512xf32>
    %5 = vector.broadcast %4 : vector<1x512xf32> to vector<2x512xf32>
    %6 = arith.addf %3, %5 : vector<2x512xf32>
    %cst_5 = arith.constant 0.000000e+00 : f32
    %7 = vector.broadcast %cst_5 : f32 to vector<2x512xf32>
    %8 = arith.maximumf %6, %7 : vector<2x512xf32>
    %9 = arith.truncf %8 : vector<2x512xf32> to vector<2x512xbf16>
    %c0_6 = arith.constant 0 : index
    %c0_7 = arith.constant 0 : index
    %10 = vector.load %arg3[%c0_6, %c0_7] : memref<512x256xbf16, #tpu.memory_space<vmem>>, vector<512x256xbf16>
    %cst_8 = arith.constant dense<0.000000e+00> : vector<2x256xf32>
    %11 = tpu.matmul %9, %10, %cst_8 {dimension_numbers = #tpu.dot_dimension_numbers<[1], [0], [0], [1], [0, 0, 1, 1], [], []>} : vector<2x512xbf16>, vector<512x256xbf16>, vector<2x256xf32> -> vector<2x256xf32>
    %c0_9 = arith.constant 0 : index
    %c0_10 = arith.constant 0 : index
    %12 = vector.load %arg4[%c0_9, %c0_10] : memref<1x256xf32, #tpu.memory_space<vmem>>, vector<1x256xf32>
    %13 = vector.broadcast %12 : vector<1x256xf32> to vector<2x256xf32>
    %14 = arith.addf %11, %13 : vector<2x256xf32>
    %cst_11 = arith.constant 0.000000e+00 : f32
    %15 = vector.broadcast %cst_11 : f32 to vector<2x256xf32>
    %16 = arith.maximumf %14, %15 : vector<2x256xf32>
    %17 = arith.truncf %16 : vector<2x256xf32> to vector<2x256xbf16>
    %c0_12 = arith.constant 0 : index
    %c0_13 = arith.constant 0 : index
    %18 = vector.load %arg5[%c0_12, %c0_13] : memref<256x9xbf16, #tpu.memory_space<vmem>>, vector<256x9xbf16>
    %cst_14 = arith.constant dense<0.000000e+00> : vector<2x9xf32>
    %19 = tpu.matmul %17, %18, %cst_14 {dimension_numbers = #tpu.dot_dimension_numbers<[1], [0], [0], [1], [0, 0, 1, 1], [], []>} : vector<2x256xbf16>, vector<256x9xbf16>, vector<2x9xf32> -> vector<2x9xf32>
    %c0_15 = arith.constant 0 : index
    %c0_16 = arith.constant 0 : index
    %20 = vector.load %arg6[%c0_15, %c0_16] : memref<1x9xf32, #tpu.memory_space<vmem>>, vector<1x9xf32>
    %21 = vector.broadcast %20 : vector<1x9xf32> to vector<2x9xf32>
    %22 = arith.addf %19, %21 : vector<2x9xf32>
    %c0_17 = arith.constant 0 : index
    %c0_18 = arith.constant 0 : index
    %23 = vector.load %arg7[%c0_17, %c0_18] : memref<2x9xf32, #tpu.memory_space<vmem>>, vector<2x9xf32>
    tpu.vector_store %arg7[%c0_17, %c0_18], %22 {strides = array<i32>} : memref<2x9xf32, #tpu.memory_space<vmem>>, vector<2x9xf32>,
    return
  }
}

module attributes {stable_mosaic.version = 11 : i64} {
  func.func @_local_mlp_tnet64_kernel(%arg0: i32, %arg1: i32, %arg2: memref<1x128x3xf32, #tpu.memory_space<vmem>>, %arg3: memref<1x3x64xbf16, #tpu.memory_space<vmem>>, %arg4: memref<1x64xf32, #tpu.memory_space<vmem>>, %arg5: memref<64x64xbf16, #tpu.memory_space<vmem>>, %arg6: memref<1x64xf32, #tpu.memory_space<vmem>>, %arg7: memref<64x64xbf16, #tpu.memory_space<vmem>>, %arg8: memref<1x64xf32, #tpu.memory_space<vmem>>, %arg9: memref<64x128xbf16, #tpu.memory_space<vmem>>, %arg10: memref<1x128xf32, #tpu.memory_space<vmem>>, %arg11: memref<128x1024xbf16, #tpu.memory_space<vmem>>, %arg12: memref<1x1024xf32, #tpu.memory_space<vmem>>, %arg13: memref<1x64x128xbf16, #tpu.memory_space<vmem>>, %arg14: memref<1x1x1024xf32, #tpu.memory_space<vmem>>, %arg15: memref<16x1024xf32, #tpu.memory_space<vmem>>) attributes {dimension_semantics = [#tpu.dimension_semantics<parallel>, #tpu.dimension_semantics<arbitrary>], iteration_bounds = array<i64: 2, 1>, scalar_prefetch = 0 : i64, scratch_operands = 1 : i64, tpu.core_type = #tpu.core_type<tc>, window_params = [{transform_indices = @transform_0, window_bounds = array<i64: 1, 128, 3>}, {transform_indices = @transform_1, window_bounds = array<i64: 1, 3, 64>}, {pipeline_mode = #tpu.pipeline_mode<synchronous>, transform_indices = @transform_2, window_bounds = array<i64: 1, 64>}, {pipeline_mode = #tpu.pipeline_mode<synchronous>, transform_indices = @transform_3, window_bounds = array<i64: 64, 64>}, {pipeline_mode = #tpu.pipeline_mode<synchronous>, transform_indices = @transform_4, window_bounds = array<i64: 1, 64>}, {pipeline_mode = #tpu.pipeline_mode<synchronous>, transform_indices = @transform_5, window_bounds = array<i64: 64, 64>}, {pipeline_mode = #tpu.pipeline_mode<synchronous>, transform_indices = @transform_6, window_bounds = array<i64: 1, 64>}, {pipeline_mode = #tpu.pipeline_mode<synchronous>, transform_indices = @transform_7, window_bounds = array<i64: 64, 128>}, {pipeline_mode = #tpu.pipeline_mode<synchronous>, transform_indices = @transform_8, window_bounds = array<i64: 1, 128>}, {pipeline_mode = #tpu.pipeline_mode<synchronous>, transform_indices = @transform_9, window_bounds = array<i64: 128, 1024>}, {pipeline_mode = #tpu.pipeline_mode<synchronous>, transform_indices = @transform_10, window_bounds = array<i64: 1, 1024>}, {transform_indices = @transform_11, window_bounds = array<i64: 1, 64, 128>}, {transform_indices = @transform_12, window_bounds = array<i64: 1, 1, 1024>}]} {
    %c0 = arith.constant 0 : index
    %c0_0 = arith.constant 0 : index
    %c0_1 = arith.constant 0 : index
    %0 = vector.load %arg2[%c0, %c0_0, %c0_1] : memref<1x128x3xf32, #tpu.memory_space<vmem>>, vector<1x128x3xf32>
    %1 = vector.shape_cast %0 : vector<1x128x3xf32> to vector<128x3xf32>
    %2 = arith.truncf %1 : vector<128x3xf32> to vector<128x3xbf16>
    %c0_2 = arith.constant 0 : index
    %c0_3 = arith.constant 0 : index
    %c0_4 = arith.constant 0 : index
    %3 = vector.load %arg3[%c0_2, %c0_3, %c0_4] : memref<1x3x64xbf16, #tpu.memory_space<vmem>>, vector<1x3x64xbf16>
    %4 = vector.shape_cast %3 : vector<1x3x64xbf16> to vector<3x64xbf16>
    %cst = arith.constant dense<0.000000e+00> : vector<128x64xf32>
    %5 = tpu.matmul %2, %4, %cst {dimension_numbers = #tpu.dot_dimension_numbers<[1], [0], [0], [1], [0, 0, 1, 1], [], []>} : vector<128x3xbf16>, vector<3x64xbf16>, vector<128x64xf32> -> vector<128x64xf32>
    %c0_5 = arith.constant 0 : index
    %c0_6 = arith.constant 0 : index
    %6 = vector.load %arg4[%c0_5, %c0_6] : memref<1x64xf32, #tpu.memory_space<vmem>>, vector<1x64xf32>
    %7 = vector.broadcast %6 : vector<1x64xf32> to vector<128x64xf32>
    %8 = arith.addf %5, %7 : vector<128x64xf32>
    %cst_7 = arith.constant 0.000000e+00 : f32
    %9 = vector.broadcast %cst_7 : f32 to vector<128x64xf32>
    %10 = arith.maximumf %8, %9 : vector<128x64xf32>
    %11 = arith.truncf %10 : vector<128x64xf32> to vector<128x64xbf16>
    %c0_8 = arith.constant 0 : index
    %c0_9 = arith.constant 0 : index
    %12 = vector.load %arg5[%c0_8, %c0_9] : memref<64x64xbf16, #tpu.memory_space<vmem>>, vector<64x64xbf16>
    %cst_10 = arith.constant dense<0.000000e+00> : vector<128x64xf32>
    %13 = tpu.matmul %11, %12, %cst_10 {dimension_numbers = #tpu.dot_dimension_numbers<[1], [0], [0], [1], [0, 0, 1, 1], [], []>} : vector<128x64xbf16>, vector<64x64xbf16>, vector<128x64xf32> -> vector<128x64xf32>
    %c0_11 = arith.constant 0 : index
    %c0_12 = arith.constant 0 : index
    %14 = vector.load %arg6[%c0_11, %c0_12] : memref<1x64xf32, #tpu.memory_space<vmem>>, vector<1x64xf32>
    %15 = vector.broadcast %14 : vector<1x64xf32> to vector<128x64xf32>
    %16 = arith.addf %13, %15 : vector<128x64xf32>
    %cst_13 = arith.constant 0.000000e+00 : f32
    %17 = vector.broadcast %cst_13 : f32 to vector<128x64xf32>
    %18 = arith.maximumf %16, %17 : vector<128x64xf32>
    %19 = tpu.transpose %18, [1, 0] : vector<128x64xf32> -> vector<64x128xf32>
    %20 = arith.truncf %19 : vector<64x128xf32> to vector<64x128xbf16>
    %c0_14 = arith.constant 0 : index
    %c0_15 = arith.constant 0 : index
    %c0_16 = arith.constant 0 : index
    %21 = vector.load %arg13[%c0_14, %c0_15, %c0_16] : memref<1x64x128xbf16, #tpu.memory_space<vmem>>, vector<1x64x128xbf16>
    %22 = vector.shape_cast %21 : vector<1x64x128xbf16> to vector<64x128xbf16>
    %23 = vector.shape_cast %20 : vector<64x128xbf16> to vector<1x64x128xbf16>
    tpu.vector_store %arg13[%c0_14, %c0_15, %c0_16], %23 {strides = array<i32>} : memref<1x64x128xbf16, #tpu.memory_space<vmem>>, vector<1x64x128xbf16>,
    %24 = arith.truncf %18 : vector<128x64xf32> to vector<128x64xbf16>
    %c0_17 = arith.constant 0 : index
    %c0_18 = arith.constant 0 : index
    %25 = vector.load %arg7[%c0_17, %c0_18] : memref<64x64xbf16, #tpu.memory_space<vmem>>, vector<64x64xbf16>
    %cst_19 = arith.constant dense<0.000000e+00> : vector<128x64xf32>
    %26 = tpu.matmul %24, %25, %cst_19 {dimension_numbers = #tpu.dot_dimension_numbers<[1], [0], [0], [1], [0, 0, 1, 1], [], []>} : vector<128x64xbf16>, vector<64x64xbf16>, vector<128x64xf32> -> vector<128x64xf32>
    %c0_20 = arith.constant 0 : index
    %c0_21 = arith.constant 0 : index
    %27 = vector.load %arg8[%c0_20, %c0_21] : memref<1x64xf32, #tpu.memory_space<vmem>>, vector<1x64xf32>
    %28 = vector.broadcast %27 : vector<1x64xf32> to vector<128x64xf32>
    %29 = arith.addf %26, %28 : vector<128x64xf32>
    %cst_22 = arith.constant 0.000000e+00 : f32
    %30 = vector.broadcast %cst_22 : f32 to vector<128x64xf32>
    %31 = arith.maximumf %29, %30 : vector<128x64xf32>
    %32 = arith.truncf %31 : vector<128x64xf32> to vector<128x64xbf16>
    %c0_23 = arith.constant 0 : index
    %c0_24 = arith.constant 0 : index
    %33 = vector.load %arg9[%c0_23, %c0_24] : memref<64x128xbf16, #tpu.memory_space<vmem>>, vector<64x128xbf16>
    %cst_25 = arith.constant dense<0.000000e+00> : vector<128x128xf32>
    %34 = tpu.matmul %32, %33, %cst_25 {dimension_numbers = #tpu.dot_dimension_numbers<[1], [0], [0], [1], [0, 0, 1, 1], [], []>} : vector<128x64xbf16>, vector<64x128xbf16>, vector<128x128xf32> -> vector<128x128xf32>
    %c0_26 = arith.constant 0 : index
    %c0_27 = arith.constant 0 : index
    %35 = vector.load %arg10[%c0_26, %c0_27] : memref<1x128xf32, #tpu.memory_space<vmem>>, vector<1x128xf32>
    %36 = vector.broadcast %35 : vector<1x128xf32> to vector<128x128xf32>
    %37 = arith.addf %34, %36 : vector<128x128xf32>
    %cst_28 = arith.constant 0.000000e+00 : f32
    %38 = vector.broadcast %cst_28 : f32 to vector<128x128xf32>
    %39 = arith.maximumf %37, %38 : vector<128x128xf32>
    %40 = arith.truncf %39 : vector<128x128xf32> to vector<128x128xbf16>
    %c0_29 = arith.constant 0 : index
    %c0_30 = arith.constant 0 : index
    %41 = vector.load %arg11[%c0_29, %c0_30] : memref<128x1024xbf16, #tpu.memory_space<vmem>>, vector<128x1024xbf16>
    %cst_31 = arith.constant dense<0.000000e+00> : vector<128x1024xf32>
    %42 = tpu.matmul %40, %41, %cst_31 {dimension_numbers = #tpu.dot_dimension_numbers<[1], [0], [0], [1], [0, 0, 1, 1], [], []>} : vector<128x128xbf16>, vector<128x1024xbf16>, vector<128x1024xf32> -> vector<128x1024xf32>
    %c0_32 = arith.constant 0 : index
    %c0_33 = arith.constant 0 : index
    %43 = vector.load %arg12[%c0_32, %c0_33] : memref<1x1024xf32, #tpu.memory_space<vmem>>, vector<1x1024xf32>
    %44 = vector.broadcast %43 : vector<1x1024xf32> to vector<128x1024xf32>
    %45 = arith.addf %42, %44 : vector<128x1024xf32>
    %cst_34 = arith.constant 0.000000e+00 : f32
    %46 = vector.broadcast %cst_34 : f32 to vector<128x1024xf32>
    %47 = arith.maximumf %45, %46 : vector<128x1024xf32>
    %48 = vector.extract_strided_slice %47 {offsets = [0, 0], sizes = [16, 1024], strides = [1, 1]} : vector<128x1024xf32> to vector<16x1024xf32>
    %49 = vector.extract_strided_slice %47 {offsets = [16, 0], sizes = [16, 1024], strides = [1, 1]} : vector<128x1024xf32> to vector<16x1024xf32>
    %50 = arith.maximumf %48, %49 : vector<16x1024xf32>
    %51 = vector.extract_strided_slice %47 {offsets = [32, 0], sizes = [16, 1024], strides = [1, 1]} : vector<128x1024xf32> to vector<16x1024xf32>
    %52 = arith.maximumf %50, %51 : vector<16x1024xf32>
    %53 = vector.extract_strided_slice %47 {offsets = [48, 0], sizes = [16, 1024], strides = [1, 1]} : vector<128x1024xf32> to vector<16x1024xf32>
    %54 = arith.maximumf %52, %53 : vector<16x1024xf32>
    %55 = vector.extract_strided_slice %47 {offsets = [64, 0], sizes = [16, 1024], strides = [1, 1]} : vector<128x1024xf32> to vector<16x1024xf32>
    %56 = arith.maximumf %54, %55 : vector<16x1024xf32>
    %57 = vector.extract_strided_slice %47 {offsets = [80, 0], sizes = [16, 1024], strides = [1, 1]} : vector<128x1024xf32> to vector<16x1024xf32>
    %58 = arith.maximumf %56, %57 : vector<16x1024xf32>
    %59 = vector.extract_strided_slice %47 {offsets = [96, 0], sizes = [16, 1024], strides = [1, 1]} : vector<128x1024xf32> to vector<16x1024xf32>
    %60 = arith.maximumf %58, %59 : vector<16x1024xf32>
    %61 = vector.extract_strided_slice %47 {offsets = [112, 0], sizes = [16, 1024], strides = [1, 1]} : vector<128x1024xf32> to vector<16x1024xf32>
    %62 = arith.maximumf %60, %61 : vector<16x1024xf32>
    %c0_i32 = arith.constant 0 : i32
    %63 = arith.cmpi eq, %arg1, %c0_i32 : i32
    %64 = arith.extui %63 : i1 to i32
    %c0_i32_35 = arith.constant 0 : i32
    %65 = arith.cmpi ne, %64, %c0_i32_35 : i32
    scf.if %65 {
      %c0_40 = arith.constant 0 : index
      %c0_41 = arith.constant 0 : index
      %72 = vector.load %arg15[%c0_40, %c0_41] : memref<16x1024xf32, #tpu.memory_space<vmem>>, vector<16x1024xf32>
      tpu.vector_store %arg15[%c0_40, %c0_41], %62 {strides = array<i32>} : memref<16x1024xf32, #tpu.memory_space<vmem>>, vector<16x1024xf32>,
    } else {
    }
    %c0_i32_36 = arith.constant 0 : i32
    %66 = arith.cmpi sgt, %arg1, %c0_i32_36 : i32
    %67 = arith.extui %66 : i1 to i32
    %c0_i32_37 = arith.constant 0 : i32
    %68 = arith.cmpi ne, %67, %c0_i32_37 : i32
    scf.if %68 {
      %c0_40 = arith.constant 0 : index
      %c0_41 = arith.constant 0 : index
      %72 = vector.load %arg15[%c0_40, %c0_41] : memref<16x1024xf32, #tpu.memory_space<vmem>>, vector<16x1024xf32>
      %73 = arith.maximumf %72, %62 : vector<16x1024xf32>
      %c0_42 = arith.constant 0 : index
      %c0_43 = arith.constant 0 : index
      %74 = vector.load %arg15[%c0_42, %c0_43] : memref<16x1024xf32, #tpu.memory_space<vmem>>, vector<16x1024xf32>
      tpu.vector_store %arg15[%c0_42, %c0_43], %73 {strides = array<i32>} : memref<16x1024xf32, #tpu.memory_space<vmem>>, vector<16x1024xf32>,
    } else {
    }
    %c0_i32_38 = arith.constant 0 : i32
    %69 = arith.cmpi eq, %arg1, %c0_i32_38 : i32
    %70 = arith.extui %69 : i1 to i32
    %c0_i32_39 = arith.constant 0 : i32
    %71 = arith.cmpi ne, %70, %c0_i32_39 : i32
    scf.if %71 {
      %c0_40 = arith.constant 0 : index
      %c0_41 = arith.constant 0 : index
      %72 = vector.load %arg15[%c0_40, %c0_41] : memref<16x1024xf32, #tpu.memory_space<vmem>>, vector<16x1024xf32>
      %cst_42 = arith.constant dense<0xFF800000> : vector<1024xf32>
      %73 = vector.multi_reduction <maximumf>, %72, %cst_42 [0] : vector<16x1024xf32> to vector<1024xf32>
      %74 = vector.shape_cast %73 : vector<1024xf32> to vector<1x1024xf32>
      %c0_43 = arith.constant 0 : index
      %c0_44 = arith.constant 0 : index
      %c0_45 = arith.constant 0 : index
      %75 = vector.load %arg14[%c0_43, %c0_44, %c0_45] : memref<1x1x1024xf32, #tpu.memory_space<vmem>>, vector<1x1x1024xf32>
      %76 = vector.shape_cast %75 : vector<1x1x1024xf32> to vector<1x1024xf32>
      %77 = vector.shape_cast %74 : vector<1x1024xf32> to vector<1x1x1024xf32>
      tpu.vector_store %arg14[%c0_43, %c0_44, %c0_45], %77 {strides = array<i32>} : memref<1x1x1024xf32, #tpu.memory_space<vmem>>, vector<1x1x1024xf32>,
    } else {
    }
    return
  }
  func.func @transform_0(%arg0: i32, %arg1: i32) -> (i32, i32, i32) {
    %c0_i32 = arith.constant 0 : i32
    %c0_i32_0 = arith.constant 0 : i32
    return %arg0, %arg1, %c0_i32 : i32, i32, i32
  }
  func.func @transform_1(%arg0: i32, %arg1: i32) -> (i32, i32, i32) {
    %c0_i32 = arith.constant 0 : i32
    %c0_i32_0 = arith.constant 0 : i32
    %c0_i32_1 = arith.constant 0 : i32
    return %arg0, %c0_i32, %c0_i32_0 : i32, i32, i32
  }
  func.func @transform_2(%arg0: i32, %arg1: i32) -> (i32, i32) {
    %c0_i32 = arith.constant 0 : i32
    %c0_i32_0 = arith.constant 0 : i32
    %c0_i32_1 = arith.constant 0 : i32
    return %c0_i32, %c0_i32_0 : i32, i32
  }
  func.func @transform_3(%arg0: i32, %arg1: i32) -> (i32, i32) {
    %c0_i32 = arith.constant 0 : i32
    %c0_i32_0 = arith.constant 0 : i32
    %c0_i32_1 = arith.constant 0 : i32
    return %c0_i32, %c0_i32_0 : i32, i32
  }
  func.func @transform_4(%arg0: i32, %arg1: i32) -> (i32, i32) {
    %c0_i32 = arith.constant 0 : i32
    %c0_i32_0 = arith.constant 0 : i32
    %c0_i32_1 = arith.constant 0 : i32
    return %c0_i32, %c0_i32_0 : i32, i32
  }
  func.func @transform_5(%arg0: i32, %arg1: i32) -> (i32, i32) {
    %c0_i32 = arith.constant 0 : i32
    %c0_i32_0 = arith.constant 0 : i32
    %c0_i32_1 = arith.constant 0 : i32
    return %c0_i32, %c0_i32_0 : i32, i32
  }
  func.func @transform_6(%arg0: i32, %arg1: i32) -> (i32, i32) {
    %c0_i32 = arith.constant 0 : i32
    %c0_i32_0 = arith.constant 0 : i32
    %c0_i32_1 = arith.constant 0 : i32
    return %c0_i32, %c0_i32_0 : i32, i32
  }
  func.func @transform_7(%arg0: i32, %arg1: i32) -> (i32, i32) {
    %c0_i32 = arith.constant 0 : i32
    %c0_i32_0 = arith.constant 0 : i32
    %c0_i32_1 = arith.constant 0 : i32
    return %c0_i32, %c0_i32_0 : i32, i32
  }
  func.func @transform_8(%arg0: i32, %arg1: i32) -> (i32, i32) {
    %c0_i32 = arith.constant 0 : i32
    %c0_i32_0 = arith.constant 0 : i32
    %c0_i32_1 = arith.constant 0 : i32
    return %c0_i32, %c0_i32_0 : i32, i32
  }
  func.func @transform_9(%arg0: i32, %arg1: i32) -> (i32, i32) {
    %c0_i32 = arith.constant 0 : i32
    %c0_i32_0 = arith.constant 0 : i32
    %c0_i32_1 = arith.constant 0 : i32
    return %c0_i32, %c0_i32_0 : i32, i32
  }
  func.func @transform_10(%arg0: i32, %arg1: i32) -> (i32, i32) {
    %c0_i32 = arith.constant 0 : i32
    %c0_i32_0 = arith.constant 0 : i32
    %c0_i32_1 = arith.constant 0 : i32
    return %c0_i32, %c0_i32_0 : i32, i32
  }
  func.func @transform_11(%arg0: i32, %arg1: i32) -> (i32, i32, i32) {
    %c0_i32 = arith.constant 0 : i32
    %c0_i32_0 = arith.constant 0 : i32
    return %arg0, %c0_i32, %arg1 : i32, i32, i32
  }
  func.func @transform_12(%arg0: i32, %arg1: i32) -> (i32, i32, i32) {
    %c0_i32 = arith.constant 0 : i32
    %c0_i32_0 = arith.constant 0 : i32
    %c0_i32_1 = arith.constant 0 : i32
    return %arg0, %c0_i32, %c0_i32_0 : i32, i32, i32
  }
}

module attributes {stable_mosaic.version = 11 : i64} {
  func.func @_tnet_fc_kernel(%arg0: memref<2x1024xf32, #tpu.memory_space<vmem>>, %arg1: memref<1024x512xbf16, #tpu.memory_space<vmem>>, %arg2: memref<1x512xf32, #tpu.memory_space<vmem>>, %arg3: memref<512x256xbf16, #tpu.memory_space<vmem>>, %arg4: memref<1x256xf32, #tpu.memory_space<vmem>>, %arg5: memref<256x4096xbf16, #tpu.memory_space<vmem>>, %arg6: memref<1x4096xf32, #tpu.memory_space<vmem>>, %arg7: memref<2x4096xf32, #tpu.memory_space<vmem>>) attributes {dimension_semantics = [], scalar_prefetch = 0 : i64, scratch_operands = 0 : i64, tpu.core_type = #tpu.core_type<tc>} {
    %c0 = arith.constant 0 : index
    %c0_0 = arith.constant 0 : index
    %0 = vector.load %arg0[%c0, %c0_0] : memref<2x1024xf32, #tpu.memory_space<vmem>>, vector<2x1024xf32>
    %1 = arith.truncf %0 : vector<2x1024xf32> to vector<2x1024xbf16>
    %c0_1 = arith.constant 0 : index
    %c0_2 = arith.constant 0 : index
    %2 = vector.load %arg1[%c0_1, %c0_2] : memref<1024x512xbf16, #tpu.memory_space<vmem>>, vector<1024x512xbf16>
    %cst = arith.constant dense<0.000000e+00> : vector<2x512xf32>
    %3 = tpu.matmul %1, %2, %cst {dimension_numbers = #tpu.dot_dimension_numbers<[1], [0], [0], [1], [0, 0, 1, 1], [], []>} : vector<2x1024xbf16>, vector<1024x512xbf16>, vector<2x512xf32> -> vector<2x512xf32>
    %c0_3 = arith.constant 0 : index
    %c0_4 = arith.constant 0 : index
    %4 = vector.load %arg2[%c0_3, %c0_4] : memref<1x512xf32, #tpu.memory_space<vmem>>, vector<1x512xf32>
    %5 = vector.broadcast %4 : vector<1x512xf32> to vector<2x512xf32>
    %6 = arith.addf %3, %5 : vector<2x512xf32>
    %cst_5 = arith.constant 0.000000e+00 : f32
    %7 = vector.broadcast %cst_5 : f32 to vector<2x512xf32>
    %8 = arith.maximumf %6, %7 : vector<2x512xf32>
    %9 = arith.truncf %8 : vector<2x512xf32> to vector<2x512xbf16>
    %c0_6 = arith.constant 0 : index
    %c0_7 = arith.constant 0 : index
    %10 = vector.load %arg3[%c0_6, %c0_7] : memref<512x256xbf16, #tpu.memory_space<vmem>>, vector<512x256xbf16>
    %cst_8 = arith.constant dense<0.000000e+00> : vector<2x256xf32>
    %11 = tpu.matmul %9, %10, %cst_8 {dimension_numbers = #tpu.dot_dimension_numbers<[1], [0], [0], [1], [0, 0, 1, 1], [], []>} : vector<2x512xbf16>, vector<512x256xbf16>, vector<2x256xf32> -> vector<2x256xf32>
    %c0_9 = arith.constant 0 : index
    %c0_10 = arith.constant 0 : index
    %12 = vector.load %arg4[%c0_9, %c0_10] : memref<1x256xf32, #tpu.memory_space<vmem>>, vector<1x256xf32>
    %13 = vector.broadcast %12 : vector<1x256xf32> to vector<2x256xf32>
    %14 = arith.addf %11, %13 : vector<2x256xf32>
    %cst_11 = arith.constant 0.000000e+00 : f32
    %15 = vector.broadcast %cst_11 : f32 to vector<2x256xf32>
    %16 = arith.maximumf %14, %15 : vector<2x256xf32>
    %17 = arith.truncf %16 : vector<2x256xf32> to vector<2x256xbf16>
    %c0_12 = arith.constant 0 : index
    %c0_13 = arith.constant 0 : index
    %18 = vector.load %arg5[%c0_12, %c0_13] : memref<256x4096xbf16, #tpu.memory_space<vmem>>, vector<256x4096xbf16>
    %cst_14 = arith.constant dense<0.000000e+00> : vector<2x4096xf32>
    %19 = tpu.matmul %17, %18, %cst_14 {dimension_numbers = #tpu.dot_dimension_numbers<[1], [0], [0], [1], [0, 0, 1, 1], [], []>} : vector<2x256xbf16>, vector<256x4096xbf16>, vector<2x4096xf32> -> vector<2x4096xf32>
    %c0_15 = arith.constant 0 : index
    %c0_16 = arith.constant 0 : index
    %20 = vector.load %arg6[%c0_15, %c0_16] : memref<1x4096xf32, #tpu.memory_space<vmem>>, vector<1x4096xf32>
    %21 = vector.broadcast %20 : vector<1x4096xf32> to vector<2x4096xf32>
    %22 = arith.addf %19, %21 : vector<2x4096xf32>
    %c0_17 = arith.constant 0 : index
    %c0_18 = arith.constant 0 : index
    %23 = vector.load %arg7[%c0_17, %c0_18] : memref<2x4096xf32, #tpu.memory_space<vmem>>, vector<2x4096xf32>
    tpu.vector_store %arg7[%c0_17, %c0_18], %22 {strides = array<i32>} : memref<2x4096xf32, #tpu.memory_space<vmem>>, vector<2x4096xf32>,
    return
  }
}

module attributes {stable_mosaic.version = 11 : i64} {
  func.func @_apply_transform_kernel(%arg0: i32, %arg1: i32, %arg2: memref<1x64x64xbf16, #tpu.memory_space<vmem>>, %arg3: memref<1x64x128xbf16, #tpu.memory_space<vmem>>, %arg4: memref<1x64x128xf32, #tpu.memory_space<vmem>>) attributes {dimension_semantics = [#tpu.dimension_semantics<parallel>, #tpu.dimension_semantics<parallel>], iteration_bounds = array<i64: 2, 1>, scalar_prefetch = 0 : i64, scratch_operands = 0 : i64, tpu.core_type = #tpu.core_type<tc>, window_params = [{transform_indices = @transform_0, window_bounds = array<i64: 1, 64, 64>}, {transform_indices = @transform_1, window_bounds = array<i64: 1, 64, 128>}, {transform_indices = @transform_2, window_bounds = array<i64: 1, 64, 128>}]} {
    %c0 = arith.constant 0 : index
    %c0_0 = arith.constant 0 : index
    %c0_1 = arith.constant 0 : index
    %0 = vector.load %arg2[%c0, %c0_0, %c0_1] : memref<1x64x64xbf16, #tpu.memory_space<vmem>>, vector<1x64x64xbf16>
    %1 = vector.shape_cast %0 : vector<1x64x64xbf16> to vector<64x64xbf16>
    %c0_2 = arith.constant 0 : index
    %c0_3 = arith.constant 0 : index
    %c0_4 = arith.constant 0 : index
    %2 = vector.load %arg3[%c0_2, %c0_3, %c0_4] : memref<1x64x128xbf16, #tpu.memory_space<vmem>>, vector<1x64x128xbf16>
    %3 = vector.shape_cast %2 : vector<1x64x128xbf16> to vector<64x128xbf16>
    %cst = arith.constant dense<0.000000e+00> : vector<64x128xf32>
    %4 = tpu.matmul %1, %3, %cst {dimension_numbers = #tpu.dot_dimension_numbers<[1], [0], [0], [1], [0, 0, 1, 1], [], []>} : vector<64x64xbf16>, vector<64x128xbf16>, vector<64x128xf32> -> vector<64x128xf32>
    %c0_5 = arith.constant 0 : index
    %c0_6 = arith.constant 0 : index
    %c0_7 = arith.constant 0 : index
    %5 = vector.load %arg4[%c0_5, %c0_6, %c0_7] : memref<1x64x128xf32, #tpu.memory_space<vmem>>, vector<1x64x128xf32>
    %6 = vector.shape_cast %5 : vector<1x64x128xf32> to vector<64x128xf32>
    %7 = vector.shape_cast %4 : vector<64x128xf32> to vector<1x64x128xf32>
    tpu.vector_store %arg4[%c0_5, %c0_6, %c0_7], %7 {strides = array<i32>} : memref<1x64x128xf32, #tpu.memory_space<vmem>>, vector<1x64x128xf32>,
    return
  }
  func.func @transform_0(%arg0: i32, %arg1: i32) -> (i32, i32, i32) {
    %c0_i32 = arith.constant 0 : i32
    %c0_i32_0 = arith.constant 0 : i32
    %c0_i32_1 = arith.constant 0 : i32
    return %arg0, %c0_i32, %c0_i32_0 : i32, i32, i32
  }
  func.func @transform_1(%arg0: i32, %arg1: i32) -> (i32, i32, i32) {
    %c0_i32 = arith.constant 0 : i32
    %c0_i32_0 = arith.constant 0 : i32
    return %arg0, %c0_i32, %arg1 : i32, i32, i32
  }
  func.func @transform_2(%arg0: i32, %arg1: i32) -> (i32, i32, i32) {
    %c0_i32 = arith.constant 0 : i32
    %c0_i32_0 = arith.constant 0 : i32
    return %arg0, %c0_i32, %arg1 : i32, i32, i32
  }
}

</mosaic_0001>

<bundles_post_ra>
// kernel: pointnet_local_features_forward.5
= control target key start
LH: loop header
LB: loop body
LE: loop exit
PB: predicated region body
PF: predicated region fallthrough
CT: control target
= control target key end

     0   :  { %12 = vsyncpa [#allocation4], 0  ;;  %s3225_s0 = inlined_call_operand.vmem [shape: f32[2,128,3], index: 0, kind: input, shape index: {}]   ;;  %s3226_s1 = inlined_call_operand.vmem [shape: bf16[3,64], index: 1, kind: input, shape index: {}]   ;;  %s3227_s2 = inlined_call_operand.hbm [shape: f32[1,64], index: 2, kind: input, shape index: {}]   ;;  %s3228_s3 = inlined_call_operand.vmem [shape: bf16[64,128], index: 3, kind: input, shape index: {}]   ;;  %s3229_s4 = inlined_call_operand.hbm [shape: f32[1,128], index: 4, kind: input, shape index: {}]   ;;  %s3230_s5 = inlined_call_operand.vmem [shape: bf16[128,1024], index: 5, kind: input, shape index: {}]   ;;  %s3231_s6 = inlined_call_operand.hbm [shape: f32[1,1024], index: 6, kind: input, shape index: {}]   ;;  %s3232_s7 = inlined_call_operand.vmem [shape: f32[2,1,1024], index: 7, kind: output, shape index: {}]  }
   0x1   :  { %13 = vsyncpa [#allocation6], 0  ;;  %s2527_s24 = smov 0   ;;  %s2529_s25 = smov 0  }
   0x2   :  { %s2531_s26 = smov 0  }
   0x3 LB: > { %s2481_s27 = smov [#allocation5]   ;;  %s2137_s29 = sadd.s32 4294967295, %s2479_s26   ;;  %s2479_s26 = sphi %s2531_s26, %s19_s26   ;;  %s2475_s25 = sphi %s2529_s25, %s3245_s25   ;;  %s2471_s24 = sphi %s2527_s24, %s3244_s24  }
   0x4   : > { %s246_s28 = sshll.u32 %s2481_s27, 4  ;;  %p2139_p0 = scmp.ge.s32.totalorder %s2479_s26, 1  ;;  %s247_s28 = int_to_ptr.vmem [resolvable:$true] %s246_s28 }
   0x5   : > { %p216_p1 = scmp.lt.s32.totalorder %s2479_s26, 3  ;;  %p2545_p2 = scmp.eq.s32.totalorder %s2137_s29, 0 }
   0x6   : > { %s31_s9 = sadd.s32 1, %s2475_s25  ;;  %s2482_s12 = smov [#allocation3]  }
   0x7   : > { %s3236_s30 = scalar_select %p2545_p2, 1, 0 }
   0x8   : > { %p2549_p3 = pnand %p2139_p0, %p216_p1  ;;  %p2562_p6 = scmp.ge.s32.totalorder %s31_s9, 2 }
   0x9   : > { %s232_s13 = sshll.u32 %s2482_s12, 4  ;;  %s2365_s16 = scalar_lea.hbm %s3229_s4, 16  ;;  %s2566_s13 = int_to_ptr.vmem [resolvable:$true] %s232_s13 }
   0xa   : > { %s3237_s8 = scalar_select %p2549_p3, 1, 0 }
   0xb   : > { %p2315_p4 = pneg %p2549_p3  ;;  %p2366_p7 = scmp.ne.s32.totalorder %s3229_s4, %s2365_s16 }
   0xc   : > { %s3239_s11 = scalar_select %p2562_p6, 1, 0 }
   0xd   : > { %p2558_p5 = pnand %p2545_p2, %p2315_p4  ;;  %p2372_p11 = scmp.lt.u32.totalorder %s2365_s16, %s3229_s4 }
   0xf   : > { %p2576_p8 = pneg %p2558_p5 }
  0x11   : > { %p2368_p9 = pnand %p2576_p8, %p2366_p7 }
  0x13   : > { %p2369_p10 = pneg %p2368_p9 }
  0x15   : > { %p2374_p12 = pnand %p2372_p11, %p2369_p10 }
  0x17   : > { %2377 = shalt.err (!%p2374_p12)
}
  0x18   : > { %s2378_s22 = scalar_lea.vmem %s247_s28, 16  ;;  %s2385_s23 = scalar_lea.vmem %s247_s28, 32 }
  0x19   : > { %p2379_p13 = scmp.ne.s32.totalorder %s247_s28, %s2378_s22  ;;  %p2386_p4 = scmp.lt.s32.totalorder %s247_s28, %s247_s28 }
  0x1a   : > { %p2387_p2 = scmp.lt.s32.totalorder %s2385_s23, %s2378_s22 }
  0x1b   : > { %p2381_p0 = pnand %p2379_p13, %p2576_p8 }
  0x1c   : > { %p2388_p3 = por %p2387_p2, %p2386_p4 }
  0x1d   : > { %p2382_p1 = pneg %p2381_p0 }
  0x1f   : > { %p2389_p6 = pnand %p2388_p3, %p2382_p1 }
  0x21   : > { %2392 = shalt.err (!%p2389_p6)
}
  0x22   : > { %2321 = dma.hbm_to_vmem [thread:$0]  (!%p2558_p5), %s3229_s4, 16, %s247_s28, [#allocation6]  }
  0x23   : > { %p3241_p7 = scmp.ne.s32.totalorder %s3239_s11, 0  ;;  %s2393_s15 = scalar_lea.hbm %s3227_s2, 16 }
  0x24   : > { %p2394_p2 = scmp.ne.s32.totalorder %s3227_s2, %s2393_s15  ;;  %p2400_p9 = scmp.lt.u32.totalorder %s2393_s15, %s3227_s2 }
  0x25   : > { %s3247_s9 = smov (%p3241_p7, %s31_s9), 0 }
  0x26   : > { %p2396_p3 = pnand %p2394_p2, %p2576_p8 }
  0x28   : > { %p2397_p6 = pneg %p2396_p3 }
  0x2a   : > { %p2402_p10 = pnand %p2400_p9, %p2397_p6 }
  0x2c   : > { %2405 = shalt.err (!%p2402_p10)
}
  0x2d   : > { %s2406_s28 = scalar_lea.vmem %s2566_s13, 16  ;;  %s2413_s11 = scalar_lea.vmem %s2566_s13, 32 }
  0x2e   : > { %p2407_p11 = scmp.ne.s32.totalorder %s2566_s13, %s2406_s28  ;;  %p2414_p0 = scmp.lt.s32.totalorder %s2566_s13, %s2566_s13 }
  0x2f   : > { %p2415_p1 = scmp.lt.s32.totalorder %s2413_s11, %s2406_s28 }
  0x30   : > { %p2409_p12 = pnand %p2407_p11, %p2576_p8 }
  0x31   : > { %p2416_p4 = por %p2415_p1, %p2414_p0 }
  0x32   : > { %p2410_p13 = pneg %p2409_p12 }
  0x34   : > { %p2417_p7 = pnand %p2416_p4, %p2410_p13 }
  0x36   : > { %2420 = shalt.err (!%p2417_p7)
}
  0x37   : > { %2318 = dma.hbm_to_vmem [thread:$0]  (!%p2558_p5), %s3227_s2, 16, %s2566_s13, [#allocation4]  }
  0x38   : > { %s2483_s23 = smov [#allocation7]   ;;  %s2421_s14 = scalar_lea.hbm %s3231_s6, 128 }
  0x39   : > { %s260_s27 = sshll.u32 %s2483_s23, 4  ;;  %p2422_p2 = scmp.ne.s32.totalorder %s3231_s6, %s2421_s14  ;;  %s261_s27 = int_to_ptr.vmem [resolvable:$true] %s260_s27 }
  0x3a   : > { %p2428_p9 = scmp.lt.u32.totalorder %s2421_s14, %s3231_s6 }
  0x3b   : > { %p2424_p3 = pnand %p2422_p2, %p2576_p8 }
  0x3d   : > { %p2425_p6 = pneg %p2424_p3 }
  0x3f   : > { %p2430_p10 = pnand %p2428_p9, %p2425_p6 }
  0x41   : > { %2433 = shalt.err (!%p2430_p10)
}
  0x42   : > { %s2434_s13 = scalar_lea.vmem %s261_s27, 128  ;;  %p2442_p0 = scmp.lt.s32.totalorder %s261_s27, %s261_s27 }
  0x43   : > { %p2435_p11 = scmp.ne.s32.totalorder %s261_s27, %s2434_s13  ;;  %p2443_p1 = scmp.lt.s32.totalorder %s2434_s13, %s2434_s13 }
  0x45   : > { %p2437_p12 = pnand %p2435_p11, %p2576_p8  ;;  %p2444_p4 = por %p2443_p1, %p2442_p0 }
  0x47   : > { %p2438_p13 = pneg %p2437_p12 }
  0x49   : > { %p2445_p7 = pnand %p2444_p4, %p2438_p13 }
  0x4b   : > { %2448 = shalt.err (!%p2445_p7)
}
  0x4c   : > { %2324 = dma.hbm_to_vmem [thread:$0]  (!%p2558_p5), %s3231_s6, 128, %s261_s27, [#allocation6]  }
  0x4d   : > { %p3242_p2 = scmp.ne.s32.totalorder %s3237_s8, 0 }
  0x4e   : > { %p3243_p3 = scmp.ne.s32.totalorder (!%p3242_p2), %s3236_s30, 0 }
  0x4f   : > { %286 = sbr.rel (%p3242_p2) target bundleno = 907 (0x38b), region = 48 }
  0x56   : > { %2462 = dma.done.wait (%p3243_p3), [#allocation4], 16  }
  0x57   : > { %2464 = vsyncadd (%p3243_p3), [#allocation4], 4294967280 }
  0x58   : > { %2466 = dma.done.wait (%p3243_p3), [#allocation6], 144  }
  0x59   : > { %2468 = vsyncadd (%p3243_p3), [#allocation6], 4294967152  ;;  %vm401_vm0 = vcmask 1040384   ;;  %p330_p8 = scmp.lt.s32.totalorder %s2471_s24, 1  ;;  %vm402_vm1 = vcmask 1041408   ;;  %v2484_v0 = vmov 65535  }
  0x5a   : > { %v403_v1 = vsel %vm401_vm0, 4294967295, %v2484_v0  ;;  %v368_v3 = vld [vmem:[%s3226_s1] sm:$0x3]  ;;  %vm376_vm2 = vcmask 23552   ;;  %v2362_v17 = vld [vmem:[%s3228_s3 + $0x8] sm:$0xff]   ;;  %v2363_v31 = vld [vmem:[%s3228_s3 + $0x10] sm:$0xff]  }
  0x5b   : > { %s3249_s24 = smov (!%p330_p8, %s2471_s24), 1  ;;  %v404_v2 = vsel %vm402_vm1, %v403_v1, 0  ;;  %v2361_v16 = vld [vmem:[%s3228_s3] sm:$0xff]   ;;  %v2364_v32 = vld [vmem:[%s3228_s3 + $0x18] sm:$0xff]   ;;  %v2706_v35 = vld [vmem:[%s3230_s5 + $0x8] sm:$0xff]  ;;  %vm568_vm3 = vcmask 523264  }
  0x5c   : > { %s2239_s8 = sshll.u32 %s3249_s24, 7  ;;  %v406_v6 = vand.u32 %v404_v2, %v368_v3  ;;  %2279 = vmatprep.subr.bf16.mxu1 %v2361_v16  ;;  %v714_v33 = vld [vmem:[%s3230_s5] sm:$0xff]  ;;  %v2711_v38 = vld [vmem:[%s3230_s5 + $0x28] sm:$0xff]  ;;  %s2150_s29 = sshll.u32 %s3249_s24, 3 }
  0x5d   : > { %s2656_s11 = scalar_lea.vmem %s3225_s0, %s2239_s8  ;;  %2280 = vmatpush3.bf16.msra.mxu1 %v2361_v16  ;;  %v718_v34 = vld [vmem:[%s3230_s5 + $0x20] sm:$0xff]  ;;  %v2175_v41 = vcombine.low %v2706_v35, %v2711_v38  ;;  %v2176_v42 = vcombine.high %v2706_v35, %v2711_v38  ;;  %s342_s15 = scalar_lea.vmem %s3232_s7, %s2150_s29 }
  0x5e   : > { %v344_v4 = vld [vmem:[%s2656_s11] sm:$0xff]  ;;  %v345_v5 = vld [vmem:[%s2656_s11 + $0x8] sm:$0xff]  ;;  %v346_v8 = vld [vmem:[%s2656_s11 + $0x10] sm:$0xff]  ;;  %2261 = vmatprep.subr.bf16.mxu0 %v406_v6  ;;  %2281 = vmatprep.subr.bf16.mxu1 %v2362_v17  ;;  %v2173_v36 = vcombine.low %v714_v33, %v718_v34  ;;  %v2174_v37 = vcombine.high %v714_v33, %v718_v34 }
  0x5f   : > { %v360_v7 = vpack.c.bf16 %v345_v5, %v344_v4  ;;  %v347_v9 = vld [vmem:[%s2656_s11 + $0x18] sm:$0xff]  ;;  %v348_v10 = vld [vmem:[%s2656_s11 + $0x20] sm:$0xff]  ;;  %v349_v11 = vld [vmem:[%s2656_s11 + $0x28] sm:$0xff]  ;;  %2262 = vmatpush3.bf16.msra.mxu0 %v406_v6 }
  0x60   : > { %v361_v12 = vpack.c.bf16 %v347_v9, %v346_v8  ;;  %v362_v13 = vpack.c.bf16 %v349_v11, %v348_v10  ;;  %v350_v14 = vld [vmem:[%s2656_s11 + $0x30] sm:$0xff]  ;;  %v351_v15 = vld [vmem:[%s2656_s11 + $0x38] sm:$0xff]  ;;  %v352_v18 = vld [vmem:[%s2656_s11 + $0x40] sm:$0xff]  ;;  %1140 = vmatprep.subr.bf16.mxu0 %v2174_v37 }
  0x61   : > { %2263 = vmatprep.mubr.msk.bf16.mxu0 %vm376_vm2, %v360_v7  ;;  %v353_v19 = vld [vmem:[%s2656_s11 + $0x48] sm:$0xff]  ;;  %v363_v20 = vpack.c.bf16 %v351_v15, %v350_v14  ;;  %2282 = vmatpush3.bf16.msra.mxu1 %v2362_v17  ;;  %v354_v22 = vld [vmem:[%s2656_s11 + $0x50] sm:$0xff]  ;;  %v355_v23 = vld [vmem:[%s2656_s11 + $0x58] sm:$0xff] }
  0x62   : > { %2264 = vmatmul.mubr.msk.bf16.vlgmr.msra.gmra.mrb[0].mxu0 %vm376_vm2, %v361_v12  ;;  %v364_v21 = vpack.c.bf16 %v353_v19, %v352_v18  ;;  %v356_v24 = vld [vmem:[%s2656_s11 + $0x60] sm:$0xff]  ;;  %v357_v25 = vld [vmem:[%s2656_s11 + $0x68] sm:$0xff]  ;;  %v365_v26 = vpack.c.bf16 %v355_v23, %v354_v22  ;;  %v358_v28 = vld [vmem:[%s2656_s11 + $0x70] sm:$0xff]  ;;  %2283 = vmatprep.subr.bf16.mxu1 %v2363_v31 }
  0x63   : > { %2267 = vmatprep.mubr.msk.bf16.mxu0 %vm376_vm2, %v362_v13  ;;  %v366_v27 = vpack.c.bf16 %v357_v25, %v356_v24  ;;  %v359_v29 = vld [vmem:[%s2656_s11 + $0x78] sm:$0xff]  ;;  %v722_v39 = vld [vmem:[%s3230_s5 + $0x40] sm:$0xff]  ;;  %1141 = vmatpush1.bf16.msra.mxu0 %v2173_v36  ;;  %v723_v10 = vld [vmem:[%s3230_s5 + $0x48] sm:$0xff] }
  0x64   : > { %v367_v30 = vpack.c.bf16 %v359_v29, %v358_v28  ;;  %v726_v40 = vld [vmem:[%s3230_s5 + $0x60] sm:$0xff]  ;;  %v727_v11 = vld [vmem:[%s3230_s5 + $0x68] sm:$0xff] }
  0x65   : > { %2284 = vmatpush3.bf16.msra.mxu1 %v2363_v31  ;;  %v2182_v43 = vcombine.high %v722_v39, %v726_v40  ;;  %v730_v44 = vld [vmem:[%s3230_s5 + $0x80] sm:$0xff]  ;;  %v2181_v46 = vcombine.low %v722_v39, %v726_v40  ;;  %v2184_v17 = vcombine.high %v723_v10, %v727_v11  ;;  %v739_v31 = vld [vmem:[%s3230_s5 + $0xc8] sm:$0xff] }
  0x66   : > { %2285 = vmatprep.subr.bf16.mxu1 %v2364_v32  ;;  %v734_v45 = vld [vmem:[%s3230_s5 + $0xa0] sm:$0xff] }
  0x67   : > { %1142 = vmatprep.subr.bf16.mxu0 %v2182_v43  ;;  %v2190_v47 = vcombine.high %v730_v44, %v734_v45  ;;  %v738_v48 = vld [vmem:[%s3230_s5 + $0xc0] sm:$0xff]  ;;  %v2189_v50 = vcombine.low %v730_v44, %v734_v45  ;;  %v751_v43 = vld [vmem:[%s3230_s5 + $0x128] sm:$0xff] }
  0x68   : > { %v742_v49 = vld [vmem:[%s3230_s5 + $0xe0] sm:$0xff]  ;;  %1143 = vmatpush1.bf16.msra.mxu0 %v2181_v46 }
  0x69   : > { %2286 = vmatpush3.bf16.msra.mxu1 %v2364_v32  ;;  %1144 = vmatprep.subr.bf16.mxu0 %v2190_v47  ;;  %v2198_v51 = vcombine.high %v738_v48, %v742_v49  ;;  %v746_v52 = vld [vmem:[%s3230_s5 + $0x100] sm:$0xff]  ;;  %v2197_v54 = vcombine.low %v738_v48, %v742_v49  ;;  %v743_v32 = vld [vmem:[%s3230_s5 + $0xe8] sm:$0xff] }
  0x6a   : > { %2268 = vmatmul.mubr.msk.bf16.gmra.mrb[4].mxu0 %vm376_vm2, %v363_v20  ;;  %1253 = vmatprep.subr.bf16.mxu1 %v2176_v42  ;;  %v750_v53 = vld [vmem:[%s3230_s5 + $0x120] sm:$0xff]  ;;  %v731_v20 = vld [vmem:[%s3230_s5 + $0x88] sm:$0xff]  ;;  %v2200_v39 = vcombine.high %v739_v31, %v743_v32  ;;  %v2199_v49 = vcombine.low %v739_v31, %v743_v32  ;;  %v721_v32 = vld [vmem:[%s3230_s5 + $0x38] sm:$0xff] }
  0x6b   : > { %2271 = vmatprep.mubr.msk.bf16.mxu0 %vm376_vm2, %v364_v21  ;;  %v2206_v55 = vcombine.high %v746_v52, %v750_v53  ;;  %v754_v56 = vld [vmem:[%s3230_s5 + $0x140] sm:$0xff]  ;;  %v2205_v58 = vcombine.low %v746_v52, %v750_v53  ;;  %v735_v21 = vld [vmem:[%s3230_s5 + $0xa8] sm:$0xff] }
  0x6c   : > { %1145 = vmatpush1.bf16.msra.mxu0 %v2189_v50  ;;  %v758_v57 = vld [vmem:[%s3230_s5 + $0x160] sm:$0xff]  ;;  %v2192_v29 = vcombine.high %v731_v20, %v735_v21  ;;  %v2191_v37 = vcombine.low %v731_v20, %v735_v21  ;;  %v747_v42 = vld [vmem:[%s3230_s5 + $0x108] sm:$0xff] }
  0x6d   : > { %1146 = vmatprep.subr.bf16.mxu0 %v2198_v51  ;;  %v2214_v59 = vcombine.high %v754_v56, %v758_v57  ;;  %v2213_v60 = vcombine.low %v754_v56, %v758_v57  ;;  %v2747_v61 = vld [vmem:[#allocation3] ss:$0 sm:$0xff]  ;;  %v2208_v51 = vcombine.high %v747_v42, %v751_v43  ;;  %v755_v53 = vld [vmem:[%s3230_s5 + $0x148] sm:$0xff] }
  0x6e   : > { %v771_v20 = vld [vmem:[%s3230_s5 + $0x1c8] sm:$0xff] }
  0x70   : > { %1147 = vmatpush1.bf16.msra.mxu0 %v2197_v54  ;;  %v759_v54 = vld [vmem:[%s3230_s5 + $0x168] sm:$0xff] }
  0x71   : > { %1148 = vmatprep.subr.bf16.mxu0 %v2206_v55 }
  0x72   : > { %2272 = vmatmul.mubr.msk.bf16.gmra.mrb[8].mxu0 %vm376_vm2, %v365_v26 }
  0x73   : > { %2275 = vmatprep.mubr.msk.bf16.mxu0 %vm376_vm2, %v366_v27  ;;  %v2183_v27 = vcombine.low %v723_v10, %v727_v11  ;;  %v762_v11 = vld [vmem:[%s3230_s5 + $0x180] sm:$0xff] }
  0x74   : > { %1149 = vmatpush1.bf16.msra.mxu0 %v2205_v58  ;;  %v2207_v58 = vcombine.low %v747_v42, %v751_v43 }
  0x75   : > { %1150 = vmatprep.subr.bf16.mxu0 %v2214_v59 }
  0x78   : > { %1151 = vmatpush1.bf16.msra.mxu0 %v2213_v60 }
  0x7a   : > { %2276 = vmatmul.mubr.msk.bf16.gmra.mrb[12].mxu0 %vm376_vm2, %v367_v30 }
 0x135   : > { %v2265_v62 = vpop.f32.mrb[0].mxu0 }
 0x136   : > { %v451_v63 = vadd.f32 %v2265_v62, %v2747_v61  ;;  %v442_v0 = vpop.f32.mrb[1].mxu0  ;;  %v2216_v62 = vcombine.high %v755_v53, %v759_v54 }
 0x137   : > { %v443_v1 = vadd.f32 %v2747_v61, %v442_v0  ;;  %v2266_v2 = vpop.f32.mrb[2].mxu0 }
 0x138   : > { %v454_v3 = vadd.f32 %v2266_v2, %v2747_v61  ;;  %v445_v4 = vpop.f32.mrb[3].mxu0  ;;  %v507_v6 = vmax.f32 %v451_v63, 0.0 }
 0x139   : > { %v446_v5 = vadd.f32 %v2747_v61, %v445_v4  ;;  %v505_v8 = vmax.f32 %v443_v1, 0.0 }
 0x13a   : > { %v508_v7 = vmax.f32 %v454_v3, 0.0 }
 0x13b   : > { %v506_v9 = vmax.f32 %v446_v5, 0.0 }
 0x13c   : > { %v522_v12 = vpack.c.bf16 %v508_v7, %v507_v6  ;;  %v2215_v6 = vcombine.low %v755_v53, %v759_v54 }
 0x13d   : > { %v2269_v13 = vpop.f32.mrb[4].mxu0  ;;  %v521_v14 = vpack.c.bf16 %v506_v9, %v505_v8 }
 0x13e   : > { %v467_v15 = vadd.f32 %v2269_v13, %v2747_v61  ;;  %v458_v16 = vpop.f32.mrb[5].mxu0 }
 0x13f   : > { %v459_v18 = vadd.f32 %v2747_v61, %v458_v16  ;;  %2287 = vmatprep.mubr.msk.bf16.mxu1 %vm568_vm3, %v521_v14  ;;  %v2270_v19 = vpop.f32.mrb[6].mxu0  ;;  %v767_v14 = vld [vmem:[%s3230_s5 + $0x1a8] sm:$0xff] }
 0x140   : > { %v511_v22 = vmax.f32 %v467_v15, 0.0  ;;  %v470_v23 = vadd.f32 %v2270_v19, %v2747_v61  ;;  %2288 = vmatmul.mubr.msk.bf16.vlgmr.msra.gmra.mrb[0].mxu1 %vm568_vm3, %v522_v12  ;;  %v461_v24 = vpop.f32.mrb[7].mxu0  ;;  %v763_v12 = vld [vmem:[%s3230_s5 + $0x188] sm:$0xff]  ;;  %v774_v19 = vld [vmem:[%s3230_s5 + $0x1e0] sm:$0xff] }
 0x141   : > { %v509_v25 = vmax.f32 %v459_v18, 0.0  ;;  %v462_v26 = vadd.f32 %v2747_v61, %v461_v24  ;;  %1254 = vmatpush1.bf16.msra.mxu1 %v2175_v41  ;;  %v2223_v16 = vcombine.low %v763_v12, %v767_v14  ;;  %v770_v18 = vld [vmem:[%s3230_s5 + $0x1c0] sm:$0xff] }
 0x142   : > { %v512_v28 = vmax.f32 %v470_v23, 0.0  ;;  %1255 = vmatprep.subr.bf16.mxu1 %v2184_v17  ;;  %v2224_v17 = vcombine.high %v763_v12, %v767_v14  ;;  %v2230_v21 = vcombine.high %v770_v18, %v774_v19  ;;  %v2229_v23 = vcombine.low %v770_v18, %v774_v19  ;;  %v741_v14 = vld [vmem:[%s3230_s5 + $0xd8] sm:$0xff] }
 0x143   : > { %v510_v30 = vmax.f32 %v462_v26, 0.0  ;;  %v2485_v26 = vmov 0  }
 0x144   : > { %v524_v33 = vpack.c.bf16 %v512_v28, %v511_v22  ;;  %v775_v22 = vld [vmem:[%s3230_s5 + $0x1e8] sm:$0xff]  ;;  %1172 = vmatprep.mubr.bf16.mxu0 %v2485_v26  ;;  %v720_v28 = vld [vmem:[%s3230_s5 + $0x30] sm:$0xff] }
 0x145   : > { %v523_v34 = vpack.c.bf16 %v510_v30, %v509_v25  ;;  %v2273_v36 = vpop.f32.mrb[8].mxu0  ;;  %1256 = vmatpush1.bf16.msra.mxu1 %v2183_v27  ;;  %v2231_v24 = vcombine.low %v771_v20, %v775_v22  ;;  %v2232_v25 = vcombine.high %v771_v20, %v775_v22  ;;  %v716_v27 = vld [vmem:[%s3230_s5 + $0x10] sm:$0xff] }
 0x146   : > { %v483_v35 = vadd.f32 %v2273_v36, %v2747_v61  ;;  %v474_v38 = vpop.f32.mrb[9].mxu0  ;;  %1257 = vmatprep.subr.bf16.mxu1 %v2192_v29  ;;  %v717_v29 = vld [vmem:[%s3230_s5 + $0x18] sm:$0xff]  ;;  %v2177_v30 = vcombine.low %v716_v27, %v720_v28  ;;  %v2178_v31 = vcombine.high %v716_v27, %v720_v28  ;;  %v2844_v36 = vld [vmem:[#allocation5] ss:$0 sm:$0xff] }
 0x147   : > { %2291 = vmatprep.mubr.msk.bf16.mxu1 %vm568_vm3, %v523_v34  ;;  %v475_v40 = vadd.f32 %v2747_v61, %v474_v38  ;;  %v2274_v41 = vpop.f32.mrb[10].mxu0  ;;  %v2180_v34 = vcombine.high %v717_v29, %v721_v32 }
 0x148   : > { %2292 = vmatmul.mubr.msk.bf16.gmra.mrb[4].mxu1 %vm568_vm3, %v524_v33  ;;  %v515_v44 = vmax.f32 %v483_v35, 0.0  ;;  %v486_v45 = vadd.f32 %v2274_v41, %v2747_v61  ;;  %v477_v46 = vpop.f32.mrb[11].mxu0  ;;  %v2179_v33 = vcombine.low %v717_v29, %v721_v32  ;;  %v752_v29 = vld [vmem:[%s3230_s5 + $0x130] sm:$0xff] }
 0x149   : > { %v513_v47 = vmax.f32 %v475_v40, 0.0  ;;  %v478_v48 = vadd.f32 %v2747_v61, %v477_v46  ;;  %1258 = vmatpush1.bf16.msra.mxu1 %v2191_v37  ;;  %v724_v46 = vld [vmem:[%s3230_s5 + $0x50] sm:$0xff] }
 0x14a   : > { %v516_v50 = vmax.f32 %v486_v45, 0.0  ;;  %1259 = vmatprep.subr.bf16.mxu1 %v2200_v39 }
 0x14b   : > { %v514_v52 = vmax.f32 %v478_v48, 0.0 }
 0x14c   : > { %v526_v55 = vpack.c.bf16 %v516_v50, %v515_v44  ;;  %v725_v50 = vld [vmem:[%s3230_s5 + $0x58] sm:$0xff] }
 0x14d   : > { %v525_v56 = vpack.c.bf16 %v514_v52, %v513_v47  ;;  %v2277_v57 = vpop.f32.mrb[12].mxu0  ;;  %1260 = vmatpush1.bf16.msra.mxu1 %v2199_v49  ;;  %v728_v49 = vld [vmem:[%s3230_s5 + $0x70] sm:$0xff] }
 0x14e   : > { %v499_v59 = vadd.f32 %v2277_v57, %v2747_v61  ;;  %v490_v60 = vpop.f32.mrb[13].mxu0  ;;  %1261 = vmatprep.subr.bf16.mxu1 %v2208_v51  ;;  %v729_v51 = vld [vmem:[%s3230_s5 + $0x78] sm:$0xff] }
 0x14f   : > { %2295 = vmatprep.mubr.msk.bf16.mxu1 %vm568_vm3, %v525_v56  ;;  %v491_v63 = vadd.f32 %v2747_v61, %v490_v60  ;;  %v2278_v0 = vpop.f32.mrb[14].mxu0  ;;  %v736_v60 = vld [vmem:[%s3230_s5 + $0xb0] sm:$0xff] }
 0x150   : > { %2296 = vmatmul.mubr.msk.bf16.gmra.mrb[8].mxu1 %vm568_vm3, %v526_v55  ;;  %v519_v1 = vmax.f32 %v499_v59, 0.0  ;;  %v502_v2 = vadd.f32 %v2278_v0, %v2747_v61  ;;  %v493_v3 = vpop.f32.mrb[15].mxu0  ;;  %v732_v55 = vld [vmem:[%s3230_s5 + $0x90] sm:$0xff]  ;;  %v2188_v59 = vcombine.high %v725_v50, %v729_v51 }
 0x151   : > { %v517_v4 = vmax.f32 %v491_v63, 0.0  ;;  %v494_v5 = vadd.f32 %v2747_v61, %v493_v3  ;;  %1262 = vmatpush1.bf16.msra.mxu1 %v2207_v58  ;;  %v766_v61 = vld [vmem:[%s3230_s5 + $0x1a0] sm:$0xff]  ;;  %v2186_v58 = vcombine.high %v724_v46, %v728_v49  ;;  %v737_v63 = vld [vmem:[%s3230_s5 + $0xb8] sm:$0xff]  ;;  %v2193_v19 = vcombine.low %v732_v55, %v736_v60 }
 0x152   : > { %v520_v7 = vmax.f32 %v502_v2, 0.0  ;;  %1263 = vmatprep.subr.bf16.mxu1 %v2216_v62  ;;  %v2222_v13 = vcombine.high %v762_v11, %v766_v61  ;;  %v2221_v15 = vcombine.low %v762_v11, %v766_v61  ;;  %v733_v62 = vld [vmem:[%s3230_s5 + $0x98] sm:$0xff]  ;;  %v740_v61 = vld [vmem:[%s3230_s5 + $0xd0] sm:$0xff] }
 0x153   : > { %v518_v8 = vmax.f32 %v494_v5, 0.0  ;;  %v2185_v5 = vcombine.low %v724_v46, %v728_v49  ;;  %v2195_v20 = vcombine.low %v733_v62, %v737_v63  ;;  %v757_v46 = vld [vmem:[%s3230_s5 + $0x158] sm:$0xff] }
 0x154   : > { %v528_v9 = vpack.c.bf16 %v520_v7, %v519_v1  ;;  %1152 = vmatprep.subr.bf16.mxu0 %v2222_v13  ;;  %v744_v13 = vld [vmem:[%s3230_s5 + $0xf0] sm:$0xff] }
 0x155   : > { %v527_v10 = vpack.c.bf16 %v518_v8, %v517_v4  ;;  %1264 = vmatpush1.bf16.msra.mxu1 %v2215_v6  ;;  %1153 = vmatpush1.bf16.msra.mxu0 %v2221_v15  ;;  %v2187_v6 = vcombine.low %v725_v50, %v729_v51  ;;  %v745_v15 = vld [vmem:[%s3230_s5 + $0xf8] sm:$0xff] }
 0x156   : > { %1265 = vmatprep.subr.bf16.mxu1 %v2224_v17  ;;  %1154 = vmatprep.subr.bf16.mxu0 %v2230_v21 }
 0x157   : > { %2299 = vmatprep.mubr.msk.bf16.mxu1 %vm568_vm3, %v527_v10  ;;  %v2196_v10 = vcombine.high %v733_v62, %v737_v63  ;;  %v768_v63 = vld [vmem:[%s3230_s5 + $0x1b0] sm:$0xff] }
 0x158   : > { %2300 = vmatmul.mubr.msk.bf16.gmra.mrb[12].mxu1 %vm568_vm3, %v528_v9  ;;  %v2194_v9 = vcombine.high %v732_v55, %v736_v60 }
 0x159   : > { %1266 = vmatpush1.bf16.msra.mxu1 %v2223_v16  ;;  %1155 = vmatpush1.bf16.msra.mxu0 %v2229_v23  ;;  %v2202_v23 = vcombine.high %v740_v61, %v744_v13 }
 0x15a   : > { %1267 = vmatprep.subr.bf16.mxu1 %v2232_v25  ;;  %1285 = vmatprep.mubr.bf16.mxu1 %v2485_v26  ;;  %v748_v25 = vld [vmem:[%s3230_s5 + $0x110] sm:$0xff] }
 0x15b   : > { %1366 = vmatprep.subr.bf16.mxu0 %v2178_v31  ;;  %v753_v31 = vld [vmem:[%s3230_s5 + $0x138] sm:$0xff]  ;;  %v2209_v51 = vcombine.low %v748_v25, %v752_v29 }
 0x15d   : > { %1268 = vmatpush1.bf16.msra.mxu1 %v2231_v24  ;;  %v2204_v24 = vcombine.high %v741_v14, %v745_v15 }
 0x15e   : > { %1479 = vmatprep.subr.bf16.mxu1 %v2180_v34 }
 0x213   : > { %v2289_v37 = vpop.f32.mrb[0].mxu1 }
 0x214   : > { %v636_v35 = vadd.f32 %v2289_v37, %v2844_v36  ;;  %v627_v38 = vpop.f32.mrb[1].mxu1 }
 0x215   : > { %v628_v39 = vadd.f32 %v2844_v36, %v627_v38  ;;  %v2290_v40 = vpop.f32.mrb[2].mxu1  ;;  %v2201_v38 = vcombine.low %v740_v61, %v744_v13  ;;  %v772_v61 = vld [vmem:[%s3230_s5 + $0x1d0] sm:$0xff] }
 0x216   : > { %v639_v41 = vadd.f32 %v2290_v40, %v2844_v36  ;;  %v630_v42 = vpop.f32.mrb[3].mxu1  ;;  %v692_v44 = vmax.f32 %v636_v35, 0.0  ;;  %v776_v13 = vld [vmem:[%s3230_s5 + $0x1f0] sm:$0xff] }
 0x217   : > { %v631_v43 = vadd.f32 %v2844_v36, %v630_v42  ;;  %v690_v47 = vmax.f32 %v628_v39, 0.0  ;;  %v2203_v39 = vcombine.low %v741_v14, %v745_v15  ;;  %v777_v14 = vld [vmem:[%s3230_s5 + $0x1f8] sm:$0xff] }
 0x218   : > { %v693_v45 = vmax.f32 %v639_v41, 0.0  ;;  %v2210_v41 = vcombine.high %v748_v25, %v752_v29 }
 0x219   : > { %v691_v48 = vmax.f32 %v631_v43, 0.0  ;;  %v756_v43 = vld [vmem:[%s3230_s5 + $0x150] sm:$0xff] }
 0x21a   : > { %v2862_v52 = vpack.c.bf16 %v693_v45, %v692_v44  ;;  %v760_v45 = vld [vmem:[%s3230_s5 + $0x170] sm:$0xff] }
 0x21b   : > { %v2864_v53 = vpack.c.bf16 %v691_v48, %v690_v47  ;;  %v2293_v54 = vpop.f32.mrb[4].mxu1  ;;  %v761_v47 = vld [vmem:[%s3230_s5 + $0x178] sm:$0xff] }
 0x21c   : > { %v652_v56 = vadd.f32 %v2293_v54, %v2844_v36  ;;  %v643_v57 = vpop.f32.mrb[5].mxu1 }
 0x21d   : > { %v644_v0 = vadd.f32 %v2844_v36, %v643_v57  ;;  %1173 = vmatmul.mubr.bf16.vlgmr.msra.gmra.mrb[16].mxu0 %v2864_v53  ;;  %1286 = vmatmul.mubr.bf16.vlgmr.msra.gmra.mrb[16].mxu1 %v2864_v53  ;;  %v2294_v1 = vpop.f32.mrb[6].mxu1  ;;  %v2218_v57 = vcombine.high %v756_v43, %v760_v45 }
 0x21e   : > { %v696_v2 = vmax.f32 %v652_v56, 0.0  ;;  %1367 = vmatpush1.bf16.msra.mxu0 %v2177_v30  ;;  %1480 = vmatpush1.bf16.msra.mxu1 %v2179_v33  ;;  %v655_v3 = vadd.f32 %v2294_v1, %v2844_v36  ;;  %v646_v4 = vpop.f32.mrb[7].mxu1  ;;  %v749_v30 = vld [vmem:[%s3230_s5 + $0x118] sm:$0xff] }
 0x21f   : > { %v694_v7 = vmax.f32 %v644_v0, 0.0  ;;  %v647_v8 = vadd.f32 %v2844_v36, %v646_v4  ;;  %1182 = vmatprep.mubr.bf16.mxu0 %v2485_v26  ;;  %1295 = vmatprep.mubr.bf16.mxu1 %v2485_v26  ;;  %v2212_v42 = vcombine.high %v749_v30, %v753_v31  ;;  %v2211_v54 = vcombine.low %v749_v30, %v753_v31  ;;  %v765_v0 = vld [vmem:[%s3230_s5 + $0x198] sm:$0xff] }
 0x220   : > { %v697_v11 = vmax.f32 %v655_v3, 0.0  ;;  %1368 = vmatprep.subr.bf16.mxu0 %v2186_v58  ;;  %1481 = vmatprep.subr.bf16.mxu1 %v2188_v59  ;;  %v2220_v58 = vcombine.high %v757_v46, %v761_v47  ;;  %v764_v59 = vld [vmem:[%s3230_s5 + $0x190] sm:$0xff]  ;;  %v769_v1 = vld [vmem:[%s3230_s5 + $0x1b8] sm:$0xff] }
 0x221   : > { %v695_v12 = vmax.f32 %v647_v8, 0.0  ;;  %v2219_v8 = vcombine.low %v757_v46, %v761_v47 }
 0x222   : > { %v2898_v16 = vpack.c.bf16 %v697_v11, %v696_v2  ;;  %1369 = vmatpush1.bf16.msra.mxu0 %v2185_v5  ;;  %1482 = vmatpush1.bf16.msra.mxu1 %v2187_v6  ;;  %v2228_v11 = vcombine.high %v765_v0, %v769_v1 }
 0x223   : > { %v2900_v17 = vpack.c.bf16 %v695_v12, %v694_v7  ;;  %v2297_v18 = vpop.f32.mrb[8].mxu1  ;;  %1370 = vmatprep.subr.bf16.mxu0 %v2194_v9  ;;  %1483 = vmatprep.subr.bf16.mxu1 %v2196_v10  ;;  %v2217_v7 = vcombine.low %v756_v43, %v760_v45  ;;  %v2226_v10 = vcombine.high %v764_v59, %v768_v63 }
 0x224   : > { %v668_v21 = vadd.f32 %v2297_v18, %v2844_v36  ;;  %v659_v22 = vpop.f32.mrb[9].mxu1 }
 0x225   : > { %1183 = vmatmul.mubr.bf16.gmra.mrb[20].mxu0 %v2862_v52  ;;  %1296 = vmatmul.mubr.bf16.gmra.mrb[20].mxu1 %v2862_v52  ;;  %v660_v27 = vadd.f32 %v2844_v36, %v659_v22  ;;  %v2298_v28 = vpop.f32.mrb[10].mxu1 }
 0x226   : > { %v700_v32 = vmax.f32 %v668_v21, 0.0  ;;  %1192 = vmatprep.mubr.bf16.mxu0 %v2485_v26  ;;  %1305 = vmatprep.mubr.bf16.mxu1 %v2485_v26  ;;  %v671_v33 = vadd.f32 %v2298_v28, %v2844_v36  ;;  %v662_v34 = vpop.f32.mrb[11].mxu1  ;;  %v2234_v21 = vcombine.high %v772_v61, %v776_v13  ;;  %v3024_v28 = vld [vmem:[#allocation7] sm:$0xff] }
 0x227   : > { %v698_v37 = vmax.f32 %v660_v27, 0.0  ;;  %1371 = vmatpush1.bf16.msra.mxu0 %v2193_v19  ;;  %1484 = vmatpush1.bf16.msra.mxu1 %v2195_v20  ;;  %v663_v35 = vadd.f32 %v2844_v36, %v662_v34  ;;  %v2225_v19 = vcombine.low %v764_v59, %v768_v63  ;;  %v2227_v20 = vcombine.low %v765_v0, %v769_v1 }
 0x228   : > { %v701_v40 = vmax.f32 %v671_v33, 0.0  ;;  %1372 = vmatprep.subr.bf16.mxu0 %v2202_v23  ;;  %1485 = vmatprep.subr.bf16.mxu1 %v2204_v24  ;;  %v2233_v23 = vcombine.low %v772_v61, %v776_v13 }
 0x229   : > { %v699_v44 = vmax.f32 %v663_v35, 0.0 }
 0x22a   : > { %v2934_v48 = vpack.c.bf16 %v701_v40, %v700_v32 }
 0x22b   : > { %v2936_v49 = vpack.c.bf16 %v699_v44, %v698_v37  ;;  %1373 = vmatpush1.bf16.msra.mxu0 %v2201_v38  ;;  %1486 = vmatpush1.bf16.msra.mxu1 %v2203_v39  ;;  %v2301_v50 = vpop.f32.mrb[12].mxu1 }
 0x22c   : > { %v684_v55 = vadd.f32 %v2301_v50, %v2844_v36  ;;  %1374 = vmatprep.subr.bf16.mxu0 %v2210_v41  ;;  %1487 = vmatprep.subr.bf16.mxu1 %v2212_v42  ;;  %v675_v56 = vpop.f32.mrb[13].mxu1 }
 0x22d   : > { %1193 = vmatmul.mubr.bf16.gmra.mrb[24].mxu0 %v2900_v17  ;;  %1306 = vmatmul.mubr.bf16.gmra.mrb[24].mxu1 %v2900_v17  ;;  %v676_v60 = vadd.f32 %v2844_v36, %v675_v56  ;;  %v2302_v62 = vpop.f32.mrb[14].mxu1 }
 0x22e   : > { %1202 = vmatprep.mubr.bf16.mxu0 %v2485_v26  ;;  %1315 = vmatprep.mubr.bf16.mxu1 %v2485_v26  ;;  %v704_v2 = vmax.f32 %v684_v55, 0.0  ;;  %v687_v3 = vadd.f32 %v2302_v62, %v2844_v36  ;;  %v678_v4 = vpop.f32.mrb[15].mxu1 }
 0x22f   : > { %v702_v5 = vmax.f32 %v676_v60, 0.0  ;;  %1375 = vmatpush1.bf16.msra.mxu0 %v2209_v51  ;;  %1488 = vmatpush1.bf16.msra.mxu1 %v2211_v54  ;;  %v679_v6 = vadd.f32 %v2844_v36, %v678_v4  ;;  %v773_v36 = vld [vmem:[%s3230_s5 + $0x1d8] sm:$0xff] }
 0x230   : > { %v705_v9 = vmax.f32 %v687_v3, 0.0  ;;  %1376 = vmatprep.subr.bf16.mxu0 %v2218_v57  ;;  %1489 = vmatprep.subr.bf16.mxu1 %v2220_v58  ;;  %v2236_v22 = vcombine.high %v773_v36, %v777_v14  ;;  %v2235_v24 = vcombine.low %v773_v36, %v777_v14 }
 0x231   : > { %v703_v12 = vmax.f32 %v679_v6, 0.0 }
 0x232   : > { %v2970_v15 = vpack.c.bf16 %v705_v9, %v704_v2 }
 0x233   : > { %v712_v18 = vpack.c.bf16 %v703_v12, %v702_v5  ;;  %1377 = vmatpush1.bf16.msra.mxu0 %v2217_v7  ;;  %1490 = vmatpush1.bf16.msra.mxu1 %v2219_v8 }
 0x234   : > { %1378 = vmatprep.subr.bf16.mxu0 %v2226_v10  ;;  %1491 = vmatprep.subr.bf16.mxu1 %v2228_v11 }
 0x235   : > { %1203 = vmatmul.mubr.bf16.gmra.mrb[28].mxu0 %v2898_v16  ;;  %1316 = vmatmul.mubr.bf16.gmra.mrb[28].mxu1 %v2898_v16 }
 0x236   : > { %1212 = vmatprep.mubr.bf16.mxu0 %v2485_v26  ;;  %1325 = vmatprep.mubr.bf16.mxu1 %v2485_v26 }
 0x237   : > { %1379 = vmatpush1.bf16.msra.mxu0 %v2225_v19  ;;  %1492 = vmatpush1.bf16.msra.mxu1 %v2227_v20 }
 0x238   : > { %1380 = vmatprep.subr.bf16.mxu0 %v2234_v21  ;;  %1493 = vmatprep.subr.bf16.mxu1 %v2236_v22 }
 0x23b   : > { %1381 = vmatpush1.bf16.msra.mxu0 %v2233_v23  ;;  %1494 = vmatpush1.bf16.msra.mxu1 %v2235_v24 }
 0x23d   : > { %1213 = vmatmul.mubr.bf16.gmra.mrb[32].mxu0 %v2936_v49  ;;  %1326 = vmatmul.mubr.bf16.gmra.mrb[32].mxu1 %v2936_v49 }
 0x23e   : > { %1222 = vmatprep.mubr.bf16.mxu0 %v2485_v26  ;;  %1335 = vmatprep.mubr.bf16.mxu1 %v2485_v26 }
 0x245   : > { %1223 = vmatmul.mubr.bf16.gmra.mrb[36].mxu0 %v2934_v48  ;;  %1336 = vmatmul.mubr.bf16.gmra.mrb[36].mxu1 %v2934_v48 }
 0x246   : > { %1232 = vmatprep.mubr.bf16.mxu0 %v2485_v26  ;;  %1345 = vmatprep.mubr.bf16.mxu1 %v2485_v26 }
 0x24d   : > { %1233 = vmatmul.mubr.bf16.gmra.mrb[40].mxu0 %v712_v18  ;;  %1346 = vmatmul.mubr.bf16.gmra.mrb[40].mxu1 %v712_v18 }
 0x24e   : > { %1242 = vmatprep.mubr.bf16.mxu0 %v2485_v26  ;;  %1355 = vmatprep.mubr.bf16.mxu1 %v2485_v26 }
 0x255   : > { %1243 = vmatmul.mubr.bf16.gmra.mrb[44].mxu0 %v2970_v15  ;;  %1356 = vmatmul.mubr.bf16.gmra.mrb[44].mxu1 %v2970_v15 }
 0x256   : > { %1398 = vmatprep.mubr.bf16.mxu0 %v2485_v26  ;;  %1511 = vmatprep.mubr.bf16.mxu1 %v2485_v26 }
 0x25d   : > { %1399 = vmatmul.mubr.bf16.vlgmr.msra.gmra.mrb[48].mxu0 %v2864_v53  ;;  %1512 = vmatmul.mubr.bf16.vlgmr.msra.gmra.mrb[48].mxu1 %v2864_v53 }
 0x25e   : > { %1408 = vmatprep.mubr.bf16.mxu0 %v2485_v26  ;;  %1521 = vmatprep.mubr.bf16.mxu1 %v2485_v26 }
 0x265   : > { %1409 = vmatmul.mubr.bf16.gmra.mrb[52].mxu0 %v2862_v52  ;;  %1522 = vmatmul.mubr.bf16.gmra.mrb[52].mxu1 %v2862_v52  ;;  %v780_v52 = vlaneseq }
 0x266   : > { %1418 = vmatprep.mubr.bf16.mxu0 %v2485_v26  ;;  %1531 = vmatprep.mubr.bf16.mxu1 %v2485_v26 }
 0x267   : > { %v3018_v53 = vshrl.u32 %v780_v52, 7 }
 0x269   : > { %v786_v25 = vsub.s32 1, %v3018_v53  ;;  %v794_v27 = vsub.s32 3, %v3018_v53 }
 0x26b   : > { %v3033_v32 = vrot.slane %v3024_v28, %v786_v25  ;;  %v3036_v33 = vrot.slane %v3024_v28, %v794_v27 }
 0x26d   : > { %1419 = vmatmul.mubr.bf16.gmra.mrb[56].mxu0 %v2900_v17  ;;  %1532 = vmatmul.mubr.bf16.gmra.mrb[56].mxu1 %v2900_v17  ;;  %v790_v17 = vsub.s32 2, %v3018_v53 }
 0x26e   : > { %1428 = vmatprep.mubr.bf16.mxu0 %v2485_v26  ;;  %1541 = vmatprep.mubr.bf16.mxu1 %v2485_v26 }
 0x26f   : > { %v3030_v30 = vrot.slane %v3024_v28, %v790_v17 }
 0x275   : > { %1429 = vmatmul.mubr.bf16.gmra.mrb[60].mxu0 %v2898_v16  ;;  %1542 = vmatmul.mubr.bf16.gmra.mrb[60].mxu1 %v2898_v16  ;;  %v782_v16 = vsub.s32 0, %v3018_v53 }
 0x276   : > { %1438 = vmatprep.mubr.bf16.mxu0 %v2485_v26  ;;  %1551 = vmatprep.mubr.bf16.mxu1 %v2485_v26 }
 0x277   : > { %v3027_v29 = vrot.slane %v3024_v28, %v782_v16 }
 0x27d   : > { %1439 = vmatmul.mubr.bf16.gmra.mrb[64].mxu0 %v2936_v49  ;;  %1552 = vmatmul.mubr.bf16.gmra.mrb[64].mxu1 %v2936_v49 }
 0x27e   : > { %1448 = vmatprep.mubr.bf16.mxu0 %v2485_v26  ;;  %1561 = vmatprep.mubr.bf16.mxu1 %v2485_v26 }
 0x285   : > { %1449 = vmatmul.mubr.bf16.gmra.mrb[68].mxu0 %v2934_v48  ;;  %1562 = vmatmul.mubr.bf16.gmra.mrb[68].mxu1 %v2934_v48 }
 0x286   : > { %1458 = vmatprep.mubr.bf16.mxu0 %v2485_v26  ;;  %1571 = vmatprep.mubr.bf16.mxu1 %v2485_v26 }
 0x28d   : > { %1459 = vmatmul.mubr.bf16.gmra.mrb[72].mxu0 %v712_v18  ;;  %1572 = vmatmul.mubr.bf16.gmra.mrb[72].mxu1 %v712_v18 }
 0x28e   : > { %1468 = vmatprep.mubr.bf16.mxu0 %v2485_v26  ;;  %1581 = vmatprep.mubr.bf16.mxu1 %v2485_v26 }
 0x295   : > { %1469 = vmatmul.mubr.bf16.gmra.mrb[76].mxu0 %v2970_v15  ;;  %1582 = vmatmul.mubr.bf16.gmra.mrb[76].mxu1 %v2970_v15 }
 0x2f0   : > { %v1174_v26 = vpop.f32.mrb[16].mxu0  ;;  %v1287_v31 = vpop.f32.mrb[16].mxu1 }
 0x2f1   : > { %v1176_v34 = vpop.f32.mrb[17].mxu0  ;;  %v1289_v37 = vpop.f32.mrb[17].mxu1  ;;  %v1175_v41 = vadd.f32 %v1174_v26, %v3027_v29  ;;  %v1288_v42 = vadd.f32 %v1287_v31, %v3030_v30 }
 0x2f2   : > { %v1178_v35 = vpop.f32.mrb[18].mxu0  ;;  %v1291_v38 = vpop.f32.mrb[18].mxu1  ;;  %v1177_v43 = vadd.f32 %v1176_v34, %v3033_v32  ;;  %v1290_v44 = vadd.f32 %v1289_v37, %v3036_v33 }
 0x2f3   : > { %v1180_v39 = vpop.f32.mrb[19].mxu0  ;;  %v1293_v40 = vpop.f32.mrb[19].mxu1  ;;  %v1179_v45 = vadd.f32 %v1178_v35, %v3027_v29  ;;  %v1292_v46 = vadd.f32 %v1291_v38, %v3030_v30  ;;  %v1592_v49 = vmax.f32 %v1175_v41, 0.0  ;;  %v1594_v50 = vmax.f32 %v1288_v42, 0.0 }
 0x2f4   : > { %v1181_v47 = vadd.f32 %v1180_v39, %v3033_v32  ;;  %v1294_v48 = vadd.f32 %v1293_v40, %v3036_v33  ;;  %v1593_v51 = vmax.f32 %v1177_v43, 0.0  ;;  %v1595_v54 = vmax.f32 %v1290_v44, 0.0 }
 0x2f5   : > { %v1600_v57 = vmax.f32 %v1179_v45, 0.0  ;;  %v1602_v58 = vmax.f32 %v1292_v46, 0.0 }
 0x2f6   : > { %v1601_v0 = vmax.f32 %v1181_v47, 0.0  ;;  %v1603_v1 = vmax.f32 %v1294_v48, 0.0 }
 0x2f8   : > { %v1184_v55 = vpop.f32.mrb[20].mxu0  ;;  %v1297_v56 = vpop.f32.mrb[20].mxu1 }
 0x2f9   : > { %v1185_v59 = vadd.f32 %v1184_v55, %v3027_v29  ;;  %v1298_v60 = vadd.f32 %v1297_v56, %v3030_v30  ;;  %v1186_v62 = vpop.f32.mrb[21].mxu0  ;;  %v1299_v63 = vpop.f32.mrb[21].mxu1 }
 0x2fa   : > { %v1187_v2 = vadd.f32 %v1186_v62, %v3033_v32  ;;  %v1300_v3 = vadd.f32 %v1299_v63, %v3036_v33  ;;  %v1188_v4 = vpop.f32.mrb[22].mxu0  ;;  %v1301_v5 = vpop.f32.mrb[22].mxu1 }
 0x2fb   : > { %v1608_v6 = vmax.f32 %v1185_v59, 0.0  ;;  %v1610_v7 = vmax.f32 %v1298_v60, 0.0  ;;  %v1189_v8 = vadd.f32 %v1188_v4, %v3027_v29  ;;  %v1302_v9 = vadd.f32 %v1301_v5, %v3030_v30  ;;  %v1190_v10 = vpop.f32.mrb[23].mxu0  ;;  %v1303_v11 = vpop.f32.mrb[23].mxu1 }
 0x2fc   : > { %v1609_v61 = vmax.f32 %v1187_v2, 0.0  ;;  %v1611_v12 = vmax.f32 %v1300_v3, 0.0  ;;  %v1191_v13 = vadd.f32 %v1190_v10, %v3033_v32  ;;  %v1304_v36 = vadd.f32 %v1303_v11, %v3036_v33 }
 0x2fd   : > { %v1720_v14 = vmax.f32 %v1592_v49, %v1608_v6  ;;  %v1722_v15 = vmax.f32 %v1594_v50, %v1610_v7  ;;  %v1616_v18 = vmax.f32 %v1189_v8, 0.0  ;;  %v1618_v19 = vmax.f32 %v1302_v9, 0.0 }
 0x2fe   : > { %v1721_v20 = vmax.f32 %v1593_v51, %v1609_v61  ;;  %v1723_v21 = vmax.f32 %v1595_v54, %v1611_v12  ;;  %v1617_v22 = vmax.f32 %v1191_v13, 0.0  ;;  %v1619_v23 = vmax.f32 %v1304_v36, 0.0 }
 0x2ff   : > { %v1728_v24 = vmax.f32 %v1600_v57, %v1616_v18  ;;  %v1730_v52 = vmax.f32 %v1602_v58, %v1618_v19 }
 0x300   : > { %v1729_v16 = vmax.f32 %v1601_v0, %v1617_v22  ;;  %v1731_v17 = vmax.f32 %v1603_v1, %v1619_v23  ;;  %v1194_v25 = vpop.f32.mrb[24].mxu0  ;;  %v1307_v27 = vpop.f32.mrb[24].mxu1 }
 0x301   : > { %v1195_v26 = vadd.f32 %v1194_v25, %v3027_v29  ;;  %v1308_v31 = vadd.f32 %v1307_v27, %v3030_v30  ;;  %v1196_v34 = vpop.f32.mrb[25].mxu0  ;;  %v1309_v37 = vpop.f32.mrb[25].mxu1 }
 0x302   : > { %v1197_v35 = vadd.f32 %v1196_v34, %v3033_v32  ;;  %v1310_v38 = vadd.f32 %v1309_v37, %v3036_v33  ;;  %v1198_v39 = vpop.f32.mrb[26].mxu0  ;;  %v1311_v40 = vpop.f32.mrb[26].mxu1 }
 0x303   : > { %v1624_v41 = vmax.f32 %v1195_v26, 0.0  ;;  %v1626_v42 = vmax.f32 %v1308_v31, 0.0  ;;  %v1199_v43 = vadd.f32 %v1198_v39, %v3027_v29  ;;  %v1312_v44 = vadd.f32 %v1311_v40, %v3030_v30  ;;  %v1200_v45 = vpop.f32.mrb[27].mxu0  ;;  %v1313_v46 = vpop.f32.mrb[27].mxu1 }
 0x304   : > { %v1625_v47 = vmax.f32 %v1197_v35, 0.0  ;;  %v1627_v48 = vmax.f32 %v1310_v38, 0.0  ;;  %v1201_v49 = vadd.f32 %v1200_v45, %v3033_v32  ;;  %v1314_v50 = vadd.f32 %v1313_v46, %v3036_v33 }
 0x305   : > { %v1736_v51 = vmax.f32 %v1720_v14, %v1624_v41  ;;  %v1738_v54 = vmax.f32 %v1722_v15, %v1626_v42  ;;  %v1632_v55 = vmax.f32 %v1199_v43, 0.0  ;;  %v1634_v56 = vmax.f32 %v1312_v44, 0.0 }
 0x306   : > { %v1737_v57 = vmax.f32 %v1721_v20, %v1625_v47  ;;  %v1739_v58 = vmax.f32 %v1723_v21, %v1627_v48  ;;  %v1633_v59 = vmax.f32 %v1201_v49, 0.0  ;;  %v1635_v60 = vmax.f32 %v1314_v50, 0.0 }
 0x307   : > { %v1744_v62 = vmax.f32 %v1728_v24, %v1632_v55  ;;  %v1746_v63 = vmax.f32 %v1730_v52, %v1634_v56 }
 0x308   : > { %v1745_v0 = vmax.f32 %v1729_v16, %v1633_v59  ;;  %v1747_v1 = vmax.f32 %v1731_v17, %v1635_v60  ;;  %v1204_v2 = vpop.f32.mrb[28].mxu0  ;;  %v1317_v3 = vpop.f32.mrb[28].mxu1 }
 0x309   : > { %v1205_v4 = vadd.f32 %v1204_v2, %v3027_v29  ;;  %v1318_v5 = vadd.f32 %v1317_v3, %v3030_v30  ;;  %v1206_v6 = vpop.f32.mrb[29].mxu0  ;;  %v1319_v7 = vpop.f32.mrb[29].mxu1 }
 0x30a   : > { %v1207_v8 = vadd.f32 %v1206_v6, %v3033_v32  ;;  %v1320_v9 = vadd.f32 %v1319_v7, %v3036_v33  ;;  %v1208_v10 = vpop.f32.mrb[30].mxu0  ;;  %v1321_v11 = vpop.f32.mrb[30].mxu1 }
 0x30b   : > { %v1640_v61 = vmax.f32 %v1205_v4, 0.0  ;;  %v1642_v12 = vmax.f32 %v1318_v5, 0.0  ;;  %v1209_v13 = vadd.f32 %v1208_v10, %v3027_v29  ;;  %v1322_v36 = vadd.f32 %v1321_v11, %v3030_v30  ;;  %v1210_v14 = vpop.f32.mrb[31].mxu0  ;;  %v1323_v15 = vpop.f32.mrb[31].mxu1 }
 0x30c   : > { %v1641_v18 = vmax.f32 %v1207_v8, 0.0  ;;  %v1643_v19 = vmax.f32 %v1320_v9, 0.0  ;;  %v1211_v20 = vadd.f32 %v1210_v14, %v3033_v32  ;;  %v1324_v21 = vadd.f32 %v1323_v15, %v3036_v33 }
 0x30d   : > { %v1752_v22 = vmax.f32 %v1736_v51, %v1640_v61  ;;  %v1754_v23 = vmax.f32 %v1738_v54, %v1642_v12  ;;  %v1648_v24 = vmax.f32 %v1209_v13, 0.0  ;;  %v1650_v52 = vmax.f32 %v1322_v36, 0.0 }
 0x30e   : > { %v1753_v16 = vmax.f32 %v1737_v57, %v1641_v18  ;;  %v1755_v17 = vmax.f32 %v1739_v58, %v1643_v19  ;;  %v1649_v25 = vmax.f32 %v1211_v20, 0.0  ;;  %v1651_v27 = vmax.f32 %v1324_v21, 0.0 }
 0x30f   : > { %v1760_v26 = vmax.f32 %v1744_v62, %v1648_v24  ;;  %v1762_v31 = vmax.f32 %v1746_v63, %v1650_v52 }
 0x310   : > { %v1761_v34 = vmax.f32 %v1745_v0, %v1649_v25  ;;  %v1763_v37 = vmax.f32 %v1747_v1, %v1651_v27  ;;  %v1214_v35 = vpop.f32.mrb[32].mxu0  ;;  %v1327_v38 = vpop.f32.mrb[32].mxu1 }
 0x311   : > { %v1215_v39 = vadd.f32 %v1214_v35, %v3027_v29  ;;  %v1328_v40 = vadd.f32 %v1327_v38, %v3030_v30  ;;  %v1216_v41 = vpop.f32.mrb[33].mxu0  ;;  %v1329_v42 = vpop.f32.mrb[33].mxu1 }
 0x312   : > { %v1217_v43 = vadd.f32 %v1216_v41, %v3033_v32  ;;  %v1330_v44 = vadd.f32 %v1329_v42, %v3036_v33  ;;  %v1218_v45 = vpop.f32.mrb[34].mxu0  ;;  %v1331_v46 = vpop.f32.mrb[34].mxu1 }
 0x313   : > { %v1656_v47 = vmax.f32 %v1215_v39, 0.0  ;;  %v1658_v48 = vmax.f32 %v1328_v40, 0.0  ;;  %v1219_v49 = vadd.f32 %v1218_v45, %v3027_v29  ;;  %v1332_v50 = vadd.f32 %v1331_v46, %v3030_v30  ;;  %v1220_v51 = vpop.f32.mrb[35].mxu0  ;;  %v1333_v54 = vpop.f32.mrb[35].mxu1 }
 0x314   : > { %v1657_v55 = vmax.f32 %v1217_v43, 0.0  ;;  %v1659_v56 = vmax.f32 %v1330_v44, 0.0  ;;  %v1221_v57 = vadd.f32 %v1220_v51, %v3033_v32  ;;  %v1334_v58 = vadd.f32 %v1333_v54, %v3036_v33 }
 0x315   : > { %v1768_v59 = vmax.f32 %v1752_v22, %v1656_v47  ;;  %v1770_v60 = vmax.f32 %v1754_v23, %v1658_v48  ;;  %v1664_v62 = vmax.f32 %v1219_v49, 0.0  ;;  %v1666_v63 = vmax.f32 %v1332_v50, 0.0 }
 0x316   : > { %v1769_v0 = vmax.f32 %v1753_v16, %v1657_v55  ;;  %v1771_v1 = vmax.f32 %v1755_v17, %v1659_v56  ;;  %v1665_v2 = vmax.f32 %v1221_v57, 0.0  ;;  %v1667_v3 = vmax.f32 %v1334_v58, 0.0 }
 0x317   : > { %v1776_v4 = vmax.f32 %v1760_v26, %v1664_v62  ;;  %v1778_v5 = vmax.f32 %v1762_v31, %v1666_v63  ;;  %v798_v49 = vsub.s32 4, %v3018_v53  ;;  %v806_v50 = vsub.s32 6, %v3018_v53 }
 0x318   : > { %v1777_v6 = vmax.f32 %v1761_v34, %v1665_v2  ;;  %v1779_v7 = vmax.f32 %v1763_v37, %v1667_v3  ;;  %v1224_v8 = vpop.f32.mrb[36].mxu0  ;;  %v1337_v9 = vpop.f32.mrb[36].mxu1  ;;  %v802_v57 = vsub.s32 5, %v3018_v53  ;;  %v810_v58 = vsub.s32 7, %v3018_v53 }
 0x319   : > { %v1225_v10 = vadd.f32 %v1224_v8, %v3027_v29  ;;  %v1338_v11 = vadd.f32 %v1337_v9, %v3030_v30  ;;  %v1226_v61 = vpop.f32.mrb[37].mxu0  ;;  %v1339_v12 = vpop.f32.mrb[37].mxu1 }
 0x31a   : > { %v1227_v13 = vadd.f32 %v1226_v61, %v3033_v32  ;;  %v1340_v36 = vadd.f32 %v1339_v12, %v3036_v33  ;;  %v1228_v14 = vpop.f32.mrb[38].mxu0  ;;  %v1341_v15 = vpop.f32.mrb[38].mxu1 }
 0x31b   : > { %v1672_v18 = vmax.f32 %v1225_v10, 0.0  ;;  %v1674_v19 = vmax.f32 %v1338_v11, 0.0  ;;  %v1229_v20 = vadd.f32 %v1228_v14, %v3027_v29  ;;  %v1342_v21 = vadd.f32 %v1341_v15, %v3030_v30  ;;  %v1230_v22 = vpop.f32.mrb[39].mxu0  ;;  %v1343_v23 = vpop.f32.mrb[39].mxu1 }
 0x31c   : > { %v1673_v24 = vmax.f32 %v1227_v13, 0.0  ;;  %v1675_v52 = vmax.f32 %v1340_v36, 0.0  ;;  %v1231_v16 = vadd.f32 %v1230_v22, %v3033_v32  ;;  %v1344_v17 = vadd.f32 %v1343_v23, %v3036_v33 }
 0x31d   : > { %v1784_v25 = vmax.f32 %v1768_v59, %v1672_v18  ;;  %v1786_v27 = vmax.f32 %v1770_v60, %v1674_v19  ;;  %v1680_v26 = vmax.f32 %v1229_v20, 0.0  ;;  %v1682_v31 = vmax.f32 %v1342_v21, 0.0 }
 0x31e   : > { %v1785_v34 = vmax.f32 %v1769_v0, %v1673_v24  ;;  %v1787_v37 = vmax.f32 %v1771_v1, %v1675_v52  ;;  %v1681_v35 = vmax.f32 %v1231_v16, 0.0  ;;  %v1683_v38 = vmax.f32 %v1344_v17, 0.0 }
 0x31f   : > { %v1792_v39 = vmax.f32 %v1776_v4, %v1680_v26  ;;  %v1794_v40 = vmax.f32 %v1778_v5, %v1682_v31  ;;  %v3099_v20 = vrot.slane %v3024_v28, %v798_v49  ;;  %v3104_v52 = vrot.slane %v3024_v28, %v806_v50 }
 0x320   : > { %v1793_v41 = vmax.f32 %v1777_v6, %v1681_v35  ;;  %v1795_v42 = vmax.f32 %v1779_v7, %v1683_v38  ;;  %v1234_v43 = vpop.f32.mrb[40].mxu0  ;;  %v1347_v44 = vpop.f32.mrb[40].mxu1  ;;  %v3107_v16 = vrot.slane %v3024_v28, %v802_v57  ;;  %v2486_v31 = vmov 1966171168  }
 0x321   : > { %v1235_v45 = vadd.f32 %v1234_v43, %v3027_v29  ;;  %v1348_v46 = vadd.f32 %v1347_v44, %v3030_v30  ;;  %v1236_v47 = vpop.f32.mrb[41].mxu0  ;;  %v1349_v48 = vpop.f32.mrb[41].mxu1 }
 0x322   : > { %v1237_v51 = vadd.f32 %v1236_v47, %v3033_v32  ;;  %v1350_v54 = vadd.f32 %v1349_v48, %v3036_v33  ;;  %v1238_v55 = vpop.f32.mrb[42].mxu0  ;;  %v1351_v56 = vpop.f32.mrb[42].mxu1 }
 0x323   : > { %v1688_v59 = vmax.f32 %v1235_v45, 0.0  ;;  %v1690_v60 = vmax.f32 %v1348_v46, 0.0  ;;  %v1239_v62 = vadd.f32 %v1238_v55, %v3027_v29  ;;  %v1352_v63 = vadd.f32 %v1351_v56, %v3030_v30  ;;  %v1240_v0 = vpop.f32.mrb[43].mxu0  ;;  %v1353_v1 = vpop.f32.mrb[43].mxu1 }
 0x324   : > { %v1689_v2 = vmax.f32 %v1237_v51, 0.0  ;;  %v1691_v3 = vmax.f32 %v1350_v54, 0.0  ;;  %v1241_v4 = vadd.f32 %v1240_v0, %v3033_v32  ;;  %v1354_v5 = vadd.f32 %v1353_v1, %v3036_v33 }
 0x325   : > { %v1800_v6 = vmax.f32 %v1784_v25, %v1688_v59  ;;  %v1802_v7 = vmax.f32 %v1786_v27, %v1690_v60  ;;  %v1696_v8 = vmax.f32 %v1239_v62, 0.0  ;;  %v1698_v9 = vmax.f32 %v1352_v63, 0.0 }
 0x326   : > { %v1801_v10 = vmax.f32 %v1785_v34, %v1689_v2  ;;  %v1803_v11 = vmax.f32 %v1787_v37, %v1691_v3  ;;  %v1697_v61 = vmax.f32 %v1241_v4, 0.0  ;;  %v1699_v12 = vmax.f32 %v1354_v5, 0.0 }
 0x327   : > { %v1808_v13 = vmax.f32 %v1792_v39, %v1696_v8  ;;  %v1810_v36 = vmax.f32 %v1794_v40, %v1698_v9  ;;  %v1992_v34 = vunpack.c.l.s4 %v2486_v31  ;;  %v3112_v37 = vrot.slane %v3024_v28, %v810_v58 }
 0x328   : > { %v1809_v14 = vmax.f32 %v1793_v41, %v1697_v61  ;;  %v1811_v15 = vmax.f32 %v1795_v42, %v1699_v12  ;;  %v1244_v18 = vpop.f32.mrb[44].mxu0  ;;  %v1357_v19 = vpop.f32.mrb[44].mxu1 }
 0x329   : > { %v1245_v21 = vadd.f32 %v1244_v18, %v3027_v29  ;;  %v1358_v22 = vadd.f32 %v1357_v19, %v3030_v30  ;;  %v1246_v23 = vpop.f32.mrb[45].mxu0  ;;  %v1359_v24 = vpop.f32.mrb[45].mxu1  ;;  %v1993_v57 = vunpack.c.0.s8 %v1992_v34 }
 0x32a   : > { %v1247_v17 = vadd.f32 %v1246_v23, %v3033_v32  ;;  %v1360_v25 = vadd.f32 %v1359_v24, %v3036_v33  ;;  %v1248_v27 = vpop.f32.mrb[46].mxu0  ;;  %v1361_v26 = vpop.f32.mrb[46].mxu1 }
 0x32b   : > { %v1704_v35 = vmax.f32 %v1245_v21, 0.0  ;;  %v1706_v38 = vmax.f32 %v1358_v22, 0.0  ;;  %v1249_v39 = vadd.f32 %v1248_v27, %v3027_v29  ;;  %v1362_v40 = vadd.f32 %v1361_v26, %v3030_v30  ;;  %v1250_v41 = vpop.f32.mrb[47].mxu0  ;;  %v1363_v42 = vpop.f32.mrb[47].mxu1 }
 0x32c   : > { %v1705_v43 = vmax.f32 %v1247_v17, 0.0  ;;  %v1707_v44 = vmax.f32 %v1360_v25, 0.0  ;;  %v1251_v45 = vadd.f32 %v1250_v41, %v3033_v32  ;;  %v1364_v46 = vadd.f32 %v1363_v42, %v3036_v33 }
 0x32d   : > { %v1816_v47 = vmax.f32 %v1800_v6, %v1704_v35  ;;  %v1818_v48 = vmax.f32 %v1802_v7, %v1706_v38  ;;  %v1712_v49 = vmax.f32 %v1249_v39, 0.0  ;;  %v1714_v50 = vmax.f32 %v1362_v40, 0.0 }
 0x32e   : > { %v1817_v28 = vmax.f32 %v1801_v10, %v1705_v43  ;;  %v1819_v51 = vmax.f32 %v1803_v11, %v1707_v44  ;;  %v1713_v54 = vmax.f32 %v1251_v45, 0.0  ;;  %v1715_v55 = vmax.f32 %v1364_v46, 0.0 }
 0x32f   : > { %v1824_v56 = vmax.f32 %v1808_v13, %v1712_v49  ;;  %v1826_v29 = vmax.f32 %v1810_v36, %v1714_v50  ;;  %v3123_v10 = vsub.s32 %v1993_v57, %v3018_v53 }
 0x330   : > { %v1825_v30 = vmax.f32 %v1809_v14, %v1713_v54  ;;  %v1827_v58 = vmax.f32 %v1811_v15, %v1715_v55  ;;  %v1400_v59 = vpop.f32.mrb[48].mxu0  ;;  %v1513_v60 = vpop.f32.mrb[48].mxu1 }
 0x331   : > { %v1923_v62 = vmax.f32 %v1816_v47, %v1824_v56  ;;  %v1937_v63 = vmax.f32 %v1818_v48, %v1826_v29  ;;  %v1401_v32 = vadd.f32 %v1400_v59, %v3099_v20  ;;  %v1514_v33 = vadd.f32 %v1513_v60, %v3104_v52  ;;  %v1402_v0 = vpop.f32.mrb[49].mxu0  ;;  %v1515_v1 = vpop.f32.mrb[49].mxu1 }
 0x332   : > { %v1930_v2 = vmax.f32 %v1817_v28, %v1825_v30  ;;  %v1944_v3 = vmax.f32 %v1819_v51, %v1827_v58  ;;  %v1403_v4 = vadd.f32 %v1402_v0, %v3107_v16  ;;  %v1516_v5 = vadd.f32 %v1515_v1, %v3112_v37  ;;  %v1404_v6 = vpop.f32.mrb[50].mxu0  ;;  %v1517_v7 = vpop.f32.mrb[50].mxu1 }
 0x333   : > { %v1924_v8 = vrot.slane %v1923_v62, 4  ;;  %v1938_v9 = vrot.slane %v1937_v63, 4  ;;  %v1406_v11 = vpop.f32.mrb[51].mxu0  ;;  %v1519_v61 = vpop.f32.mrb[51].mxu1  ;;  %v1596_v36 = vmax.f32 %v1401_v32, 0.0  ;;  %v1598_v14 = vmax.f32 %v1514_v33, 0.0 }
 0x334   : > { %v1931_v12 = vrot.slane %v1930_v2, 4  ;;  %v1945_v13 = vrot.slane %v1944_v3, 4  ;;  %v3126_v19 = vadd.f32 %v1404_v6, %v3099_v20  ;;  %v3129_v21 = vadd.f32 %v1517_v7, %v3104_v52 }
 0x335   : > { %v1925_v15 = vmax.f32 %v1923_v62, %v1924_v8  ;;  %v1939_v18 = vmax.f32 %v1937_v63, %v1938_v9  ;;  %v1597_v24 = vmax.f32 %v1403_v4, 0.0  ;;  %v1599_v17 = vmax.f32 %v1516_v5, 0.0 }
 0x336   : > { %v1932_v22 = vmax.f32 %v1930_v2, %v1931_v12  ;;  %v1946_v23 = vmax.f32 %v1944_v3, %v1945_v13  ;;  %v3132_v27 = vadd.f32 %v1406_v11, %v3107_v16  ;;  %v3135_v26 = vadd.f32 %v1519_v61, %v3112_v37 }
 0x337   : > { %v1926_v53 = vrot.slane %v1925_v15, 2  ;;  %v1940_v25 = vrot.slane %v1939_v18, 2  ;;  %v1604_v35 = vmax.f32 %v3126_v19, 0.0  ;;  %v1606_v38 = vmax.f32 %v3129_v21, 0.0 }
 0x338   : > { %v1933_v31 = vrot.slane %v1932_v22, 2  ;;  %v1947_v34 = vrot.slane %v1946_v23, 2  ;;  %v1410_v39 = vpop.f32.mrb[52].mxu0  ;;  %v1523_v40 = vpop.f32.mrb[52].mxu1  ;;  %v1605_v61 = vmax.f32 %v3132_v27, 0.0  ;;  %v1607_v12 = vmax.f32 %v3135_v26, 0.0 }
 0x339   : > { %v1927_v41 = vmax.f32 %v1925_v15, %v1926_v53  ;;  %v1941_v42 = vmax.f32 %v1939_v18, %v1940_v25  ;;  %v1411_v43 = vadd.f32 %v1410_v39, %v3099_v20  ;;  %v1524_v44 = vadd.f32 %v1523_v40, %v3104_v52  ;;  %v1412_v45 = vpop.f32.mrb[53].mxu0  ;;  %v1525_v46 = vpop.f32.mrb[53].mxu1 }
 0x33a   : > { %v1934_v47 = vmax.f32 %v1932_v22, %v1933_v31  ;;  %v1948_v48 = vmax.f32 %v1946_v23, %v1947_v34  ;;  %v1413_v49 = vadd.f32 %v1412_v45, %v3107_v16  ;;  %v1526_v50 = vadd.f32 %v1525_v46, %v3112_v37  ;;  %v1414_v28 = vpop.f32.mrb[54].mxu0  ;;  %v1527_v51 = vpop.f32.mrb[54].mxu1 }
 0x33b   : > { %v1928_v54 = vrot.slane %v1927_v41, 1  ;;  %v1942_v55 = vrot.slane %v1941_v42, 1  ;;  %v1612_v56 = vmax.f32 %v1411_v43, 0.0  ;;  %v1614_v29 = vmax.f32 %v1524_v44, 0.0  ;;  %v1416_v57 = vpop.f32.mrb[55].mxu0  ;;  %v1529_v30 = vpop.f32.mrb[55].mxu1 }
 0x33c   : > { %v1935_v58 = vrot.slane %v1934_v47, 1  ;;  %v1949_v59 = vrot.slane %v1948_v48, 1  ;;  %v1613_v60 = vmax.f32 %v1413_v49, 0.0  ;;  %v1615_v62 = vmax.f32 %v1526_v50, 0.0 }
 0x33d   : > { %v1929_v63 = vmax.f32 %v1927_v41, %v1928_v54  ;;  %v1943_v32 = vmax.f32 %v1941_v42, %v1942_v55  ;;  %v1724_v33 = vmax.f32 %v1596_v36, %v1612_v56  ;;  %v1726_v0 = vmax.f32 %v1598_v14, %v1614_v29 }
 0x33e   : > { %v1936_v1 = vmax.f32 %v1934_v47, %v1935_v58  ;;  %v1950_v2 = vmax.f32 %v1948_v48, %v1949_v59  ;;  %v1725_v3 = vmax.f32 %v1597_v24, %v1613_v60  ;;  %v1727_v4 = vmax.f32 %v1599_v17, %v1615_v62 }
 0x33f   : > { %v1415_v5 = vadd.f32 %v1414_v28, %v3099_v20  ;;  %v1528_v6 = vadd.f32 %v1527_v51, %v3104_v52  ;;  %v1417_v7 = vadd.f32 %v1416_v57, %v3107_v16  ;;  %v1530_v8 = vadd.f32 %v1529_v30, %v3112_v37 }
 0x340   : > { %v1987_v9 = vcombine.low %v1929_v63, %v1936_v1  ;;  %v1988_v11 = vcombine.low %v1943_v32, %v1950_v2  ;;  %v1420_v13 = vpop.f32.mrb[56].mxu0  ;;  %v1533_v36 = vpop.f32.mrb[56].mxu1 }
 0x341   : > { %v1620_v14 = vmax.f32 %v1415_v5, 0.0  ;;  %v1622_v15 = vmax.f32 %v1528_v6, 0.0  ;;  %v1621_v18 = vmax.f32 %v1417_v7, 0.0  ;;  %v1623_v19 = vmax.f32 %v1530_v8, 0.0  ;;  %v1422_v21 = vpop.f32.mrb[57].mxu0  ;;  %v1535_v22 = vpop.f32.mrb[57].mxu1 }
 0x342   : > { %v3150_v23 = vrot.slane %v1987_v9, %v3123_v10  ;;  %v3153_v24 = vrot.slane %v1988_v11, %v3123_v10  ;;  %v1421_v17 = vadd.f32 %v1420_v13, %v3099_v20  ;;  %v1534_v53 = vadd.f32 %v1533_v36, %v3104_v52  ;;  %v1424_v25 = vpop.f32.mrb[58].mxu0  ;;  %v1537_v27 = vpop.f32.mrb[58].mxu1 }
 0x343   : > { %v1732_v26 = vmax.f32 %v1604_v35, %v1620_v14  ;;  %v1734_v31 = vmax.f32 %v1606_v38, %v1622_v15  ;;  %v1733_v34 = vmax.f32 %v1605_v61, %v1621_v18  ;;  %v1735_v39 = vmax.f32 %v1607_v12, %v1623_v19  ;;  %v1426_v40 = vpop.f32.mrb[59].mxu0  ;;  %v1539_v41 = vpop.f32.mrb[59].mxu1 }
 0x344   : > { %v2019_v42 = vcombine.low %v3150_v23, %v3153_v24  ;;  %v1628_v43 = vmax.f32 %v1421_v17, 0.0  ;;  %v1630_v44 = vmax.f32 %v1534_v53, 0.0  ;;  %v1423_v45 = vadd.f32 %v1422_v21, %v3107_v16 }
 0x345   : > { %v1536_v46 = vadd.f32 %v1535_v22, %v3112_v37  ;;  %v1425_v47 = vadd.f32 %v1424_v25, %v3099_v20  ;;  %v1538_v48 = vadd.f32 %v1537_v27, %v3104_v52  ;;  %v1427_v35 = vadd.f32 %v1426_v40, %v3107_v16 }
 0x346   : > { %v1740_v38 = vmax.f32 %v1724_v33, %v1628_v43  ;;  %v1742_v49 = vmax.f32 %v1726_v0, %v1630_v44  ;;  %v1629_v50 = vmax.f32 %v1423_v45, 0.0  ;;  %v1540_v29 = vadd.f32 %v1539_v41, %v3112_v37 }
 0x347   : > { %v1631_v28 = vmax.f32 %v1536_v46, 0.0  ;;  %v1636_v51 = vmax.f32 %v1425_v47, 0.0  ;;  %v1638_v54 = vmax.f32 %v1538_v48, 0.0  ;;  %v1637_v55 = vmax.f32 %v1427_v35, 0.0 }
 0x348   : > { %v1741_v56 = vmax.f32 %v1725_v3, %v1629_v50  ;;  %v1430_v57 = vpop.f32.mrb[60].mxu0  ;;  %v1543_v30 = vpop.f32.mrb[60].mxu1  ;;  %v1639_v1 = vmax.f32 %v1540_v29, 0.0 }
 0x349   : > { %v1743_v58 = vmax.f32 %v1727_v4, %v1631_v28  ;;  %v1748_v59 = vmax.f32 %v1732_v26, %v1636_v51  ;;  %v1750_v60 = vmax.f32 %v1734_v31, %v1638_v54  ;;  %v1749_v62 = vmax.f32 %v1733_v34, %v1637_v55  ;;  %v1432_v63 = vpop.f32.mrb[61].mxu0  ;;  %v1545_v32 = vpop.f32.mrb[61].mxu1 }
 0x34a   : > { %v1431_v33 = vadd.f32 %v1430_v57, %v3099_v20  ;;  %v1544_v0 = vadd.f32 %v1543_v30, %v3104_v52  ;;  %v1433_v2 = vadd.f32 %v1432_v63, %v3107_v16  ;;  %v1434_v5 = vpop.f32.mrb[62].mxu0  ;;  %v1547_v6 = vpop.f32.mrb[62].mxu1  ;;  %v1546_v3 = vadd.f32 %v1545_v32, %v3112_v37 }
 0x34b   : > { %v1435_v7 = vadd.f32 %v1434_v5, %v3099_v20  ;;  %v1548_v4 = vadd.f32 %v1547_v6, %v3104_v52  ;;  %v1436_v8 = vpop.f32.mrb[63].mxu0  ;;  %v1549_v9 = vpop.f32.mrb[63].mxu1  ;;  %v1751_v11 = vmax.f32 %v1735_v39, %v1639_v1 }
 0x34c   : > { %v1644_v61 = vmax.f32 %v1431_v33, 0.0  ;;  %v1646_v12 = vmax.f32 %v1544_v0, 0.0  ;;  %v1645_v13 = vmax.f32 %v1433_v2, 0.0  ;;  %v1647_v36 = vmax.f32 %v1546_v3, 0.0 }
 0x34d   : > { %v1652_v14 = vmax.f32 %v1435_v7, 0.0  ;;  %v1654_v15 = vmax.f32 %v1548_v4, 0.0  ;;  %v1437_v18 = vadd.f32 %v1436_v8, %v3107_v16  ;;  %v1550_v17 = vadd.f32 %v1549_v9, %v3112_v37 }
 0x34e   : > { %v1756_v19 = vmax.f32 %v1740_v38, %v1644_v61  ;;  %v1758_v21 = vmax.f32 %v1742_v49, %v1646_v12  ;;  %v1757_v22 = vmax.f32 %v1741_v56, %v1645_v13  ;;  %v1759_v53 = vmax.f32 %v1743_v58, %v1647_v36 }
 0x34f   : > { %v1764_v25 = vmax.f32 %v1748_v59, %v1652_v14  ;;  %v1766_v27 = vmax.f32 %v1750_v60, %v1654_v15  ;;  %v1653_v26 = vmax.f32 %v1437_v18, 0.0  ;;  %v1655_v31 = vmax.f32 %v1550_v17, 0.0 }
 0x350   : > { %v1440_v34 = vpop.f32.mrb[64].mxu0  ;;  %v1553_v39 = vpop.f32.mrb[64].mxu1 }
 0x351   : > { %v1765_v40 = vmax.f32 %v1749_v62, %v1653_v26  ;;  %v1441_v41 = vadd.f32 %v1440_v34, %v3099_v20  ;;  %v1554_v43 = vadd.f32 %v1553_v39, %v3104_v52  ;;  %v1442_v44 = vpop.f32.mrb[65].mxu0  ;;  %v1555_v45 = vpop.f32.mrb[65].mxu1  ;;  %v1767_v46 = vmax.f32 %v1751_v11, %v1655_v31 }
 0x352   : > { %v1443_v47 = vadd.f32 %v1442_v44, %v3107_v16  ;;  %v1556_v48 = vadd.f32 %v1555_v45, %v3112_v37  ;;  %v1444_v35 = vpop.f32.mrb[66].mxu0  ;;  %v1557_v38 = vpop.f32.mrb[66].mxu1 }
 0x353   : > { %v1660_v49 = vmax.f32 %v1441_v41, 0.0  ;;  %v1662_v50 = vmax.f32 %v1554_v43, 0.0  ;;  %v1445_v28 = vadd.f32 %v1444_v35, %v3099_v20  ;;  %v1558_v51 = vadd.f32 %v1557_v38, %v3104_v52  ;;  %v1446_v54 = vpop.f32.mrb[67].mxu0  ;;  %v1559_v55 = vpop.f32.mrb[67].mxu1 }
 0x354   : > { %v1661_v56 = vmax.f32 %v1443_v47, 0.0  ;;  %v1663_v29 = vmax.f32 %v1556_v48, 0.0  ;;  %v1447_v57 = vadd.f32 %v1446_v54, %v3107_v16  ;;  %v1560_v30 = vadd.f32 %v1559_v55, %v3112_v37 }
 0x355   : > { %v1772_v58 = vmax.f32 %v1756_v19, %v1660_v49  ;;  %v1774_v59 = vmax.f32 %v1758_v21, %v1662_v50  ;;  %v1668_v60 = vmax.f32 %v1445_v28, 0.0  ;;  %v1670_v62 = vmax.f32 %v1558_v51, 0.0 }
 0x356   : > { %v1773_v63 = vmax.f32 %v1757_v22, %v1661_v56  ;;  %v1775_v32 = vmax.f32 %v1759_v53, %v1663_v29  ;;  %v1669_v1 = vmax.f32 %v1447_v57, 0.0  ;;  %v1671_v33 = vmax.f32 %v1560_v30, 0.0 }
 0x357   : > { %v1780_v0 = vmax.f32 %v1764_v25, %v1668_v60  ;;  %v1782_v2 = vmax.f32 %v1766_v27, %v1670_v62 }
 0x358   : > { %v1781_v5 = vmax.f32 %v1765_v40, %v1669_v1  ;;  %v1783_v6 = vmax.f32 %v1767_v46, %v1671_v33  ;;  %v1450_v3 = vpop.f32.mrb[68].mxu0  ;;  %v1563_v7 = vpop.f32.mrb[68].mxu1 }
 0x359   : > { %v1451_v4 = vadd.f32 %v1450_v3, %v3099_v20  ;;  %v1564_v8 = vadd.f32 %v1563_v7, %v3104_v52  ;;  %v1452_v9 = vpop.f32.mrb[69].mxu0  ;;  %v1565_v11 = vpop.f32.mrb[69].mxu1 }
 0x35a   : > { %v1453_v61 = vadd.f32 %v1452_v9, %v3107_v16  ;;  %v1566_v12 = vadd.f32 %v1565_v11, %v3112_v37  ;;  %v1454_v13 = vpop.f32.mrb[70].mxu0  ;;  %v1567_v36 = vpop.f32.mrb[70].mxu1 }
 0x35b   : > { %v1676_v14 = vmax.f32 %v1451_v4, 0.0  ;;  %v1678_v15 = vmax.f32 %v1564_v8, 0.0  ;;  %v1455_v18 = vadd.f32 %v1454_v13, %v3099_v20  ;;  %v1568_v19 = vadd.f32 %v1567_v36, %v3104_v52  ;;  %v1456_v21 = vpop.f32.mrb[71].mxu0  ;;  %v1569_v22 = vpop.f32.mrb[71].mxu1 }
 0x35c   : > { %v1677_v17 = vmax.f32 %v1453_v61, 0.0  ;;  %v1679_v53 = vmax.f32 %v1566_v12, 0.0  ;;  %v1457_v25 = vadd.f32 %v1456_v21, %v3107_v16  ;;  %v1570_v27 = vadd.f32 %v1569_v22, %v3112_v37 }
 0x35d   : > { %v1788_v26 = vmax.f32 %v1772_v58, %v1676_v14  ;;  %v1790_v31 = vmax.f32 %v1774_v59, %v1678_v15  ;;  %v1684_v34 = vmax.f32 %v1455_v18, 0.0  ;;  %v1686_v39 = vmax.f32 %v1568_v19, 0.0 }
 0x35e   : > { %v1789_v40 = vmax.f32 %v1773_v63, %v1677_v17  ;;  %v1791_v41 = vmax.f32 %v1775_v32, %v1679_v53  ;;  %v1685_v43 = vmax.f32 %v1457_v25, 0.0  ;;  %v1687_v44 = vmax.f32 %v1570_v27, 0.0 }
 0x35f   : > { %v1796_v45 = vmax.f32 %v1780_v0, %v1684_v34  ;;  %v1798_v46 = vmax.f32 %v1782_v2, %v1686_v39 }
 0x360   : > { %v1797_v47 = vmax.f32 %v1781_v5, %v1685_v43  ;;  %v1799_v48 = vmax.f32 %v1783_v6, %v1687_v44  ;;  %v1460_v35 = vpop.f32.mrb[72].mxu0  ;;  %v1573_v38 = vpop.f32.mrb[72].mxu1 }
 0x361   : > { %v1461_v49 = vadd.f32 %v1460_v35, %v3099_v20  ;;  %v1574_v50 = vadd.f32 %v1573_v38, %v3104_v52  ;;  %v1462_v28 = vpop.f32.mrb[73].mxu0  ;;  %v1575_v51 = vpop.f32.mrb[73].mxu1 }
 0x362   : > { %v1463_v54 = vadd.f32 %v1462_v28, %v3107_v16  ;;  %v1576_v55 = vadd.f32 %v1575_v51, %v3112_v37  ;;  %v1464_v56 = vpop.f32.mrb[74].mxu0  ;;  %v1577_v29 = vpop.f32.mrb[74].mxu1 }
 0x363   : > { %v1692_v57 = vmax.f32 %v1461_v49, 0.0  ;;  %v1694_v30 = vmax.f32 %v1574_v50, 0.0  ;;  %v1465_v58 = vadd.f32 %v1464_v56, %v3099_v20  ;;  %v1578_v59 = vadd.f32 %v1577_v29, %v3104_v52  ;;  %v1466_v60 = vpop.f32.mrb[75].mxu0  ;;  %v1579_v62 = vpop.f32.mrb[75].mxu1 }
 0x364   : > { %v1693_v63 = vmax.f32 %v1463_v54, 0.0  ;;  %v1695_v32 = vmax.f32 %v1576_v55, 0.0  ;;  %v1467_v1 = vadd.f32 %v1466_v60, %v3107_v16  ;;  %v1580_v33 = vadd.f32 %v1579_v62, %v3112_v37 }
 0x365   : > { %v1804_v0 = vmax.f32 %v1788_v26, %v1692_v57  ;;  %v1806_v2 = vmax.f32 %v1790_v31, %v1694_v30  ;;  %v1700_v5 = vmax.f32 %v1465_v58, 0.0  ;;  %v1702_v6 = vmax.f32 %v1578_v59, 0.0 }
 0x366   : > { %v1805_v3 = vmax.f32 %v1789_v40, %v1693_v63  ;;  %v1807_v7 = vmax.f32 %v1791_v41, %v1695_v32  ;;  %v1701_v4 = vmax.f32 %v1467_v1, 0.0  ;;  %v1703_v8 = vmax.f32 %v1580_v33, 0.0 }
 0x367   : > { %v1812_v9 = vmax.f32 %v1796_v45, %v1700_v5  ;;  %v1814_v11 = vmax.f32 %v1798_v46, %v1702_v6 }
 0x368   : > { %v1813_v61 = vmax.f32 %v1797_v47, %v1701_v4  ;;  %v1815_v12 = vmax.f32 %v1799_v48, %v1703_v8  ;;  %v1470_v13 = vpop.f32.mrb[76].mxu0  ;;  %v1583_v36 = vpop.f32.mrb[76].mxu1 }
 0x369   : > { %v1471_v14 = vadd.f32 %v1470_v13, %v3099_v20  ;;  %v1584_v15 = vadd.f32 %v1583_v36, %v3104_v52  ;;  %v1472_v18 = vpop.f32.mrb[77].mxu0  ;;  %v1585_v19 = vpop.f32.mrb[77].mxu1 }
 0x36a   : > { %v1473_v21 = vadd.f32 %v1472_v18, %v3107_v16  ;;  %v1586_v22 = vadd.f32 %v1585_v19, %v3112_v37  ;;  %v1474_v17 = vpop.f32.mrb[78].mxu0  ;;  %v1587_v53 = vpop.f32.mrb[78].mxu1  ;;  %v2027_v19 = vrot.slane %v2019_v42, %v3123_v10 }
 0x36b   : > { %v1708_v25 = vmax.f32 %v1471_v14, 0.0  ;;  %v1710_v27 = vmax.f32 %v1584_v15, 0.0  ;;  %v1475_v26 = vadd.f32 %v1474_v17, %v3099_v20  ;;  %v1588_v31 = vadd.f32 %v1587_v53, %v3104_v52  ;;  %v1476_v34 = vpop.f32.mrb[79].mxu0  ;;  %v1589_v39 = vpop.f32.mrb[79].mxu1 }
 0x36c   : > { %v1709_v40 = vmax.f32 %v1473_v21, 0.0  ;;  %v1711_v41 = vmax.f32 %v1586_v22, 0.0  ;;  %v1477_v43 = vadd.f32 %v1476_v34, %v3107_v16  ;;  %v1590_v44 = vadd.f32 %v1589_v39, %v3112_v37 }
 0x36d   : > { %v1820_v45 = vmax.f32 %v1804_v0, %v1708_v25  ;;  %v1822_v46 = vmax.f32 %v1806_v2, %v1710_v27  ;;  %v1716_v47 = vmax.f32 %v1475_v26, 0.0  ;;  %v1718_v48 = vmax.f32 %v1588_v31, 0.0 }
 0x36e   : > { %v1821_v35 = vmax.f32 %v1805_v3, %v1709_v40  ;;  %v1823_v38 = vmax.f32 %v1807_v7, %v1711_v41  ;;  %v1717_v49 = vmax.f32 %v1477_v43, 0.0  ;;  %v1719_v50 = vmax.f32 %v1590_v44, 0.0 }
 0x36f   : > { %v1828_v28 = vmax.f32 %v1812_v9, %v1716_v47  ;;  %v1830_v20 = vmax.f32 %v1814_v11, %v1718_v48 }
 0x370   : > { %v1829_v51 = vmax.f32 %v1813_v61, %v1717_v49  ;;  %v1831_v52 = vmax.f32 %v1815_v12, %v1719_v50 }
 0x371   : > { %v1951_v54 = vmax.f32 %v1820_v45, %v1828_v28  ;;  %v1965_v55 = vmax.f32 %v1822_v46, %v1830_v20 }
 0x372   : > { %v1958_v56 = vmax.f32 %v1821_v35, %v1829_v51  ;;  %v1972_v29 = vmax.f32 %v1823_v38, %v1831_v52 }
 0x373   : > { %v1952_v57 = vrot.slane %v1951_v54, 4  ;;  %v1966_v16 = vrot.slane %v1965_v55, 4 }
 0x374   : > { %v1959_v30 = vrot.slane %v1958_v56, 4  ;;  %v1973_v37 = vrot.slane %v1972_v29, 4 }
 0x375   : > { %v1953_v58 = vmax.f32 %v1951_v54, %v1952_v57  ;;  %v1967_v59 = vmax.f32 %v1965_v55, %v1966_v16 }
 0x376   : > { %v1960_v60 = vmax.f32 %v1958_v56, %v1959_v30  ;;  %v1974_v62 = vmax.f32 %v1972_v29, %v1973_v37 }
 0x377   : > { %v1954_v63 = vrot.slane %v1953_v58, 2  ;;  %v1968_v32 = vrot.slane %v1967_v59, 2 }
 0x378   : > { %v1961_v1 = vrot.slane %v1960_v60, 2  ;;  %v1975_v33 = vrot.slane %v1974_v62, 2 }
 0x379   : > { %v1955_v0 = vmax.f32 %v1953_v58, %v1954_v63  ;;  %v1969_v2 = vmax.f32 %v1967_v59, %v1968_v32 }
 0x37a   : > { %v1962_v5 = vmax.f32 %v1960_v60, %v1961_v1  ;;  %v1976_v6 = vmax.f32 %v1974_v62, %v1975_v33 }
 0x37b   : > { %v1956_v3 = vrot.slane %v1955_v0, 1  ;;  %v1970_v7 = vrot.slane %v1969_v2, 1 }
 0x37c   : > { %v1963_v4 = vrot.slane %v1962_v5, 1  ;;  %v1977_v8 = vrot.slane %v1976_v6, 1 }
 0x37d   : > { %v1957_v9 = vmax.f32 %v1955_v0, %v1956_v3  ;;  %v1971_v11 = vmax.f32 %v1969_v2, %v1970_v7 }
 0x37e   : > { %v1964_v61 = vmax.f32 %v1962_v5, %v1963_v4  ;;  %v1978_v12 = vmax.f32 %v1976_v6, %v1977_v8 }
 0x380   : > { %v1989_v13 = vcombine.low %v1957_v9, %v1964_v61  ;;  %v1990_v36 = vcombine.low %v1971_v11, %v1978_v12 }
 0x382   : > { %v2011_v14 = vrot.slane %v1989_v13, %v3123_v10  ;;  %v2018_v15 = vrot.slane %v1990_v36, %v3123_v10 }
 0x384   : > { %v2020_v18 = vcombine.low %v2011_v14, %v2018_v15 }
 0x386   : > { %v2034_v21 = vrot.slane %v2020_v18, %v3123_v10 }
 0x388   : > { %v2035_v22 = vcombine.low %v2027_v19, %v2034_v21 }
 0x38a   : > { %2037 = vst [vmem:[%s342_s15] sm:$0xff] %v2035_v22 }
 0x38b PF: > { %s19_s26 = sadd.s32 1, %s2479_s26   ;;  %s3244_s24 = smov %s2475_s25 }
 0x38c   : > { %p16_p5 = scmp.ge.s32.totalorder %s19_s26, 4   ;;  %s3245_s25 = smov %s3247_s9 }
 0x38e   :  { %18 = sbr.rel (!%p16_p5) target bundleno = 3 (0x3), region = 103 }
 0x395   :  { %2057 = vsyncpa [#allocation4], 1 }
 0x396   :  { %2059 = vsyncpa [#allocation4 + $0x1], 1 }
 0x397   :  { %2060 = vsyncpa [#allocation6], 1 }

// kernel: pointnet_local_features_forward.6
= control target key start
LH: loop header
LB: loop body
LE: loop exit
PB: predicated region body
PF: predicated region fallthrough
CT: control target
= control target key end

     0   :  { %v3528_v36 = vmov 1983009808   ;;  %v35_v38 = vlaneseq  ;;  %vm2632_vm0 = vcmask 66560   ;;  %s4667_s1 = inlined_call_operand.vmem [shape: bf16[1024,512], index: 1, kind: input, shape index: {}]   ;;  %s4668_s0 = inlined_call_operand.vmem [shape: f32[2,1024], index: 0, kind: input, shape index: {}]   ;;  %s4669_s3 = inlined_call_operand.vmem [shape: bf16[512,256], index: 3, kind: input, shape index: {}]   ;;  %s4670_s2 = inlined_call_operand.vmem [shape: f32[1,512], index: 2, kind: input, shape index: {}]   ;;  %s4671_s5 = inlined_call_operand.vmem [shape: bf16[256,9], index: 5, kind: input, shape index: {}]   ;;  %s4672_s4 = inlined_call_operand.vmem [shape: f32[1,256], index: 4, kind: input, shape index: {}]   ;;  %s4673_s6 = inlined_call_operand.vmem [shape: f32[1,9], index: 6, kind: input, shape index: {}]   ;;  %s4674_s7 = inlined_call_operand.vmem [shape: f32[2,9], index: 7, kind: output, shape index: {}]  }
   0x1   :  { %v3030_v0 = vld [vmem:[%s4667_s1 + $0x4] ss:$16 sps:$4 sm:$0xff]   ;;  %v3034_v2 = vld [vmem:[%s4667_s1] ss:$16 sps:$4 sm:$0xff]   ;;  %v33_v37 = vunpack.c.l.s4 %v3528_v36 }
   0x2   :  { %v3032_v1 = vld [vmem:[%s4667_s1 + $0x204] ss:$16 sps:$4 sm:$0xff]   ;;  %1639 = vmatprep.subr.bf16.mxu1 %v3030_v0  ;;  %v3035_v3 = vld [vmem:[%s4667_s1 + $0x200] ss:$16 sps:$4 sm:$0xff]   ;;  %v3686_v43 = vshrl.u32 %v35_v38, 7 }
   0x3   :  { %1680 = vmatprep.subr.bf16.mxu0 %v3032_v1  ;;  %v3036_v4 = vld [vmem:[%s4667_s1 + $0x24] ss:$16 sps:$4 sm:$0xff]   ;;  %1640 = vmatpush1.bf16.msra.mxu1 %v3034_v2  ;;  %v3040_v6 = vld [vmem:[%s4667_s1 + $0x20] ss:$16 sps:$4 sm:$0xff]   ;;  %v34_v42 = vunpack.c.0.s8 %v33_v37  ;;  %v3157_v37 = vld [vmem:[%s4667_s1 + $0x8c] ss:$16 sps:$4 sm:$0xff]  }
   0x4   :  { %1681 = vmatpush1.bf16.msra.mxu0 %v3035_v3  ;;  %v3038_v5 = vld [vmem:[%s4667_s1 + $0x224] ss:$16 sps:$4 sm:$0xff]   ;;  %1641 = vmatprep.subr.bf16.mxu1 %v3036_v4  ;;  %v3041_v7 = vld [vmem:[%s4667_s1 + $0x220] ss:$16 sps:$4 sm:$0xff]  }
   0x5   :  { %1682 = vmatprep.subr.bf16.mxu0 %v3038_v5  ;;  %v3042_v8 = vld [vmem:[%s4667_s1 + $0x44] ss:$16 sps:$4 sm:$0xff]   ;;  %v3046_v10 = vld [vmem:[%s4667_s1 + $0x40] ss:$16 sps:$4 sm:$0xff]   ;;  %v3704_v49 = vsub.s32 %v34_v42, %v3686_v43 }
   0x6   :  { %v3044_v9 = vld [vmem:[%s4667_s1 + $0x244] ss:$16 sps:$4 sm:$0xff]   ;;  %v3047_v11 = vld [vmem:[%s4667_s1 + $0x240] ss:$16 sps:$4 sm:$0xff]  }
   0x7   :  { %1642 = vmatpush1.bf16.msra.mxu1 %v3040_v6  ;;  %v3048_v12 = vld [vmem:[%s4667_s1 + $0x64] ss:$16 sps:$4 sm:$0xff]   ;;  %v3052_v14 = vld [vmem:[%s4667_s1 + $0x60] ss:$16 sps:$4 sm:$0xff]  }
   0x8   :  { %1683 = vmatpush1.bf16.msra.mxu0 %v3041_v7  ;;  %1643 = vmatprep.subr.bf16.mxu1 %v3042_v8  ;;  %v3050_v13 = vld [vmem:[%s4667_s1 + $0x264] ss:$16 sps:$4 sm:$0xff]   ;;  %v3053_v15 = vld [vmem:[%s4667_s1 + $0x260] ss:$16 sps:$4 sm:$0xff]   ;;  %v3759_v8 = vld [vmem:[%s4668_s0 + $0x8] sm:$0xff] }
   0x9   :  { %1684 = vmatprep.subr.bf16.mxu0 %v3044_v9  ;;  %v3054_v16 = vld [vmem:[%s4667_s1 + $0x84] ss:$16 sps:$4 sm:$0xff]   ;;  %v3058_v18 = vld [vmem:[%s4667_s1 + $0x80] ss:$16 sps:$4 sm:$0xff]  }
   0xa   :  { %v3056_v17 = vld [vmem:[%s4667_s1 + $0x284] ss:$16 sps:$4 sm:$0xff]   ;;  %v3059_v19 = vld [vmem:[%s4667_s1 + $0x280] ss:$16 sps:$4 sm:$0xff]  }
   0xb   :  { %1644 = vmatpush1.bf16.msra.mxu1 %v3046_v10  ;;  %v3060_v20 = vld [vmem:[%s4667_s1 + $0xa4] ss:$16 sps:$4 sm:$0xff]   ;;  %v3064_v22 = vld [vmem:[%s4667_s1 + $0xa0] ss:$16 sps:$4 sm:$0xff]  }
   0xc   :  { %1685 = vmatpush1.bf16.msra.mxu0 %v3047_v11  ;;  %1645 = vmatprep.subr.bf16.mxu1 %v3048_v12  ;;  %v3062_v21 = vld [vmem:[%s4667_s1 + $0x2a4] ss:$16 sps:$4 sm:$0xff]   ;;  %v3065_v23 = vld [vmem:[%s4667_s1 + $0x2a0] ss:$16 sps:$4 sm:$0xff]  }
   0xd   :  { %1686 = vmatprep.subr.bf16.mxu0 %v3050_v13  ;;  %v3066_v24 = vld [vmem:[%s4667_s1 + $0xc4] ss:$16 sps:$4 sm:$0xff]   ;;  %v3070_v26 = vld [vmem:[%s4667_s1 + $0xc0] ss:$16 sps:$4 sm:$0xff]   ;;  %v3775_v13 = vrot.slane %v3759_v8, %v3704_v49 }
   0xe   :  { %v3068_v25 = vld [vmem:[%s4667_s1 + $0x2c4] ss:$16 sps:$4 sm:$0xff]   ;;  %v3071_v27 = vld [vmem:[%s4667_s1 + $0x2c0] ss:$16 sps:$4 sm:$0xff]  }
   0xf   :  { %1646 = vmatpush1.bf16.msra.mxu1 %v3052_v14  ;;  %v3072_v28 = vld [vmem:[%s4667_s1 + $0xe4] ss:$16 sps:$4 sm:$0xff]   ;;  %v3076_v30 = vld [vmem:[%s4667_s1 + $0xe0] ss:$16 sps:$4 sm:$0xff]  }
  0x10   :  { %1687 = vmatpush1.bf16.msra.mxu0 %v3053_v15  ;;  %1647 = vmatprep.subr.bf16.mxu1 %v3054_v16  ;;  %v3074_v29 = vld [vmem:[%s4667_s1 + $0x2e4] ss:$16 sps:$4 sm:$0xff]   ;;  %v3077_v31 = vld [vmem:[%s4667_s1 + $0x2e0] ss:$16 sps:$4 sm:$0xff]  }
  0x11   :  { %1688 = vmatprep.subr.bf16.mxu0 %v3056_v17  ;;  %v3078_v32 = vld [vmem:[%s4667_s1 + $0x104] ss:$16 sps:$4 sm:$0xff]   ;;  %v3082_v34 = vld [vmem:[%s4667_s1 + $0x100] ss:$16 sps:$4 sm:$0xff]   ;;  %v3133_v17 = vld [vmem:[%s4667_s1 + $0xc] ss:$16 sps:$4 sm:$0xff]  }
  0x12   :  { %v3080_v33 = vld [vmem:[%s4667_s1 + $0x304] ss:$16 sps:$4 sm:$0xff]   ;;  %v3083_v35 = vld [vmem:[%s4667_s1 + $0x300] ss:$16 sps:$4 sm:$0xff]  }
  0x13   :  { %1648 = vmatpush1.bf16.msra.mxu1 %v3058_v18  ;;  %v3084_v39 = vld [vmem:[%s4667_s1 + $0x124] ss:$16 sps:$4 sm:$0xff]   ;;  %v3088_v41 = vld [vmem:[%s4667_s1 + $0x120] ss:$16 sps:$4 sm:$0xff]   ;;  %v63_v18 = vcombine.high %v3775_v13, %v3775_v13 }
  0x14   :  { %1689 = vmatpush1.bf16.msra.mxu0 %v3059_v19  ;;  %1649 = vmatprep.subr.bf16.mxu1 %v3060_v20  ;;  %v3086_v40 = vld [vmem:[%s4667_s1 + $0x324] ss:$16 sps:$4 sm:$0xff]   ;;  %v3089_v44 = vld [vmem:[%s4667_s1 + $0x320] ss:$16 sps:$4 sm:$0xff]  }
  0x15   :  { %1690 = vmatprep.subr.bf16.mxu0 %v3062_v21  ;;  %v3090_v45 = vld [vmem:[%s4667_s1 + $0x144] ss:$16 sps:$4 sm:$0xff]   ;;  %v3094_v47 = vld [vmem:[%s4667_s1 + $0x140] ss:$16 sps:$4 sm:$0xff]  }
  0x16   :  { %v3092_v46 = vld [vmem:[%s4667_s1 + $0x344] ss:$16 sps:$4 sm:$0xff]   ;;  %v3095_v48 = vld [vmem:[%s4667_s1 + $0x340] ss:$16 sps:$4 sm:$0xff]  }
  0x17   :  { %1650 = vmatpush1.bf16.msra.mxu1 %v3064_v22  ;;  %v3096_v50 = vld [vmem:[%s4667_s1 + $0x164] ss:$16 sps:$4 sm:$0xff]   ;;  %v3100_v55 = vld [vmem:[%s4667_s1 + $0x160] ss:$16 sps:$4 sm:$0xff]   ;;  %v3131_v22 = vld [vmem:[%s4667_s1 + $0x8] ss:$16 sps:$4 sm:$0xff]  }
  0x18   :  { %1691 = vmatpush1.bf16.msra.mxu0 %v3065_v23  ;;  %1651 = vmatprep.subr.bf16.mxu1 %v3066_v24  ;;  %v3098_v51 = vld [vmem:[%s4667_s1 + $0x364] ss:$16 sps:$4 sm:$0xff]   ;;  %v3101_v56 = vld [vmem:[%s4667_s1 + $0x360] ss:$16 sps:$4 sm:$0xff]   ;;  %v3139_v24 = vld [vmem:[%s4667_s1 + $0x2c] ss:$16 sps:$4 sm:$0xff]  }
  0x19   :  { %1692 = vmatprep.subr.bf16.mxu0 %v3068_v25  ;;  %v27_v52 = vld [vmem:[%s4668_s0] sm:$0xff]  ;;  %v3807_v25 = vpack.c.bf16 %v63_v18, %v63_v18  ;;  %v3217_v18 = vld [vmem:[%s4667_s1 + $0x1cc] ss:$16 sps:$4 sm:$0xff]  }
  0x1a   :  { %v38_v53 = vrot.slane %v27_v52, %v3704_v49  ;;  %v31_v54 = vcombine.high %v27_v52, %v27_v52  ;;  %v3102_v57 = vld [vmem:[%s4667_s1 + $0x184] ss:$16 sps:$4 sm:$0xff]   ;;  %v3106_v63 = vld [vmem:[%s4667_s1 + $0x180] ss:$16 sps:$4 sm:$0xff]  }
  0x1b   :  { %1652 = vmatpush1.bf16.msra.mxu1 %v3070_v26  ;;  %v3104_v58 = vld [vmem:[%s4667_s1 + $0x384] ss:$16 sps:$4 sm:$0xff]   ;;  %v3107_v0 = vld [vmem:[%s4667_s1 + $0x380] ss:$16 sps:$4 sm:$0xff]  }
  0x1c   :  { %1693 = vmatpush1.bf16.msra.mxu0 %v3071_v27  ;;  %1653 = vmatprep.subr.bf16.mxu1 %v3072_v28  ;;  %v46_v59 = vcombine.high %v38_v53, %v38_v53  ;;  %v45_v60 = vrot.slane %v31_v54, %v3704_v49  ;;  %v3108_v1 = vld [vmem:[%s4667_s1 + $0x1a4] ss:$16 sps:$4 sm:$0xff]   ;;  %v3112_v4 = vld [vmem:[%s4667_s1 + $0x1a0] ss:$16 sps:$4 sm:$0xff]   ;;  %v3791_v19 = vpack.c.bf16 %v38_v53, %v38_v53  ;;  %v3137_v27 = vld [vmem:[%s4667_s1 + $0x28] ss:$16 sps:$4 sm:$0xff]  }
  0x1d   :  { %1694 = vmatprep.subr.bf16.mxu0 %v3074_v29  ;;  %v3110_v2 = vld [vmem:[%s4667_s1 + $0x3a4] ss:$16 sps:$4 sm:$0xff]   ;;  %v3113_v5 = vld [vmem:[%s4667_s1 + $0x3a0] ss:$16 sps:$4 sm:$0xff]   ;;  %v3145_v29 = vld [vmem:[%s4667_s1 + $0x4c] ss:$16 sps:$4 sm:$0xff]  }
  0x1e   :  { %v74_v61 = vpack.c.bf16 %v46_v59, %v46_v59  ;;  %v47_v62 = vcombine.high %v45_v60, %v45_v60  ;;  %v3114_v6 = vld [vmem:[%s4667_s1 + $0x1c4] ss:$16 sps:$4 sm:$0xff]   ;;  %v3118_v9 = vld [vmem:[%s4667_s1 + $0x1c0] ss:$16 sps:$4 sm:$0xff]   ;;  %v3793_v20 = vpack.c.bf16 %v45_v60, %v45_v60  ;;  %v3173_v53 = vld [vmem:[%s4667_s1 + $0xe8] ss:$16 sps:$4 sm:$0xff]  }
  0x1f   :  { %1654 = vmatpush1.bf16.msra.mxu1 %v3076_v30  ;;  %v3116_v7 = vld [vmem:[%s4667_s1 + $0x3c4] ss:$16 sps:$4 sm:$0xff]   ;;  %v3119_v10 = vld [vmem:[%s4667_s1 + $0x3c0] ss:$16 sps:$4 sm:$0xff]   ;;  %v3187_v59 = vld [vmem:[%s4667_s1 + $0x12c] ss:$16 sps:$4 sm:$0xff]  }
  0x20   :  { %1695 = vmatpush1.bf16.msra.mxu0 %v3077_v31  ;;  %1655 = vmatprep.subr.bf16.mxu1 %v3078_v32  ;;  %v3741_v3 = vpack.c.bf16 %v47_v62, %v47_v62  ;;  %v3120_v11 = vld [vmem:[%s4667_s1 + $0x1e4] ss:$16 sps:$4 sm:$0xff]   ;;  %v3124_v14 = vld [vmem:[%s4667_s1 + $0x1e0] ss:$16 sps:$4 sm:$0xff]   ;;  %v3143_v31 = vld [vmem:[%s4667_s1 + $0x48] ss:$16 sps:$4 sm:$0xff]  }
  0x21   :  { %1696 = vmatprep.subr.bf16.mxu0 %v3080_v33  ;;  %1671 = vmatprep.mubr.bf16.mxu1 %v74_v61  ;;  %v3122_v12 = vld [vmem:[%s4667_s1 + $0x3e4] ss:$16 sps:$4 sm:$0xff]   ;;  %v3125_v15 = vld [vmem:[%s4667_s1 + $0x3e0] ss:$16 sps:$4 sm:$0xff]   ;;  %v3151_v33 = vld [vmem:[%s4667_s1 + $0x6c] ss:$16 sps:$4 sm:$0xff]  }
  0x22   :  { %1712 = vmatprep.mubr.bf16.mxu0 %v3741_v3  ;;  %v3130_v16 = vld [vmem:[%s4667_s1 + $0x404] ss:$16 sps:$4 sm:$0xff]   ;;  %v3128_v21 = vld [vmem:[%s4667_s1 + $0x400] ss:$16 sps:$4 sm:$0xff]  }
  0x23   :  { %1656 = vmatpush1.bf16.msra.mxu1 %v3082_v34  ;;  %v3136_v23 = vld [vmem:[%s4667_s1 + $0x424] ss:$16 sps:$4 sm:$0xff]   ;;  %v3134_v26 = vld [vmem:[%s4667_s1 + $0x420] ss:$16 sps:$4 sm:$0xff]  }
  0x24   :  { %1697 = vmatpush1.bf16.msra.mxu0 %v3083_v35  ;;  %1657 = vmatprep.subr.bf16.mxu1 %v3084_v39  ;;  %v3142_v28 = vld [vmem:[%s4667_s1 + $0x444] ss:$16 sps:$4 sm:$0xff]   ;;  %v3140_v30 = vld [vmem:[%s4667_s1 + $0x440] ss:$16 sps:$4 sm:$0xff]   ;;  %v3149_v35 = vld [vmem:[%s4667_s1 + $0x68] ss:$16 sps:$4 sm:$0xff]  }
  0x25   :  { %1698 = vmatprep.subr.bf16.mxu0 %v3086_v40  ;;  %v3148_v32 = vld [vmem:[%s4667_s1 + $0x464] ss:$16 sps:$4 sm:$0xff]   ;;  %v3146_v34 = vld [vmem:[%s4667_s1 + $0x460] ss:$16 sps:$4 sm:$0xff]   ;;  %v3155_v39 = vld [vmem:[%s4667_s1 + $0x88] ss:$16 sps:$4 sm:$0xff]  }
  0x26   :  { %v3154_v36 = vld [vmem:[%s4667_s1 + $0x484] ss:$16 sps:$4 sm:$0xff]   ;;  %v3152_v38 = vld [vmem:[%s4667_s1 + $0x480] ss:$16 sps:$4 sm:$0xff]  }
  0x27   :  { %1658 = vmatpush1.bf16.msra.mxu1 %v3088_v41  ;;  %v3160_v40 = vld [vmem:[%s4667_s1 + $0x4a4] ss:$16 sps:$4 sm:$0xff]   ;;  %v3163_v41 = vld [vmem:[%s4667_s1 + $0xac] ss:$16 sps:$4 sm:$0xff]   ;;  %v3158_v42 = vld [vmem:[%s4667_s1 + $0x4a0] ss:$16 sps:$4 sm:$0xff]  }
  0x28   :  { %1699 = vmatpush1.bf16.msra.mxu0 %v3089_v44  ;;  %1659 = vmatprep.subr.bf16.mxu1 %v3090_v45  ;;  %v3161_v44 = vld [vmem:[%s4667_s1 + $0xa8] ss:$16 sps:$4 sm:$0xff]   ;;  %v3166_v45 = vld [vmem:[%s4667_s1 + $0x4c4] ss:$16 sps:$4 sm:$0xff]   ;;  %v3170_v52 = vld [vmem:[%s4667_s1 + $0x4e0] ss:$16 sps:$4 sm:$0xff]  }
  0x29   :  { %1700 = vmatprep.subr.bf16.mxu0 %v3092_v46  ;;  %v3169_v46 = vld [vmem:[%s4667_s1 + $0xcc] ss:$16 sps:$4 sm:$0xff]   ;;  %v3178_v54 = vld [vmem:[%s4667_s1 + $0x504] ss:$16 sps:$4 sm:$0xff]   ;;  %v3182_v60 = vld [vmem:[%s4667_s1 + $0x520] ss:$16 sps:$4 sm:$0xff]  }
  0x2a   :  { %v3190_v62 = vld [vmem:[%s4667_s1 + $0x544] ss:$16 sps:$4 sm:$0xff]  }
  0x2b   :  { %1660 = vmatpush1.bf16.msra.mxu1 %v3094_v47  ;;  %v3164_v47 = vld [vmem:[%s4667_s1 + $0x4c0] ss:$16 sps:$4 sm:$0xff]  }
  0x2c   :  { %1701 = vmatpush1.bf16.msra.mxu0 %v3095_v48  ;;  %1661 = vmatprep.subr.bf16.mxu1 %v3096_v50  ;;  %v3167_v48 = vld [vmem:[%s4667_s1 + $0xc8] ss:$16 sps:$4 sm:$0xff]   ;;  %v3172_v50 = vld [vmem:[%s4667_s1 + $0x4e4] ss:$16 sps:$4 sm:$0xff]  }
  0x2d   :  { %1702 = vmatprep.subr.bf16.mxu0 %v3098_v51  ;;  %v3175_v51 = vld [vmem:[%s4667_s1 + $0xec] ss:$16 sps:$4 sm:$0xff]  }
  0x2f   :  { %1662 = vmatpush1.bf16.msra.mxu1 %v3100_v55  ;;  %v3181_v55 = vld [vmem:[%s4667_s1 + $0x10c] ss:$16 sps:$4 sm:$0xff]  }
  0x30   :  { %1703 = vmatpush1.bf16.msra.mxu0 %v3101_v56  ;;  %1663 = vmatprep.subr.bf16.mxu1 %v3102_v57  ;;  %v3176_v56 = vld [vmem:[%s4667_s1 + $0x500] ss:$16 sps:$4 sm:$0xff]   ;;  %v3179_v57 = vld [vmem:[%s4667_s1 + $0x108] ss:$16 sps:$4 sm:$0xff]  }
  0x31   :  { %1704 = vmatprep.subr.bf16.mxu0 %v3104_v58  ;;  %v3184_v58 = vld [vmem:[%s4667_s1 + $0x524] ss:$16 sps:$4 sm:$0xff]  }
  0x33   :  { %1664 = vmatpush1.bf16.msra.mxu1 %v3106_v63  ;;  %v3193_v63 = vld [vmem:[%s4667_s1 + $0x14c] ss:$16 sps:$4 sm:$0xff]  }
  0x34   :  { %1705 = vmatpush1.bf16.msra.mxu0 %v3107_v0  ;;  %1665 = vmatprep.subr.bf16.mxu1 %v3108_v1  ;;  %v3188_v0 = vld [vmem:[%s4667_s1 + $0x540] ss:$16 sps:$4 sm:$0xff]   ;;  %v3191_v1 = vld [vmem:[%s4667_s1 + $0x148] ss:$16 sps:$4 sm:$0xff]  }
  0x35   :  { %1706 = vmatprep.subr.bf16.mxu0 %v3110_v2  ;;  %v3196_v2 = vld [vmem:[%s4667_s1 + $0x564] ss:$16 sps:$4 sm:$0xff]  }
  0x37   :  { %1666 = vmatpush1.bf16.msra.mxu1 %v3112_v4  ;;  %v3199_v4 = vld [vmem:[%s4667_s1 + $0x16c] ss:$16 sps:$4 sm:$0xff]  }
  0x38   :  { %1707 = vmatpush1.bf16.msra.mxu0 %v3113_v5  ;;  %1667 = vmatprep.subr.bf16.mxu1 %v3114_v6  ;;  %v3194_v5 = vld [vmem:[%s4667_s1 + $0x560] ss:$16 sps:$4 sm:$0xff]   ;;  %v3197_v6 = vld [vmem:[%s4667_s1 + $0x168] ss:$16 sps:$4 sm:$0xff]  }
  0x39   :  { %1708 = vmatprep.subr.bf16.mxu0 %v3116_v7  ;;  %v3202_v7 = vld [vmem:[%s4667_s1 + $0x584] ss:$16 sps:$4 sm:$0xff]  }
  0x3b   :  { %1668 = vmatpush1.bf16.msra.mxu1 %v3118_v9  ;;  %v3205_v9 = vld [vmem:[%s4667_s1 + $0x18c] ss:$16 sps:$4 sm:$0xff]  }
  0x3c   :  { %1709 = vmatpush1.bf16.msra.mxu0 %v3119_v10  ;;  %1669 = vmatprep.subr.bf16.mxu1 %v3120_v11  ;;  %v3200_v10 = vld [vmem:[%s4667_s1 + $0x580] ss:$16 sps:$4 sm:$0xff]   ;;  %v3203_v11 = vld [vmem:[%s4667_s1 + $0x188] ss:$16 sps:$4 sm:$0xff]  }
  0x3d   :  { %1710 = vmatprep.subr.bf16.mxu0 %v3122_v12  ;;  %v3208_v12 = vld [vmem:[%s4667_s1 + $0x5a4] ss:$16 sps:$4 sm:$0xff]  }
  0x3f   :  { %1670 = vmatpush1.bf16.msra.mxu1 %v3124_v14  ;;  %v3211_v14 = vld [vmem:[%s4667_s1 + $0x1ac] ss:$16 sps:$4 sm:$0xff]  }
  0x40   :  { %1711 = vmatpush1.bf16.msra.mxu0 %v3125_v15  ;;  %1803 = vmatprep.subr.bf16.mxu1 %v3133_v17  ;;  %v3206_v15 = vld [vmem:[%s4667_s1 + $0x5a0] ss:$16 sps:$4 sm:$0xff]   ;;  %v3214_v17 = vld [vmem:[%s4667_s1 + $0x5c4] ss:$16 sps:$4 sm:$0xff]  }
  0x41   :  { %1721 = vmatprep.subr.bf16.mxu0 %v3130_v16  ;;  %v3209_v16 = vld [vmem:[%s4667_s1 + $0x1a8] ss:$16 sps:$4 sm:$0xff]  }
  0x42   :  { %1672 = vmatmul.mubr.bf16.vlgmr.msra.gmra.mrb[0].mxu1 %v3791_v19 }
  0x43   :  { %1713 = vmatmul.mubr.bf16.vlgmr.msra.gmra.mrb[0].mxu0 %v3793_v20  ;;  %1804 = vmatpush1.bf16.msra.mxu1 %v3131_v22  ;;  %v3212_v22 = vld [vmem:[%s4667_s1 + $0x5c0] ss:$16 sps:$4 sm:$0xff]  }
  0x44   :  { %1722 = vmatpush1.bf16.msra.mxu0 %v3128_v21  ;;  %1805 = vmatprep.subr.bf16.mxu1 %v3139_v24  ;;  %v48_v21 = vcombine.high %v3759_v8, %v3759_v8  ;;  %v3220_v24 = vld [vmem:[%s4667_s1 + $0x5e4] ss:$16 sps:$4 sm:$0xff]   ;;  %v3223_v8 = vld [vmem:[%s4667_s1 + $0x1ec] ss:$16 sps:$4 sm:$0xff]  }
  0x45   :  { %1723 = vmatprep.subr.bf16.mxu0 %v3136_v23  ;;  %1753 = vmatprep.mubr.bf16.mxu0 %v3807_v25  ;;  %v3215_v23 = vld [vmem:[%s4667_s1 + $0x1c8] ss:$16 sps:$4 sm:$0xff]  }
  0x46   :  { %1835 = vmatprep.mubr.bf16.mxu1 %v74_v61  ;;  %v3185_v61 = vld [vmem:[%s4667_s1 + $0x128] ss:$16 sps:$4 sm:$0xff]  }
  0x47   :  { %1806 = vmatpush1.bf16.msra.mxu1 %v3137_v27  ;;  %v3218_v27 = vld [vmem:[%s4667_s1 + $0x5e0] ss:$16 sps:$4 sm:$0xff]  }
  0x48   :  { %1724 = vmatpush1.bf16.msra.mxu0 %v3134_v26  ;;  %1807 = vmatprep.subr.bf16.mxu1 %v3145_v29  ;;  %v3983_v26 = vrot.slane %v48_v21, %v3704_v49  ;;  %v3226_v29 = vld [vmem:[%s4667_s1 + $0x604] ss:$16 sps:$4 sm:$0xff]   ;;  %v3229_v49 = vld [vmem:[%s4667_s1 + $0x20c] ss:$16 sps:$4 sm:$0xff]   ;;  %v3296_v21 = vld [vmem:[%s4667_s1 + $0x780] ss:$16 sps:$4 sm:$0xff]  }
  0x49   :  { %1725 = vmatprep.subr.bf16.mxu0 %v3142_v28  ;;  %v3221_v28 = vld [vmem:[%s4667_s1 + $0x1e8] ss:$16 sps:$4 sm:$0xff]  }
  0x4b   :  { %1808 = vmatpush1.bf16.msra.mxu1 %v3143_v31  ;;  %v4001_v31 = vpack.c.bf16 %v3775_v13, %v3775_v13  ;;  %v3235_v13 = vld [vmem:[%s4667_s1 + $0x22c] ss:$16 sps:$4 sm:$0xff]  }
  0x4c   :  { %1726 = vmatpush1.bf16.msra.mxu0 %v3140_v30  ;;  %1809 = vmatprep.subr.bf16.mxu1 %v3151_v33  ;;  %v64_v30 = vcombine.high %v3983_v26, %v3983_v26  ;;  %v3227_v33 = vld [vmem:[%s4667_s1 + $0x208] ss:$16 sps:$4 sm:$0xff]  }
  0x4d   :  { %1727 = vmatprep.subr.bf16.mxu0 %v3148_v32  ;;  %v3224_v32 = vld [vmem:[%s4667_s1 + $0x600] ss:$16 sps:$4 sm:$0xff]  }
  0x4f   :  { %1810 = vmatpush1.bf16.msra.mxu1 %v3149_v35  ;;  %v4015_v35 = vpack.c.bf16 %v64_v30, %v64_v30  ;;  %v3311_v30 = vld [vmem:[%s4667_s1 + $0x3c8] ss:$16 sps:$4 sm:$0xff]  }
  0x50   :  { %1728 = vmatpush1.bf16.msra.mxu0 %v3146_v34  ;;  %1811 = vmatprep.subr.bf16.mxu1 %v3157_v37  ;;  %v3232_v34 = vld [vmem:[%s4667_s1 + $0x624] ss:$16 sps:$4 sm:$0xff]   ;;  %v3233_v37 = vld [vmem:[%s4667_s1 + $0x228] ss:$16 sps:$4 sm:$0xff]  }
  0x51   :  { %1729 = vmatprep.subr.bf16.mxu0 %v3154_v36  ;;  %v3230_v36 = vld [vmem:[%s4667_s1 + $0x620] ss:$16 sps:$4 sm:$0xff]  }
  0x53   :  { %1812 = vmatpush1.bf16.msra.mxu1 %v3155_v39  ;;  %v3236_v39 = vld [vmem:[%s4667_s1 + $0x640] ss:$16 sps:$4 sm:$0xff]  }
  0x54   :  { %1730 = vmatpush1.bf16.msra.mxu0 %v3152_v38  ;;  %1813 = vmatprep.subr.bf16.mxu1 %v3163_v41  ;;  %v3238_v38 = vld [vmem:[%s4667_s1 + $0x644] ss:$16 sps:$4 sm:$0xff]  }
  0x55   :  { %1731 = vmatprep.subr.bf16.mxu0 %v3160_v40  ;;  %v3239_v40 = vld [vmem:[%s4667_s1 + $0x248] ss:$16 sps:$4 sm:$0xff]   ;;  %v3244_v41 = vld [vmem:[%s4667_s1 + $0x664] ss:$16 sps:$4 sm:$0xff]  }
  0x57   :  { %1814 = vmatpush1.bf16.msra.mxu1 %v3161_v44  ;;  %v3245_v44 = vld [vmem:[%s4667_s1 + $0x268] ss:$16 sps:$4 sm:$0xff]  }
  0x58   :  { %1732 = vmatpush1.bf16.msra.mxu0 %v3158_v42  ;;  %1815 = vmatprep.subr.bf16.mxu1 %v3169_v46  ;;  %v3242_v42 = vld [vmem:[%s4667_s1 + $0x660] ss:$16 sps:$4 sm:$0xff]   ;;  %v3253_v46 = vld [vmem:[%s4667_s1 + $0x28c] ss:$16 sps:$4 sm:$0xff]  }
  0x59   :  { %1733 = vmatprep.subr.bf16.mxu0 %v3166_v45  ;;  %v3250_v45 = vld [vmem:[%s4667_s1 + $0x684] ss:$16 sps:$4 sm:$0xff]  }
  0x5b   :  { %1816 = vmatpush1.bf16.msra.mxu1 %v3167_v48  ;;  %v3251_v48 = vld [vmem:[%s4667_s1 + $0x288] ss:$16 sps:$4 sm:$0xff]  }
  0x5c   :  { %1734 = vmatpush1.bf16.msra.mxu0 %v3164_v47  ;;  %1817 = vmatprep.subr.bf16.mxu1 %v3175_v51  ;;  %v3248_v47 = vld [vmem:[%s4667_s1 + $0x680] ss:$16 sps:$4 sm:$0xff]   ;;  %v3259_v51 = vld [vmem:[%s4667_s1 + $0x2ac] ss:$16 sps:$4 sm:$0xff]  }
  0x5d   :  { %1735 = vmatprep.subr.bf16.mxu0 %v3172_v50  ;;  %v3256_v50 = vld [vmem:[%s4667_s1 + $0x6a4] ss:$16 sps:$4 sm:$0xff]  }
  0x5f   :  { %1818 = vmatpush1.bf16.msra.mxu1 %v3173_v53  ;;  %v3257_v53 = vld [vmem:[%s4667_s1 + $0x2a8] ss:$16 sps:$4 sm:$0xff]  }
  0x60   :  { %1736 = vmatpush1.bf16.msra.mxu0 %v3170_v52  ;;  %1819 = vmatprep.subr.bf16.mxu1 %v3181_v55  ;;  %v3254_v52 = vld [vmem:[%s4667_s1 + $0x6a0] ss:$16 sps:$4 sm:$0xff]   ;;  %v3265_v55 = vld [vmem:[%s4667_s1 + $0x2cc] ss:$16 sps:$4 sm:$0xff]  }
  0x61   :  { %1737 = vmatprep.subr.bf16.mxu0 %v3178_v54  ;;  %v3262_v54 = vld [vmem:[%s4667_s1 + $0x6c4] ss:$16 sps:$4 sm:$0xff]  }
  0x63   :  { %1820 = vmatpush1.bf16.msra.mxu1 %v3179_v57  ;;  %v3263_v57 = vld [vmem:[%s4667_s1 + $0x2c8] ss:$16 sps:$4 sm:$0xff]  }
  0x64   :  { %1738 = vmatpush1.bf16.msra.mxu0 %v3176_v56  ;;  %1821 = vmatprep.subr.bf16.mxu1 %v3187_v59  ;;  %v3260_v56 = vld [vmem:[%s4667_s1 + $0x6c0] ss:$16 sps:$4 sm:$0xff]   ;;  %v3271_v59 = vld [vmem:[%s4667_s1 + $0x2ec] ss:$16 sps:$4 sm:$0xff]  }
  0x65   :  { %1739 = vmatprep.subr.bf16.mxu0 %v3184_v58  ;;  %v3268_v58 = vld [vmem:[%s4667_s1 + $0x6e4] ss:$16 sps:$4 sm:$0xff]  }
  0x67   :  { %1822 = vmatpush1.bf16.msra.mxu1 %v3185_v61  ;;  %v3269_v61 = vld [vmem:[%s4667_s1 + $0x2e8] ss:$16 sps:$4 sm:$0xff]  }
  0x68   :  { %1740 = vmatpush1.bf16.msra.mxu0 %v3182_v60  ;;  %1823 = vmatprep.subr.bf16.mxu1 %v3193_v63  ;;  %v3266_v60 = vld [vmem:[%s4667_s1 + $0x6e0] ss:$16 sps:$4 sm:$0xff]   ;;  %v3277_v63 = vld [vmem:[%s4667_s1 + $0x30c] ss:$16 sps:$4 sm:$0xff]  }
  0x69   :  { %1741 = vmatprep.subr.bf16.mxu0 %v3190_v62  ;;  %v3274_v62 = vld [vmem:[%s4667_s1 + $0x704] ss:$16 sps:$4 sm:$0xff]  }
  0x6b   :  { %1824 = vmatpush1.bf16.msra.mxu1 %v3191_v1  ;;  %v3275_v1 = vld [vmem:[%s4667_s1 + $0x308] ss:$16 sps:$4 sm:$0xff]  }
  0x6c   :  { %1742 = vmatpush1.bf16.msra.mxu0 %v3188_v0  ;;  %1825 = vmatprep.subr.bf16.mxu1 %v3199_v4  ;;  %v3272_v0 = vld [vmem:[%s4667_s1 + $0x700] ss:$16 sps:$4 sm:$0xff]   ;;  %v3283_v4 = vld [vmem:[%s4667_s1 + $0x32c] ss:$16 sps:$4 sm:$0xff]  }
  0x6d   :  { %1743 = vmatprep.subr.bf16.mxu0 %v3196_v2  ;;  %v3280_v2 = vld [vmem:[%s4667_s1 + $0x724] ss:$16 sps:$4 sm:$0xff]  }
  0x6f   :  { %1826 = vmatpush1.bf16.msra.mxu1 %v3197_v6  ;;  %v3281_v6 = vld [vmem:[%s4667_s1 + $0x328] ss:$16 sps:$4 sm:$0xff]  }
  0x70   :  { %1744 = vmatpush1.bf16.msra.mxu0 %v3194_v5  ;;  %1827 = vmatprep.subr.bf16.mxu1 %v3205_v9  ;;  %v3278_v5 = vld [vmem:[%s4667_s1 + $0x720] ss:$16 sps:$4 sm:$0xff]   ;;  %v3289_v9 = vld [vmem:[%s4667_s1 + $0x34c] ss:$16 sps:$4 sm:$0xff]  }
  0x71   :  { %1745 = vmatprep.subr.bf16.mxu0 %v3202_v7  ;;  %v3286_v7 = vld [vmem:[%s4667_s1 + $0x744] ss:$16 sps:$4 sm:$0xff]  }
  0x73   :  { %1828 = vmatpush1.bf16.msra.mxu1 %v3203_v11  ;;  %v3287_v11 = vld [vmem:[%s4667_s1 + $0x348] ss:$16 sps:$4 sm:$0xff]  }
  0x74   :  { %1746 = vmatpush1.bf16.msra.mxu0 %v3200_v10  ;;  %1829 = vmatprep.subr.bf16.mxu1 %v3211_v14  ;;  %v3284_v10 = vld [vmem:[%s4667_s1 + $0x740] ss:$16 sps:$4 sm:$0xff]   ;;  %v3295_v14 = vld [vmem:[%s4667_s1 + $0x36c] ss:$16 sps:$4 sm:$0xff]  }
  0x75   :  { %1747 = vmatprep.subr.bf16.mxu0 %v3208_v12  ;;  %v3292_v12 = vld [vmem:[%s4667_s1 + $0x764] ss:$16 sps:$4 sm:$0xff]  }
  0x77   :  { %1830 = vmatpush1.bf16.msra.mxu1 %v3209_v16  ;;  %v3293_v16 = vld [vmem:[%s4667_s1 + $0x368] ss:$16 sps:$4 sm:$0xff]  }
  0x78   :  { %1748 = vmatpush1.bf16.msra.mxu0 %v3206_v15  ;;  %1831 = vmatprep.subr.bf16.mxu1 %v3217_v18  ;;  %v3290_v15 = vld [vmem:[%s4667_s1 + $0x760] ss:$16 sps:$4 sm:$0xff]   ;;  %v3301_v18 = vld [vmem:[%s4667_s1 + $0x38c] ss:$16 sps:$4 sm:$0xff]  }
  0x79   :  { %1749 = vmatprep.subr.bf16.mxu0 %v3214_v17  ;;  %v3298_v17 = vld [vmem:[%s4667_s1 + $0x784] ss:$16 sps:$4 sm:$0xff]  }
  0x7b   :  { %1832 = vmatpush1.bf16.msra.mxu1 %v3215_v23  ;;  %v3304_v23 = vld [vmem:[%s4667_s1 + $0x7a4] ss:$16 sps:$4 sm:$0xff]  }
  0x7c   :  { %1750 = vmatpush1.bf16.msra.mxu0 %v3212_v22  ;;  %1833 = vmatprep.subr.bf16.mxu1 %v3223_v8  ;;  %v3299_v22 = vld [vmem:[%s4667_s1 + $0x388] ss:$16 sps:$4 sm:$0xff]   ;;  %v3302_v8 = vld [vmem:[%s4667_s1 + $0x7a0] ss:$16 sps:$4 sm:$0xff]  }
  0x7d   :  { %1751 = vmatprep.subr.bf16.mxu0 %v3220_v24  ;;  %v3307_v24 = vld [vmem:[%s4667_s1 + $0x3ac] ss:$16 sps:$4 sm:$0xff]  }
  0x7f   :  { %1834 = vmatpush1.bf16.msra.mxu1 %v3221_v28  ;;  %v3310_v28 = vld [vmem:[%s4667_s1 + $0x7c4] ss:$16 sps:$4 sm:$0xff]  }
  0x80   :  { %1752 = vmatpush1.bf16.msra.mxu0 %v3218_v27  ;;  %1844 = vmatprep.subr.bf16.mxu1 %v3229_v49  ;;  %v3305_v27 = vld [vmem:[%s4667_s1 + $0x3a8] ss:$16 sps:$4 sm:$0xff]   ;;  %v3308_v49 = vld [vmem:[%s4667_s1 + $0x7c0] ss:$16 sps:$4 sm:$0xff]  }
  0x81   :  { %1762 = vmatprep.subr.bf16.mxu0 %v3226_v29  ;;  %v3313_v29 = vld [vmem:[%s4667_s1 + $0x3cc] ss:$16 sps:$4 sm:$0xff]  }
  0x82   :  { %1836 = vmatmul.mubr.bf16.vlgmr.msra.gmra.mrb[4].mxu1 %v3791_v19  ;;  %v3241_v19 = vld [vmem:[%s4667_s1 + $0x24c] ss:$16 sps:$4 sm:$0xff]  }
  0x83   :  { %1754 = vmatmul.mubr.bf16.vlgmr.msra.gmra.mrb[0].mxu0 %v4001_v31  ;;  %1845 = vmatpush1.bf16.msra.mxu1 %v3227_v33  ;;  %v3319_v33 = vld [vmem:[%s4667_s1 + $0x3ec] ss:$16 sps:$4 sm:$0xff]  }
  0x84   :  { %1763 = vmatpush1.bf16.msra.mxu0 %v3224_v32  ;;  %1846 = vmatprep.subr.bf16.mxu1 %v3235_v13  ;;  %v3316_v32 = vld [vmem:[%s4667_s1 + $0x7e4] ss:$16 sps:$4 sm:$0xff]   ;;  %v3317_v13 = vld [vmem:[%s4667_s1 + $0x3e8] ss:$16 sps:$4 sm:$0xff]  }
  0x85   :  { %1764 = vmatprep.subr.bf16.mxu0 %v3232_v34  ;;  %1794 = vmatprep.mubr.bf16.mxu0 %v4015_v35  ;;  %v3314_v34 = vld [vmem:[%s4667_s1 + $0x7e0] ss:$16 sps:$4 sm:$0xff]  }
  0x86   :  { %1876 = vmatprep.mubr.bf16.mxu1 %v3741_v3  ;;  %v3247_v3 = vld [vmem:[%s4667_s1 + $0x26c] ss:$16 sps:$4 sm:$0xff]  }
  0x87   :  { %1847 = vmatpush1.bf16.msra.mxu1 %v3233_v37  ;;  %v4200_v37 = vpack.c.bf16 %v3983_v26, %v3983_v26  ;;  %v3323_v26 = vld [vmem:[%s4667_s1 + $0x428] ss:$16 sps:$4 sm:$0xff]  }
  0x88   :  { %1765 = vmatpush1.bf16.msra.mxu0 %v3230_v36  ;;  %1848 = vmatprep.subr.bf16.mxu1 %v3241_v19  ;;  %v3322_v36 = vld [vmem:[%s4667_s1 + $0x40c] ss:$16 sps:$4 sm:$0xff]  }
  0x89   :  { %1766 = vmatprep.subr.bf16.mxu0 %v3238_v38  ;;  %v3320_v38 = vld [vmem:[%s4667_s1 + $0x408] ss:$16 sps:$4 sm:$0xff]   ;;  %v3325_v19 = vld [vmem:[%s4667_s1 + $0x42c] ss:$16 sps:$4 sm:$0xff]  }
  0x8b   :  { %1849 = vmatpush1.bf16.msra.mxu1 %v3239_v40  ;;  %v3416_v40 = vld [vmem:[%s4669_s3] ss:$8 sps:$4 sm:$0xff]  }
  0x8c   :  { %1767 = vmatpush1.bf16.msra.mxu0 %v3236_v39  ;;  %1850 = vmatprep.subr.bf16.mxu1 %v3247_v3  ;;  %v3328_v39 = vld [vmem:[%s4667_s1 + $0x44c] ss:$16 sps:$4 sm:$0xff]   ;;  %v3326_v3 = vld [vmem:[%s4667_s1 + $0x448] ss:$16 sps:$4 sm:$0xff]  }
  0x8d   :  { %1768 = vmatprep.subr.bf16.mxu0 %v3244_v41  ;;  %v3421_v41 = vld [vmem:[%s4669_s3 + $0x14] ss:$8 sps:$4 sm:$0xff]  }
  0x8f   :  { %1851 = vmatpush1.bf16.msra.mxu1 %v3245_v44  ;;  %v3424_v44 = vld [vmem:[%s4669_s3 + $0x24] ss:$8 sps:$4 sm:$0xff]  }
  0x90   :  { %1769 = vmatpush1.bf16.msra.mxu0 %v3242_v42  ;;  %1852 = vmatprep.subr.bf16.mxu1 %v3253_v46  ;;  %v3419_v42 = vld [vmem:[%s4669_s3 + $0x10] ss:$8 sps:$4 sm:$0xff]   ;;  %v3334_v46 = vld [vmem:[%s4667_s1 + $0x48c] ss:$16 sps:$4 sm:$0xff]  }
  0x91   :  { %1770 = vmatprep.subr.bf16.mxu0 %v3250_v45  ;;  %v3329_v45 = vld [vmem:[%s4667_s1 + $0x468] ss:$16 sps:$4 sm:$0xff]  }
  0x93   :  { %1853 = vmatpush1.bf16.msra.mxu1 %v3251_v48  ;;  %v3427_v48 = vld [vmem:[%s4669_s3 + $0x34] ss:$8 sps:$4 sm:$0xff]  }
  0x94   :  { %1771 = vmatpush1.bf16.msra.mxu0 %v3248_v47  ;;  %1854 = vmatprep.subr.bf16.mxu1 %v3259_v51  ;;  %v3422_v47 = vld [vmem:[%s4669_s3 + $0x20] ss:$8 sps:$4 sm:$0xff]   ;;  %v3337_v51 = vld [vmem:[%s4667_s1 + $0x4ac] ss:$16 sps:$4 sm:$0xff]  }
  0x95   :  { %1772 = vmatprep.subr.bf16.mxu0 %v3256_v50  ;;  %v3332_v50 = vld [vmem:[%s4667_s1 + $0x488] ss:$16 sps:$4 sm:$0xff]  }
  0x97   :  { %1855 = vmatpush1.bf16.msra.mxu1 %v3257_v53  ;;  %v3430_v53 = vld [vmem:[%s4669_s3 + $0x44] ss:$8 sps:$4 sm:$0xff]  }
  0x98   :  { %1773 = vmatpush1.bf16.msra.mxu0 %v3254_v52  ;;  %1856 = vmatprep.subr.bf16.mxu1 %v3265_v55  ;;  %v3425_v52 = vld [vmem:[%s4669_s3 + $0x30] ss:$8 sps:$4 sm:$0xff]   ;;  %v3340_v55 = vld [vmem:[%s4667_s1 + $0x4cc] ss:$16 sps:$4 sm:$0xff]  }
  0x99   :  { %1774 = vmatprep.subr.bf16.mxu0 %v3262_v54  ;;  %v3335_v54 = vld [vmem:[%s4667_s1 + $0x4a8] ss:$16 sps:$4 sm:$0xff]  }
  0x9b   :  { %1857 = vmatpush1.bf16.msra.mxu1 %v3263_v57  ;;  %v3433_v57 = vld [vmem:[%s4669_s3 + $0x54] ss:$8 sps:$4 sm:$0xff]  }
  0x9c   :  { %1775 = vmatpush1.bf16.msra.mxu0 %v3260_v56  ;;  %1858 = vmatprep.subr.bf16.mxu1 %v3271_v59  ;;  %v3428_v56 = vld [vmem:[%s4669_s3 + $0x40] ss:$8 sps:$4 sm:$0xff]   ;;  %v3431_v59 = vld [vmem:[%s4669_s3 + $0x50] ss:$8 sps:$4 sm:$0xff]  }
  0x9d   :  { %1776 = vmatprep.subr.bf16.mxu0 %v3268_v58  ;;  %v3338_v58 = vld [vmem:[%s4667_s1 + $0x4c8] ss:$16 sps:$4 sm:$0xff]  }
  0x9f   :  { %1859 = vmatpush1.bf16.msra.mxu1 %v3269_v61  ;;  %v3436_v61 = vld [vmem:[%s4669_s3 + $0x64] ss:$8 sps:$4 sm:$0xff]  }
  0xa0   :  { %1777 = vmatpush1.bf16.msra.mxu0 %v3266_v60  ;;  %1860 = vmatprep.subr.bf16.mxu1 %v3277_v63  ;;  %v3343_v60 = vld [vmem:[%s4667_s1 + $0x4ec] ss:$16 sps:$4 sm:$0xff]   ;;  %v3434_v63 = vld [vmem:[%s4669_s3 + $0x60] ss:$8 sps:$4 sm:$0xff]  }
  0xa1   :  { %1778 = vmatprep.subr.bf16.mxu0 %v3274_v62  ;;  %v3341_v62 = vld [vmem:[%s4667_s1 + $0x4e8] ss:$16 sps:$4 sm:$0xff]  }
  0xa3   :  { %1861 = vmatpush1.bf16.msra.mxu1 %v3275_v1  ;;  %v3439_v1 = vld [vmem:[%s4669_s3 + $0x74] ss:$8 sps:$4 sm:$0xff]  }
  0xa4   :  { %1779 = vmatpush1.bf16.msra.mxu0 %v3272_v0  ;;  %1862 = vmatprep.subr.bf16.mxu1 %v3283_v4  ;;  %v3346_v0 = vld [vmem:[%s4667_s1 + $0x50c] ss:$16 sps:$4 sm:$0xff]   ;;  %v3437_v4 = vld [vmem:[%s4669_s3 + $0x70] ss:$8 sps:$4 sm:$0xff]  }
  0xa5   :  { %1780 = vmatprep.subr.bf16.mxu0 %v3280_v2  ;;  %v3344_v2 = vld [vmem:[%s4667_s1 + $0x508] ss:$16 sps:$4 sm:$0xff]  }
  0xa7   :  { %1863 = vmatpush1.bf16.msra.mxu1 %v3281_v6  ;;  %v3442_v6 = vld [vmem:[%s4669_s3 + $0x84] ss:$8 sps:$4 sm:$0xff]  }
  0xa8   :  { %1781 = vmatpush1.bf16.msra.mxu0 %v3278_v5  ;;  %1864 = vmatprep.subr.bf16.mxu1 %v3289_v9  ;;  %v3349_v5 = vld [vmem:[%s4667_s1 + $0x52c] ss:$16 sps:$4 sm:$0xff]   ;;  %v3440_v9 = vld [vmem:[%s4669_s3 + $0x80] ss:$8 sps:$4 sm:$0xff]  }
  0xa9   :  { %1782 = vmatprep.subr.bf16.mxu0 %v3286_v7  ;;  %v3347_v7 = vld [vmem:[%s4667_s1 + $0x528] ss:$16 sps:$4 sm:$0xff]  }
  0xab   :  { %1865 = vmatpush1.bf16.msra.mxu1 %v3287_v11  ;;  %v3445_v11 = vld [vmem:[%s4669_s3 + $0x94] ss:$8 sps:$4 sm:$0xff]  }
  0xac   :  { %1783 = vmatpush1.bf16.msra.mxu0 %v3284_v10  ;;  %1866 = vmatprep.subr.bf16.mxu1 %v3295_v14  ;;  %v3352_v10 = vld [vmem:[%s4667_s1 + $0x54c] ss:$16 sps:$4 sm:$0xff]   ;;  %v3443_v14 = vld [vmem:[%s4669_s3 + $0x90] ss:$8 sps:$4 sm:$0xff]  }
  0xad   :  { %1784 = vmatprep.subr.bf16.mxu0 %v3292_v12  ;;  %v3350_v12 = vld [vmem:[%s4667_s1 + $0x548] ss:$16 sps:$4 sm:$0xff]  }
  0xaf   :  { %1867 = vmatpush1.bf16.msra.mxu1 %v3293_v16  ;;  %v3448_v16 = vld [vmem:[%s4669_s3 + $0xa4] ss:$8 sps:$4 sm:$0xff]  }
  0xb0   :  { %1785 = vmatpush1.bf16.msra.mxu0 %v3290_v15  ;;  %1868 = vmatprep.subr.bf16.mxu1 %v3301_v18  ;;  %v3355_v15 = vld [vmem:[%s4667_s1 + $0x56c] ss:$16 sps:$4 sm:$0xff]   ;;  %v3446_v18 = vld [vmem:[%s4669_s3 + $0xa0] ss:$8 sps:$4 sm:$0xff]  }
  0xb1   :  { %1786 = vmatprep.subr.bf16.mxu0 %v3298_v17  ;;  %v3353_v17 = vld [vmem:[%s4667_s1 + $0x568] ss:$16 sps:$4 sm:$0xff]  }
  0xb3   :  { %1869 = vmatpush1.bf16.msra.mxu1 %v3299_v22  ;;  %v3451_v22 = vld [vmem:[%s4669_s3 + $0xb4] ss:$8 sps:$4 sm:$0xff]  }
  0xb4   :  { %1787 = vmatpush1.bf16.msra.mxu0 %v3296_v21  ;;  %1870 = vmatprep.subr.bf16.mxu1 %v3307_v24  ;;  %v3358_v21 = vld [vmem:[%s4667_s1 + $0x58c] ss:$16 sps:$4 sm:$0xff]   ;;  %v3449_v24 = vld [vmem:[%s4669_s3 + $0xb0] ss:$8 sps:$4 sm:$0xff]  }
  0xb5   :  { %1788 = vmatprep.subr.bf16.mxu0 %v3304_v23  ;;  %v3356_v23 = vld [vmem:[%s4667_s1 + $0x588] ss:$16 sps:$4 sm:$0xff]  }
  0xb7   :  { %1871 = vmatpush1.bf16.msra.mxu1 %v3305_v27  ;;  %v3454_v27 = vld [vmem:[%s4669_s3 + $0xc4] ss:$8 sps:$4 sm:$0xff]  }
  0xb8   :  { %1789 = vmatpush1.bf16.msra.mxu0 %v3302_v8  ;;  %1872 = vmatprep.subr.bf16.mxu1 %v3313_v29  ;;  %v3361_v8 = vld [vmem:[%s4667_s1 + $0x5ac] ss:$16 sps:$4 sm:$0xff]   ;;  %v3452_v29 = vld [vmem:[%s4669_s3 + $0xc0] ss:$8 sps:$4 sm:$0xff]  }
  0xb9   :  { %1790 = vmatprep.subr.bf16.mxu0 %v3310_v28  ;;  %v3359_v28 = vld [vmem:[%s4667_s1 + $0x5a8] ss:$16 sps:$4 sm:$0xff]  }
  0xbb   :  { %1873 = vmatpush1.bf16.msra.mxu1 %v3311_v30  ;;  %v3457_v30 = vld [vmem:[%s4669_s3 + $0xd4] ss:$8 sps:$4 sm:$0xff]  }
  0xbc   :  { %1791 = vmatpush1.bf16.msra.mxu0 %v3308_v49  ;;  %1874 = vmatprep.subr.bf16.mxu1 %v3319_v33  ;;  %v3364_v49 = vld [vmem:[%s4667_s1 + $0x5cc] ss:$16 sps:$4 sm:$0xff]   ;;  %v3455_v33 = vld [vmem:[%s4669_s3 + $0xd0] ss:$8 sps:$4 sm:$0xff]  }
  0xbd   :  { %1792 = vmatprep.subr.bf16.mxu0 %v3316_v32  ;;  %v3362_v32 = vld [vmem:[%s4667_s1 + $0x5c8] ss:$16 sps:$4 sm:$0xff]  }
  0xbf   :  { %1875 = vmatpush1.bf16.msra.mxu1 %v3317_v13  ;;  %v3365_v13 = vld [vmem:[%s4667_s1 + $0x5e8] ss:$16 sps:$4 sm:$0xff]  }
  0xc0   :  { %1793 = vmatpush1.bf16.msra.mxu0 %v3314_v34  ;;  %1885 = vmatprep.subr.bf16.mxu1 %v3322_v36  ;;  %v3367_v34 = vld [vmem:[%s4667_s1 + $0x5ec] ss:$16 sps:$4 sm:$0xff]  }
  0xc1   :  { %v3370_v36 = vld [vmem:[%s4667_s1 + $0x60c] ss:$16 sps:$4 sm:$0xff]  }
  0xc2   :  { %1877 = vmatmul.mubr.bf16.vlgmr.msra.gmra.mrb[4].mxu1 %v3793_v20  ;;  %v3418_v20 = vld [vmem:[%s4669_s3 + $0x4] ss:$8 sps:$4 sm:$0xff]  }
  0xc3   :  { %1795 = vmatmul.mubr.bf16.vlgmr.msra.gmra.mrb[0].mxu0 %v4200_v37  ;;  %1886 = vmatpush1.bf16.msra.mxu1 %v3320_v38  ;;  %v3368_v38 = vld [vmem:[%s4667_s1 + $0x608] ss:$16 sps:$4 sm:$0xff]  }
  0xc4   :  { %1917 = vmatprep.mubr.bf16.mxu1 %v3807_v25  ;;  %1887 = vmatprep.subr.bf16.mxu1 %v3325_v19  ;;  %v3331_v25 = vld [vmem:[%s4667_s1 + $0x46c] ss:$16 sps:$4 sm:$0xff]  }
  0xc5   :  { %2371 = vmatprep.subr.bf16.mxu0 %v3418_v20  ;;  %v3373_v19 = vld [vmem:[%s4667_s1 + $0x62c] ss:$16 sps:$4 sm:$0xff]  }
  0xc6   :  { %2372 = vmatpush1.bf16.msra.mxu0 %v3416_v40  ;;  %v3374_v40 = vld [vmem:[%s4667_s1 + $0x648] ss:$16 sps:$4 sm:$0xff]   ;;  %v3382_v20 = vld [vmem:[%s4667_s1 + $0x68c] ss:$16 sps:$4 sm:$0xff]  }
  0xc7   :  { %1888 = vmatpush1.bf16.msra.mxu1 %v3323_v26  ;;  %2373 = vmatprep.subr.bf16.mxu0 %v3421_v41  ;;  %v3371_v26 = vld [vmem:[%s4667_s1 + $0x628] ss:$16 sps:$4 sm:$0xff]  }
  0xc8   :  { %1889 = vmatprep.subr.bf16.mxu1 %v3328_v39  ;;  %v3376_v39 = vld [vmem:[%s4667_s1 + $0x64c] ss:$16 sps:$4 sm:$0xff]   ;;  %v3380_v41 = vld [vmem:[%s4667_s1 + $0x688] ss:$16 sps:$4 sm:$0xff]  }
  0xca   :  { %2374 = vmatpush1.bf16.msra.mxu0 %v3419_v42  ;;  %v3388_v42 = vld [vmem:[%s4667_s1 + $0x6cc] ss:$16 sps:$4 sm:$0xff]  }
  0xcb   :  { %1890 = vmatpush1.bf16.msra.mxu1 %v3326_v3  ;;  %2375 = vmatprep.subr.bf16.mxu0 %v3424_v44  ;;  %v3385_v3 = vld [vmem:[%s4667_s1 + $0x6ac] ss:$16 sps:$4 sm:$0xff]  }
  0xcc   :  { %1891 = vmatprep.subr.bf16.mxu1 %v3331_v25  ;;  %v3383_v25 = vld [vmem:[%s4667_s1 + $0x6a8] ss:$16 sps:$4 sm:$0xff]   ;;  %v3460_v44 = vld [vmem:[%s4669_s3 + $0xe4] ss:$8 sps:$4 sm:$0xff]  }
  0xce   :  { %2376 = vmatpush1.bf16.msra.mxu0 %v3422_v47 }
  0xcf   :  { %1892 = vmatpush1.bf16.msra.mxu1 %v3329_v45  ;;  %2377 = vmatprep.subr.bf16.mxu0 %v3427_v48 }
  0xd0   :  { %1893 = vmatprep.subr.bf16.mxu1 %v3334_v46  ;;  %v3458_v46 = vld [vmem:[%s4669_s3 + $0xe0] ss:$8 sps:$4 sm:$0xff]  }
  0xd2   :  { %2378 = vmatpush1.bf16.msra.mxu0 %v3425_v52  ;;  %v3391_v52 = vld [vmem:[%s4667_s1 + $0x6ec] ss:$16 sps:$4 sm:$0xff]  }
  0xd3   :  { %1894 = vmatpush1.bf16.msra.mxu1 %v3332_v50  ;;  %2379 = vmatprep.subr.bf16.mxu0 %v3430_v53  ;;  %v3386_v50 = vld [vmem:[%s4667_s1 + $0x6c8] ss:$16 sps:$4 sm:$0xff]   ;;  %v3463_v53 = vld [vmem:[%s4669_s3 + $0xf4] ss:$8 sps:$4 sm:$0xff]  }
  0xd4   :  { %1895 = vmatprep.subr.bf16.mxu1 %v3337_v51 }
  0xd6   :  { %2380 = vmatpush1.bf16.msra.mxu0 %v3428_v56  ;;  %v3394_v56 = vld [vmem:[%s4667_s1 + $0x70c] ss:$16 sps:$4 sm:$0xff]  }
  0xd7   :  { %1896 = vmatpush1.bf16.msra.mxu1 %v3335_v54  ;;  %2381 = vmatprep.subr.bf16.mxu0 %v3433_v57  ;;  %v3461_v54 = vld [vmem:[%s4669_s3 + $0xf0] ss:$8 sps:$4 sm:$0xff]   ;;  %v3466_v57 = vld [vmem:[%s4669_s3 + $0x104] ss:$8 sps:$4 sm:$0xff]  }
  0xd8   :  { %1897 = vmatprep.subr.bf16.mxu1 %v3340_v55  ;;  %v3389_v55 = vld [vmem:[%s4667_s1 + $0x6e8] ss:$16 sps:$4 sm:$0xff]  }
  0xda   :  { %2382 = vmatpush1.bf16.msra.mxu0 %v3431_v59  ;;  %v3397_v59 = vld [vmem:[%s4667_s1 + $0x72c] ss:$16 sps:$4 sm:$0xff]  }
  0xdb   :  { %1898 = vmatpush1.bf16.msra.mxu1 %v3338_v58  ;;  %2383 = vmatprep.subr.bf16.mxu0 %v3436_v61  ;;  %v3392_v58 = vld [vmem:[%s4667_s1 + $0x708] ss:$16 sps:$4 sm:$0xff]   ;;  %v3400_v61 = vld [vmem:[%s4667_s1 + $0x74c] ss:$16 sps:$4 sm:$0xff]  }
  0xdc   :  { %1899 = vmatprep.subr.bf16.mxu1 %v3343_v60  ;;  %v3395_v60 = vld [vmem:[%s4667_s1 + $0x728] ss:$16 sps:$4 sm:$0xff]  }
  0xde   :  { %2384 = vmatpush1.bf16.msra.mxu0 %v3434_v63  ;;  %v3403_v63 = vld [vmem:[%s4667_s1 + $0x76c] ss:$16 sps:$4 sm:$0xff]  }
  0xdf   :  { %1900 = vmatpush1.bf16.msra.mxu1 %v3341_v62  ;;  %2385 = vmatprep.subr.bf16.mxu0 %v3439_v1  ;;  %v3398_v62 = vld [vmem:[%s4667_s1 + $0x748] ss:$16 sps:$4 sm:$0xff]   ;;  %v3406_v1 = vld [vmem:[%s4667_s1 + $0x78c] ss:$16 sps:$4 sm:$0xff]  }
  0xe0   :  { %1901 = vmatprep.subr.bf16.mxu1 %v3346_v0  ;;  %v3401_v0 = vld [vmem:[%s4667_s1 + $0x768] ss:$16 sps:$4 sm:$0xff]  }
  0xe2   :  { %2386 = vmatpush1.bf16.msra.mxu0 %v3437_v4  ;;  %v3409_v4 = vld [vmem:[%s4667_s1 + $0x7ac] ss:$16 sps:$4 sm:$0xff]  }
  0xe3   :  { %1902 = vmatpush1.bf16.msra.mxu1 %v3344_v2  ;;  %2387 = vmatprep.subr.bf16.mxu0 %v3442_v6  ;;  %v3404_v2 = vld [vmem:[%s4667_s1 + $0x788] ss:$16 sps:$4 sm:$0xff]   ;;  %v3412_v6 = vld [vmem:[%s4667_s1 + $0x7cc] ss:$16 sps:$4 sm:$0xff]  }
  0xe4   :  { %1903 = vmatprep.subr.bf16.mxu1 %v3349_v5  ;;  %v3407_v5 = vld [vmem:[%s4667_s1 + $0x7a8] ss:$16 sps:$4 sm:$0xff]  }
  0xe6   :  { %2388 = vmatpush1.bf16.msra.mxu0 %v3440_v9  ;;  %v3415_v9 = vld [vmem:[%s4667_s1 + $0x7ec] ss:$16 sps:$4 sm:$0xff]  }
  0xe7   :  { %1904 = vmatpush1.bf16.msra.mxu1 %v3347_v7  ;;  %2389 = vmatprep.subr.bf16.mxu0 %v3445_v11  ;;  %v3410_v7 = vld [vmem:[%s4667_s1 + $0x7c8] ss:$16 sps:$4 sm:$0xff]   ;;  %v341_v11 = vsub.s32 0, %v3686_v43 }
  0xe8   :  { %1905 = vmatprep.subr.bf16.mxu1 %v3352_v10  ;;  %v3413_v10 = vld [vmem:[%s4667_s1 + $0x7e8] ss:$16 sps:$4 sm:$0xff]  }
  0xea   :  { %2390 = vmatpush1.bf16.msra.mxu0 %v3443_v14  ;;  %v345_v14 = vsub.s32 1, %v3686_v43 }
  0xeb   :  { %1906 = vmatpush1.bf16.msra.mxu1 %v3350_v12  ;;  %2391 = vmatprep.subr.bf16.mxu0 %v3448_v16  ;;  %v4500_v12 = vld [vmem:[%s4670_s2] sm:$0xf] }
  0xec   :  { %1907 = vmatprep.subr.bf16.mxu1 %v3355_v15  ;;  %v342_v15 = vrot.slane %v4500_v12, %v341_v11  ;;  %v346_v16 = vrot.slane %v4500_v12, %v345_v14 }
  0xee   :  { %2392 = vmatpush1.bf16.msra.mxu0 %v3446_v18 }
  0xef   :  { %1908 = vmatpush1.bf16.msra.mxu1 %v3353_v17  ;;  %2393 = vmatprep.subr.bf16.mxu0 %v3451_v22 }
  0xf0   :  { %1909 = vmatprep.subr.bf16.mxu1 %v3358_v21 }
  0xf2   :  { %2394 = vmatpush1.bf16.msra.mxu0 %v3449_v24 }
  0xf3   :  { %1910 = vmatpush1.bf16.msra.mxu1 %v3356_v23  ;;  %2395 = vmatprep.subr.bf16.mxu0 %v3454_v27 }
  0xf4   :  { %1911 = vmatprep.subr.bf16.mxu1 %v3361_v8 }
  0xf6   :  { %2396 = vmatpush1.bf16.msra.mxu0 %v3452_v29 }
  0xf7   :  { %1912 = vmatpush1.bf16.msra.mxu1 %v3359_v28  ;;  %2397 = vmatprep.subr.bf16.mxu0 %v3457_v30 }
  0xf8   :  { %1913 = vmatprep.subr.bf16.mxu1 %v3364_v49  ;;  %v3464_v49 = vld [vmem:[%s4669_s3 + $0x100] ss:$8 sps:$4 sm:$0xff]  }
  0xfa   :  { %2398 = vmatpush1.bf16.msra.mxu0 %v3455_v33  ;;  %v3467_v33 = vld [vmem:[%s4669_s3 + $0x110] ss:$8 sps:$4 sm:$0xff]  }
  0xfb   :  { %1914 = vmatpush1.bf16.msra.mxu1 %v3362_v32  ;;  %2399 = vmatprep.subr.bf16.mxu0 %v3460_v44  ;;  %v3469_v32 = vld [vmem:[%s4669_s3 + $0x114] ss:$8 sps:$4 sm:$0xff]   ;;  %v3520_v44 = vld [vmem:[%s4671_s5 + $0x60] sm:$0xff]  }
  0xfc   :  { %1915 = vmatprep.subr.bf16.mxu1 %v3367_v34  ;;  %v3472_v34 = vld [vmem:[%s4669_s3 + $0x124] ss:$8 sps:$4 sm:$0xff]  }
  0xfe   :  { %2400 = vmatpush1.bf16.msra.mxu0 %v3458_v46  ;;  %v3479_v46 = vld [vmem:[%s4669_s3 + $0x150] ss:$8 sps:$4 sm:$0xff]  }
  0xff   :  { %1916 = vmatpush1.bf16.msra.mxu1 %v3365_v13  ;;  %2401 = vmatprep.subr.bf16.mxu0 %v3463_v53  ;;  %v3512_v13 = vld [vmem:[%s4671_s5 + $0x40] sm:$0xff]   ;;  %v3485_v53 = vld [vmem:[%s4669_s3 + $0x170] ss:$8 sps:$4 sm:$0xff]  }
 0x100   :  { %1926 = vmatprep.subr.bf16.mxu1 %v3370_v36  ;;  %v3513_v36 = vld [vmem:[%s4671_s5] sm:$0xff]  }
 0x102   :  { %1918 = vmatmul.mubr.bf16.vlgmr.msra.gmra.mrb[4].mxu1 %v4001_v31  ;;  %v3379_v31 = vld [vmem:[%s4667_s1 + $0x66c] ss:$16 sps:$4 sm:$0xff]   ;;  %2402 = vmatpush1.bf16.msra.mxu0 %v3461_v54 }
 0x103   :  { %1927 = vmatpush1.bf16.msra.mxu1 %v3368_v38  ;;  %1958 = vmatprep.mubr.bf16.mxu1 %v4015_v35  ;;  %v3377_v35 = vld [vmem:[%s4667_s1 + $0x668] ss:$16 sps:$4 sm:$0xff]   ;;  %v3490_v54 = vld [vmem:[%s4669_s3 + $0x184] ss:$8 sps:$4 sm:$0xff]  }
 0x104   :  { %1928 = vmatprep.subr.bf16.mxu1 %v3373_v19  ;;  %2412 = vmatprep.subr.bf16.mxu0 %v3466_v57  ;;  %v3470_v38 = vld [vmem:[%s4669_s3 + $0x120] ss:$8 sps:$4 sm:$0xff]   ;;  %v3491_v57 = vld [vmem:[%s4669_s3 + $0x190] ss:$8 sps:$4 sm:$0xff]  }
 0x105   :  { %v3514_v19 = vld [vmem:[%s4671_s5 + $0x48] sm:$0xff]  }
 0x107   :  { %1929 = vmatpush1.bf16.msra.mxu1 %v3371_v26  ;;  %v3515_v26 = vld [vmem:[%s4671_s5 + $0x8] sm:$0xff]  }
 0x108   :  { %1930 = vmatprep.subr.bf16.mxu1 %v3376_v39  ;;  %v3516_v39 = vld [vmem:[%s4671_s5 + $0x50] sm:$0xff]  }
 0x10b   :  { %1931 = vmatpush1.bf16.msra.mxu1 %v3374_v40  ;;  %v3475_v40 = vld [vmem:[%s4669_s3 + $0x134] ss:$8 sps:$4 sm:$0xff]  }
 0x10c   :  { %1932 = vmatprep.subr.bf16.mxu1 %v3379_v31  ;;  %v3473_v31 = vld [vmem:[%s4669_s3 + $0x130] ss:$8 sps:$4 sm:$0xff]  }
 0x10f   :  { %1933 = vmatpush1.bf16.msra.mxu1 %v3377_v35  ;;  %v3517_v35 = vld [vmem:[%s4671_s5 + $0x10] sm:$0xff]  }
 0x110   :  { %1934 = vmatprep.subr.bf16.mxu1 %v3382_v20  ;;  %v3518_v20 = vld [vmem:[%s4671_s5 + $0x58] sm:$0xff]  }
 0x113   :  { %1935 = vmatpush1.bf16.msra.mxu1 %v3380_v41  ;;  %v3478_v41 = vld [vmem:[%s4669_s3 + $0x144] ss:$8 sps:$4 sm:$0xff]  }
 0x114   :  { %1936 = vmatprep.subr.bf16.mxu1 %v3385_v3  ;;  %v3476_v3 = vld [vmem:[%s4669_s3 + $0x140] ss:$8 sps:$4 sm:$0xff]  }
 0x115   :  { %v1673_v45 = vpop.f32.mrb[0].mxu1 }
 0x116   :  { %v1675_v47 = vpop.f32.mrb[1].mxu1  ;;  %v1674_v17 = vadd.f32 %v1673_v45, %v342_v15  ;;  %v3521_v45 = vld [vmem:[%s4671_s5 + $0x20] sm:$0xff]  }
 0x117   :  { %v1677_v48 = vpop.f32.mrb[2].mxu1  ;;  %1937 = vmatpush1.bf16.msra.mxu1 %v3383_v25  ;;  %v1676_v18 = vadd.f32 %v1675_v47, %v346_v16  ;;  %v3481_v25 = vld [vmem:[%s4669_s3 + $0x154] ss:$8 sps:$4 sm:$0xff]   ;;  %v3522_v47 = vld [vmem:[%s4671_s5 + $0x68] sm:$0xff]  }
 0x118   :  { %v1678_v51 = vpop.f32.mrb[3].mxu1  ;;  %1938 = vmatprep.subr.bf16.mxu1 %v3388_v42  ;;  %v3519_v42 = vld [vmem:[%s4671_s5 + $0x18] sm:$0xff]   ;;  %v3484_v48 = vld [vmem:[%s4669_s3 + $0x164] ss:$8 sps:$4 sm:$0xff]  }
 0x119   :  { %v3482_v51 = vld [vmem:[%s4669_s3 + $0x160] ss:$8 sps:$4 sm:$0xff]  }
 0x11b   :  { %1939 = vmatpush1.bf16.msra.mxu1 %v3386_v50  ;;  %v3523_v50 = vld [vmem:[%s4671_s5 + $0x28] sm:$0xff]  }
 0x11c   :  { %1940 = vmatprep.subr.bf16.mxu1 %v3391_v52  ;;  %v3487_v52 = vld [vmem:[%s4669_s3 + $0x174] ss:$8 sps:$4 sm:$0xff]  }
 0x11f   :  { %1941 = vmatpush1.bf16.msra.mxu1 %v3389_v55  ;;  %v3488_v55 = vld [vmem:[%s4669_s3 + $0x180] ss:$8 sps:$4 sm:$0xff]  }
 0x120   :  { %1942 = vmatprep.subr.bf16.mxu1 %v3394_v56  ;;  %v3493_v56 = vld [vmem:[%s4669_s3 + $0x194] ss:$8 sps:$4 sm:$0xff]  }
 0x123   :  { %1943 = vmatpush1.bf16.msra.mxu1 %v3392_v58  ;;  %v3496_v58 = vld [vmem:[%s4669_s3 + $0x1a4] ss:$8 sps:$4 sm:$0xff]  }
 0x124   :  { %1944 = vmatprep.subr.bf16.mxu1 %v3397_v59  ;;  %v3494_v59 = vld [vmem:[%s4669_s3 + $0x1a0] ss:$8 sps:$4 sm:$0xff]  }
 0x127   :  { %1945 = vmatpush1.bf16.msra.mxu1 %v3395_v60  ;;  %v3499_v60 = vld [vmem:[%s4669_s3 + $0x1b4] ss:$8 sps:$4 sm:$0xff]  }
 0x128   :  { %1946 = vmatprep.subr.bf16.mxu1 %v3400_v61  ;;  %v3497_v61 = vld [vmem:[%s4669_s3 + $0x1b0] ss:$8 sps:$4 sm:$0xff]  }
 0x12b   :  { %1947 = vmatpush1.bf16.msra.mxu1 %v3398_v62  ;;  %v3502_v62 = vld [vmem:[%s4669_s3 + $0x1c4] ss:$8 sps:$4 sm:$0xff]  }
 0x12c   :  { %1948 = vmatprep.subr.bf16.mxu1 %v3403_v63  ;;  %v3500_v63 = vld [vmem:[%s4669_s3 + $0x1c0] ss:$8 sps:$4 sm:$0xff]  }
 0x12f   :  { %1949 = vmatpush1.bf16.msra.mxu1 %v3401_v0  ;;  %v3505_v0 = vld [vmem:[%s4669_s3 + $0x1d4] ss:$8 sps:$4 sm:$0xff]  }
 0x130   :  { %1950 = vmatprep.subr.bf16.mxu1 %v3406_v1  ;;  %v3503_v1 = vld [vmem:[%s4669_s3 + $0x1d0] ss:$8 sps:$4 sm:$0xff]  }
 0x133   :  { %1951 = vmatpush1.bf16.msra.mxu1 %v3404_v2  ;;  %v3508_v2 = vld [vmem:[%s4669_s3 + $0x1e4] ss:$8 sps:$4 sm:$0xff]  }
 0x134   :  { %1952 = vmatprep.subr.bf16.mxu1 %v3409_v4  ;;  %v3506_v4 = vld [vmem:[%s4669_s3 + $0x1e0] ss:$8 sps:$4 sm:$0xff]  }
 0x137   :  { %1953 = vmatpush1.bf16.msra.mxu1 %v3407_v5  ;;  %v3511_v5 = vld [vmem:[%s4669_s3 + $0x1f4] ss:$8 sps:$4 sm:$0xff]  }
 0x138   :  { %1954 = vmatprep.subr.bf16.mxu1 %v3412_v6  ;;  %v3509_v6 = vld [vmem:[%s4669_s3 + $0x1f0] ss:$8 sps:$4 sm:$0xff]  }
 0x13b   :  { %1955 = vmatpush1.bf16.msra.mxu1 %v3410_v7  ;;  %v349_v7 = vsub.s32 2, %v3686_v43 }
 0x13c   :  { %1956 = vmatprep.subr.bf16.mxu1 %v3415_v9  ;;  %v353_v9 = vsub.s32 3, %v3686_v43 }
 0x13e   :  { %v354_v15 = vrot.slane %v4500_v12, %v353_v9 }
 0x13f   :  { %1957 = vmatpush1.bf16.msra.mxu1 %v3413_v10  ;;  %v350_v10 = vrot.slane %v4500_v12, %v349_v7  ;;  %v3525_v12 = vld [vmem:[%s4671_s5 + $0x30] sm:$0xff]  }
 0x140   :  { %2975 = vmatprep.subr.bf16.mxu1 %v3512_v13 }
 0x142   :  { %1959 = vmatmul.mubr.bf16.vlgmr.msra.gmra.mrb[4].mxu1 %v4200_v37 }
 0x143   :  { %2976 = vmatpush3.bf16.msra.mxu1 %v3513_v36 }
 0x144   :  { %2977 = vmatprep.subr.bf16.mxu1 %v3514_v19 }
 0x147   :  { %2978 = vmatpush3.bf16.msra.mxu1 %v3515_v26 }
 0x148   :  { %2979 = vmatprep.subr.bf16.mxu1 %v3516_v39 }
 0x14b   :  { %2980 = vmatpush3.bf16.msra.mxu1 %v3517_v35 }
 0x14c   :  { %2981 = vmatprep.subr.bf16.mxu1 %v3518_v20 }
 0x14f   :  { %2982 = vmatpush3.bf16.msra.mxu1 %v3519_v42 }
 0x150   :  { %2983 = vmatprep.subr.bf16.mxu1 %v3520_v44 }
 0x153   :  { %2984 = vmatpush3.bf16.msra.mxu1 %v3521_v45 }
 0x154   :  { %2985 = vmatprep.subr.bf16.mxu1 %v3522_v47 }
 0x157   :  { %2986 = vmatpush3.bf16.msra.mxu1 %v3523_v50 }
 0x196   :  { %v1796_v37 = vpop.f32.mrb[0].mxu0 }
 0x197   :  { %v2998_v21 = vadd.f32 %v1796_v37, %v1674_v17  ;;  %v1798_v22 = vpop.f32.mrb[1].mxu0 }
 0x198   :  { %v3000_v23 = vadd.f32 %v1798_v22, %v1676_v18  ;;  %v1800_v24 = vpop.f32.mrb[2].mxu0 }
 0x199   :  { %v1967_v8 = vmax.f32 %v2998_v21, 0.0  ;;  %v1801_v27 = vpop.f32.mrb[3].mxu0 }
 0x19a   :  { %v1968_v28 = vmax.f32 %v3000_v23, 0.0 }
 0x19b   :  { %v1971_v30 = vpack.c.bf16 %v1967_v8, %v1967_v8 }
 0x19c   :  { %v1972_v29 = vpack.c.bf16 %v1968_v28, %v1968_v28  ;;  %v3524_v28 = vld [vmem:[%s4671_s5 + $0x70] sm:$0xff]  }
 0x19d   :  { %2987 = vmatprep.subr.bf16.mxu1 %v3524_v28 }
 0x19e   :  { %2403 = vmatprep.mubr.bf16.mxu0 %v1972_v29  ;;  %2988 = vmatpush3.bf16.msra.mxu1 %v3525_v12  ;;  %v3526_v29 = vld [vmem:[%s4671_s5 + $0x78] sm:$0xff]  }
 0x19f   :  { %2404 = vmatmul.mubr.bf16.vlgmr.msra.gmra.mrb[4].mxu0 %v1971_v30  ;;  %2989 = vmatprep.subr.bf16.mxu1 %v3526_v29  ;;  %v2039_v30 = vld [vmem:[%s4672_s4] sm:$0x3] }
 0x1a0   :  { %2413 = vmatpush1.bf16.msra.mxu0 %v3464_v49  ;;  %v3527_v49 = vld [vmem:[%s4671_s5 + $0x38] sm:$0xff]  }
 0x1a1   :  { %2414 = vmatprep.subr.bf16.mxu0 %v3469_v32  ;;  %v2044_v32 = vrot.slane %v2039_v30, %v341_v11  ;;  %v2958_v11 = vld [vmem:[%s4673_s6] ss:$0 sm:$0xff] }
 0x1a2   :  { %2990 = vmatpush3.bf16.msra.mxu1 %v3527_v49 }
 0x1a4   :  { %2415 = vmatpush1.bf16.msra.mxu0 %v3467_v33  ;;  %v2048_v33 = vrot.slane %v2039_v30, %v345_v14 }
 0x1a5   :  { %2416 = vmatprep.subr.bf16.mxu0 %v3472_v34 }
 0x1a8   :  { %2417 = vmatpush1.bf16.msra.mxu0 %v3470_v38 }
 0x1a9   :  { %2418 = vmatprep.subr.bf16.mxu0 %v3475_v40 }
 0x1ac   :  { %2419 = vmatpush1.bf16.msra.mxu0 %v3473_v31 }
 0x1ad   :  { %2420 = vmatprep.subr.bf16.mxu0 %v3478_v41 }
 0x1b0   :  { %2421 = vmatpush1.bf16.msra.mxu0 %v3476_v3 }
 0x1b1   :  { %2422 = vmatprep.subr.bf16.mxu0 %v3481_v25 }
 0x1b4   :  { %2423 = vmatpush1.bf16.msra.mxu0 %v3479_v46 }
 0x1b5   :  { %2424 = vmatprep.subr.bf16.mxu0 %v3484_v48 }
 0x1b8   :  { %2425 = vmatpush1.bf16.msra.mxu0 %v3482_v51 }
 0x1b9   :  { %2426 = vmatprep.subr.bf16.mxu0 %v3487_v52 }
 0x1bc   :  { %2427 = vmatpush1.bf16.msra.mxu0 %v3485_v53 }
 0x1bd   :  { %2428 = vmatprep.subr.bf16.mxu0 %v3490_v54 }
 0x1c0   :  { %2429 = vmatpush1.bf16.msra.mxu0 %v3488_v55 }
 0x1c1   :  { %2430 = vmatprep.subr.bf16.mxu0 %v3493_v56 }
 0x1c4   :  { %2431 = vmatpush1.bf16.msra.mxu0 %v3491_v57 }
 0x1c5   :  { %2432 = vmatprep.subr.bf16.mxu0 %v3496_v58 }
 0x1c8   :  { %2433 = vmatpush1.bf16.msra.mxu0 %v3494_v59 }
 0x1c9   :  { %2434 = vmatprep.subr.bf16.mxu0 %v3499_v60 }
 0x1cc   :  { %2435 = vmatpush1.bf16.msra.mxu0 %v3497_v61 }
 0x1cd   :  { %2436 = vmatprep.subr.bf16.mxu0 %v3502_v62 }
 0x1d0   :  { %2437 = vmatpush1.bf16.msra.mxu0 %v3500_v63 }
 0x1d1   :  { %2438 = vmatprep.subr.bf16.mxu0 %v3505_v0 }
 0x1d4   :  { %2439 = vmatpush1.bf16.msra.mxu0 %v3503_v1 }
 0x1d5   :  { %2440 = vmatprep.subr.bf16.mxu0 %v3508_v2 }
 0x1d8   :  { %2441 = vmatpush1.bf16.msra.mxu0 %v3506_v4 }
 0x1d9   :  { %2442 = vmatprep.subr.bf16.mxu0 %v3511_v5 }
 0x1dc   :  { %2443 = vmatpush1.bf16.msra.mxu0 %v3509_v6 }
 0x215   :  { %v1960_v16 = vpop.f32.mrb[4].mxu1 }
 0x216   :  { %v3001_v17 = vadd.f32 %v1960_v16, %v350_v10  ;;  %v1962_v18 = vpop.f32.mrb[5].mxu1 }
 0x217   :  { %v3002_v37 = vadd.f32 %v1962_v18, %v354_v15  ;;  %v1964_v21 = vpop.f32.mrb[6].mxu1 }
 0x218   :  { %v1969_v22 = vmax.f32 %v3001_v17, 0.0  ;;  %v1965_v23 = vpop.f32.mrb[7].mxu1 }
 0x219   :  { %v1970_v24 = vmax.f32 %v3002_v37, 0.0 }
 0x21a   :  { %v1973_v27 = vpack.c.bf16 %v1969_v22, %v1969_v22 }
 0x21b   :  { %v1974_v8 = vpack.c.bf16 %v1970_v24, %v1970_v24 }
 0x21d   :  { %2444 = vmatprep.mubr.bf16.mxu0 %v1974_v8 }
 0x21e   :  { %2445 = vmatmul.mubr.bf16.vlgmr.msra.gmra.mrb[4].mxu0 %v1973_v27 }
 0x2f1   :  { %v2446_v34 = vpop.f32.mrb[4].mxu0 }
 0x2f2   :  { %v3003_v13 = vadd.f32 %v2446_v34, %v2044_v32  ;;  %v2448_v36 = vpop.f32.mrb[5].mxu0 }
 0x2f3   :  { %v3004_v38 = vadd.f32 %v2448_v36, %v2048_v33  ;;  %v2450_v19 = vpop.f32.mrb[6].mxu0 }
 0x2f4   :  { %v2453_v26 = vmax.f32 %v3003_v13, 0.0  ;;  %v2451_v39 = vpop.f32.mrb[7].mxu0 }
 0x2f5   :  { %v2454_v40 = vmax.f32 %v3004_v38, 0.0 }
 0x2f6   :  { %v2455_v35 = vpack.c.bf16 %v2453_v26, %v2453_v26 }
 0x2f7   :  { %v2456_v31 = vpack.c.bf16 %v2454_v40, %v2454_v40 }
 0x2f9   :  { %2624 = vmatprep.mubr.bf16.mxu1 %v2456_v31 }
 0x2fa   :  { %2625 = vmatmul.mubr.bf16.vlgmr.msra.gmra.mrb[8].mxu1 %v2455_v35 }
 0x3cd   :  { %v2991_v20 = vpop.f32.mrb[8].mxu1 }
 0x3ce   :  { %v2992_v41 = vpop.f32.mrb[9].mxu1 }
 0x3cf   :  { %v2993_v43 = vadd.f32 %v2992_v41, %v2991_v20  ;;  %v2994_v14 = vpop.f32.mrb[10].mxu1 }
 0x3d0   :  { %v2995_v3 = vpop.f32.mrb[11].mxu1 }
 0x3d1   :  { %v2627_v25 = vadd.f32 %v2993_v43, %v2958_v11 }
 0x3d3   :  { %2633 = vst.msk [vmem:[%s4674_s7] sm:$0x3] %vm2632_vm0, %v2627_v25 }

// kernel: pointnet_local_features_forward.7
= control target key start
LH: loop header
LB: loop body
LE: loop exit
PB: predicated region body
PF: predicated region fallthrough
CT: control target
= control target key end

     0   :  { %s3171_s21 = smov 0   ;;  %s3173_s22 = smov 0   ;;  %s3848_s0 = inlined_call_operand.vmem [shape: f32[2,128,3], index: 0, kind: input, shape index: {}]   ;;  %s3849_s1 = inlined_call_operand.vmem [shape: bf16[2,3,64], index: 1, kind: input, shape index: {}]   ;;  %s3850_s2 = inlined_call_operand.vmem [shape: f32[1,64], index: 2, kind: input, shape index: {}]   ;;  %s3851_s3 = inlined_call_operand.vmem [shape: bf16[64,64], index: 3, kind: input, shape index: {}]   ;;  %s3852_s4 = inlined_call_operand.vmem [shape: f32[1,64], index: 4, kind: input, shape index: {}]   ;;  %s3853_s5 = inlined_call_operand.vmem [shape: bf16[64,64], index: 5, kind: input, shape index: {}]   ;;  %s3854_s6 = inlined_call_operand.vmem [shape: f32[1,64], index: 6, kind: input, shape index: {}]   ;;  %s3855_s7 = inlined_call_operand.vmem [shape: bf16[64,128], index: 7, kind: input, shape index: {}]   ;;  %s3856_s8 = inlined_call_operand.vmem [shape: f32[1,128], index: 8, kind: input, shape index: {}]   ;;  %s3857_s9 = inlined_call_operand.vmem [shape: bf16[128,1024], index: 9, kind: input, shape index: {}]   ;;  %s3858_s10 = inlined_call_operand.vmem [shape: f32[1,1024], index: 10, kind: input, shape index: {}]   ;;  %s3859_s11 = inlined_call_operand.vmem [shape: bf16[2,64,128], index: 11, kind: output, shape index: {0}]   ;;  %s3860_s12 = inlined_call_operand.vmem [shape: f32[2,1,1024], index: 12, kind: output, shape index: {1}]  }
   0x1   :  { %s3175_s23 = smov 0  }
   0x2 LB: > { %s35_s24 = sadd.s32 1, %s3097_s22  ;;  %p2743_p0 = scmp.ge.s32.totalorder %s3101_s23, 1  ;;  %s3101_s23 = sphi %s3175_s23, %s23_s23   ;;  %s3097_s22 = sphi %s3173_s22, %s3862_s22   ;;  %s3093_s21 = sphi %s3171_s21, %s3861_s21  }
   0x3   : > { %p37_p1 = scmp.ge.s32.totalorder %s35_s24, 2  ;;  %p395_p2 = scmp.lt.s32.totalorder %s3101_s23, 3 }
   0x5   : > { %s3864_s24 = smov (%p37_p1, %s35_s24), 0  ;;  %p396_p3 = pnand %p2743_p0, %p395_p2 }
   0x6   : > { %p453_p4 = scmp.lt.s32.totalorder (!%p396_p3), %s3093_s21, 1  ;;  %vm536_vm0 = vcmask (!%p396_p3), 1040384   ;;  %vm537_vm1 = vcmask (!%p396_p3), 1041408   ;;  %v3067_v0 = vld [vmem:[%s3851_s3] sm:$0xff] (!%p396_p3)   ;;  %v3103_v1 = vmov (!%p396_p3), 65535   ;;  %v3068_v3 = vld [vmem:[%s3851_s3 + $0x8] sm:$0xff] (!%p396_p3)  }
   0x7   : > { %399 = sbr.rel (%p396_p3) target bundleno = 1277 (0x4fd), region = 64  ;;  %v538_v2 = vsel (!%p396_p3), %vm536_vm0, 4294967295, %v3103_v1  ;;  %2968 = vmatprep.subr.bf16.mxu1 (!%p396_p3), %v3067_v0  ;;  %vm511_vm2 = vcmask (!%p396_p3), 23552   ;;  %v3069_v31 = vld [vmem:[%s3851_s3 + $0x10] sm:$0xff] (!%p396_p3)   ;;  %v3070_v32 = vld [vmem:[%s3851_s3 + $0x18] sm:$0xff] (!%p396_p3)   ;;  %v3071_v33 = vld [vmem:[%s3853_s5] sm:$0xff] (!%p396_p3)  }
   0x8   : > { %v539_v4 = vsel (!%p396_p3), %vm537_vm1, %v538_v2, 0  ;;  %2969 = vmatpush3.bf16.msra.mxu1 (!%p396_p3), %v3067_v0  ;;  %v3072_v34 = vld [vmem:[%s3853_s5 + $0x8] sm:$0xff] (!%p396_p3)   ;;  %v3073_v35 = vld [vmem:[%s3853_s5 + $0x10] sm:$0xff] (!%p396_p3)   ;;  %v2750_v36 = vld [vmem:[%s3850_s2] ss:$0 sm:$0xff] (!%p396_p3)  ;;  %vm703_vm3 = vcmask (!%p396_p3), 523264  }
   0x9   : > { %2970 = vmatprep.subr.bf16.mxu1 (!%p396_p3), %v3068_v3 }
   0xc   : > { %2971 = vmatpush3.bf16.msra.mxu1 (!%p396_p3), %v3068_v3 }
   0xd   : > { %2972 = vmatprep.subr.bf16.mxu1 (!%p396_p3), %v3069_v31 }
   0xe   : > { %s3866_s21 = smov (!%p453_p4, %s3093_s21), 1 }
   0xf   : > { %s2872_s29 = sshll.u32 %s3866_s21, 7  ;;  %s2746_s30 = sshll.u32 %s3866_s21, 1 }
  0x10   : > { %s3202_s15 = scalar_lea.vmem %s3848_s0, %s2872_s29  ;;  %s465_s18 = scalar_lea.vmem %s3849_s1, %s2746_s30  ;;  %2973 = vmatpush3.bf16.msra.mxu1 %v3069_v31  ;;  %v3076_v31 = vld [vmem:[%s3855_s7 + $0x8] sm:$0xff]  }
  0x11   : > { %v503_v5 = vld [vmem:[%s465_s18] sm:$0x3]  ;;  %v480_v7 = vld [vmem:[%s3202_s15 + $0x8] sm:$0xff]  ;;  %v481_v10 = vld [vmem:[%s3202_s15 + $0x10] sm:$0xff]  ;;  %2974 = vmatprep.subr.bf16.mxu1 %v3070_v32  ;;  %s2873_s27 = sshll.u32 %s3866_s21, 5  ;;  %s2749_s13 = sshll.u32 %s3866_s21, 3 }
  0x12   : > { %v479_v6 = vld [vmem:[%s3202_s15] sm:$0xff]  ;;  %v541_v8 = vand.u32 %v539_v4, %v503_v5  ;;  %v482_v11 = vld [vmem:[%s3202_s15 + $0x18] sm:$0xff]  ;;  %v484_v13 = vld [vmem:[%s3202_s15 + $0x28] sm:$0xff]  ;;  %s3655_s30 = scalar_lea.vmem %s3859_s11, %s2873_s27  ;;  %s477_s16 = scalar_lea.vmem %s3860_s12, %s2749_s13 }
  0x13   : > { %v495_v9 = vpack.c.bf16 %v480_v7, %v479_v6  ;;  %v483_v12 = vld [vmem:[%s3202_s15 + $0x20] sm:$0xff]  ;;  %v496_v14 = vpack.c.bf16 %v482_v11, %v481_v10  ;;  %v485_v16 = vld [vmem:[%s3202_s15 + $0x30] sm:$0xff]  ;;  %v486_v17 = vld [vmem:[%s3202_s15 + $0x38] sm:$0xff] }
  0x14   : > { %2950 = vmatprep.subr.bf16.mxu0 %v541_v8  ;;  %v497_v15 = vpack.c.bf16 %v484_v13, %v483_v12  ;;  %v487_v18 = vld [vmem:[%s3202_s15 + $0x40] sm:$0xff]  ;;  %v488_v19 = vld [vmem:[%s3202_s15 + $0x48] sm:$0xff]  ;;  %v498_v20 = vpack.c.bf16 %v486_v17, %v485_v16  ;;  %v489_v22 = vld [vmem:[%s3202_s15 + $0x50] sm:$0xff]  ;;  %2975 = vmatpush3.bf16.msra.mxu1 %v3070_v32 }
  0x15   : > { %2952 = vmatprep.mubr.msk.bf16.mxu0 %vm511_vm2, %v495_v9  ;;  %2951 = vmatpush3.bf16.msra.mxu0 %v541_v8  ;;  %v499_v21 = vpack.c.bf16 %v488_v19, %v487_v18  ;;  %v490_v23 = vld [vmem:[%s3202_s15 + $0x58] sm:$0xff]  ;;  %v491_v24 = vld [vmem:[%s3202_s15 + $0x60] sm:$0xff]  ;;  %v492_v25 = vld [vmem:[%s3202_s15 + $0x68] sm:$0xff] }
  0x16   : > { %v500_v26 = vpack.c.bf16 %v490_v23, %v489_v22  ;;  %v501_v27 = vpack.c.bf16 %v492_v25, %v491_v24  ;;  %v493_v28 = vld [vmem:[%s3202_s15 + $0x70] sm:$0xff]  ;;  %v494_v29 = vld [vmem:[%s3202_s15 + $0x78] sm:$0xff]  ;;  %2992 = vmatprep.subr.bf16.mxu0 %v3071_v33 }
  0x17   : > { %v502_v30 = vpack.c.bf16 %v494_v29, %v493_v28  ;;  %v3074_v29 = vld [vmem:[%s3853_s5 + $0x18] sm:$0xff]   ;;  %v3077_v32 = vld [vmem:[%s3855_s7 + $0x10] sm:$0xff]  }
  0x18   : > { %2953 = vmatmul.mubr.msk.bf16.vlgmr.msra.gmra.mrb[0].mxu0 %vm511_vm2, %v496_v14 }
  0x19   : > { %2956 = vmatprep.mubr.msk.bf16.mxu0 %vm511_vm2, %v497_v15  ;;  %2993 = vmatpush3.bf16.msra.mxu0 %v3071_v33  ;;  %v3272_v33 = vld [vmem:[%s3852_s4] ss:$0 sm:$0xff] }
  0x1a   : > { %2994 = vmatprep.subr.bf16.mxu0 %v3072_v34 }
  0x1d   : > { %2995 = vmatpush3.bf16.msra.mxu0 %v3072_v34 }
  0x1e   : > { %2996 = vmatprep.subr.bf16.mxu0 %v3073_v35 }
  0x20   : > { %2957 = vmatmul.mubr.msk.bf16.gmra.mrb[4].mxu0 %vm511_vm2, %v498_v20 }
  0x21   : > { %2960 = vmatprep.mubr.msk.bf16.mxu0 %vm511_vm2, %v499_v21  ;;  %2997 = vmatpush3.bf16.msra.mxu0 %v3073_v35 }
  0x22   : > { %2998 = vmatprep.subr.bf16.mxu0 %v3074_v29 }
  0x25   : > { %2999 = vmatpush3.bf16.msra.mxu0 %v3074_v29  ;;  %v3310_v29 = vld [vmem:[%s3857_s9 + $0x8] sm:$0xff] }
  0x28   : > { %2961 = vmatmul.mubr.msk.bf16.gmra.mrb[8].mxu0 %vm511_vm2, %v500_v26 }
  0x29   : > { %2964 = vmatprep.mubr.msk.bf16.mxu0 %vm511_vm2, %v501_v27 }
  0x30   : > { %2965 = vmatmul.mubr.msk.bf16.gmra.mrb[12].mxu0 %vm511_vm2, %v502_v30  ;;  %v3075_v30 = vld [vmem:[%s3855_s7] sm:$0xff]  }
  0x31   : > { %3016 = vmatprep.subr.bf16.mxu1 %v3075_v30 }
  0xeb   : > { %v2954_v37 = vpop.f32.mrb[0].mxu0 }
  0xec   : > { %v586_v38 = vadd.f32 %v2954_v37, %v2750_v36  ;;  %v577_v39 = vpop.f32.mrb[1].mxu0 }
  0xed   : > { %v578_v40 = vadd.f32 %v2750_v36, %v577_v39  ;;  %v2955_v41 = vpop.f32.mrb[2].mxu0 }
  0xee   : > { %v589_v42 = vadd.f32 %v2955_v41, %v2750_v36  ;;  %v580_v43 = vpop.f32.mrb[3].mxu0  ;;  %v642_v45 = vmax.f32 %v586_v38, 0.0 }
  0xef   : > { %v581_v44 = vadd.f32 %v2750_v36, %v580_v43  ;;  %v640_v47 = vmax.f32 %v578_v40, 0.0 }
  0xf0   : > { %v643_v46 = vmax.f32 %v589_v42, 0.0 }
  0xf1   : > { %v641_v48 = vmax.f32 %v581_v44, 0.0 }
  0xf2   : > { %v657_v49 = vpack.c.bf16 %v643_v46, %v642_v45 }
  0xf3   : > { %v2958_v50 = vpop.f32.mrb[4].mxu0  ;;  %v656_v51 = vpack.c.bf16 %v641_v48, %v640_v47 }
  0xf4   : > { %v602_v52 = vadd.f32 %v2958_v50, %v2750_v36  ;;  %v593_v53 = vpop.f32.mrb[5].mxu0 }
  0xf5   : > { %v594_v54 = vadd.f32 %v2750_v36, %v593_v53  ;;  %v2959_v55 = vpop.f32.mrb[6].mxu0  ;;  %2976 = vmatprep.mubr.msk.bf16.mxu1 %vm703_vm3, %v656_v51 }
  0xf6   : > { %v646_v56 = vmax.f32 %v602_v52, 0.0  ;;  %v605_v57 = vadd.f32 %v2959_v55, %v2750_v36  ;;  %v596_v58 = vpop.f32.mrb[7].mxu0  ;;  %2977 = vmatmul.mubr.msk.bf16.vlgmr.msra.gmra.mrb[0].mxu1 %vm703_vm3, %v657_v49 }
  0xf7   : > { %v644_v59 = vmax.f32 %v594_v54, 0.0  ;;  %v597_v60 = vadd.f32 %v2750_v36, %v596_v58  ;;  %3017 = vmatpush3.bf16.msra.mxu1 %v3075_v30 }
  0xf8   : > { %v647_v61 = vmax.f32 %v605_v57, 0.0  ;;  %3018 = vmatprep.subr.bf16.mxu1 %v3076_v31 }
  0xf9   : > { %v645_v62 = vmax.f32 %v597_v60, 0.0 }
  0xfa   : > { %v659_v63 = vpack.c.bf16 %v647_v61, %v646_v56 }
  0xfb   : > { %v658_v0 = vpack.c.bf16 %v645_v62, %v644_v59  ;;  %v2962_v1 = vpop.f32.mrb[8].mxu0  ;;  %3019 = vmatpush3.bf16.msra.mxu1 %v3076_v31 }
  0xfc   : > { %v618_v2 = vadd.f32 %v2962_v1, %v2750_v36  ;;  %v609_v3 = vpop.f32.mrb[9].mxu0  ;;  %3020 = vmatprep.subr.bf16.mxu1 %v3077_v32 }
  0xfd   : > { %v610_v4 = vadd.f32 %v2750_v36, %v609_v3  ;;  %2980 = vmatprep.mubr.msk.bf16.mxu1 %vm703_vm3, %v658_v0  ;;  %v2963_v5 = vpop.f32.mrb[10].mxu0 }
  0xfe   : > { %v650_v6 = vmax.f32 %v618_v2, 0.0  ;;  %v621_v7 = vadd.f32 %v2963_v5, %v2750_v36  ;;  %2981 = vmatmul.mubr.msk.bf16.gmra.mrb[4].mxu1 %vm703_vm3, %v659_v63  ;;  %v612_v8 = vpop.f32.mrb[11].mxu0 }
  0xff   : > { %v648_v9 = vmax.f32 %v610_v4, 0.0  ;;  %v613_v10 = vadd.f32 %v2750_v36, %v612_v8  ;;  %3021 = vmatpush3.bf16.msra.mxu1 %v3077_v32  ;;  %v3315_v32 = vld [vmem:[%s3857_s9 + $0x28] sm:$0xff] }
 0x100   : > { %v651_v11 = vmax.f32 %v621_v7, 0.0 }
 0x101   : > { %v649_v12 = vmax.f32 %v613_v10, 0.0 }
 0x102   : > { %v661_v13 = vpack.c.bf16 %v651_v11, %v650_v6 }
 0x103   : > { %v660_v14 = vpack.c.bf16 %v649_v12, %v648_v9  ;;  %v2966_v15 = vpop.f32.mrb[12].mxu0 }
 0x104   : > { %v634_v16 = vadd.f32 %v2966_v15, %v2750_v36  ;;  %v625_v17 = vpop.f32.mrb[13].mxu0 }
 0x105   : > { %2984 = vmatprep.mubr.msk.bf16.mxu1 %vm703_vm3, %v660_v14  ;;  %v626_v18 = vadd.f32 %v2750_v36, %v625_v17  ;;  %v2967_v19 = vpop.f32.mrb[14].mxu0 }
 0x106   : > { %2985 = vmatmul.mubr.msk.bf16.gmra.mrb[8].mxu1 %vm703_vm3, %v661_v13  ;;  %v654_v20 = vmax.f32 %v634_v16, 0.0  ;;  %v637_v21 = vadd.f32 %v2967_v19, %v2750_v36  ;;  %v628_v22 = vpop.f32.mrb[15].mxu0 }
 0x107   : > { %v652_v23 = vmax.f32 %v626_v18, 0.0  ;;  %v629_v24 = vadd.f32 %v2750_v36, %v628_v22 }
 0x108   : > { %v655_v25 = vmax.f32 %v637_v21, 0.0 }
 0x109   : > { %v653_v26 = vmax.f32 %v629_v24, 0.0 }
 0x10a   : > { %v663_v27 = vpack.c.bf16 %v655_v25, %v654_v20 }
 0x10b   : > { %v662_v28 = vpack.c.bf16 %v653_v26, %v652_v23  ;;  %v3078_v26 = vld [vmem:[%s3855_s7 + $0x18] sm:$0xff]  }
 0x10c   : > { %3022 = vmatprep.subr.bf16.mxu1 %v3078_v26 }
 0x10d   : > { %2988 = vmatprep.mubr.msk.bf16.mxu1 %vm703_vm3, %v662_v28  ;;  %3023 = vmatpush3.bf16.msra.mxu1 %v3078_v26  ;;  %v1293_v28 = vld [vmem:[%s3857_s9 + $0x20] sm:$0xff]  ;;  %v1318_v26 = vld [vmem:[%s3857_s9 + $0xe8] sm:$0xff] }
 0x10e   : > { %2989 = vmatmul.mubr.msk.bf16.gmra.mrb[12].mxu1 %vm703_vm3, %v663_v27  ;;  %v1289_v27 = vld [vmem:[%s3857_s9] sm:$0xff] }
 0x10f   : > { %v2806_v30 = vcombine.low %v1289_v27, %v1293_v28  ;;  %v2807_v31 = vcombine.high %v1289_v27, %v1293_v28 }
 0x111   : > { %1715 = vmatprep.subr.bf16.mxu0 %v2807_v31 }
 0x1c9   : > { %v2978_v34 = vpop.f32.mrb[0].mxu1 }
 0x1ca   : > { %v771_v35 = vadd.f32 %v2978_v34, %v3272_v33  ;;  %v762_v36 = vpop.f32.mrb[1].mxu1  ;;  %v1301_v34 = vld [vmem:[%s3857_s9 + $0x60] sm:$0xff] }
 0x1cb   : > { %v763_v37 = vadd.f32 %v3272_v33, %v762_v36  ;;  %v2979_v38 = vpop.f32.mrb[2].mxu1  ;;  %v2809_v36 = vcombine.high %v3310_v29, %v3315_v32 }
 0x1cc   : > { %v774_v39 = vadd.f32 %v2979_v38, %v3272_v33  ;;  %v765_v40 = vpop.f32.mrb[3].mxu1  ;;  %v827_v43 = vmax.f32 %v771_v35, 0.0  ;;  %v2808_v35 = vcombine.low %v3310_v29, %v3315_v32  ;;  %v1305_v38 = vld [vmem:[%s3857_s9 + $0x80] sm:$0xff] }
 0x1cd   : > { %v825_v41 = vmax.f32 %v763_v37, 0.0  ;;  %v766_v42 = vadd.f32 %v3272_v33, %v765_v40  ;;  %1828 = vmatprep.subr.bf16.mxu1 %v2809_v36  ;;  %v1322_v36 = vld [vmem:[%s3857_s9 + $0x108] sm:$0xff] }
 0x1ce   : > { %v828_v44 = vmax.f32 %v774_v39, 0.0  ;;  %v1309_v39 = vld [vmem:[%s3857_s9 + $0xa0] sm:$0xff] }
 0x1cf   : > { %v826_v45 = vmax.f32 %v766_v42, 0.0  ;;  %841 = vxpose.xlu0.b32.start [1/16] (narrow) %v825_v41, 64  ;;  %v1313_v42 = vld [vmem:[%s3857_s9 + $0xc0] sm:$0xff] }
 0x1d0   : > { %v914_v46 = vpack.c.bf16 %v828_v44, %v827_v43 }
 0x1d1   : > { %v913_v47 = vpack.c.bf16 %v826_v45, %v825_v41  ;;  %v2982_v48 = vpop.f32.mrb[4].mxu1  ;;  %v2823_v41 = vcombine.high %v1305_v38, %v1309_v39 }
 0x1d2   : > { %v787_v49 = vadd.f32 %v2982_v48, %v3272_v33  ;;  %v778_v50 = vpop.f32.mrb[5].mxu1 }
 0x1d3   : > { %v779_v51 = vadd.f32 %v3272_v33, %v778_v50  ;;  %v2983_v52 = vpop.f32.mrb[6].mxu1  ;;  %842 = vxpose.xlu0.b32.cont [2/16] (narrow) %v826_v45, 64  ;;  %3000 = vmatprep.mubr.msk.bf16.mxu0 %vm703_vm3, %v913_v47  ;;  %v1325_v47 = vld [vmem:[%s3857_s9 + $0x120] sm:$0xff] }
 0x1d4   : > { %v831_v53 = vmax.f32 %v787_v49, 0.0  ;;  %v790_v54 = vadd.f32 %v2983_v52, %v3272_v33  ;;  %v781_v55 = vpop.f32.mrb[7].mxu1  ;;  %3001 = vmatmul.mubr.msk.bf16.vlgmr.msra.gmra.mrb[16].mxu0 %vm703_vm3, %v914_v46  ;;  %v1321_v46 = vld [vmem:[%s3857_s9 + $0x100] sm:$0xff] }
 0x1d5   : > { %v829_v56 = vmax.f32 %v779_v51, 0.0  ;;  %v782_v57 = vadd.f32 %v3272_v33, %v781_v55  ;;  %1716 = vmatpush1.bf16.msra.mxu0 %v2806_v30  ;;  %v2839_v49 = vcombine.high %v1321_v46, %v1325_v47  ;;  %v1329_v50 = vld [vmem:[%s3857_s9 + $0x140] sm:$0xff]  ;;  %v2838_v52 = vcombine.low %v1321_v46, %v1325_v47  ;;  %v1330_v47 = vld [vmem:[%s3857_s9 + $0x148] sm:$0xff] }
 0x1d6   : > { %v832_v58 = vmax.f32 %v790_v54, 0.0  ;;  %v1333_v51 = vld [vmem:[%s3857_s9 + $0x160] sm:$0xff] }
 0x1d7   : > { %v830_v59 = vmax.f32 %v782_v57, 0.0  ;;  %843 = vxpose.xlu0.b32.cont [3/16] (narrow) %v827_v43, 64  ;;  %v1317_v43 = vld [vmem:[%s3857_s9 + $0xe0] sm:$0xff]  ;;  %v2846_v54 = vcombine.low %v1329_v50, %v1333_v51 }
 0x1d8   : > { %v916_v60 = vpack.c.bf16 %v832_v58, %v831_v53  ;;  %v2831_v45 = vcombine.high %v1313_v42, %v1317_v43  ;;  %v2830_v48 = vcombine.low %v1313_v42, %v1317_v43  ;;  %v3354_v55 = vld [vmem:[%s3854_s6] ss:$0 sm:$0xff] }
 0x1d9   : > { %v915_v61 = vpack.c.bf16 %v830_v59, %v829_v56  ;;  %v2986_v62 = vpop.f32.mrb[8].mxu1 }
 0x1da   : > { %v803_v63 = vadd.f32 %v2986_v62, %v3272_v33  ;;  %v794_v0 = vpop.f32.mrb[9].mxu1 }
 0x1db   : > { %v795_v1 = vadd.f32 %v3272_v33, %v794_v0  ;;  %844 = vxpose.xlu0.b32.cont [4/16] (narrow) %v828_v44, 64  ;;  %3004 = vmatprep.mubr.msk.bf16.mxu0 %vm703_vm3, %v915_v61  ;;  %v2987_v2 = vpop.f32.mrb[10].mxu1  ;;  %v2822_v44 = vcombine.low %v1305_v38, %v1309_v39 }
 0x1dc   : > { %v835_v3 = vmax.f32 %v803_v63, 0.0  ;;  %v806_v4 = vadd.f32 %v2987_v2, %v3272_v33  ;;  %3005 = vmatmul.mubr.msk.bf16.gmra.mrb[20].mxu0 %vm703_vm3, %v916_v60  ;;  %v797_v5 = vpop.f32.mrb[11].mxu1 }
 0x1dd   : > { %v833_v6 = vmax.f32 %v795_v1, 0.0  ;;  %v798_v7 = vadd.f32 %v3272_v33, %v797_v5  ;;  %v1302_v5 = vld [vmem:[%s3857_s9 + $0x68] sm:$0xff] }
 0x1de   : > { %v836_v8 = vmax.f32 %v806_v4, 0.0  ;;  %v1298_v4 = vld [vmem:[%s3857_s9 + $0x48] sm:$0xff] }
 0x1df   : > { %v834_v9 = vmax.f32 %v798_v7, 0.0  ;;  %845 = vxpose.xlu0.b32.cont [5/16] (narrow) %v829_v56, 64 }
 0x1e0   : > { %v918_v10 = vpack.c.bf16 %v836_v8, %v835_v3 }
 0x1e1   : > { %v917_v11 = vpack.c.bf16 %v834_v9, %v833_v6  ;;  %v2990_v12 = vpop.f32.mrb[12].mxu1 }
 0x1e2   : > { %v819_v13 = vadd.f32 %v2990_v12, %v3272_v33  ;;  %v810_v14 = vpop.f32.mrb[13].mxu1 }
 0x1e3   : > { %846 = vxpose.xlu0.b32.cont [6/16] (narrow) %v830_v59, 64  ;;  %3008 = vmatprep.mubr.msk.bf16.mxu0 %vm703_vm3, %v917_v11  ;;  %v811_v15 = vadd.f32 %v3272_v33, %v810_v14  ;;  %v2991_v16 = vpop.f32.mrb[14].mxu1  ;;  %v2817_v11 = vcombine.high %v1298_v4, %v1302_v5  ;;  %v1306_v14 = vld [vmem:[%s3857_s9 + $0x88] sm:$0xff] }
 0x1e4   : > { %3009 = vmatmul.mubr.msk.bf16.gmra.mrb[24].mxu0 %vm703_vm3, %v918_v10  ;;  %v839_v17 = vmax.f32 %v819_v13, 0.0  ;;  %v822_v18 = vadd.f32 %v2991_v16, %v3272_v33  ;;  %v813_v19 = vpop.f32.mrb[15].mxu1 }
 0x1e5   : > { %v837_v20 = vmax.f32 %v811_v15, 0.0  ;;  %v814_v21 = vadd.f32 %v3272_v33, %v813_v19  ;;  %v1297_v33 = vld [vmem:[%s3857_s9 + $0x40] sm:$0xff]  ;;  %v1310_v15 = vld [vmem:[%s3857_s9 + $0xa8] sm:$0xff]  ;;  %v2816_v19 = vcombine.low %v1298_v4, %v1302_v5 }
 0x1e6   : > { %v840_v22 = vmax.f32 %v822_v18, 0.0  ;;  %v2815_v37 = vcombine.high %v1297_v33, %v1301_v34  ;;  %v2814_v40 = vcombine.low %v1297_v33, %v1301_v34  ;;  %v2824_v29 = vcombine.low %v1306_v14, %v1310_v15  ;;  %v1337_v5 = vld [vmem:[%s3857_s9 + $0x180] sm:$0xff] }
 0x1e7   : > { %847 = vxpose.xlu0.b32.cont [7/16] (narrow) %v831_v53, 64  ;;  %v838_v23 = vmax.f32 %v814_v21, 0.0  ;;  %v2847_v53 = vcombine.high %v1329_v50, %v1333_v51 }
 0x1e8   : > { %v920_v24 = vpack.c.bf16 %v840_v22, %v839_v17  ;;  %1717 = vmatprep.subr.bf16.mxu0 %v2815_v37  ;;  %v1326_v37 = vld [vmem:[%s3857_s9 + $0x128] sm:$0xff] }
 0x1e9   : > { %v919_v25 = vpack.c.bf16 %v838_v23, %v837_v20  ;;  %1718 = vmatpush1.bf16.msra.mxu0 %v2814_v40 }
 0x1ea   : > { %1719 = vmatprep.subr.bf16.mxu0 %v2823_v41 }
 0x1eb   : > { %848 = vxpose.xlu0.b32.cont [8/16] (narrow) %v832_v58, 64  ;;  %3012 = vmatprep.mubr.msk.bf16.mxu0 %vm703_vm3, %v919_v25  ;;  %v1314_v25 = vld [vmem:[%s3857_s9 + $0xc8] sm:$0xff] }
 0x1ec   : > { %3013 = vmatmul.mubr.msk.bf16.gmra.mrb[28].mxu0 %vm703_vm3, %v920_v24  ;;  %v2833_v33 = vcombine.high %v1314_v25, %v1318_v26  ;;  %v2832_v43 = vcombine.low %v1314_v25, %v1318_v26  ;;  %v1296_v26 = vld [vmem:[%s3857_s9 + $0x38] sm:$0xff] }
 0x1ed   : > { %1720 = vmatpush1.bf16.msra.mxu0 %v2822_v44 }
 0x1ee   : > { %1721 = vmatprep.subr.bf16.mxu0 %v2831_v45  ;;  %v2841_v45 = vcombine.high %v1322_v36, %v1326_v37 }
 0x1ef   : > { %849 = vxpose.xlu0.b32.cont [9/16] (narrow) %v833_v6, 64 }
 0x1f1   : > { %1722 = vmatpush1.bf16.msra.mxu0 %v2830_v48  ;;  %v1334_v48 = vld [vmem:[%s3857_s9 + $0x168] sm:$0xff] }
 0x1f2   : > { %1723 = vmatprep.subr.bf16.mxu0 %v2839_v49 }
 0x1f3   : > { %850 = vxpose.xlu0.b32.cont [10/16] (narrow) %v834_v9, 64 }
 0x1f5   : > { %1724 = vmatpush1.bf16.msra.mxu0 %v2838_v52  ;;  %v2840_v52 = vcombine.low %v1322_v36, %v1326_v37 }
 0x1f6   : > { %1725 = vmatprep.subr.bf16.mxu0 %v2847_v53 }
 0x1f7   : > { %851 = vxpose.xlu0.b32.cont [11/16] (narrow) %v835_v3, 64 }
 0x1f9   : > { %1726 = vmatpush1.bf16.msra.mxu0 %v2846_v54 }
 0x1fb   : > { %852 = vxpose.xlu0.b32.cont [12/16] (narrow) %v836_v8, 64 }
 0x1ff   : > { %853 = vxpose.xlu0.b32.cont [13/16] (narrow) %v837_v20, 64 }
 0x203   : > { %854 = vxpose.xlu0.b32.cont [14/16] (narrow) %v838_v23, 64 }
 0x207   : > { %855 = vxpose.xlu0.b32.cont [15/16] (narrow) %v839_v17, 64 }
 0x20b   : > { %856 = vxpose.xlu0.b32.end [16/16] (narrow) %v840_v22, 64  ;;  %v2825_v22 = vcombine.high %v1306_v14, %v1310_v15  ;;  %v1346_v14 = vld [vmem:[%s3857_s9 + $0x1c8] sm:$0xff] }
 0x2a7   : > { %v3002_v56 = vpop.f32.mrb[16].mxu0 }
 0x2a8   : > { %v1027_v57 = vadd.f32 %v3002_v56, %v3354_v55  ;;  %v1018_v58 = vpop.f32.mrb[17].mxu0  ;;  %v2849_v56 = vcombine.high %v1330_v47, %v1334_v48 }
 0x2a9   : > { %v1019_v59 = vadd.f32 %v3354_v55, %v1018_v58  ;;  %v3003_v60 = vpop.f32.mrb[18].mxu0 }
 0x2aa   : > { %v1030_v61 = vadd.f32 %v3003_v60, %v3354_v55  ;;  %v1021_v62 = vpop.f32.mrb[19].mxu0  ;;  %v1083_v0 = vmax.f32 %v1027_v57, 0.0 }
 0x2ab   : > { %v1022_v63 = vadd.f32 %v3354_v55, %v1021_v62  ;;  %v1081_v2 = vmax.f32 %v1019_v59, 0.0 }
 0x2ac   : > { %v1084_v1 = vmax.f32 %v1030_v61, 0.0 }
 0x2ad   : > { %v1082_v3 = vmax.f32 %v1022_v63, 0.0 }
 0x2ae   : > { %v1098_v6 = vpack.c.bf16 %v1084_v1, %v1083_v0  ;;  %v2848_v0 = vcombine.low %v1330_v47, %v1334_v48 }
 0x2af   : > { %v1097_v7 = vpack.c.bf16 %v1082_v3, %v1081_v2  ;;  %v3006_v8 = vpop.f32.mrb[20].mxu0 }
 0x2b0   : > { %v1043_v9 = vadd.f32 %v3006_v8, %v3354_v55  ;;  %v1034_v10 = vpop.f32.mrb[21].mxu0  ;;  %v1342_v8 = vld [vmem:[%s3857_s9 + $0x1a8] sm:$0xff] }
 0x2b1   : > { %v1035_v12 = vadd.f32 %v3354_v55, %v1034_v10  ;;  %v3007_v13 = vpop.f32.mrb[22].mxu0  ;;  %3024 = vmatprep.mubr.msk.bf16.mxu1 %vm703_vm3, %v1097_v7 }
 0x2b2   : > { %v1046_v16 = vadd.f32 %v3007_v13, %v3354_v55  ;;  %v1037_v17 = vpop.f32.mrb[23].mxu0  ;;  %3025 = vmatmul.mubr.msk.bf16.vlgmr.msra.gmra.mrb[16].mxu1 %vm703_vm3, %v1098_v6  ;;  %v1087_v20 = vmax.f32 %v1043_v9, 0.0  ;;  %v1338_v6 = vld [vmem:[%s3857_s9 + $0x188] sm:$0xff]  ;;  %v1349_v13 = vld [vmem:[%s3857_s9 + $0x1e0] sm:$0xff] }
 0x2b3   : > { %v1038_v18 = vadd.f32 %v3354_v55, %v1037_v17  ;;  %1829 = vmatpush1.bf16.msra.mxu1 %v2808_v35  ;;  %v1085_v23 = vmax.f32 %v1035_v12, 0.0  ;;  %v2856_v10 = vcombine.low %v1338_v6, %v1342_v8  ;;  %v1345_v12 = vld [vmem:[%s3857_s9 + $0x1c0] sm:$0xff] }
 0x2b4   : > { %v1088_v21 = vmax.f32 %v1046_v16, 0.0  ;;  %1830 = vmatprep.subr.bf16.mxu1 %v2817_v11  ;;  %v2857_v11 = vcombine.high %v1338_v6, %v1342_v8  ;;  %v2863_v15 = vcombine.high %v1345_v12, %v1349_v13  ;;  %v1350_v16 = vld [vmem:[%s3857_s9 + $0x1e8] sm:$0xff]  ;;  %v2862_v17 = vcombine.low %v1345_v12, %v1349_v13  ;;  %v1316_v8 = vld [vmem:[%s3857_s9 + $0xd8] sm:$0xff] }
 0x2b5   : > { %v1086_v24 = vmax.f32 %v1038_v18, 0.0  ;;  %v2864_v18 = vcombine.low %v1346_v14, %v1350_v16 }
 0x2b6   : > { %v1100_v27 = vpack.c.bf16 %v1088_v21, %v1087_v20  ;;  %v3104_v20 = vmov 0   ;;  %v1291_v21 = vld [vmem:[%s3857_s9 + $0x10] sm:$0xff] }
 0x2b7   : > { %v1099_v28 = vpack.c.bf16 %v1086_v24, %v1085_v23  ;;  %v3010_v30 = vpop.f32.mrb[24].mxu0  ;;  %1831 = vmatpush1.bf16.msra.mxu1 %v2816_v19  ;;  %v2865_v19 = vcombine.high %v1346_v14, %v1350_v16  ;;  %1747 = vmatprep.mubr.bf16.mxu0 %v3104_v20  ;;  %v1292_v23 = vld [vmem:[%s3857_s9 + $0x18] sm:$0xff] }
 0x2b8   : > { %v1059_v31 = vadd.f32 %v3010_v30, %v3354_v55  ;;  %v1050_v32 = vpop.f32.mrb[25].mxu0  ;;  %1832 = vmatprep.subr.bf16.mxu1 %v2825_v22  ;;  %v1295_v22 = vld [vmem:[%s3857_s9 + $0x30] sm:$0xff]  ;;  %v3454_v30 = vld [vmem:[%s3856_s8] ss:$0 sm:$0xff] }
 0x2b9   : > { %v1051_v34 = vadd.f32 %v3354_v55, %v1050_v32  ;;  %3028 = vmatprep.mubr.msk.bf16.mxu1 %vm703_vm3, %v1099_v28  ;;  %v3011_v35 = vpop.f32.mrb[26].mxu0  ;;  %v2810_v24 = vcombine.low %v1291_v21, %v1295_v22  ;;  %v2811_v25 = vcombine.high %v1291_v21, %v1295_v22  ;;  %v2813_v28 = vcombine.high %v1292_v23, %v1296_v26 }
 0x2ba   : > { %v1091_v38 = vmax.f32 %v1059_v31, 0.0  ;;  %v1062_v39 = vadd.f32 %v3011_v35, %v3354_v55  ;;  %3029 = vmatmul.mubr.msk.bf16.gmra.mrb[20].mxu1 %vm703_vm3, %v1100_v27  ;;  %v1053_v40 = vpop.f32.mrb[27].mxu0  ;;  %v2812_v27 = vcombine.low %v1292_v23, %v1296_v26  ;;  %v1327_v23 = vld [vmem:[%s3857_s9 + $0x130] sm:$0xff] }
 0x2bb   : > { %v1089_v41 = vmax.f32 %v1051_v34, 0.0  ;;  %v1054_v42 = vadd.f32 %v3354_v55, %v1053_v40  ;;  %1833 = vmatpush1.bf16.msra.mxu1 %v2824_v29  ;;  %v1299_v40 = vld [vmem:[%s3857_s9 + $0x50] sm:$0xff] }
 0x2bc   : > { %v1092_v44 = vmax.f32 %v1062_v39, 0.0  ;;  %1834 = vmatprep.subr.bf16.mxu1 %v2833_v33 }
 0x2bd   : > { %v1090_v46 = vmax.f32 %v1054_v42, 0.0 }
 0x2be   : > { %v1102_v49 = vpack.c.bf16 %v1092_v44, %v1091_v38  ;;  %v1300_v44 = vld [vmem:[%s3857_s9 + $0x58] sm:$0xff] }
 0x2bf   : > { %v1101_v50 = vpack.c.bf16 %v1090_v46, %v1089_v41  ;;  %v3014_v51 = vpop.f32.mrb[28].mxu0  ;;  %1835 = vmatpush1.bf16.msra.mxu1 %v2832_v43  ;;  %v1303_v43 = vld [vmem:[%s3857_s9 + $0x70] sm:$0xff] }
 0x2c0   : > { %v1075_v53 = vadd.f32 %v3014_v51, %v3354_v55  ;;  %v1066_v54 = vpop.f32.mrb[29].mxu0  ;;  %1836 = vmatprep.subr.bf16.mxu1 %v2841_v45  ;;  %v1304_v45 = vld [vmem:[%s3857_s9 + $0x78] sm:$0xff] }
 0x2c1   : > { %3032 = vmatprep.mubr.msk.bf16.mxu1 %vm703_vm3, %v1101_v50  ;;  %v1067_v57 = vadd.f32 %v3354_v55, %v1066_v54  ;;  %v3015_v58 = vpop.f32.mrb[30].mxu0  ;;  %v1311_v54 = vld [vmem:[%s3857_s9 + $0xb0] sm:$0xff] }
 0x2c2   : > { %3033 = vmatmul.mubr.msk.bf16.gmra.mrb[24].mxu1 %vm703_vm3, %v1102_v49  ;;  %v1095_v59 = vmax.f32 %v1075_v53, 0.0  ;;  %v1078_v60 = vadd.f32 %v3015_v58, %v3354_v55  ;;  %v1069_v61 = vpop.f32.mrb[31].mxu0  ;;  %v1307_v49 = vld [vmem:[%s3857_s9 + $0x90] sm:$0xff]  ;;  %v2821_v53 = vcombine.high %v1300_v44, %v1304_v45 }
 0x2c3   : > { %v1093_v62 = vmax.f32 %v1067_v57, 0.0  ;;  %v1070_v63 = vadd.f32 %v3354_v55, %v1069_v61  ;;  %1837 = vmatpush1.bf16.msra.mxu1 %v2840_v52  ;;  %v1341_v55 = vld [vmem:[%s3857_s9 + $0x1a0] sm:$0xff]  ;;  %v2819_v52 = vcombine.high %v1299_v40, %v1303_v43  ;;  %v1312_v57 = vld [vmem:[%s3857_s9 + $0xb8] sm:$0xff]  ;;  %v2826_v13 = vcombine.low %v1307_v49, %v1311_v54 }
 0x2c4   : > { %v1096_v1 = vmax.f32 %v1078_v60, 0.0  ;;  %1838 = vmatprep.subr.bf16.mxu1 %v2849_v56  ;;  %v2855_v7 = vcombine.high %v1337_v5, %v1341_v55  ;;  %v2854_v9 = vcombine.low %v1337_v5, %v1341_v55  ;;  %v1308_v56 = vld [vmem:[%s3857_s9 + $0x98] sm:$0xff]  ;;  %v1315_v5 = vld [vmem:[%s3857_s9 + $0xd0] sm:$0xff] }
 0x2c5   : > { %v1094_v2 = vmax.f32 %v1070_v63, 0.0  ;;  %v2820_v63 = vcombine.low %v1300_v44, %v1304_v45  ;;  %v2828_v14 = vcombine.low %v1308_v56, %v1312_v57 }
 0x2c6   : > { %v1104_v3 = vpack.c.bf16 %v1096_v1, %v1095_v59  ;;  %1727 = vmatprep.subr.bf16.mxu0 %v2855_v7  ;;  %v2827_v1 = vcombine.high %v1307_v49, %v1311_v54  ;;  %v1319_v7 = vld [vmem:[%s3857_s9 + $0xf0] sm:$0xff] }
 0x2c7   : > { %v1103_v4 = vpack.c.bf16 %v1094_v2, %v1093_v62  ;;  %1839 = vmatpush1.bf16.msra.mxu1 %v2848_v0  ;;  %1728 = vmatpush1.bf16.msra.mxu0 %v2854_v9  ;;  %v2818_v62 = vcombine.low %v1299_v40, %v1303_v43  ;;  %v2829_v2 = vcombine.high %v1308_v56, %v1312_v57  ;;  %v1320_v9 = vld [vmem:[%s3857_s9 + $0xf8] sm:$0xff]  ;;  %v1343_v57 = vld [vmem:[%s3857_s9 + $0x1b0] sm:$0xff] }
 0x2c8   : > { %1840 = vmatprep.subr.bf16.mxu1 %v2857_v11  ;;  %1729 = vmatprep.subr.bf16.mxu0 %v2863_v15  ;;  %v1332_v40 = vld [vmem:[%s3857_s9 + $0x158] sm:$0xff] }
 0x2c9   : > { %3036 = vmatprep.mubr.msk.bf16.mxu1 %vm703_vm3, %v1103_v4 }
 0x2ca   : > { %3037 = vmatmul.mubr.msk.bf16.gmra.mrb[28].mxu1 %vm703_vm3, %v1104_v3 }
 0x2cb   : > { %1841 = vmatpush1.bf16.msra.mxu1 %v2856_v10  ;;  %1730 = vmatpush1.bf16.msra.mxu0 %v2862_v17  ;;  %v2835_v17 = vcombine.high %v1315_v5, %v1319_v7 }
 0x2cc   : > { %1842 = vmatprep.subr.bf16.mxu1 %v2865_v19  ;;  %1860 = vmatprep.mubr.bf16.mxu1 %v3104_v20  ;;  %v1323_v19 = vld [vmem:[%s3857_s9 + $0x110] sm:$0xff] }
 0x2cd   : > { %1941 = vmatprep.subr.bf16.mxu0 %v2811_v25  ;;  %v1328_v25 = vld [vmem:[%s3857_s9 + $0x138] sm:$0xff]  ;;  %v2842_v45 = vcombine.low %v1323_v19, %v1327_v23 }
 0x2cf   : > { %1843 = vmatpush1.bf16.msra.mxu1 %v2864_v18  ;;  %v2837_v18 = vcombine.high %v1316_v8, %v1320_v9 }
 0x2d0   : > { %2054 = vmatprep.subr.bf16.mxu1 %v2813_v28 }
 0x385   : > { %v3026_v29 = vpop.f32.mrb[16].mxu1 }
 0x386   : > { %v1211_v31 = vadd.f32 %v3026_v29, %v3454_v30  ;;  %v1202_v32 = vpop.f32.mrb[17].mxu1 }
 0x387   : > { %v1203_v33 = vadd.f32 %v3454_v30, %v1202_v32  ;;  %v3027_v34 = vpop.f32.mrb[18].mxu1  ;;  %v2834_v32 = vcombine.low %v1315_v5, %v1319_v7  ;;  %v1351_v7 = vld [vmem:[%s3857_s9 + $0x1f0] sm:$0xff] }
 0x388   : > { %v1214_v35 = vadd.f32 %v3027_v34, %v3454_v30  ;;  %v1205_v36 = vpop.f32.mrb[19].mxu1  ;;  %v1267_v38 = vmax.f32 %v1211_v31, 0.0 }
 0x389   : > { %v1206_v37 = vadd.f32 %v3454_v30, %v1205_v36  ;;  %v1265_v41 = vmax.f32 %v1203_v33, 0.0  ;;  %v2836_v33 = vcombine.low %v1316_v8, %v1320_v9  ;;  %v1352_v8 = vld [vmem:[%s3857_s9 + $0x1f8] sm:$0xff] }
 0x38a   : > { %v1268_v39 = vmax.f32 %v1214_v35, 0.0  ;;  %v2843_v35 = vcombine.high %v1323_v19, %v1327_v23  ;;  %v3634_v19 = vld [vmem:[%s3858_s10] sm:$0xff] }
 0x38b   : > { %v1266_v42 = vmax.f32 %v1206_v37, 0.0  ;;  %v1331_v37 = vld [vmem:[%s3857_s9 + $0x150] sm:$0xff] }
 0x38c   : > { %v3472_v46 = vpack.c.bf16 %v1268_v39, %v1267_v38  ;;  %v1335_v39 = vld [vmem:[%s3857_s9 + $0x170] sm:$0xff] }
 0x38d   : > { %v3474_v47 = vpack.c.bf16 %v1266_v42, %v1265_v41  ;;  %v3030_v48 = vpop.f32.mrb[20].mxu1  ;;  %v1336_v41 = vld [vmem:[%s3857_s9 + $0x178] sm:$0xff] }
 0x38e   : > { %v1227_v50 = vadd.f32 %v3030_v48, %v3454_v30  ;;  %v1218_v51 = vpop.f32.mrb[21].mxu1 }
 0x38f   : > { %v1219_v58 = vadd.f32 %v3454_v30, %v1218_v51  ;;  %v3031_v59 = vpop.f32.mrb[22].mxu1  ;;  %1748 = vmatmul.mubr.bf16.vlgmr.msra.gmra.mrb[32].mxu0 %v3474_v47  ;;  %1861 = vmatmul.mubr.bf16.vlgmr.msra.gmra.mrb[32].mxu1 %v3474_v47  ;;  %v2851_v51 = vcombine.high %v1331_v37, %v1335_v39 }
 0x390   : > { %v1230_v60 = vadd.f32 %v3031_v59, %v3454_v30  ;;  %1942 = vmatpush1.bf16.msra.mxu0 %v2810_v24  ;;  %2055 = vmatpush1.bf16.msra.mxu1 %v2812_v27  ;;  %v1221_v61 = vpop.f32.mrb[23].mxu1  ;;  %v1271_v3 = vmax.f32 %v1227_v50, 0.0  ;;  %v1324_v24 = vld [vmem:[%s3857_s9 + $0x118] sm:$0xff] }
 0x391   : > { %v1222_v0 = vadd.f32 %v3454_v30, %v1221_v61  ;;  %1757 = vmatprep.mubr.bf16.mxu0 %v3104_v20  ;;  %1870 = vmatprep.mubr.bf16.mxu1 %v3104_v20  ;;  %v1269_v55 = vmax.f32 %v1219_v58, 0.0  ;;  %v2845_v36 = vcombine.high %v1324_v24, %v1328_v25  ;;  %v2844_v48 = vcombine.low %v1324_v24, %v1328_v25  ;;  %v1340_v58 = vld [vmem:[%s3857_s9 + $0x198] sm:$0xff] }
 0x392   : > { %v1272_v4 = vmax.f32 %v1230_v60, 0.0  ;;  %1943 = vmatprep.subr.bf16.mxu0 %v2819_v52  ;;  %2056 = vmatprep.subr.bf16.mxu1 %v2821_v53  ;;  %v2853_v52 = vcombine.high %v1332_v40, %v1336_v41  ;;  %v1339_v53 = vld [vmem:[%s3857_s9 + $0x190] sm:$0xff]  ;;  %v1344_v59 = vld [vmem:[%s3857_s9 + $0x1b8] sm:$0xff] }
 0x393   : > { %v1270_v6 = vmax.f32 %v1222_v0, 0.0  ;;  %v2861_v5 = vcombine.high %v1340_v58, %v1344_v59 }
 0x394   : > { %v3508_v10 = vpack.c.bf16 %v1272_v4, %v1271_v3  ;;  %1944 = vmatpush1.bf16.msra.mxu0 %v2818_v62  ;;  %2057 = vmatpush1.bf16.msra.mxu1 %v2820_v63  ;;  %v2859_v4 = vcombine.high %v1339_v53, %v1343_v57 }
 0x395   : > { %v3510_v11 = vpack.c.bf16 %v1270_v6, %v1269_v55  ;;  %v3034_v12 = vpop.f32.mrb[24].mxu1  ;;  %1945 = vmatprep.subr.bf16.mxu0 %v2827_v1  ;;  %2058 = vmatprep.subr.bf16.mxu1 %v2829_v2  ;;  %v2850_v1 = vcombine.low %v1331_v37, %v1335_v39  ;;  %v2852_v2 = vcombine.low %v1332_v40, %v1336_v41  ;;  %v1347_v55 = vld [vmem:[%s3857_s9 + $0x1d0] sm:$0xff] }
 0x396   : > { %v1243_v15 = vadd.f32 %v3034_v12, %v3454_v30  ;;  %v1234_v16 = vpop.f32.mrb[25].mxu1 }
 0x397   : > { %v1235_v21 = vadd.f32 %v3454_v30, %v1234_v16  ;;  %1758 = vmatmul.mubr.bf16.gmra.mrb[36].mxu0 %v3472_v46  ;;  %1871 = vmatmul.mubr.bf16.gmra.mrb[36].mxu1 %v3472_v46  ;;  %v3035_v22 = vpop.f32.mrb[26].mxu1 }
 0x398   : > { %v1275_v26 = vmax.f32 %v1243_v15, 0.0  ;;  %v1246_v27 = vadd.f32 %v3035_v22, %v3454_v30  ;;  %v1237_v28 = vpop.f32.mrb[27].mxu1  ;;  %1767 = vmatprep.mubr.bf16.mxu0 %v3104_v20  ;;  %1880 = vmatprep.mubr.bf16.mxu1 %v3104_v20  ;;  %v2867_v15 = vcombine.high %v1347_v55, %v1351_v7 }
 0x399   : > { %v1273_v29 = vmax.f32 %v1235_v21, 0.0  ;;  %v1238_v31 = vadd.f32 %v3454_v30, %v1237_v28  ;;  %1946 = vmatpush1.bf16.msra.mxu0 %v2826_v13  ;;  %2059 = vmatpush1.bf16.msra.mxu1 %v2828_v14  ;;  %v2858_v13 = vcombine.low %v1339_v53, %v1343_v57  ;;  %v2860_v14 = vcombine.low %v1340_v58, %v1344_v59 }
 0x39a   : > { %v1276_v34 = vmax.f32 %v1246_v27, 0.0  ;;  %1947 = vmatprep.subr.bf16.mxu0 %v2835_v17  ;;  %2060 = vmatprep.subr.bf16.mxu1 %v2837_v18  ;;  %v2866_v17 = vcombine.low %v1347_v55, %v1351_v7 }
 0x39b   : > { %v1274_v38 = vmax.f32 %v1238_v31, 0.0 }
 0x39c   : > { %v3544_v42 = vpack.c.bf16 %v1276_v34, %v1275_v26 }
 0x39d   : > { %v3546_v43 = vpack.c.bf16 %v1274_v38, %v1273_v29  ;;  %v3038_v44 = vpop.f32.mrb[28].mxu1  ;;  %1948 = vmatpush1.bf16.msra.mxu0 %v2834_v32  ;;  %2061 = vmatpush1.bf16.msra.mxu1 %v2836_v33 }
 0x39e   : > { %v1259_v49 = vadd.f32 %v3038_v44, %v3454_v30  ;;  %v1250_v50 = vpop.f32.mrb[29].mxu1  ;;  %1949 = vmatprep.subr.bf16.mxu0 %v2843_v35  ;;  %2062 = vmatprep.subr.bf16.mxu1 %v2845_v36 }
 0x39f   : > { %1768 = vmatmul.mubr.bf16.gmra.mrb[40].mxu0 %v3510_v11  ;;  %1881 = vmatmul.mubr.bf16.gmra.mrb[40].mxu1 %v3510_v11  ;;  %v1251_v54 = vadd.f32 %v3454_v30, %v1250_v50  ;;  %v3039_v56 = vpop.f32.mrb[30].mxu1 }
 0x3a0   : > { %v1279_v60 = vmax.f32 %v1259_v49, 0.0  ;;  %1777 = vmatprep.mubr.bf16.mxu0 %v3104_v20  ;;  %1890 = vmatprep.mubr.bf16.mxu1 %v3104_v20  ;;  %v1262_v61 = vadd.f32 %v3039_v56, %v3454_v30  ;;  %v1253_v62 = vpop.f32.mrb[31].mxu1 }
 0x3a1   : > { %v1277_v63 = vmax.f32 %v1251_v54, 0.0  ;;  %v1254_v0 = vadd.f32 %v3454_v30, %v1253_v62  ;;  %1950 = vmatpush1.bf16.msra.mxu0 %v2842_v45  ;;  %2063 = vmatpush1.bf16.msra.mxu1 %v2844_v48  ;;  %v1348_v30 = vld [vmem:[%s3857_s9 + $0x1d8] sm:$0xff] }
 0x3a2   : > { %v1280_v3 = vmax.f32 %v1262_v61, 0.0  ;;  %1951 = vmatprep.subr.bf16.mxu0 %v2851_v51  ;;  %2064 = vmatprep.subr.bf16.mxu1 %v2853_v52  ;;  %v2869_v16 = vcombine.high %v1348_v30, %v1352_v8  ;;  %v2868_v18 = vcombine.low %v1348_v30, %v1352_v8 }
 0x3a3   : > { %v1278_v6 = vmax.f32 %v1254_v0, 0.0 }
 0x3a4   : > { %v3580_v9 = vpack.c.bf16 %v1280_v3, %v1279_v60 }
 0x3a5   : > { %v1287_v12 = vpack.c.bf16 %v1278_v6, %v1277_v63  ;;  %1952 = vmatpush1.bf16.msra.mxu0 %v2850_v1  ;;  %2065 = vmatpush1.bf16.msra.mxu1 %v2852_v2 }
 0x3a6   : > { %1953 = vmatprep.subr.bf16.mxu0 %v2859_v4  ;;  %2066 = vmatprep.subr.bf16.mxu1 %v2861_v5 }
 0x3a7   : > { %1778 = vmatmul.mubr.bf16.gmra.mrb[44].mxu0 %v3508_v10  ;;  %1891 = vmatmul.mubr.bf16.gmra.mrb[44].mxu1 %v3508_v10 }
 0x3a8   : > { %1787 = vmatprep.mubr.bf16.mxu0 %v3104_v20  ;;  %1900 = vmatprep.mubr.bf16.mxu1 %v3104_v20 }
 0x3a9   : > { %1954 = vmatpush1.bf16.msra.mxu0 %v2858_v13  ;;  %2067 = vmatpush1.bf16.msra.mxu1 %v2860_v14 }
 0x3aa   : > { %1955 = vmatprep.subr.bf16.mxu0 %v2867_v15  ;;  %2068 = vmatprep.subr.bf16.mxu1 %v2869_v16 }
 0x3ad   : > { %1956 = vmatpush1.bf16.msra.mxu0 %v2866_v17  ;;  %2069 = vmatpush1.bf16.msra.mxu1 %v2868_v18 }
 0x3af   : > { %1788 = vmatmul.mubr.bf16.gmra.mrb[48].mxu0 %v3546_v43  ;;  %1901 = vmatmul.mubr.bf16.gmra.mrb[48].mxu1 %v3546_v43 }
 0x3b0   : > { %1797 = vmatprep.mubr.bf16.mxu0 %v3104_v20  ;;  %1910 = vmatprep.mubr.bf16.mxu1 %v3104_v20 }
 0x3b7   : > { %1798 = vmatmul.mubr.bf16.gmra.mrb[52].mxu0 %v3544_v42  ;;  %1911 = vmatmul.mubr.bf16.gmra.mrb[52].mxu1 %v3544_v42 }
 0x3b8   : > { %1807 = vmatprep.mubr.bf16.mxu0 %v3104_v20  ;;  %1920 = vmatprep.mubr.bf16.mxu1 %v3104_v20 }
 0x3bf   : > { %1808 = vmatmul.mubr.bf16.gmra.mrb[56].mxu0 %v1287_v12  ;;  %1921 = vmatmul.mubr.bf16.gmra.mrb[56].mxu1 %v1287_v12 }
 0x3c0   : > { %1817 = vmatprep.mubr.bf16.mxu0 %v3104_v20  ;;  %1930 = vmatprep.mubr.bf16.mxu1 %v3104_v20 }
 0x3c7   : > { %1818 = vmatmul.mubr.bf16.gmra.mrb[60].mxu0 %v3580_v9  ;;  %1931 = vmatmul.mubr.bf16.gmra.mrb[60].mxu1 %v3580_v9 }
 0x3c8   : > { %1973 = vmatprep.mubr.bf16.mxu0 %v3104_v20  ;;  %2086 = vmatprep.mubr.bf16.mxu1 %v3104_v20 }
 0x3cf   : > { %1974 = vmatmul.mubr.bf16.vlgmr.msra.gmra.mrb[64].mxu0 %v3474_v47  ;;  %2087 = vmatmul.mubr.bf16.vlgmr.msra.gmra.mrb[64].mxu1 %v3474_v47 }
 0x3d0   : > { %1983 = vmatprep.mubr.bf16.mxu0 %v3104_v20  ;;  %2096 = vmatprep.mubr.bf16.mxu1 %v3104_v20 }
 0x3d7   : > { %1984 = vmatmul.mubr.bf16.gmra.mrb[68].mxu0 %v3472_v46  ;;  %2097 = vmatmul.mubr.bf16.gmra.mrb[68].mxu1 %v3472_v46  ;;  %v1355_v46 = vlaneseq }
 0x3d8   : > { %1993 = vmatprep.mubr.bf16.mxu0 %v3104_v20  ;;  %2106 = vmatprep.mubr.bf16.mxu1 %v3104_v20 }
 0x3d9   : > { %v3628_v47 = vshrl.u32 %v1355_v46, 7 }
 0x3db   : > { %v1365_v21 = vsub.s32 2, %v3628_v47  ;;  %v1369_v22 = vsub.s32 3, %v3628_v47 }
 0x3dd   : > { %v3643_v26 = vrot.slane %v3634_v19, %v1365_v21  ;;  %v3649_v29 = vrot.slane %v3634_v19, %v1369_v22 }
 0x3df   : > { %1994 = vmatmul.mubr.bf16.gmra.mrb[72].mxu0 %v3510_v11  ;;  %2107 = vmatmul.mubr.bf16.gmra.mrb[72].mxu1 %v3510_v11  ;;  %v1357_v11 = vsub.s32 0, %v3628_v47 }
 0x3e0   : > { %2003 = vmatprep.mubr.bf16.mxu0 %v3104_v20  ;;  %2116 = vmatprep.mubr.bf16.mxu1 %v3104_v20 }
 0x3e1   : > { %v3640_v23 = vrot.slane %v3634_v19, %v1357_v11 }
 0x3e7   : > { %2004 = vmatmul.mubr.bf16.gmra.mrb[76].mxu0 %v3508_v10  ;;  %2117 = vmatmul.mubr.bf16.gmra.mrb[76].mxu1 %v3508_v10  ;;  %v857_v10 = vpop.trf.xlu0 }
 0x3e8   : > { %2013 = vmatprep.mubr.bf16.mxu0 %v3104_v20  ;;  %2126 = vmatprep.mubr.bf16.mxu1 %v3104_v20 }
 0x3eb   : > { %v858_v24 = vpop.trf.xlu0 }
 0x3ec   : > { %v2885_v31 = vpack.c.bf16 %v858_v24, %v857_v10 }
 0x3ee   : > { %2886 = vst [vmem:[%s3655_s30] sm:$0xff] %v2885_v31  }
 0x3ef   : > { %2014 = vmatmul.mubr.bf16.gmra.mrb[80].mxu0 %v3546_v43  ;;  %2127 = vmatmul.mubr.bf16.gmra.mrb[80].mxu1 %v3546_v43  ;;  %v859_v48 = vpop.trf.xlu0 }
 0x3f0   : > { %2023 = vmatprep.mubr.bf16.mxu0 %v3104_v20  ;;  %2136 = vmatprep.mubr.bf16.mxu1 %v3104_v20 }
 0x3f3   : > { %v860_v14 = vpop.trf.xlu0 }
 0x3f4   : > { %v2890_v24 = vpack.c.bf16 %v860_v14, %v859_v48 }
 0x3f6   : > { %2902 = vst [vmem:[%s3655_s30 + $0x8] sm:$0xff] %v2890_v24  }
 0x3f7   : > { %2024 = vmatmul.mubr.bf16.gmra.mrb[84].mxu0 %v3544_v42  ;;  %2137 = vmatmul.mubr.bf16.gmra.mrb[84].mxu1 %v3544_v42 }
 0x3f8   : > { %2033 = vmatprep.mubr.bf16.mxu0 %v3104_v20  ;;  %2146 = vmatprep.mubr.bf16.mxu1 %v3104_v20 }
 0x3ff   : > { %2034 = vmatmul.mubr.bf16.gmra.mrb[88].mxu0 %v1287_v12  ;;  %2147 = vmatmul.mubr.bf16.gmra.mrb[88].mxu1 %v1287_v12 }
 0x400   : > { %2043 = vmatprep.mubr.bf16.mxu0 %v3104_v20  ;;  %2156 = vmatprep.mubr.bf16.mxu1 %v3104_v20  ;;  %v1361_v20 = vsub.s32 1, %v3628_v47 }
 0x402   : > { %v3646_v28 = vrot.slane %v3634_v19, %v1361_v20 }
 0x407   : > { %2044 = vmatmul.mubr.bf16.gmra.mrb[92].mxu0 %v3580_v9  ;;  %2157 = vmatmul.mubr.bf16.gmra.mrb[92].mxu1 %v3580_v9 }
 0x462   : > { %v1749_v25 = vpop.f32.mrb[32].mxu0  ;;  %v1862_v27 = vpop.f32.mrb[32].mxu1 }
 0x463   : > { %v1751_v32 = vpop.f32.mrb[33].mxu0  ;;  %v1864_v33 = vpop.f32.mrb[33].mxu1  ;;  %v1750_v38 = vadd.f32 %v1749_v25, %v3640_v23  ;;  %v1863_v39 = vadd.f32 %v1862_v27, %v3643_v26 }
 0x464   : > { %v1753_v34 = vpop.f32.mrb[34].mxu0  ;;  %v1866_v35 = vpop.f32.mrb[34].mxu1  ;;  %v1752_v40 = vadd.f32 %v1751_v32, %v3646_v28  ;;  %v1865_v41 = vadd.f32 %v1864_v33, %v3649_v29 }
 0x465   : > { %v1755_v36 = vpop.f32.mrb[35].mxu0  ;;  %v1868_v37 = vpop.f32.mrb[35].mxu1  ;;  %v1754_v42 = vadd.f32 %v1753_v34, %v3640_v23  ;;  %v1867_v43 = vadd.f32 %v1866_v35, %v3643_v26  ;;  %v2167_v49 = vmax.f32 %v1750_v38, 0.0  ;;  %v2169_v50 = vmax.f32 %v1863_v39, 0.0 }
 0x466   : > { %v1756_v44 = vadd.f32 %v1755_v36, %v3646_v28  ;;  %v1869_v45 = vadd.f32 %v1868_v37, %v3649_v29  ;;  %v2168_v51 = vmax.f32 %v1752_v40, 0.0  ;;  %v2170_v52 = vmax.f32 %v1865_v41, 0.0 }
 0x467   : > { %v2175_v56 = vmax.f32 %v1754_v42, 0.0  ;;  %v2177_v57 = vmax.f32 %v1867_v43, 0.0 }
 0x468   : > { %v2176_v62 = vmax.f32 %v1756_v44, 0.0  ;;  %v2178_v63 = vmax.f32 %v1869_v45, 0.0 }
 0x46a   : > { %v1759_v53 = vpop.f32.mrb[36].mxu0  ;;  %v1872_v54 = vpop.f32.mrb[36].mxu1 }
 0x46b   : > { %v1760_v58 = vadd.f32 %v1759_v53, %v3640_v23  ;;  %v1873_v59 = vadd.f32 %v1872_v54, %v3643_v26  ;;  %v1761_v60 = vpop.f32.mrb[37].mxu0  ;;  %v1874_v61 = vpop.f32.mrb[37].mxu1 }
 0x46c   : > { %v1762_v0 = vadd.f32 %v1761_v60, %v3646_v28  ;;  %v1875_v1 = vadd.f32 %v1874_v61, %v3649_v29  ;;  %v1763_v2 = vpop.f32.mrb[38].mxu0  ;;  %v1876_v3 = vpop.f32.mrb[38].mxu1 }
 0x46d   : > { %v2183_v4 = vmax.f32 %v1760_v58, 0.0  ;;  %v2185_v5 = vmax.f32 %v1873_v59, 0.0  ;;  %v1764_v55 = vadd.f32 %v1763_v2, %v3640_v23  ;;  %v1877_v6 = vadd.f32 %v1876_v3, %v3643_v26  ;;  %v1765_v7 = vpop.f32.mrb[39].mxu0  ;;  %v1878_v30 = vpop.f32.mrb[39].mxu1 }
 0x46e   : > { %v2184_v8 = vmax.f32 %v1762_v0, 0.0  ;;  %v2186_v9 = vmax.f32 %v1875_v1, 0.0  ;;  %v1766_v12 = vadd.f32 %v1765_v7, %v3646_v28  ;;  %v1879_v13 = vadd.f32 %v1878_v30, %v3649_v29 }
 0x46f   : > { %v2295_v15 = vmax.f32 %v2167_v49, %v2183_v4  ;;  %v2297_v16 = vmax.f32 %v2169_v50, %v2185_v5  ;;  %v2191_v17 = vmax.f32 %v1764_v55, 0.0  ;;  %v2193_v18 = vmax.f32 %v1877_v6, 0.0 }
 0x470   : > { %v2296_v46 = vmax.f32 %v2168_v51, %v2184_v8  ;;  %v2298_v10 = vmax.f32 %v2170_v52, %v2186_v9  ;;  %v2192_v11 = vmax.f32 %v1766_v12, 0.0  ;;  %v2194_v21 = vmax.f32 %v1879_v13, 0.0 }
 0x471   : > { %v2303_v20 = vmax.f32 %v2175_v56, %v2191_v17  ;;  %v2305_v22 = vmax.f32 %v2177_v57, %v2193_v18 }
 0x472   : > { %v2304_v25 = vmax.f32 %v2176_v62, %v2192_v11  ;;  %v2306_v27 = vmax.f32 %v2178_v63, %v2194_v21  ;;  %v1769_v31 = vpop.f32.mrb[40].mxu0  ;;  %v1882_v32 = vpop.f32.mrb[40].mxu1 }
 0x473   : > { %v1770_v33 = vadd.f32 %v1769_v31, %v3640_v23  ;;  %v1883_v34 = vadd.f32 %v1882_v32, %v3643_v26  ;;  %v1771_v35 = vpop.f32.mrb[41].mxu0  ;;  %v1884_v36 = vpop.f32.mrb[41].mxu1 }
 0x474   : > { %v1772_v37 = vadd.f32 %v1771_v35, %v3646_v28  ;;  %v1885_v38 = vadd.f32 %v1884_v36, %v3649_v29  ;;  %v1773_v39 = vpop.f32.mrb[42].mxu0  ;;  %v1886_v40 = vpop.f32.mrb[42].mxu1 }
 0x475   : > { %v2199_v41 = vmax.f32 %v1770_v33, 0.0  ;;  %v2201_v42 = vmax.f32 %v1883_v34, 0.0  ;;  %v1774_v43 = vadd.f32 %v1773_v39, %v3640_v23  ;;  %v1887_v44 = vadd.f32 %v1886_v40, %v3643_v26  ;;  %v1775_v45 = vpop.f32.mrb[43].mxu0  ;;  %v1888_v48 = vpop.f32.mrb[43].mxu1 }
 0x476   : > { %v2200_v49 = vmax.f32 %v1772_v37, 0.0  ;;  %v2202_v50 = vmax.f32 %v1885_v38, 0.0  ;;  %v1776_v51 = vadd.f32 %v1775_v45, %v3646_v28  ;;  %v1889_v52 = vadd.f32 %v1888_v48, %v3649_v29  ;;  %v861_v62 = vpop.trf.xlu0 }
 0x477   : > { %v2311_v53 = vmax.f32 %v2295_v15, %v2199_v41  ;;  %v2313_v54 = vmax.f32 %v2297_v16, %v2201_v42  ;;  %v2207_v56 = vmax.f32 %v1774_v43, 0.0  ;;  %v2209_v57 = vmax.f32 %v1887_v44, 0.0 }
 0x478   : > { %v2312_v58 = vmax.f32 %v2296_v46, %v2200_v49  ;;  %v2314_v59 = vmax.f32 %v2298_v10, %v2202_v50  ;;  %v2208_v60 = vmax.f32 %v1776_v51, 0.0  ;;  %v2210_v61 = vmax.f32 %v1889_v52, 0.0 }
 0x479   : > { %v2319_v63 = vmax.f32 %v2303_v20, %v2207_v56  ;;  %v2321_v0 = vmax.f32 %v2305_v22, %v2209_v57 }
 0x47a   : > { %v2320_v1 = vmax.f32 %v2304_v25, %v2208_v60  ;;  %v2322_v2 = vmax.f32 %v2306_v27, %v2210_v61  ;;  %v1779_v3 = vpop.f32.mrb[44].mxu0  ;;  %v1892_v4 = vpop.f32.mrb[44].mxu1 }
 0x47b   : > { %v1780_v5 = vadd.f32 %v1779_v3, %v3640_v23  ;;  %v1893_v55 = vadd.f32 %v1892_v4, %v3643_v26  ;;  %v1781_v6 = vpop.f32.mrb[45].mxu0  ;;  %v1894_v7 = vpop.f32.mrb[45].mxu1 }
 0x47c   : > { %v1782_v30 = vadd.f32 %v1781_v6, %v3646_v28  ;;  %v1895_v8 = vadd.f32 %v1894_v7, %v3649_v29  ;;  %v1783_v9 = vpop.f32.mrb[46].mxu0  ;;  %v1896_v12 = vpop.f32.mrb[46].mxu1 }
 0x47d   : > { %v2215_v13 = vmax.f32 %v1780_v5, 0.0  ;;  %v2217_v14 = vmax.f32 %v1893_v55, 0.0  ;;  %v1784_v15 = vadd.f32 %v1783_v9, %v3640_v23  ;;  %v1897_v16 = vadd.f32 %v1896_v12, %v3643_v26  ;;  %v1785_v17 = vpop.f32.mrb[47].mxu0  ;;  %v1898_v18 = vpop.f32.mrb[47].mxu1 }
 0x47e   : > { %v2216_v46 = vmax.f32 %v1782_v30, 0.0  ;;  %v2218_v10 = vmax.f32 %v1895_v8, 0.0  ;;  %v1786_v11 = vadd.f32 %v1785_v17, %v3646_v28  ;;  %v1899_v21 = vadd.f32 %v1898_v18, %v3649_v29  ;;  %v862_v20 = vpop.trf.xlu0 }
 0x47f   : > { %v2327_v22 = vmax.f32 %v2311_v53, %v2215_v13  ;;  %v2329_v24 = vmax.f32 %v2313_v54, %v2217_v14  ;;  %v2223_v25 = vmax.f32 %v1784_v15, 0.0  ;;  %v2225_v27 = vmax.f32 %v1897_v16, 0.0 }
 0x480   : > { %v2328_v31 = vmax.f32 %v2312_v58, %v2216_v46  ;;  %v2330_v32 = vmax.f32 %v2314_v59, %v2218_v10  ;;  %v2224_v33 = vmax.f32 %v1786_v11, 0.0  ;;  %v2226_v34 = vmax.f32 %v1899_v21, 0.0 }
 0x481   : > { %v2335_v35 = vmax.f32 %v2319_v63, %v2223_v25  ;;  %v2337_v36 = vmax.f32 %v2321_v0, %v2225_v27  ;;  %v2895_v37 = vpack.c.bf16 %v862_v20, %v861_v62 }
 0x482   : > { %v2336_v38 = vmax.f32 %v2320_v1, %v2224_v33  ;;  %v2338_v39 = vmax.f32 %v2322_v2, %v2226_v34  ;;  %v1789_v40 = vpop.f32.mrb[48].mxu0  ;;  %v1902_v41 = vpop.f32.mrb[48].mxu1 }
 0x483   : > { %v1790_v42 = vadd.f32 %v1789_v40, %v3640_v23  ;;  %v1903_v43 = vadd.f32 %v1902_v41, %v3643_v26  ;;  %v1791_v44 = vpop.f32.mrb[49].mxu0  ;;  %v1904_v45 = vpop.f32.mrb[49].mxu1  ;;  %2903 = vst [vmem:[%s3655_s30 + $0x10] sm:$0xff] %v2895_v37  }
 0x484   : > { %v1792_v48 = vadd.f32 %v1791_v44, %v3646_v28  ;;  %v1905_v49 = vadd.f32 %v1904_v45, %v3649_v29  ;;  %v1793_v50 = vpop.f32.mrb[50].mxu0  ;;  %v1906_v51 = vpop.f32.mrb[50].mxu1 }
 0x485   : > { %v2231_v52 = vmax.f32 %v1790_v42, 0.0  ;;  %v2233_v53 = vmax.f32 %v1903_v43, 0.0  ;;  %v1794_v54 = vadd.f32 %v1793_v50, %v3640_v23  ;;  %v1907_v56 = vadd.f32 %v1906_v51, %v3643_v26  ;;  %v1795_v57 = vpop.f32.mrb[51].mxu0  ;;  %v1908_v58 = vpop.f32.mrb[51].mxu1 }
 0x486   : > { %v2232_v59 = vmax.f32 %v1792_v48, 0.0  ;;  %v2234_v60 = vmax.f32 %v1905_v49, 0.0  ;;  %v1796_v61 = vadd.f32 %v1795_v57, %v3646_v28  ;;  %v1909_v62 = vadd.f32 %v1908_v58, %v3649_v29  ;;  %v863_v6 = vpop.trf.xlu0 }
 0x487   : > { %v2343_v63 = vmax.f32 %v2327_v22, %v2231_v52  ;;  %v2345_v0 = vmax.f32 %v2329_v24, %v2233_v53  ;;  %v2239_v1 = vmax.f32 %v1794_v54, 0.0  ;;  %v2241_v2 = vmax.f32 %v1907_v56, 0.0 }
 0x488   : > { %v2344_v3 = vmax.f32 %v2328_v31, %v2232_v59  ;;  %v2346_v4 = vmax.f32 %v2330_v32, %v2234_v60  ;;  %v2240_v5 = vmax.f32 %v1796_v61, 0.0  ;;  %v2242_v55 = vmax.f32 %v1909_v62, 0.0 }
 0x489   : > { %v2351_v7 = vmax.f32 %v2335_v35, %v2239_v1  ;;  %v2353_v30 = vmax.f32 %v2337_v36, %v2241_v2  ;;  %v1373_v58 = vsub.s32 4, %v3628_v47  ;;  %v1381_v59 = vsub.s32 6, %v3628_v47 }
 0x48a   : > { %v2352_v8 = vmax.f32 %v2336_v38, %v2240_v5  ;;  %v2354_v9 = vmax.f32 %v2338_v39, %v2242_v55  ;;  %v1799_v12 = vpop.f32.mrb[52].mxu0  ;;  %v1912_v13 = vpop.f32.mrb[52].mxu1  ;;  %v1385_v1 = vsub.s32 7, %v3628_v47 }
 0x48b   : > { %v1800_v14 = vadd.f32 %v1799_v12, %v3640_v23  ;;  %v1913_v15 = vadd.f32 %v1912_v13, %v3643_v26  ;;  %v1801_v16 = vpop.f32.mrb[53].mxu0  ;;  %v1914_v17 = vpop.f32.mrb[53].mxu1 }
 0x48c   : > { %v1802_v18 = vadd.f32 %v1801_v16, %v3646_v28  ;;  %v1915_v46 = vadd.f32 %v1914_v17, %v3649_v29  ;;  %v1803_v10 = vpop.f32.mrb[54].mxu0  ;;  %v1916_v11 = vpop.f32.mrb[54].mxu1 }
 0x48d   : > { %v2247_v21 = vmax.f32 %v1800_v14, 0.0  ;;  %v2249_v20 = vmax.f32 %v1913_v15, 0.0  ;;  %v1804_v22 = vadd.f32 %v1803_v10, %v3640_v23  ;;  %v1917_v24 = vadd.f32 %v1916_v11, %v3643_v26  ;;  %v1805_v25 = vpop.f32.mrb[55].mxu0  ;;  %v1918_v27 = vpop.f32.mrb[55].mxu1 }
 0x48e   : > { %v2248_v31 = vmax.f32 %v1802_v18, 0.0  ;;  %v2250_v32 = vmax.f32 %v1915_v46, 0.0  ;;  %v1806_v33 = vadd.f32 %v1805_v25, %v3646_v28  ;;  %v1919_v34 = vadd.f32 %v1918_v27, %v3649_v29  ;;  %v864_v35 = vpop.trf.xlu0 }
 0x48f   : > { %v2359_v36 = vmax.f32 %v2343_v63, %v2247_v21  ;;  %v2361_v37 = vmax.f32 %v2345_v0, %v2249_v20  ;;  %v2255_v38 = vmax.f32 %v1804_v22, 0.0  ;;  %v2257_v39 = vmax.f32 %v1917_v24, 0.0 }
 0x490   : > { %v2360_v40 = vmax.f32 %v2344_v3, %v2248_v31  ;;  %v2362_v41 = vmax.f32 %v2346_v4, %v2250_v32  ;;  %v2256_v42 = vmax.f32 %v1806_v33, 0.0  ;;  %v2258_v43 = vmax.f32 %v1919_v34, 0.0 }
 0x491   : > { %v2367_v44 = vmax.f32 %v2351_v7, %v2255_v38  ;;  %v2369_v45 = vmax.f32 %v2353_v30, %v2257_v39  ;;  %v2900_v48 = vpack.c.bf16 %v864_v35, %v863_v6  ;;  %v1377_v0 = vsub.s32 5, %v3628_v47 }
 0x492   : > { %v2368_v49 = vmax.f32 %v2352_v8, %v2256_v42  ;;  %v2370_v50 = vmax.f32 %v2354_v9, %v2258_v43  ;;  %v1809_v51 = vpop.f32.mrb[56].mxu0  ;;  %v1922_v52 = vpop.f32.mrb[56].mxu1  ;;  %v3722_v25 = vrot.slane %v3634_v19, %v1373_v58  ;;  %v3727_v34 = vrot.slane %v3634_v19, %v1381_v59 }
 0x493   : > { %v1810_v53 = vadd.f32 %v1809_v51, %v3640_v23  ;;  %v1923_v54 = vadd.f32 %v1922_v52, %v3643_v26  ;;  %v1811_v56 = vpop.f32.mrb[57].mxu0  ;;  %v1924_v57 = vpop.f32.mrb[57].mxu1  ;;  %2904 = vst [vmem:[%s3655_s30 + $0x18] sm:$0xff] %v2900_v48   ;;  %v3730_v35 = vrot.slane %v3634_v19, %v1377_v0  ;;  %v3735_v42 = vrot.slane %v3634_v19, %v1385_v1 }
 0x494   : > { %v1812_v60 = vadd.f32 %v1811_v56, %v3646_v28  ;;  %v1925_v61 = vadd.f32 %v1924_v57, %v3649_v29  ;;  %v1813_v62 = vpop.f32.mrb[58].mxu0  ;;  %v1926_v63 = vpop.f32.mrb[58].mxu1 }
 0x495   : > { %v2263_v2 = vmax.f32 %v1810_v53, 0.0  ;;  %v2265_v3 = vmax.f32 %v1923_v54, 0.0  ;;  %v1814_v4 = vadd.f32 %v1813_v62, %v3640_v23  ;;  %v1927_v5 = vadd.f32 %v1926_v63, %v3643_v26  ;;  %v1815_v55 = vpop.f32.mrb[59].mxu0  ;;  %v1928_v6 = vpop.f32.mrb[59].mxu1 }
 0x496   : > { %v2264_v7 = vmax.f32 %v1812_v60, 0.0  ;;  %v2266_v30 = vmax.f32 %v1925_v61, 0.0  ;;  %v1816_v8 = vadd.f32 %v1815_v55, %v3646_v28  ;;  %v1929_v9 = vadd.f32 %v1928_v6, %v3649_v29 }
 0x497   : > { %v2375_v12 = vmax.f32 %v2359_v36, %v2263_v2  ;;  %v2377_v13 = vmax.f32 %v2361_v37, %v2265_v3  ;;  %v2271_v14 = vmax.f32 %v1814_v4, 0.0  ;;  %v2273_v15 = vmax.f32 %v1927_v5, 0.0 }
 0x498   : > { %v2376_v16 = vmax.f32 %v2360_v40, %v2264_v7  ;;  %v2378_v17 = vmax.f32 %v2362_v41, %v2266_v30  ;;  %v2272_v18 = vmax.f32 %v1816_v8, 0.0  ;;  %v2274_v46 = vmax.f32 %v1929_v9, 0.0 }
 0x499   : > { %v2383_v10 = vmax.f32 %v2367_v44, %v2271_v14  ;;  %v2385_v11 = vmax.f32 %v2369_v45, %v2273_v15  ;;  %v3105_v40 = vmov 1966171168  }
 0x49a   : > { %v2384_v21 = vmax.f32 %v2368_v49, %v2272_v18  ;;  %v2386_v20 = vmax.f32 %v2370_v50, %v2274_v46  ;;  %v1819_v22 = vpop.f32.mrb[60].mxu0  ;;  %v1932_v24 = vpop.f32.mrb[60].mxu1  ;;  %v2567_v41 = vunpack.c.l.s4 %v3105_v40 }
 0x49b   : > { %v1820_v27 = vadd.f32 %v1819_v22, %v3640_v23  ;;  %v1933_v31 = vadd.f32 %v1932_v24, %v3643_v26  ;;  %v1821_v32 = vpop.f32.mrb[61].mxu0  ;;  %v1934_v33 = vpop.f32.mrb[61].mxu1 }
 0x49c   : > { %v1822_v36 = vadd.f32 %v1821_v32, %v3646_v28  ;;  %v1935_v37 = vadd.f32 %v1934_v33, %v3649_v29  ;;  %v1823_v38 = vpop.f32.mrb[62].mxu0  ;;  %v1936_v39 = vpop.f32.mrb[62].mxu1  ;;  %v2568_v0 = vunpack.c.0.s8 %v2567_v41 }
 0x49d   : > { %v2279_v43 = vmax.f32 %v1820_v27, 0.0  ;;  %v2281_v44 = vmax.f32 %v1933_v31, 0.0  ;;  %v1824_v45 = vadd.f32 %v1823_v38, %v3640_v23  ;;  %v1937_v48 = vadd.f32 %v1936_v39, %v3643_v26  ;;  %v1825_v49 = vpop.f32.mrb[63].mxu0  ;;  %v1938_v50 = vpop.f32.mrb[63].mxu1 }
 0x49e   : > { %v2280_v51 = vmax.f32 %v1822_v36, 0.0  ;;  %v2282_v52 = vmax.f32 %v1935_v37, 0.0  ;;  %v1826_v53 = vadd.f32 %v1825_v49, %v3646_v28  ;;  %v1939_v54 = vadd.f32 %v1938_v50, %v3649_v29 }
 0x49f   : > { %v2391_v56 = vmax.f32 %v2375_v12, %v2279_v43  ;;  %v2393_v57 = vmax.f32 %v2377_v13, %v2281_v44  ;;  %v2287_v58 = vmax.f32 %v1824_v45, 0.0  ;;  %v2289_v59 = vmax.f32 %v1937_v48, 0.0 }
 0x4a0   : > { %v2392_v19 = vmax.f32 %v2376_v16, %v2280_v51  ;;  %v2394_v60 = vmax.f32 %v2378_v17, %v2282_v52  ;;  %v2288_v61 = vmax.f32 %v1826_v53, 0.0  ;;  %v2290_v62 = vmax.f32 %v1939_v54, 0.0 }
 0x4a1   : > { %v2399_v63 = vmax.f32 %v2383_v10, %v2287_v58  ;;  %v2401_v23 = vmax.f32 %v2385_v11, %v2289_v59  ;;  %v3746_v16 = vsub.s32 %v2568_v0, %v3628_v47 }
 0x4a2   : > { %v2400_v26 = vmax.f32 %v2384_v21, %v2288_v61  ;;  %v2402_v1 = vmax.f32 %v2386_v20, %v2290_v62  ;;  %v1975_v2 = vpop.f32.mrb[64].mxu0  ;;  %v2088_v3 = vpop.f32.mrb[64].mxu1 }
 0x4a3   : > { %v2498_v4 = vmax.f32 %v2391_v56, %v2399_v63  ;;  %v2512_v5 = vmax.f32 %v2393_v57, %v2401_v23  ;;  %v1976_v28 = vadd.f32 %v1975_v2, %v3722_v25  ;;  %v2089_v29 = vadd.f32 %v2088_v3, %v3727_v34  ;;  %v1977_v55 = vpop.f32.mrb[65].mxu0  ;;  %v2090_v6 = vpop.f32.mrb[65].mxu1 }
 0x4a4   : > { %v2505_v7 = vmax.f32 %v2392_v19, %v2400_v26  ;;  %v2519_v30 = vmax.f32 %v2394_v60, %v2402_v1  ;;  %v1978_v8 = vadd.f32 %v1977_v55, %v3730_v35  ;;  %v2091_v9 = vadd.f32 %v2090_v6, %v3735_v42  ;;  %v1979_v12 = vpop.f32.mrb[66].mxu0  ;;  %v2092_v13 = vpop.f32.mrb[66].mxu1 }
 0x4a5   : > { %v2499_v14 = vrot.slane %v2498_v4, 4  ;;  %v2513_v15 = vrot.slane %v2512_v5, 4  ;;  %v1981_v17 = vpop.f32.mrb[67].mxu0  ;;  %v2094_v18 = vpop.f32.mrb[67].mxu1  ;;  %v2171_v11 = vmax.f32 %v1976_v28, 0.0  ;;  %v2173_v21 = vmax.f32 %v2089_v29, 0.0 }
 0x4a6   : > { %v2506_v46 = vrot.slane %v2505_v7, 4  ;;  %v2520_v10 = vrot.slane %v2519_v30, 4  ;;  %v3749_v24 = vadd.f32 %v1979_v12, %v3722_v25  ;;  %v3752_v27 = vadd.f32 %v2092_v13, %v3727_v34 }
 0x4a7   : > { %v2500_v20 = vmax.f32 %v2498_v4, %v2499_v14  ;;  %v2514_v22 = vmax.f32 %v2512_v5, %v2513_v15  ;;  %v2172_v33 = vmax.f32 %v1978_v8, 0.0  ;;  %v2174_v36 = vmax.f32 %v2091_v9, 0.0 }
 0x4a8   : > { %v2507_v31 = vmax.f32 %v2505_v7, %v2506_v46  ;;  %v2521_v32 = vmax.f32 %v2519_v30, %v2520_v10  ;;  %v3755_v38 = vadd.f32 %v1981_v17, %v3730_v35  ;;  %v3758_v39 = vadd.f32 %v2094_v18, %v3735_v42 }
 0x4a9   : > { %v2501_v47 = vrot.slane %v2500_v20, 2  ;;  %v2515_v37 = vrot.slane %v2514_v22, 2  ;;  %v2179_v43 = vmax.f32 %v3749_v24, 0.0  ;;  %v2181_v44 = vmax.f32 %v3752_v27, 0.0 }
 0x4aa   : > { %v2508_v40 = vrot.slane %v2507_v31, 2  ;;  %v2522_v41 = vrot.slane %v2521_v32, 2  ;;  %v1985_v45 = vpop.f32.mrb[68].mxu0  ;;  %v2098_v48 = vpop.f32.mrb[68].mxu1  ;;  %v2180_v18 = vmax.f32 %v3755_v38, 0.0  ;;  %v2182_v46 = vmax.f32 %v3758_v39, 0.0 }
 0x4ab   : > { %v2502_v49 = vmax.f32 %v2500_v20, %v2501_v47  ;;  %v2516_v50 = vmax.f32 %v2514_v22, %v2515_v37  ;;  %v1986_v51 = vadd.f32 %v1985_v45, %v3722_v25  ;;  %v2099_v52 = vadd.f32 %v2098_v48, %v3727_v34  ;;  %v1987_v53 = vpop.f32.mrb[69].mxu0  ;;  %v2100_v54 = vpop.f32.mrb[69].mxu1 }
 0x4ac   : > { %v2509_v56 = vmax.f32 %v2507_v31, %v2508_v40  ;;  %v2523_v57 = vmax.f32 %v2521_v32, %v2522_v41  ;;  %v1988_v58 = vadd.f32 %v1987_v53, %v3730_v35  ;;  %v2101_v59 = vadd.f32 %v2100_v54, %v3735_v42  ;;  %v1989_v19 = vpop.f32.mrb[70].mxu0  ;;  %v2102_v60 = vpop.f32.mrb[70].mxu1 }
 0x4ad   : > { %v2503_v61 = vrot.slane %v2502_v49, 1  ;;  %v2517_v62 = vrot.slane %v2516_v50, 1  ;;  %v2187_v63 = vmax.f32 %v1986_v51, 0.0  ;;  %v2189_v23 = vmax.f32 %v2099_v52, 0.0  ;;  %v1991_v0 = vpop.f32.mrb[71].mxu0  ;;  %v2104_v26 = vpop.f32.mrb[71].mxu1 }
 0x4ae   : > { %v2510_v1 = vrot.slane %v2509_v56, 1  ;;  %v2524_v2 = vrot.slane %v2523_v57, 1  ;;  %v2188_v3 = vmax.f32 %v1988_v58, 0.0  ;;  %v2190_v4 = vmax.f32 %v2101_v59, 0.0 }
 0x4af   : > { %v2504_v5 = vmax.f32 %v2502_v49, %v2503_v61  ;;  %v2518_v28 = vmax.f32 %v2516_v50, %v2517_v62  ;;  %v2299_v29 = vmax.f32 %v2171_v11, %v2187_v63  ;;  %v2301_v55 = vmax.f32 %v2173_v21, %v2189_v23 }
 0x4b0   : > { %v2511_v6 = vmax.f32 %v2509_v56, %v2510_v1  ;;  %v2525_v7 = vmax.f32 %v2523_v57, %v2524_v2  ;;  %v2300_v30 = vmax.f32 %v2172_v33, %v2188_v3  ;;  %v2302_v8 = vmax.f32 %v2174_v36, %v2190_v4 }
 0x4b1   : > { %v1990_v9 = vadd.f32 %v1989_v19, %v3722_v25  ;;  %v2103_v12 = vadd.f32 %v2102_v60, %v3727_v34  ;;  %v1992_v13 = vadd.f32 %v1991_v0, %v3730_v35  ;;  %v2105_v14 = vadd.f32 %v2104_v26, %v3735_v42 }
 0x4b2   : > { %v2562_v15 = vcombine.low %v2504_v5, %v2511_v6  ;;  %v2563_v17 = vcombine.low %v2518_v28, %v2525_v7  ;;  %v1995_v10 = vpop.f32.mrb[72].mxu0  ;;  %v2108_v11 = vpop.f32.mrb[72].mxu1 }
 0x4b3   : > { %v2195_v21 = vmax.f32 %v1990_v9, 0.0  ;;  %v2197_v20 = vmax.f32 %v2103_v12, 0.0  ;;  %v2196_v22 = vmax.f32 %v1992_v13, 0.0  ;;  %v2198_v24 = vmax.f32 %v2105_v14, 0.0  ;;  %v1997_v27 = vpop.f32.mrb[73].mxu0  ;;  %v2110_v31 = vpop.f32.mrb[73].mxu1 }
 0x4b4   : > { %v3773_v32 = vrot.slane %v2562_v15, %v3746_v16  ;;  %v3776_v33 = vrot.slane %v2563_v17, %v3746_v16  ;;  %v1996_v36 = vadd.f32 %v1995_v10, %v3722_v25  ;;  %v2109_v47 = vadd.f32 %v2108_v11, %v3727_v34  ;;  %v1999_v37 = vpop.f32.mrb[74].mxu0  ;;  %v2112_v38 = vpop.f32.mrb[74].mxu1 }
 0x4b5   : > { %v2307_v39 = vmax.f32 %v2179_v43, %v2195_v21  ;;  %v2309_v40 = vmax.f32 %v2181_v44, %v2197_v20  ;;  %v2308_v41 = vmax.f32 %v2180_v18, %v2196_v22  ;;  %v2310_v45 = vmax.f32 %v2182_v46, %v2198_v24  ;;  %v2001_v48 = vpop.f32.mrb[75].mxu0  ;;  %v2114_v49 = vpop.f32.mrb[75].mxu1 }
 0x4b6   : > { %v2594_v50 = vcombine.low %v3773_v32, %v3776_v33  ;;  %v2203_v51 = vmax.f32 %v1996_v36, 0.0  ;;  %v2205_v52 = vmax.f32 %v2109_v47, 0.0  ;;  %v1998_v53 = vadd.f32 %v1997_v27, %v3730_v35 }
 0x4b7   : > { %v2111_v54 = vadd.f32 %v2110_v31, %v3735_v42  ;;  %v2000_v56 = vadd.f32 %v1999_v37, %v3722_v25  ;;  %v2113_v57 = vadd.f32 %v2112_v38, %v3727_v34  ;;  %v2002_v43 = vadd.f32 %v2001_v48, %v3730_v35 }
 0x4b8   : > { %v2315_v44 = vmax.f32 %v2299_v29, %v2203_v51  ;;  %v2317_v58 = vmax.f32 %v2301_v55, %v2205_v52  ;;  %v2204_v59 = vmax.f32 %v1998_v53, 0.0  ;;  %v2115_v23 = vadd.f32 %v2114_v49, %v3735_v42 }
 0x4b9   : > { %v2206_v19 = vmax.f32 %v2111_v54, 0.0  ;;  %v2211_v60 = vmax.f32 %v2000_v56, 0.0  ;;  %v2213_v61 = vmax.f32 %v2113_v57, 0.0  ;;  %v2212_v62 = vmax.f32 %v2002_v43, 0.0 }
 0x4ba   : > { %v2316_v63 = vmax.f32 %v2300_v30, %v2204_v59  ;;  %v2005_v0 = vpop.f32.mrb[76].mxu0  ;;  %v2118_v26 = vpop.f32.mrb[76].mxu1  ;;  %v2214_v6 = vmax.f32 %v2115_v23, 0.0 }
 0x4bb   : > { %v2318_v1 = vmax.f32 %v2302_v8, %v2206_v19  ;;  %v2323_v2 = vmax.f32 %v2307_v39, %v2211_v60  ;;  %v2325_v3 = vmax.f32 %v2309_v40, %v2213_v61  ;;  %v2324_v4 = vmax.f32 %v2308_v41, %v2212_v62  ;;  %v2007_v5 = vpop.f32.mrb[77].mxu0  ;;  %v2120_v28 = vpop.f32.mrb[77].mxu1 }
 0x4bc   : > { %v2006_v29 = vadd.f32 %v2005_v0, %v3722_v25  ;;  %v2119_v55 = vadd.f32 %v2118_v26, %v3727_v34  ;;  %v2008_v7 = vadd.f32 %v2007_v5, %v3730_v35  ;;  %v2009_v9 = vpop.f32.mrb[78].mxu0  ;;  %v2122_v12 = vpop.f32.mrb[78].mxu1  ;;  %v2121_v30 = vadd.f32 %v2120_v28, %v3735_v42 }
 0x4bd   : > { %v2010_v13 = vadd.f32 %v2009_v9, %v3722_v25  ;;  %v2123_v8 = vadd.f32 %v2122_v12, %v3727_v34  ;;  %v2011_v14 = vpop.f32.mrb[79].mxu0  ;;  %v2124_v15 = vpop.f32.mrb[79].mxu1  ;;  %v2326_v17 = vmax.f32 %v2310_v45, %v2214_v6 }
 0x4be   : > { %v2219_v18 = vmax.f32 %v2006_v29, 0.0  ;;  %v2221_v46 = vmax.f32 %v2119_v55, 0.0  ;;  %v2220_v10 = vmax.f32 %v2008_v7, 0.0  ;;  %v2222_v11 = vmax.f32 %v2121_v30, 0.0 }
 0x4bf   : > { %v2227_v21 = vmax.f32 %v2010_v13, 0.0  ;;  %v2229_v20 = vmax.f32 %v2123_v8, 0.0  ;;  %v2012_v22 = vadd.f32 %v2011_v14, %v3730_v35  ;;  %v2125_v36 = vadd.f32 %v2124_v15, %v3735_v42 }
 0x4c0   : > { %v2331_v24 = vmax.f32 %v2315_v44, %v2219_v18  ;;  %v2333_v27 = vmax.f32 %v2317_v58, %v2221_v46  ;;  %v2332_v31 = vmax.f32 %v2316_v63, %v2220_v10  ;;  %v2334_v47 = vmax.f32 %v2318_v1, %v2222_v11 }
 0x4c1   : > { %v2339_v37 = vmax.f32 %v2323_v2, %v2227_v21  ;;  %v2341_v38 = vmax.f32 %v2325_v3, %v2229_v20  ;;  %v2228_v39 = vmax.f32 %v2012_v22, 0.0  ;;  %v2230_v40 = vmax.f32 %v2125_v36, 0.0 }
 0x4c2   : > { %v2015_v41 = vpop.f32.mrb[80].mxu0  ;;  %v2128_v45 = vpop.f32.mrb[80].mxu1 }
 0x4c3   : > { %v2340_v48 = vmax.f32 %v2324_v4, %v2228_v39  ;;  %v2016_v49 = vadd.f32 %v2015_v41, %v3722_v25  ;;  %v2129_v51 = vadd.f32 %v2128_v45, %v3727_v34  ;;  %v2017_v52 = vpop.f32.mrb[81].mxu0  ;;  %v2130_v53 = vpop.f32.mrb[81].mxu1  ;;  %v2342_v54 = vmax.f32 %v2326_v17, %v2230_v40 }
 0x4c4   : > { %v2018_v56 = vadd.f32 %v2017_v52, %v3730_v35  ;;  %v2131_v57 = vadd.f32 %v2130_v53, %v3735_v42  ;;  %v2019_v43 = vpop.f32.mrb[82].mxu0  ;;  %v2132_v44 = vpop.f32.mrb[82].mxu1 }
 0x4c5   : > { %v2235_v58 = vmax.f32 %v2016_v49, 0.0  ;;  %v2237_v59 = vmax.f32 %v2129_v51, 0.0  ;;  %v2020_v19 = vadd.f32 %v2019_v43, %v3722_v25  ;;  %v2133_v60 = vadd.f32 %v2132_v44, %v3727_v34  ;;  %v2021_v61 = vpop.f32.mrb[83].mxu0  ;;  %v2134_v62 = vpop.f32.mrb[83].mxu1 }
 0x4c6   : > { %v2236_v63 = vmax.f32 %v2018_v56, 0.0  ;;  %v2238_v23 = vmax.f32 %v2131_v57, 0.0  ;;  %v2022_v0 = vadd.f32 %v2021_v61, %v3730_v35  ;;  %v2135_v26 = vadd.f32 %v2134_v62, %v3735_v42 }
 0x4c7   : > { %v2347_v1 = vmax.f32 %v2331_v24, %v2235_v58  ;;  %v2349_v2 = vmax.f32 %v2333_v27, %v2237_v59  ;;  %v2243_v3 = vmax.f32 %v2020_v19, 0.0  ;;  %v2245_v4 = vmax.f32 %v2133_v60, 0.0 }
 0x4c8   : > { %v2348_v5 = vmax.f32 %v2332_v31, %v2236_v63  ;;  %v2350_v28 = vmax.f32 %v2334_v47, %v2238_v23  ;;  %v2244_v6 = vmax.f32 %v2022_v0, 0.0  ;;  %v2246_v29 = vmax.f32 %v2135_v26, 0.0 }
 0x4c9   : > { %v2355_v55 = vmax.f32 %v2339_v37, %v2243_v3  ;;  %v2357_v7 = vmax.f32 %v2341_v38, %v2245_v4 }
 0x4ca   : > { %v2356_v9 = vmax.f32 %v2340_v48, %v2244_v6  ;;  %v2358_v12 = vmax.f32 %v2342_v54, %v2246_v29  ;;  %v2025_v30 = vpop.f32.mrb[84].mxu0  ;;  %v2138_v13 = vpop.f32.mrb[84].mxu1 }
 0x4cb   : > { %v2026_v8 = vadd.f32 %v2025_v30, %v3722_v25  ;;  %v2139_v14 = vadd.f32 %v2138_v13, %v3727_v34  ;;  %v2027_v15 = vpop.f32.mrb[85].mxu0  ;;  %v2140_v17 = vpop.f32.mrb[85].mxu1 }
 0x4cc   : > { %v2028_v18 = vadd.f32 %v2027_v15, %v3730_v35  ;;  %v2141_v46 = vadd.f32 %v2140_v17, %v3735_v42  ;;  %v2029_v10 = vpop.f32.mrb[86].mxu0  ;;  %v2142_v11 = vpop.f32.mrb[86].mxu1 }
 0x4cd   : > { %v2251_v21 = vmax.f32 %v2026_v8, 0.0  ;;  %v2253_v20 = vmax.f32 %v2139_v14, 0.0  ;;  %v2030_v22 = vadd.f32 %v2029_v10, %v3722_v25  ;;  %v2143_v24 = vadd.f32 %v2142_v11, %v3727_v34  ;;  %v2031_v27 = vpop.f32.mrb[87].mxu0  ;;  %v2144_v31 = vpop.f32.mrb[87].mxu1 }
 0x4ce   : > { %v2252_v36 = vmax.f32 %v2028_v18, 0.0  ;;  %v2254_v47 = vmax.f32 %v2141_v46, 0.0  ;;  %v2032_v37 = vadd.f32 %v2031_v27, %v3730_v35  ;;  %v2145_v38 = vadd.f32 %v2144_v31, %v3735_v42 }
 0x4cf   : > { %v2363_v39 = vmax.f32 %v2347_v1, %v2251_v21  ;;  %v2365_v40 = vmax.f32 %v2349_v2, %v2253_v20  ;;  %v2259_v41 = vmax.f32 %v2030_v22, 0.0  ;;  %v2261_v45 = vmax.f32 %v2143_v24, 0.0 }
 0x4d0   : > { %v2364_v48 = vmax.f32 %v2348_v5, %v2252_v36  ;;  %v2366_v49 = vmax.f32 %v2350_v28, %v2254_v47  ;;  %v2260_v51 = vmax.f32 %v2032_v37, 0.0  ;;  %v2262_v52 = vmax.f32 %v2145_v38, 0.0 }
 0x4d1   : > { %v2371_v53 = vmax.f32 %v2355_v55, %v2259_v41  ;;  %v2373_v54 = vmax.f32 %v2357_v7, %v2261_v45 }
 0x4d2   : > { %v2372_v56 = vmax.f32 %v2356_v9, %v2260_v51  ;;  %v2374_v57 = vmax.f32 %v2358_v12, %v2262_v52  ;;  %v2035_v43 = vpop.f32.mrb[88].mxu0  ;;  %v2148_v44 = vpop.f32.mrb[88].mxu1 }
 0x4d3   : > { %v2036_v58 = vadd.f32 %v2035_v43, %v3722_v25  ;;  %v2149_v59 = vadd.f32 %v2148_v44, %v3727_v34  ;;  %v2037_v19 = vpop.f32.mrb[89].mxu0  ;;  %v2150_v60 = vpop.f32.mrb[89].mxu1 }
 0x4d4   : > { %v2038_v61 = vadd.f32 %v2037_v19, %v3730_v35  ;;  %v2151_v62 = vadd.f32 %v2150_v60, %v3735_v42  ;;  %v2039_v63 = vpop.f32.mrb[90].mxu0  ;;  %v2152_v23 = vpop.f32.mrb[90].mxu1 }
 0x4d5   : > { %v2267_v0 = vmax.f32 %v2036_v58, 0.0  ;;  %v2269_v26 = vmax.f32 %v2149_v59, 0.0  ;;  %v2040_v1 = vadd.f32 %v2039_v63, %v3722_v25  ;;  %v2153_v2 = vadd.f32 %v2152_v23, %v3727_v34  ;;  %v2041_v3 = vpop.f32.mrb[91].mxu0  ;;  %v2154_v4 = vpop.f32.mrb[91].mxu1 }
 0x4d6   : > { %v2268_v5 = vmax.f32 %v2038_v61, 0.0  ;;  %v2270_v28 = vmax.f32 %v2151_v62, 0.0  ;;  %v2042_v6 = vadd.f32 %v2041_v3, %v3730_v35  ;;  %v2155_v29 = vadd.f32 %v2154_v4, %v3735_v42 }
 0x4d7   : > { %v2379_v55 = vmax.f32 %v2363_v39, %v2267_v0  ;;  %v2381_v7 = vmax.f32 %v2365_v40, %v2269_v26  ;;  %v2275_v9 = vmax.f32 %v2040_v1, 0.0  ;;  %v2277_v12 = vmax.f32 %v2153_v2, 0.0 }
 0x4d8   : > { %v2380_v30 = vmax.f32 %v2364_v48, %v2268_v5  ;;  %v2382_v13 = vmax.f32 %v2366_v49, %v2270_v28  ;;  %v2276_v8 = vmax.f32 %v2042_v6, 0.0  ;;  %v2278_v14 = vmax.f32 %v2155_v29, 0.0 }
 0x4d9   : > { %v2387_v15 = vmax.f32 %v2371_v53, %v2275_v9  ;;  %v2389_v17 = vmax.f32 %v2373_v54, %v2277_v12 }
 0x4da   : > { %v2388_v18 = vmax.f32 %v2372_v56, %v2276_v8  ;;  %v2390_v46 = vmax.f32 %v2374_v57, %v2278_v14  ;;  %v2045_v10 = vpop.f32.mrb[92].mxu0  ;;  %v2158_v11 = vpop.f32.mrb[92].mxu1 }
 0x4db   : > { %v2046_v21 = vadd.f32 %v2045_v10, %v3722_v25  ;;  %v2159_v20 = vadd.f32 %v2158_v11, %v3727_v34  ;;  %v2047_v22 = vpop.f32.mrb[93].mxu0  ;;  %v2160_v24 = vpop.f32.mrb[93].mxu1 }
 0x4dc   : > { %v2048_v27 = vadd.f32 %v2047_v22, %v3730_v35  ;;  %v2161_v31 = vadd.f32 %v2160_v24, %v3735_v42  ;;  %v2049_v36 = vpop.f32.mrb[94].mxu0  ;;  %v2162_v47 = vpop.f32.mrb[94].mxu1  ;;  %v2602_v24 = vrot.slane %v2594_v50, %v3746_v16 }
 0x4dd   : > { %v2283_v37 = vmax.f32 %v2046_v21, 0.0  ;;  %v2285_v38 = vmax.f32 %v2159_v20, 0.0  ;;  %v2050_v39 = vadd.f32 %v2049_v36, %v3722_v25  ;;  %v2163_v40 = vadd.f32 %v2162_v47, %v3727_v34  ;;  %v2051_v41 = vpop.f32.mrb[95].mxu0  ;;  %v2164_v45 = vpop.f32.mrb[95].mxu1 }
 0x4de   : > { %v2284_v48 = vmax.f32 %v2048_v27, 0.0  ;;  %v2286_v49 = vmax.f32 %v2161_v31, 0.0  ;;  %v2052_v51 = vadd.f32 %v2051_v41, %v3730_v35  ;;  %v2165_v52 = vadd.f32 %v2164_v45, %v3735_v42 }
 0x4df   : > { %v2395_v53 = vmax.f32 %v2379_v55, %v2283_v37  ;;  %v2397_v54 = vmax.f32 %v2381_v7, %v2285_v38  ;;  %v2291_v56 = vmax.f32 %v2050_v39, 0.0  ;;  %v2293_v57 = vmax.f32 %v2163_v40, 0.0 }
 0x4e0   : > { %v2396_v43 = vmax.f32 %v2380_v30, %v2284_v48  ;;  %v2398_v44 = vmax.f32 %v2382_v13, %v2286_v49  ;;  %v2292_v58 = vmax.f32 %v2052_v51, 0.0  ;;  %v2294_v59 = vmax.f32 %v2165_v52, 0.0 }
 0x4e1   : > { %v2403_v19 = vmax.f32 %v2387_v15, %v2291_v56  ;;  %v2405_v25 = vmax.f32 %v2389_v17, %v2293_v57 }
 0x4e2   : > { %v2404_v60 = vmax.f32 %v2388_v18, %v2292_v58  ;;  %v2406_v34 = vmax.f32 %v2390_v46, %v2294_v59 }
 0x4e3   : > { %v2526_v61 = vmax.f32 %v2395_v53, %v2403_v19  ;;  %v2540_v62 = vmax.f32 %v2397_v54, %v2405_v25 }
 0x4e4   : > { %v2533_v63 = vmax.f32 %v2396_v43, %v2404_v60  ;;  %v2547_v23 = vmax.f32 %v2398_v44, %v2406_v34 }
 0x4e5   : > { %v2527_v0 = vrot.slane %v2526_v61, 4  ;;  %v2541_v35 = vrot.slane %v2540_v62, 4 }
 0x4e6   : > { %v2534_v26 = vrot.slane %v2533_v63, 4  ;;  %v2548_v42 = vrot.slane %v2547_v23, 4 }
 0x4e7   : > { %v2528_v1 = vmax.f32 %v2526_v61, %v2527_v0  ;;  %v2542_v2 = vmax.f32 %v2540_v62, %v2541_v35 }
 0x4e8   : > { %v2535_v3 = vmax.f32 %v2533_v63, %v2534_v26  ;;  %v2549_v4 = vmax.f32 %v2547_v23, %v2548_v42 }
 0x4e9   : > { %v2529_v5 = vrot.slane %v2528_v1, 2  ;;  %v2543_v28 = vrot.slane %v2542_v2, 2 }
 0x4ea   : > { %v2536_v6 = vrot.slane %v2535_v3, 2  ;;  %v2550_v29 = vrot.slane %v2549_v4, 2 }
 0x4eb   : > { %v2530_v55 = vmax.f32 %v2528_v1, %v2529_v5  ;;  %v2544_v7 = vmax.f32 %v2542_v2, %v2543_v28 }
 0x4ec   : > { %v2537_v9 = vmax.f32 %v2535_v3, %v2536_v6  ;;  %v2551_v12 = vmax.f32 %v2549_v4, %v2550_v29 }
 0x4ed   : > { %v2531_v30 = vrot.slane %v2530_v55, 1  ;;  %v2545_v13 = vrot.slane %v2544_v7, 1 }
 0x4ee   : > { %v2538_v8 = vrot.slane %v2537_v9, 1  ;;  %v2552_v14 = vrot.slane %v2551_v12, 1 }
 0x4ef   : > { %v2532_v15 = vmax.f32 %v2530_v55, %v2531_v30  ;;  %v2546_v17 = vmax.f32 %v2544_v7, %v2545_v13 }
 0x4f0   : > { %v2539_v18 = vmax.f32 %v2537_v9, %v2538_v8  ;;  %v2553_v46 = vmax.f32 %v2551_v12, %v2552_v14 }
 0x4f2   : > { %v2564_v10 = vcombine.low %v2532_v15, %v2539_v18  ;;  %v2565_v11 = vcombine.low %v2546_v17, %v2553_v46 }
 0x4f4   : > { %v2586_v21 = vrot.slane %v2564_v10, %v3746_v16  ;;  %v2593_v20 = vrot.slane %v2565_v11, %v3746_v16 }
 0x4f6   : > { %v2595_v22 = vcombine.low %v2586_v21, %v2593_v20 }
 0x4f8   : > { %v2609_v27 = vrot.slane %v2595_v22, %v3746_v16 }
 0x4fa   : > { %v2610_v31 = vcombine.low %v2602_v24, %v2609_v27 }
 0x4fc   : > { %2612 = vst [vmem:[%s477_s16] sm:$0xff] %v2610_v31 }
 0x4fd PF: > { %s23_s23 = sadd.s32 1, %s3101_s23   ;;  %s3861_s21 = smov %s3097_s22 }
 0x4fe   : > { %p20_p5 = scmp.ge.s32.totalorder %s23_s23, 4   ;;  %s3862_s22 = smov %s3864_s24 }
 0x500   :  { %22 = sbr.rel (!%p20_p5) target bundleno = 2 (0x2), region = 121 }

// kernel: pointnet_local_features_forward.9
= control target key start
LH: loop header
LB: loop body
LE: loop exit
PB: predicated region body
PF: predicated region fallthrough
CT: control target
= control target key end

     0   :  { %s568_s9 = smov 0   ;;  %s570_s10 = smov 0   ;;  %s612_s0 = inlined_call_operand.vmem [shape: bf16[2,64,64], index: 0, kind: input, shape index: {}]   ;;  %s613_s1 = inlined_call_operand.vmem [shape: bf16[2,64,128], index: 1, kind: input, shape index: {}]   ;;  %s614_s2 = inlined_call_operand.vmem [shape: f32[2,64,128], index: 2, kind: output, shape index: {}]  }
   0x1   :  { %s572_s11 = smov 0  }
   0x2 LB: > { %s24_s12 = sadd.s32 1, %s547_s10  ;;  %p441_p0 = scmp.ge.s32.totalorder %s551_s11, 1  ;;  %s551_s11 = sphi %s572_s11, %s12_s11   ;;  %s547_s10 = sphi %s570_s10, %s616_s10   ;;  %s543_s9 = sphi %s568_s9, %s615_s9  }
   0x3   : > { %p26_p1 = scmp.ge.s32.totalorder %s24_s12, 2  ;;  %p141_p2 = scmp.lt.s32.totalorder %s551_s11, 3 }
   0x5   : > { %s618_s12 = smov (%p26_p1, %s24_s12), 0  ;;  %p142_p3 = pnand %p441_p0, %p141_p2 }
   0x6   : > { %p174_p4 = scmp.lt.s32.totalorder (!%p142_p3), %s543_s9, 1  ;;  %vm256_vm0 = vcmask (!%p142_p3), 523264  }
   0x7   : > { %145 = sbr.rel (%p142_p3) target bundleno = 250 (0xfa), region = 28 }
   0xe   : > { %s620_s9 = smov (!%p174_p4, %s543_s9), 1 }
   0xf   : > { %s462_s13 = sshll.u32 %s620_s9, 5  ;;  %s464_s20 = sshll.u32 %s620_s9, 6 }
  0x10   : > { %s186_s16 = scalar_lea.vmem %s613_s1, %s462_s13  ;;  %s178_s19 = scalar_lea.vmem %s612_s0, %s462_s13 }
  0x11   : > { %v521_v0 = vld [vmem:[%s186_s16] sm:$0xff]   ;;  %v522_v1 = vld [vmem:[%s186_s16 + $0x8] sm:$0xff]   ;;  %v523_v2 = vld [vmem:[%s186_s16 + $0x10] sm:$0xff]   ;;  %s194_s23 = scalar_lea.vmem %s614_s2, %s464_s20 }
  0x12   : > { %473 = vmatprep.subr.bf16.mxu0 %v521_v0  ;;  %489 = vmatprep.subr.bf16.mxu1 %v521_v0  ;;  %v525_v3 = vld [vmem:[%s178_s19] sm:$0xff]   ;;  %v526_v4 = vld [vmem:[%s178_s19 + $0x10] sm:$0xff]   ;;  %v524_v5 = vld [vmem:[%s186_s16 + $0x18] sm:$0xff]  }
  0x13   : > { %474 = vmatpush3.bf16.msra.mxu0 %v521_v0  ;;  %493 = vmatpush3.bf16.msra.mxu1 %v521_v0  ;;  %v527_v6 = vld [vmem:[%s178_s19 + $0x8] sm:$0xff]   ;;  %v528_v7 = vld [vmem:[%s178_s19 + $0x18] sm:$0xff]  }
  0x14   : > { %475 = vmatprep.subr.bf16.mxu0 %v522_v1  ;;  %490 = vmatprep.subr.bf16.mxu1 %v522_v1 }
  0x15   : > { %481 = vmatprep.mubr.msk.bf16.mxu0 %vm256_vm0, %v525_v3  ;;  %485 = vmatprep.mubr.msk.bf16.mxu1 %vm256_vm0, %v526_v4 }
  0x17   : > { %476 = vmatpush3.bf16.msra.mxu0 %v522_v1  ;;  %494 = vmatpush3.bf16.msra.mxu1 %v522_v1 }
  0x18   : > { %477 = vmatprep.subr.bf16.mxu0 %v523_v2  ;;  %491 = vmatprep.subr.bf16.mxu1 %v523_v2 }
  0x1b   : > { %478 = vmatpush3.bf16.msra.mxu0 %v523_v2  ;;  %495 = vmatpush3.bf16.msra.mxu1 %v523_v2 }
  0x1c   : > { %479 = vmatprep.subr.bf16.mxu0 %v524_v5  ;;  %492 = vmatprep.subr.bf16.mxu1 %v524_v5 }
  0x1f   : > { %480 = vmatpush3.bf16.msra.mxu0 %v524_v5  ;;  %496 = vmatpush3.bf16.msra.mxu1 %v524_v5 }
  0x22   : > { %482 = vmatmul.mubr.msk.bf16.vlgmr.msra.gmra.mrb[0].mxu0 %vm256_vm0, %v527_v6  ;;  %486 = vmatmul.mubr.msk.bf16.vlgmr.msra.gmra.mrb[0].mxu1 %vm256_vm0, %v528_v7 }
  0xf5   : > { %v483_v8 = vpop.f32.mrb[0].mxu0  ;;  %v487_v9 = vpop.f32.mrb[0].mxu1 }
  0xf6   : > { %336 = vst [vmem:[%s194_s23 + $0x10] sm:$0xff] %v483_v8  ;;  %340 = vst [vmem:[%s194_s23 + $0x30] sm:$0xff] %v487_v9  ;;  %v303_v10 = vpop.f32.mrb[1].mxu0  ;;  %v319_v11 = vpop.f32.mrb[1].mxu1 }
  0xf7   : > { %334 = vst [vmem:[%s194_s23] sm:$0xff] %v303_v10  ;;  %338 = vst [vmem:[%s194_s23 + $0x20] sm:$0xff] %v319_v11  ;;  %v484_v12 = vpop.f32.mrb[2].mxu0  ;;  %v488_v13 = vpop.f32.mrb[2].mxu1 }
  0xf8   : > { %337 = vst [vmem:[%s194_s23 + $0x18] sm:$0xff] %v484_v12  ;;  %341 = vst [vmem:[%s194_s23 + $0x38] sm:$0xff] %v488_v13  ;;  %v306_v14 = vpop.f32.mrb[3].mxu0  ;;  %v322_v15 = vpop.f32.mrb[3].mxu1 }
  0xf9   : > { %335 = vst [vmem:[%s194_s23 + $0x8] sm:$0xff] %v306_v14  ;;  %339 = vst [vmem:[%s194_s23 + $0x28] sm:$0xff] %v322_v15 }
  0xfa PF: > { %s12_s11 = sadd.s32 1, %s551_s11   ;;  %s615_s9 = smov %s547_s10 }
  0xfb   : > { %p9_p5 = scmp.ge.s32.totalorder %s12_s11, 4   ;;  %s616_s10 = smov %s618_s12 }
  0xfd   :  { %11 = sbr.rel (!%p9_p5) target bundleno = 2 (0x2), region = 61 }

// kernel: pointnet_local_features_forward.8
= control target key start
LH: loop header
LB: loop body
LE: loop exit
PB: predicated region body
PF: predicated region fallthrough
CT: control target
= control target key end

     0   :  { %v7890_v36 = vmov 1983009808   ;;  %v34_v38 = vlaneseq  ;;  %s10725_s1 = inlined_call_operand.vmem [shape: bf16[1024,512], index: 1, kind: input, shape index: {}]   ;;  %s10726_s0 = inlined_call_operand.vmem [shape: f32[2,1024], index: 0, kind: input, shape index: {}]   ;;  %s10727_s3 = inlined_call_operand.vmem [shape: bf16[512,256], index: 3, kind: input, shape index: {}]   ;;  %s10728_s5 = inlined_call_operand.vmem [shape: bf16[256,4096], index: 5, kind: input, shape index: {}]   ;;  %s10729_s2 = inlined_call_operand.vmem [shape: f32[1,512], index: 2, kind: input, shape index: {}]   ;;  %s10730_s4 = inlined_call_operand.vmem [shape: f32[1,256], index: 4, kind: input, shape index: {}]   ;;  %s10731_s6 = inlined_call_operand.vmem [shape: f32[1,4096], index: 6, kind: input, shape index: {}]   ;;  %s10732_s7 = inlined_call_operand.vmem [shape: f32[2,4096], index: 7, kind: output, shape index: {}]  }
   0x1   :  { %v7407_v0 = vld [vmem:[%s10725_s1 + $0x4] ss:$16 sps:$4 sm:$0xff]   ;;  %v7409_v1 = vld [vmem:[%s10725_s1 + $0xc] ss:$16 sps:$4 sm:$0xff]   ;;  %v7411_v2 = vld [vmem:[%s10725_s1] ss:$16 sps:$4 sm:$0xff]   ;;  %v32_v37 = vunpack.c.l.s4 %v7890_v36 }
   0x2   :  { %1638 = vmatprep.subr.bf16.mxu0 %v7407_v0  ;;  %v7412_v3 = vld [vmem:[%s10725_s1 + $0x8] ss:$16 sps:$4 sm:$0xff]   ;;  %1802 = vmatprep.subr.bf16.mxu1 %v7409_v1  ;;  %v7413_v4 = vld [vmem:[%s10725_s1 + $0x24] ss:$16 sps:$4 sm:$0xff]   ;;  %v7415_v5 = vld [vmem:[%s10725_s1 + $0x2c] ss:$16 sps:$4 sm:$0xff]  }
   0x3   :  { %1639 = vmatpush1.bf16.msra.mxu0 %v7411_v2  ;;  %1803 = vmatpush1.bf16.msra.mxu1 %v7412_v3  ;;  %v7417_v6 = vld [vmem:[%s10725_s1 + $0x20] ss:$16 sps:$4 sm:$0xff]   ;;  %v7418_v7 = vld [vmem:[%s10725_s1 + $0x28] ss:$16 sps:$4 sm:$0xff]   ;;  %v7419_v8 = vld [vmem:[%s10725_s1 + $0x44] ss:$16 sps:$4 sm:$0xff]   ;;  %v33_v42 = vunpack.c.0.s8 %v32_v37 }
   0x4   :  { %1640 = vmatprep.subr.bf16.mxu0 %v7413_v4  ;;  %1804 = vmatprep.subr.bf16.mxu1 %v7415_v5  ;;  %v7421_v9 = vld [vmem:[%s10725_s1 + $0x4c] ss:$16 sps:$4 sm:$0xff]   ;;  %v7423_v10 = vld [vmem:[%s10725_s1 + $0x40] ss:$16 sps:$4 sm:$0xff]   ;;  %v7424_v11 = vld [vmem:[%s10725_s1 + $0x48] ss:$16 sps:$4 sm:$0xff]  }
   0x5   :  { %v7425_v12 = vld [vmem:[%s10725_s1 + $0x64] ss:$16 sps:$4 sm:$0xff]   ;;  %v7427_v13 = vld [vmem:[%s10725_s1 + $0x6c] ss:$16 sps:$4 sm:$0xff]   ;;  %v7429_v14 = vld [vmem:[%s10725_s1 + $0x60] ss:$16 sps:$4 sm:$0xff]  }
   0x6   :  { %v7430_v15 = vld [vmem:[%s10725_s1 + $0x68] ss:$16 sps:$4 sm:$0xff]   ;;  %v7431_v16 = vld [vmem:[%s10725_s1 + $0x84] ss:$16 sps:$4 sm:$0xff]   ;;  %v7433_v17 = vld [vmem:[%s10725_s1 + $0x8c] ss:$16 sps:$4 sm:$0xff]  }
   0x7   :  { %1641 = vmatpush1.bf16.msra.mxu0 %v7417_v6  ;;  %1805 = vmatpush1.bf16.msra.mxu1 %v7418_v7  ;;  %v7435_v18 = vld [vmem:[%s10725_s1 + $0x80] ss:$16 sps:$4 sm:$0xff]   ;;  %v7436_v19 = vld [vmem:[%s10725_s1 + $0x88] ss:$16 sps:$4 sm:$0xff]   ;;  %v7437_v20 = vld [vmem:[%s10725_s1 + $0xa4] ss:$16 sps:$4 sm:$0xff]  }
   0x8   :  { %1642 = vmatprep.subr.bf16.mxu0 %v7419_v8  ;;  %1806 = vmatprep.subr.bf16.mxu1 %v7421_v9  ;;  %v7439_v21 = vld [vmem:[%s10725_s1 + $0xac] ss:$16 sps:$4 sm:$0xff]   ;;  %v7441_v22 = vld [vmem:[%s10725_s1 + $0xa0] ss:$16 sps:$4 sm:$0xff]   ;;  %v7442_v23 = vld [vmem:[%s10725_s1 + $0xa8] ss:$16 sps:$4 sm:$0xff]  }
   0x9   :  { %v7443_v24 = vld [vmem:[%s10725_s1 + $0xc4] ss:$16 sps:$4 sm:$0xff]   ;;  %v7445_v25 = vld [vmem:[%s10725_s1 + $0xcc] ss:$16 sps:$4 sm:$0xff]   ;;  %v7447_v26 = vld [vmem:[%s10725_s1 + $0xc0] ss:$16 sps:$4 sm:$0xff]  }
   0xa   :  { %v7448_v27 = vld [vmem:[%s10725_s1 + $0xc8] ss:$16 sps:$4 sm:$0xff]   ;;  %v7449_v28 = vld [vmem:[%s10725_s1 + $0xe4] ss:$16 sps:$4 sm:$0xff]   ;;  %v7451_v29 = vld [vmem:[%s10725_s1 + $0xec] ss:$16 sps:$4 sm:$0xff]  }
   0xb   :  { %1643 = vmatpush1.bf16.msra.mxu0 %v7423_v10  ;;  %1807 = vmatpush1.bf16.msra.mxu1 %v7424_v11  ;;  %v7453_v30 = vld [vmem:[%s10725_s1 + $0xe0] ss:$16 sps:$4 sm:$0xff]   ;;  %v7454_v31 = vld [vmem:[%s10725_s1 + $0xe8] ss:$16 sps:$4 sm:$0xff]   ;;  %v7455_v32 = vld [vmem:[%s10725_s1 + $0x104] ss:$16 sps:$4 sm:$0xff]  }
   0xc   :  { %1644 = vmatprep.subr.bf16.mxu0 %v7425_v12  ;;  %1808 = vmatprep.subr.bf16.mxu1 %v7427_v13  ;;  %v7457_v33 = vld [vmem:[%s10725_s1 + $0x10c] ss:$16 sps:$4 sm:$0xff]   ;;  %v7459_v34 = vld [vmem:[%s10725_s1 + $0x100] ss:$16 sps:$4 sm:$0xff]   ;;  %v7460_v35 = vld [vmem:[%s10725_s1 + $0x108] ss:$16 sps:$4 sm:$0xff]  }
   0xd   :  { %v7461_v39 = vld [vmem:[%s10725_s1 + $0x124] ss:$16 sps:$4 sm:$0xff]   ;;  %v7463_v40 = vld [vmem:[%s10725_s1 + $0x12c] ss:$16 sps:$4 sm:$0xff]   ;;  %v7465_v41 = vld [vmem:[%s10725_s1 + $0x120] ss:$16 sps:$4 sm:$0xff]  }
   0xe   :  { %v8048_v43 = vshrl.u32 %v34_v38, 7  ;;  %v7466_v44 = vld [vmem:[%s10725_s1 + $0x128] ss:$16 sps:$4 sm:$0xff]   ;;  %v7467_v45 = vld [vmem:[%s10725_s1 + $0x144] ss:$16 sps:$4 sm:$0xff]  }
   0xf   :  { %1645 = vmatpush1.bf16.msra.mxu0 %v7429_v14  ;;  %1809 = vmatpush1.bf16.msra.mxu1 %v7430_v15  ;;  %v7469_v46 = vld [vmem:[%s10725_s1 + $0x14c] ss:$16 sps:$4 sm:$0xff]   ;;  %v7471_v47 = vld [vmem:[%s10725_s1 + $0x140] ss:$16 sps:$4 sm:$0xff]   ;;  %v7472_v48 = vld [vmem:[%s10725_s1 + $0x148] ss:$16 sps:$4 sm:$0xff]  }
  0x10   :  { %1646 = vmatprep.subr.bf16.mxu0 %v7431_v16  ;;  %1810 = vmatprep.subr.bf16.mxu1 %v7433_v17  ;;  %v8066_v49 = vsub.s32 %v33_v42, %v8048_v43  ;;  %v7473_v50 = vld [vmem:[%s10725_s1 + $0x164] ss:$16 sps:$4 sm:$0xff]   ;;  %v7475_v51 = vld [vmem:[%s10725_s1 + $0x16c] ss:$16 sps:$4 sm:$0xff]   ;;  %v7477_v54 = vld [vmem:[%s10725_s1 + $0x160] ss:$16 sps:$4 sm:$0xff]  }
  0x11   :  { %v26_v52 = vld [vmem:[%s10726_s0] sm:$0xff]  ;;  %v7478_v55 = vld [vmem:[%s10725_s1 + $0x168] ss:$16 sps:$4 sm:$0xff]   ;;  %v7481_v57 = vld [vmem:[%s10725_s1 + $0x18c] ss:$16 sps:$4 sm:$0xff]  }
  0x12   :  { %v37_v53 = vrot.slane %v26_v52, %v8066_v49  ;;  %v7479_v56 = vld [vmem:[%s10725_s1 + $0x184] ss:$16 sps:$4 sm:$0xff]   ;;  %v7483_v60 = vld [vmem:[%s10725_s1 + $0x180] ss:$16 sps:$4 sm:$0xff]   ;;  %v7484_v61 = vld [vmem:[%s10725_s1 + $0x188] ss:$16 sps:$4 sm:$0xff]   ;;  %v30_v4 = vcombine.high %v26_v52, %v26_v52 }
  0x13   :  { %1647 = vmatpush1.bf16.msra.mxu0 %v7435_v18  ;;  %1811 = vmatpush1.bf16.msra.mxu1 %v7436_v19  ;;  %v7485_v62 = vld [vmem:[%s10725_s1 + $0x1a4] ss:$16 sps:$4 sm:$0xff]   ;;  %v7487_v63 = vld [vmem:[%s10725_s1 + $0x1ac] ss:$16 sps:$4 sm:$0xff]   ;;  %v7489_v0 = vld [vmem:[%s10725_s1 + $0x1a0] ss:$16 sps:$4 sm:$0xff]  }
  0x14   :  { %1648 = vmatprep.subr.bf16.mxu0 %v7437_v20  ;;  %1812 = vmatprep.subr.bf16.mxu1 %v7439_v21  ;;  %v45_v58 = vcombine.high %v37_v53, %v37_v53  ;;  %v7490_v1 = vld [vmem:[%s10725_s1 + $0x1a8] ss:$16 sps:$4 sm:$0xff]   ;;  %v7491_v2 = vld [vmem:[%s10725_s1 + $0x1c4] ss:$16 sps:$4 sm:$0xff]   ;;  %v7493_v3 = vld [vmem:[%s10725_s1 + $0x1cc] ss:$16 sps:$4 sm:$0xff]   ;;  %v8127_v9 = vrot.slane %v30_v4, %v8066_v49  ;;  %v72_v15 = vpack.c.bf16 %v37_v53, %v37_v53 }
  0x15   :  { %v7495_v5 = vld [vmem:[%s10725_s1 + $0x1c0] ss:$16 sps:$4 sm:$0xff]   ;;  %v7496_v6 = vld [vmem:[%s10725_s1 + $0x1c8] ss:$16 sps:$4 sm:$0xff]   ;;  %v7497_v7 = vld [vmem:[%s10725_s1 + $0x1e4] ss:$16 sps:$4 sm:$0xff]  }
  0x16   :  { %v73_v59 = vpack.c.bf16 %v45_v58, %v45_v58  ;;  %v7499_v8 = vld [vmem:[%s10725_s1 + $0x1ec] ss:$16 sps:$4 sm:$0xff]   ;;  %v7501_v10 = vld [vmem:[%s10725_s1 + $0x1e0] ss:$16 sps:$4 sm:$0xff]   ;;  %v7502_v11 = vld [vmem:[%s10725_s1 + $0x1e8] ss:$16 sps:$4 sm:$0xff]   ;;  %v46_v14 = vcombine.high %v8127_v9, %v8127_v9 }
  0x17   :  { %1649 = vmatpush1.bf16.msra.mxu0 %v7441_v22  ;;  %1813 = vmatpush1.bf16.msra.mxu1 %v7442_v23  ;;  %v7507_v12 = vld [vmem:[%s10725_s1 + $0x204] ss:$16 sps:$4 sm:$0xff]   ;;  %v7510_v13 = vld [vmem:[%s10725_s1 + $0x20c] ss:$16 sps:$4 sm:$0xff]   ;;  %v7505_v16 = vld [vmem:[%s10725_s1 + $0x200] ss:$16 sps:$4 sm:$0xff]  }
  0x18   :  { %1650 = vmatprep.subr.bf16.mxu0 %v7443_v24  ;;  %1814 = vmatprep.subr.bf16.mxu1 %v7445_v25  ;;  %v7508_v17 = vld [vmem:[%s10725_s1 + $0x208] ss:$16 sps:$4 sm:$0xff]   ;;  %v7513_v18 = vld [vmem:[%s10725_s1 + $0x224] ss:$16 sps:$4 sm:$0xff]   ;;  %v7516_v19 = vld [vmem:[%s10725_s1 + $0x22c] ss:$16 sps:$4 sm:$0xff]   ;;  %v75_v20 = vpack.c.bf16 %v46_v14, %v46_v14 }
  0x19   :  { %1670 = vmatprep.mubr.bf16.mxu0 %v73_v59  ;;  %1834 = vmatprep.mubr.bf16.mxu1 %v73_v59  ;;  %v7511_v21 = vld [vmem:[%s10725_s1 + $0x220] ss:$16 sps:$4 sm:$0xff]   ;;  %v7514_v22 = vld [vmem:[%s10725_s1 + $0x228] ss:$16 sps:$4 sm:$0xff]   ;;  %v7519_v23 = vld [vmem:[%s10725_s1 + $0x244] ss:$16 sps:$4 sm:$0xff]  }
  0x1a   :  { %v7522_v24 = vld [vmem:[%s10725_s1 + $0x24c] ss:$16 sps:$4 sm:$0xff]   ;;  %v7517_v25 = vld [vmem:[%s10725_s1 + $0x240] ss:$16 sps:$4 sm:$0xff]   ;;  %v7538_v38 = vld [vmem:[%s10725_s1 + $0x2a8] ss:$16 sps:$4 sm:$0xff]  }
  0x1b   :  { %1651 = vmatpush1.bf16.msra.mxu0 %v7447_v26  ;;  %1815 = vmatpush1.bf16.msra.mxu1 %v7448_v27  ;;  %v7520_v26 = vld [vmem:[%s10725_s1 + $0x248] ss:$16 sps:$4 sm:$0xff]   ;;  %v7525_v27 = vld [vmem:[%s10725_s1 + $0x264] ss:$16 sps:$4 sm:$0xff]   ;;  %v7540_v36 = vld [vmem:[%s10725_s1 + $0x2ac] ss:$16 sps:$4 sm:$0xff]  }
  0x1c   :  { %1652 = vmatprep.subr.bf16.mxu0 %v7449_v28  ;;  %1816 = vmatprep.subr.bf16.mxu1 %v7451_v29  ;;  %v7528_v28 = vld [vmem:[%s10725_s1 + $0x26c] ss:$16 sps:$4 sm:$0xff]   ;;  %v7523_v29 = vld [vmem:[%s10725_s1 + $0x260] ss:$16 sps:$4 sm:$0xff]   ;;  %v7544_v42 = vld [vmem:[%s10725_s1 + $0x2c8] ss:$16 sps:$4 sm:$0xff]  }
  0x1d   :  { %v7535_v37 = vld [vmem:[%s10725_s1 + $0x2a0] ss:$16 sps:$4 sm:$0xff]   ;;  %v7556_v52 = vld [vmem:[%s10725_s1 + $0x308] ss:$16 sps:$4 sm:$0xff]   ;;  %v7561_v53 = vld [vmem:[%s10725_s1 + $0x324] ss:$16 sps:$4 sm:$0xff]  }
  0x1e   :  { %v7570_v58 = vld [vmem:[%s10725_s1 + $0x34c] ss:$16 sps:$4 sm:$0xff]   ;;  %v7565_v59 = vld [vmem:[%s10725_s1 + $0x340] ss:$16 sps:$4 sm:$0xff]   ;;  %v7580_v4 = vld [vmem:[%s10725_s1 + $0x388] ss:$16 sps:$4 sm:$0xff]  }
  0x1f   :  { %1653 = vmatpush1.bf16.msra.mxu0 %v7453_v30  ;;  %1817 = vmatpush1.bf16.msra.mxu1 %v7454_v31  ;;  %v7526_v30 = vld [vmem:[%s10725_s1 + $0x268] ss:$16 sps:$4 sm:$0xff]   ;;  %v7531_v31 = vld [vmem:[%s10725_s1 + $0x284] ss:$16 sps:$4 sm:$0xff]  }
  0x20   :  { %1654 = vmatprep.subr.bf16.mxu0 %v7455_v32  ;;  %1818 = vmatprep.subr.bf16.mxu1 %v7457_v33  ;;  %v7534_v32 = vld [vmem:[%s10725_s1 + $0x28c] ss:$16 sps:$4 sm:$0xff]   ;;  %v7529_v33 = vld [vmem:[%s10725_s1 + $0x280] ss:$16 sps:$4 sm:$0xff]   ;;  %v7592_v14 = vld [vmem:[%s10725_s1 + $0x3c8] ss:$16 sps:$4 sm:$0xff]  }
  0x23   :  { %1655 = vmatpush1.bf16.msra.mxu0 %v7459_v34  ;;  %1819 = vmatpush1.bf16.msra.mxu1 %v7460_v35  ;;  %v7532_v34 = vld [vmem:[%s10725_s1 + $0x288] ss:$16 sps:$4 sm:$0xff]   ;;  %v7537_v35 = vld [vmem:[%s10725_s1 + $0x2a4] ss:$16 sps:$4 sm:$0xff]  }
  0x24   :  { %1656 = vmatprep.subr.bf16.mxu0 %v7461_v39  ;;  %1820 = vmatprep.subr.bf16.mxu1 %v7463_v40  ;;  %v7543_v39 = vld [vmem:[%s10725_s1 + $0x2c4] ss:$16 sps:$4 sm:$0xff]   ;;  %v7546_v40 = vld [vmem:[%s10725_s1 + $0x2cc] ss:$16 sps:$4 sm:$0xff]  }
  0x27   :  { %1657 = vmatpush1.bf16.msra.mxu0 %v7465_v41  ;;  %1821 = vmatpush1.bf16.msra.mxu1 %v7466_v44  ;;  %v7541_v41 = vld [vmem:[%s10725_s1 + $0x2c0] ss:$16 sps:$4 sm:$0xff]   ;;  %v7549_v44 = vld [vmem:[%s10725_s1 + $0x2e4] ss:$16 sps:$4 sm:$0xff]  }
  0x28   :  { %1658 = vmatprep.subr.bf16.mxu0 %v7467_v45  ;;  %1822 = vmatprep.subr.bf16.mxu1 %v7469_v46  ;;  %v7552_v45 = vld [vmem:[%s10725_s1 + $0x2ec] ss:$16 sps:$4 sm:$0xff]   ;;  %v7547_v46 = vld [vmem:[%s10725_s1 + $0x2e0] ss:$16 sps:$4 sm:$0xff]  }
  0x2b   :  { %1659 = vmatpush1.bf16.msra.mxu0 %v7471_v47  ;;  %1823 = vmatpush1.bf16.msra.mxu1 %v7472_v48  ;;  %v7550_v47 = vld [vmem:[%s10725_s1 + $0x2e8] ss:$16 sps:$4 sm:$0xff]   ;;  %v7555_v48 = vld [vmem:[%s10725_s1 + $0x304] ss:$16 sps:$4 sm:$0xff]  }
  0x2c   :  { %1660 = vmatprep.subr.bf16.mxu0 %v7473_v50  ;;  %1824 = vmatprep.subr.bf16.mxu1 %v7475_v51  ;;  %v7558_v50 = vld [vmem:[%s10725_s1 + $0x30c] ss:$16 sps:$4 sm:$0xff]   ;;  %v7553_v51 = vld [vmem:[%s10725_s1 + $0x300] ss:$16 sps:$4 sm:$0xff]  }
  0x2f   :  { %1661 = vmatpush1.bf16.msra.mxu0 %v7477_v54  ;;  %1825 = vmatpush1.bf16.msra.mxu1 %v7478_v55  ;;  %v7564_v54 = vld [vmem:[%s10725_s1 + $0x32c] ss:$16 sps:$4 sm:$0xff]   ;;  %v7559_v55 = vld [vmem:[%s10725_s1 + $0x320] ss:$16 sps:$4 sm:$0xff]  }
  0x30   :  { %1662 = vmatprep.subr.bf16.mxu0 %v7479_v56  ;;  %1826 = vmatprep.subr.bf16.mxu1 %v7481_v57  ;;  %v7562_v56 = vld [vmem:[%s10725_s1 + $0x328] ss:$16 sps:$4 sm:$0xff]   ;;  %v7567_v57 = vld [vmem:[%s10725_s1 + $0x344] ss:$16 sps:$4 sm:$0xff]  }
  0x33   :  { %1663 = vmatpush1.bf16.msra.mxu0 %v7483_v60  ;;  %1827 = vmatpush1.bf16.msra.mxu1 %v7484_v61  ;;  %v7568_v60 = vld [vmem:[%s10725_s1 + $0x348] ss:$16 sps:$4 sm:$0xff]   ;;  %v7573_v61 = vld [vmem:[%s10725_s1 + $0x364] ss:$16 sps:$4 sm:$0xff]  }
  0x34   :  { %1664 = vmatprep.subr.bf16.mxu0 %v7485_v62  ;;  %1828 = vmatprep.subr.bf16.mxu1 %v7487_v63  ;;  %v7576_v62 = vld [vmem:[%s10725_s1 + $0x36c] ss:$16 sps:$4 sm:$0xff]   ;;  %v7571_v63 = vld [vmem:[%s10725_s1 + $0x360] ss:$16 sps:$4 sm:$0xff]  }
  0x37   :  { %1665 = vmatpush1.bf16.msra.mxu0 %v7489_v0  ;;  %1829 = vmatpush1.bf16.msra.mxu1 %v7490_v1  ;;  %v7574_v0 = vld [vmem:[%s10725_s1 + $0x368] ss:$16 sps:$4 sm:$0xff]   ;;  %v7579_v1 = vld [vmem:[%s10725_s1 + $0x384] ss:$16 sps:$4 sm:$0xff]  }
  0x38   :  { %1666 = vmatprep.subr.bf16.mxu0 %v7491_v2  ;;  %1830 = vmatprep.subr.bf16.mxu1 %v7493_v3  ;;  %v7582_v2 = vld [vmem:[%s10725_s1 + $0x38c] ss:$16 sps:$4 sm:$0xff]   ;;  %v7577_v3 = vld [vmem:[%s10725_s1 + $0x380] ss:$16 sps:$4 sm:$0xff]  }
  0x3b   :  { %1667 = vmatpush1.bf16.msra.mxu0 %v7495_v5  ;;  %1831 = vmatpush1.bf16.msra.mxu1 %v7496_v6  ;;  %v7585_v5 = vld [vmem:[%s10725_s1 + $0x3a4] ss:$16 sps:$4 sm:$0xff]   ;;  %v7588_v6 = vld [vmem:[%s10725_s1 + $0x3ac] ss:$16 sps:$4 sm:$0xff]  }
  0x3c   :  { %1668 = vmatprep.subr.bf16.mxu0 %v7497_v7  ;;  %1832 = vmatprep.subr.bf16.mxu1 %v7499_v8  ;;  %v7583_v7 = vld [vmem:[%s10725_s1 + $0x3a0] ss:$16 sps:$4 sm:$0xff]   ;;  %v7586_v8 = vld [vmem:[%s10725_s1 + $0x3a8] ss:$16 sps:$4 sm:$0xff]  }
  0x3f   :  { %1669 = vmatpush1.bf16.msra.mxu0 %v7501_v10  ;;  %1833 = vmatpush1.bf16.msra.mxu1 %v7502_v11  ;;  %v7591_v10 = vld [vmem:[%s10725_s1 + $0x3c4] ss:$16 sps:$4 sm:$0xff]   ;;  %v7594_v11 = vld [vmem:[%s10725_s1 + $0x3cc] ss:$16 sps:$4 sm:$0xff]  }
  0x40   :  { %1679 = vmatprep.subr.bf16.mxu0 %v7507_v12  ;;  %1843 = vmatprep.subr.bf16.mxu1 %v7510_v13  ;;  %v8314_v12 = vld [vmem:[%s10726_s0 + $0x8] sm:$0xff]  ;;  %v7589_v13 = vld [vmem:[%s10725_s1 + $0x3c0] ss:$16 sps:$4 sm:$0xff]  }
  0x42   :  { %1671 = vmatmul.mubr.bf16.vlgmr.msra.gmra.mrb[0].mxu0 %v72_v15  ;;  %1835 = vmatmul.mubr.bf16.vlgmr.msra.gmra.mrb[0].mxu1 %v72_v15  ;;  %v7597_v15 = vld [vmem:[%s10725_s1 + $0x3e4] ss:$16 sps:$4 sm:$0xff]  }
  0x43   :  { %1680 = vmatpush1.bf16.msra.mxu0 %v7505_v16  ;;  %1844 = vmatpush1.bf16.msra.mxu1 %v7508_v17  ;;  %v7600_v16 = vld [vmem:[%s10725_s1 + $0x3ec] ss:$16 sps:$4 sm:$0xff]   ;;  %v8330_v17 = vrot.slane %v8314_v12, %v8066_v49 }
  0x44   :  { %1681 = vmatprep.subr.bf16.mxu0 %v7513_v18  ;;  %1845 = vmatprep.subr.bf16.mxu1 %v7516_v19  ;;  %v7595_v18 = vld [vmem:[%s10725_s1 + $0x3e0] ss:$16 sps:$4 sm:$0xff]   ;;  %v7598_v19 = vld [vmem:[%s10725_s1 + $0x3e8] ss:$16 sps:$4 sm:$0xff]  }
  0x45   :  { %1711 = vmatprep.mubr.bf16.mxu0 %v75_v20  ;;  %1875 = vmatprep.mubr.bf16.mxu1 %v75_v20  ;;  %v7603_v20 = vld [vmem:[%s10725_s1 + $0x404] ss:$16 sps:$4 sm:$0xff]  }
  0x47   :  { %1682 = vmatpush1.bf16.msra.mxu0 %v7511_v21  ;;  %1846 = vmatpush1.bf16.msra.mxu1 %v7514_v22  ;;  %v7606_v21 = vld [vmem:[%s10725_s1 + $0x40c] ss:$16 sps:$4 sm:$0xff]   ;;  %v62_v22 = vcombine.high %v8330_v17, %v8330_v17 }
  0x48   :  { %1683 = vmatprep.subr.bf16.mxu0 %v7519_v23  ;;  %1847 = vmatprep.subr.bf16.mxu1 %v7522_v24  ;;  %v74_v23 = vpack.c.bf16 %v8127_v9, %v8127_v9  ;;  %v7601_v24 = vld [vmem:[%s10725_s1 + $0x400] ss:$16 sps:$4 sm:$0xff]   ;;  %v7612_v9 = vld [vmem:[%s10725_s1 + $0x42c] ss:$16 sps:$4 sm:$0xff]  }
  0x4b   :  { %1684 = vmatpush1.bf16.msra.mxu0 %v7517_v25  ;;  %1848 = vmatpush1.bf16.msra.mxu1 %v7520_v26  ;;  %v7604_v25 = vld [vmem:[%s10725_s1 + $0x408] ss:$16 sps:$4 sm:$0xff]   ;;  %v7609_v26 = vld [vmem:[%s10725_s1 + $0x424] ss:$16 sps:$4 sm:$0xff]  }
  0x4c   :  { %1685 = vmatprep.subr.bf16.mxu0 %v7525_v27  ;;  %1849 = vmatprep.subr.bf16.mxu1 %v7528_v28  ;;  %v77_v27 = vpack.c.bf16 %v62_v22, %v62_v22  ;;  %v7607_v28 = vld [vmem:[%s10725_s1 + $0x420] ss:$16 sps:$4 sm:$0xff]  }
  0x4d   :  { %v7685_v22 = vld [vmem:[%s10725_s1 + $0x5c0] ss:$16 sps:$4 sm:$0xff]  }
  0x4f   :  { %1686 = vmatpush1.bf16.msra.mxu0 %v7523_v29  ;;  %1850 = vmatpush1.bf16.msra.mxu1 %v7526_v30  ;;  %v7610_v29 = vld [vmem:[%s10725_s1 + $0x428] ss:$16 sps:$4 sm:$0xff]   ;;  %v7615_v30 = vld [vmem:[%s10725_s1 + $0x444] ss:$16 sps:$4 sm:$0xff]  }
  0x50   :  { %1687 = vmatprep.subr.bf16.mxu0 %v7531_v31  ;;  %1851 = vmatprep.subr.bf16.mxu1 %v7534_v32  ;;  %v7618_v31 = vld [vmem:[%s10725_s1 + $0x44c] ss:$16 sps:$4 sm:$0xff]   ;;  %v7613_v32 = vld [vmem:[%s10725_s1 + $0x440] ss:$16 sps:$4 sm:$0xff]  }
  0x53   :  { %1688 = vmatpush1.bf16.msra.mxu0 %v7529_v33  ;;  %1852 = vmatpush1.bf16.msra.mxu1 %v7532_v34  ;;  %v7616_v33 = vld [vmem:[%s10725_s1 + $0x448] ss:$16 sps:$4 sm:$0xff]   ;;  %v7621_v34 = vld [vmem:[%s10725_s1 + $0x464] ss:$16 sps:$4 sm:$0xff]  }
  0x54   :  { %1689 = vmatprep.subr.bf16.mxu0 %v7537_v35  ;;  %1853 = vmatprep.subr.bf16.mxu1 %v7540_v36  ;;  %v7624_v35 = vld [vmem:[%s10725_s1 + $0x46c] ss:$16 sps:$4 sm:$0xff]   ;;  %v7619_v36 = vld [vmem:[%s10725_s1 + $0x460] ss:$16 sps:$4 sm:$0xff]  }
  0x57   :  { %1690 = vmatpush1.bf16.msra.mxu0 %v7535_v37  ;;  %1854 = vmatpush1.bf16.msra.mxu1 %v7538_v38  ;;  %v7622_v37 = vld [vmem:[%s10725_s1 + $0x468] ss:$16 sps:$4 sm:$0xff]   ;;  %v7627_v38 = vld [vmem:[%s10725_s1 + $0x484] ss:$16 sps:$4 sm:$0xff]  }
  0x58   :  { %1691 = vmatprep.subr.bf16.mxu0 %v7543_v39  ;;  %1855 = vmatprep.subr.bf16.mxu1 %v7546_v40  ;;  %v7630_v39 = vld [vmem:[%s10725_s1 + $0x48c] ss:$16 sps:$4 sm:$0xff]   ;;  %v7625_v40 = vld [vmem:[%s10725_s1 + $0x480] ss:$16 sps:$4 sm:$0xff]  }
  0x5b   :  { %1692 = vmatpush1.bf16.msra.mxu0 %v7541_v41  ;;  %1856 = vmatpush1.bf16.msra.mxu1 %v7544_v42  ;;  %v7628_v41 = vld [vmem:[%s10725_s1 + $0x488] ss:$16 sps:$4 sm:$0xff]   ;;  %v7633_v42 = vld [vmem:[%s10725_s1 + $0x4a4] ss:$16 sps:$4 sm:$0xff]  }
  0x5c   :  { %1693 = vmatprep.subr.bf16.mxu0 %v7549_v44  ;;  %1857 = vmatprep.subr.bf16.mxu1 %v7552_v45  ;;  %v7636_v44 = vld [vmem:[%s10725_s1 + $0x4ac] ss:$16 sps:$4 sm:$0xff]   ;;  %v7631_v45 = vld [vmem:[%s10725_s1 + $0x4a0] ss:$16 sps:$4 sm:$0xff]  }
  0x5f   :  { %1694 = vmatpush1.bf16.msra.mxu0 %v7547_v46  ;;  %1858 = vmatpush1.bf16.msra.mxu1 %v7550_v47  ;;  %v7634_v46 = vld [vmem:[%s10725_s1 + $0x4a8] ss:$16 sps:$4 sm:$0xff]   ;;  %v7639_v47 = vld [vmem:[%s10725_s1 + $0x4c4] ss:$16 sps:$4 sm:$0xff]  }
  0x60   :  { %1695 = vmatprep.subr.bf16.mxu0 %v7555_v48  ;;  %1859 = vmatprep.subr.bf16.mxu1 %v7558_v50  ;;  %v7642_v48 = vld [vmem:[%s10725_s1 + $0x4cc] ss:$16 sps:$4 sm:$0xff]   ;;  %v7637_v50 = vld [vmem:[%s10725_s1 + $0x4c0] ss:$16 sps:$4 sm:$0xff]  }
  0x63   :  { %1696 = vmatpush1.bf16.msra.mxu0 %v7553_v51  ;;  %1860 = vmatpush1.bf16.msra.mxu1 %v7556_v52  ;;  %v7640_v51 = vld [vmem:[%s10725_s1 + $0x4c8] ss:$16 sps:$4 sm:$0xff]   ;;  %v7645_v52 = vld [vmem:[%s10725_s1 + $0x4e4] ss:$16 sps:$4 sm:$0xff]  }
  0x64   :  { %1697 = vmatprep.subr.bf16.mxu0 %v7561_v53  ;;  %1861 = vmatprep.subr.bf16.mxu1 %v7564_v54  ;;  %v7648_v53 = vld [vmem:[%s10725_s1 + $0x4ec] ss:$16 sps:$4 sm:$0xff]   ;;  %v7643_v54 = vld [vmem:[%s10725_s1 + $0x4e0] ss:$16 sps:$4 sm:$0xff]  }
  0x67   :  { %1698 = vmatpush1.bf16.msra.mxu0 %v7559_v55  ;;  %1862 = vmatpush1.bf16.msra.mxu1 %v7562_v56  ;;  %v7646_v55 = vld [vmem:[%s10725_s1 + $0x4e8] ss:$16 sps:$4 sm:$0xff]   ;;  %v7651_v56 = vld [vmem:[%s10725_s1 + $0x504] ss:$16 sps:$4 sm:$0xff]  }
  0x68   :  { %1699 = vmatprep.subr.bf16.mxu0 %v7567_v57  ;;  %1863 = vmatprep.subr.bf16.mxu1 %v7570_v58  ;;  %v7654_v57 = vld [vmem:[%s10725_s1 + $0x50c] ss:$16 sps:$4 sm:$0xff]   ;;  %v7649_v58 = vld [vmem:[%s10725_s1 + $0x500] ss:$16 sps:$4 sm:$0xff]  }
  0x6b   :  { %1700 = vmatpush1.bf16.msra.mxu0 %v7565_v59  ;;  %1864 = vmatpush1.bf16.msra.mxu1 %v7568_v60  ;;  %v7652_v59 = vld [vmem:[%s10725_s1 + $0x508] ss:$16 sps:$4 sm:$0xff]   ;;  %v7657_v60 = vld [vmem:[%s10725_s1 + $0x524] ss:$16 sps:$4 sm:$0xff]  }
  0x6c   :  { %1701 = vmatprep.subr.bf16.mxu0 %v7573_v61  ;;  %1865 = vmatprep.subr.bf16.mxu1 %v7576_v62  ;;  %v7660_v61 = vld [vmem:[%s10725_s1 + $0x52c] ss:$16 sps:$4 sm:$0xff]   ;;  %v7655_v62 = vld [vmem:[%s10725_s1 + $0x520] ss:$16 sps:$4 sm:$0xff]  }
  0x6f   :  { %1702 = vmatpush1.bf16.msra.mxu0 %v7571_v63  ;;  %1866 = vmatpush1.bf16.msra.mxu1 %v7574_v0  ;;  %v7658_v63 = vld [vmem:[%s10725_s1 + $0x528] ss:$16 sps:$4 sm:$0xff]   ;;  %v7663_v0 = vld [vmem:[%s10725_s1 + $0x544] ss:$16 sps:$4 sm:$0xff]  }
  0x70   :  { %1703 = vmatprep.subr.bf16.mxu0 %v7579_v1  ;;  %1867 = vmatprep.subr.bf16.mxu1 %v7582_v2  ;;  %v7666_v1 = vld [vmem:[%s10725_s1 + $0x54c] ss:$16 sps:$4 sm:$0xff]   ;;  %v7661_v2 = vld [vmem:[%s10725_s1 + $0x540] ss:$16 sps:$4 sm:$0xff]  }
  0x73   :  { %1704 = vmatpush1.bf16.msra.mxu0 %v7577_v3  ;;  %1868 = vmatpush1.bf16.msra.mxu1 %v7580_v4  ;;  %v7664_v3 = vld [vmem:[%s10725_s1 + $0x548] ss:$16 sps:$4 sm:$0xff]   ;;  %v7669_v4 = vld [vmem:[%s10725_s1 + $0x564] ss:$16 sps:$4 sm:$0xff]  }
  0x74   :  { %1705 = vmatprep.subr.bf16.mxu0 %v7585_v5  ;;  %1869 = vmatprep.subr.bf16.mxu1 %v7588_v6  ;;  %v7672_v5 = vld [vmem:[%s10725_s1 + $0x56c] ss:$16 sps:$4 sm:$0xff]   ;;  %v7667_v6 = vld [vmem:[%s10725_s1 + $0x560] ss:$16 sps:$4 sm:$0xff]  }
  0x77   :  { %1706 = vmatpush1.bf16.msra.mxu0 %v7583_v7  ;;  %1870 = vmatpush1.bf16.msra.mxu1 %v7586_v8  ;;  %v7670_v7 = vld [vmem:[%s10725_s1 + $0x568] ss:$16 sps:$4 sm:$0xff]   ;;  %v7675_v8 = vld [vmem:[%s10725_s1 + $0x584] ss:$16 sps:$4 sm:$0xff]  }
  0x78   :  { %1707 = vmatprep.subr.bf16.mxu0 %v7591_v10  ;;  %1871 = vmatprep.subr.bf16.mxu1 %v7594_v11  ;;  %v7678_v10 = vld [vmem:[%s10725_s1 + $0x58c] ss:$16 sps:$4 sm:$0xff]   ;;  %v7673_v11 = vld [vmem:[%s10725_s1 + $0x580] ss:$16 sps:$4 sm:$0xff]  }
  0x7b   :  { %1708 = vmatpush1.bf16.msra.mxu0 %v7589_v13  ;;  %1872 = vmatpush1.bf16.msra.mxu1 %v7592_v14  ;;  %v7676_v13 = vld [vmem:[%s10725_s1 + $0x588] ss:$16 sps:$4 sm:$0xff]   ;;  %v7681_v14 = vld [vmem:[%s10725_s1 + $0x5a4] ss:$16 sps:$4 sm:$0xff]  }
  0x7c   :  { %1709 = vmatprep.subr.bf16.mxu0 %v7597_v15  ;;  %1873 = vmatprep.subr.bf16.mxu1 %v7600_v16  ;;  %v7684_v15 = vld [vmem:[%s10725_s1 + $0x5ac] ss:$16 sps:$4 sm:$0xff]   ;;  %v7679_v16 = vld [vmem:[%s10725_s1 + $0x5a0] ss:$16 sps:$4 sm:$0xff]  }
  0x7f   :  { %1710 = vmatpush1.bf16.msra.mxu0 %v7595_v18  ;;  %1874 = vmatpush1.bf16.msra.mxu1 %v7598_v19  ;;  %v7682_v18 = vld [vmem:[%s10725_s1 + $0x5a8] ss:$16 sps:$4 sm:$0xff]   ;;  %v7687_v19 = vld [vmem:[%s10725_s1 + $0x5c4] ss:$16 sps:$4 sm:$0xff]  }
  0x80   :  { %1720 = vmatprep.subr.bf16.mxu0 %v7603_v20  ;;  %1884 = vmatprep.subr.bf16.mxu1 %v7606_v21  ;;  %v7690_v20 = vld [vmem:[%s10725_s1 + $0x5cc] ss:$16 sps:$4 sm:$0xff]   ;;  %v47_v21 = vcombine.high %v8314_v12, %v8314_v12 }
  0x81   :  { %v7696_v12 = vld [vmem:[%s10725_s1 + $0x5ec] ss:$16 sps:$4 sm:$0xff]  }
  0x82   :  { %1712 = vmatmul.mubr.bf16.vlgmr.msra.gmra.mrb[0].mxu0 %v74_v23  ;;  %1876 = vmatmul.mubr.bf16.vlgmr.msra.gmra.mrb[0].mxu1 %v74_v23  ;;  %v7688_v23 = vld [vmem:[%s10725_s1 + $0x5c8] ss:$16 sps:$4 sm:$0xff]  }
  0x83   :  { %1721 = vmatpush1.bf16.msra.mxu0 %v7601_v24  ;;  %1885 = vmatpush1.bf16.msra.mxu1 %v7604_v25  ;;  %v7693_v24 = vld [vmem:[%s10725_s1 + $0x5e4] ss:$16 sps:$4 sm:$0xff]   ;;  %v8531_v25 = vrot.slane %v47_v21, %v8066_v49  ;;  %v7772_v21 = vld [vmem:[%s10725_s1 + $0x788] ss:$16 sps:$4 sm:$0xff]  }
  0x84   :  { %1722 = vmatprep.subr.bf16.mxu0 %v7609_v26  ;;  %1886 = vmatprep.subr.bf16.mxu1 %v7612_v9  ;;  %v7691_v26 = vld [vmem:[%s10725_s1 + $0x5e0] ss:$16 sps:$4 sm:$0xff]   ;;  %v7694_v9 = vld [vmem:[%s10725_s1 + $0x5e8] ss:$16 sps:$4 sm:$0xff]  }
  0x85   :  { %1752 = vmatprep.mubr.bf16.mxu0 %v77_v27  ;;  %1916 = vmatprep.mubr.bf16.mxu1 %v77_v27  ;;  %v7699_v27 = vld [vmem:[%s10725_s1 + $0x604] ss:$16 sps:$4 sm:$0xff]  }
  0x87   :  { %1723 = vmatpush1.bf16.msra.mxu0 %v7607_v28  ;;  %1887 = vmatpush1.bf16.msra.mxu1 %v7610_v29  ;;  %v7702_v28 = vld [vmem:[%s10725_s1 + $0x60c] ss:$16 sps:$4 sm:$0xff]   ;;  %v7697_v29 = vld [vmem:[%s10725_s1 + $0x600] ss:$16 sps:$4 sm:$0xff]  }
  0x88   :  { %1724 = vmatprep.subr.bf16.mxu0 %v7615_v30  ;;  %1888 = vmatprep.subr.bf16.mxu1 %v7618_v31  ;;  %v7700_v30 = vld [vmem:[%s10725_s1 + $0x608] ss:$16 sps:$4 sm:$0xff]   ;;  %v63_v31 = vcombine.high %v8531_v25, %v8531_v25 }
  0x8b   :  { %1725 = vmatpush1.bf16.msra.mxu0 %v7613_v32  ;;  %1889 = vmatpush1.bf16.msra.mxu1 %v7616_v33  ;;  %v76_v32 = vpack.c.bf16 %v8330_v17, %v8330_v17  ;;  %v7705_v33 = vld [vmem:[%s10725_s1 + $0x624] ss:$16 sps:$4 sm:$0xff]   ;;  %v7706_v17 = vld [vmem:[%s10725_s1 + $0x628] ss:$16 sps:$4 sm:$0xff]  }
  0x8c   :  { %1726 = vmatprep.subr.bf16.mxu0 %v7621_v34  ;;  %1890 = vmatprep.subr.bf16.mxu1 %v7624_v35  ;;  %v7708_v34 = vld [vmem:[%s10725_s1 + $0x62c] ss:$16 sps:$4 sm:$0xff]   ;;  %v7703_v35 = vld [vmem:[%s10725_s1 + $0x620] ss:$16 sps:$4 sm:$0xff]  }
  0x8f   :  { %1727 = vmatpush1.bf16.msra.mxu0 %v7619_v36  ;;  %1891 = vmatpush1.bf16.msra.mxu1 %v7622_v37  ;;  %v79_v36 = vpack.c.bf16 %v63_v31, %v63_v31  ;;  %v7711_v37 = vld [vmem:[%s10725_s1 + $0x644] ss:$16 sps:$4 sm:$0xff]   ;;  %v7787_v31 = vld [vmem:[%s10725_s1 + $0x7e0] ss:$16 sps:$4 sm:$0xff]  }
  0x90   :  { %1728 = vmatprep.subr.bf16.mxu0 %v7627_v38  ;;  %1892 = vmatprep.subr.bf16.mxu1 %v7630_v39  ;;  %v7714_v38 = vld [vmem:[%s10725_s1 + $0x64c] ss:$16 sps:$4 sm:$0xff]   ;;  %v7709_v39 = vld [vmem:[%s10725_s1 + $0x640] ss:$16 sps:$4 sm:$0xff]  }
  0x93   :  { %1729 = vmatpush1.bf16.msra.mxu0 %v7625_v40  ;;  %1893 = vmatpush1.bf16.msra.mxu1 %v7628_v41  ;;  %v7712_v40 = vld [vmem:[%s10725_s1 + $0x648] ss:$16 sps:$4 sm:$0xff]   ;;  %v7717_v41 = vld [vmem:[%s10725_s1 + $0x664] ss:$16 sps:$4 sm:$0xff]  }
  0x94   :  { %1730 = vmatprep.subr.bf16.mxu0 %v7633_v42  ;;  %1894 = vmatprep.subr.bf16.mxu1 %v7636_v44  ;;  %v7720_v42 = vld [vmem:[%s10725_s1 + $0x66c] ss:$16 sps:$4 sm:$0xff]   ;;  %v7715_v44 = vld [vmem:[%s10725_s1 + $0x660] ss:$16 sps:$4 sm:$0xff]  }
  0x97   :  { %1731 = vmatpush1.bf16.msra.mxu0 %v7631_v45  ;;  %1895 = vmatpush1.bf16.msra.mxu1 %v7634_v46  ;;  %v7718_v45 = vld [vmem:[%s10725_s1 + $0x668] ss:$16 sps:$4 sm:$0xff]   ;;  %v7723_v46 = vld [vmem:[%s10725_s1 + $0x684] ss:$16 sps:$4 sm:$0xff]  }
  0x98   :  { %1732 = vmatprep.subr.bf16.mxu0 %v7639_v47  ;;  %1896 = vmatprep.subr.bf16.mxu1 %v7642_v48  ;;  %v7726_v47 = vld [vmem:[%s10725_s1 + $0x68c] ss:$16 sps:$4 sm:$0xff]   ;;  %v7721_v48 = vld [vmem:[%s10725_s1 + $0x680] ss:$16 sps:$4 sm:$0xff]  }
  0x9b   :  { %1733 = vmatpush1.bf16.msra.mxu0 %v7637_v50  ;;  %1897 = vmatpush1.bf16.msra.mxu1 %v7640_v51  ;;  %v7724_v50 = vld [vmem:[%s10725_s1 + $0x688] ss:$16 sps:$4 sm:$0xff]   ;;  %v7729_v51 = vld [vmem:[%s10725_s1 + $0x6a4] ss:$16 sps:$4 sm:$0xff]  }
  0x9c   :  { %1734 = vmatprep.subr.bf16.mxu0 %v7645_v52  ;;  %1898 = vmatprep.subr.bf16.mxu1 %v7648_v53  ;;  %v7732_v52 = vld [vmem:[%s10725_s1 + $0x6ac] ss:$16 sps:$4 sm:$0xff]   ;;  %v7727_v53 = vld [vmem:[%s10725_s1 + $0x6a0] ss:$16 sps:$4 sm:$0xff]  }
  0x9f   :  { %1735 = vmatpush1.bf16.msra.mxu0 %v7643_v54  ;;  %1899 = vmatpush1.bf16.msra.mxu1 %v7646_v55  ;;  %v7730_v54 = vld [vmem:[%s10725_s1 + $0x6a8] ss:$16 sps:$4 sm:$0xff]   ;;  %v7735_v55 = vld [vmem:[%s10725_s1 + $0x6c4] ss:$16 sps:$4 sm:$0xff]  }
  0xa0   :  { %1736 = vmatprep.subr.bf16.mxu0 %v7651_v56  ;;  %1900 = vmatprep.subr.bf16.mxu1 %v7654_v57  ;;  %v7738_v56 = vld [vmem:[%s10725_s1 + $0x6cc] ss:$16 sps:$4 sm:$0xff]   ;;  %v7733_v57 = vld [vmem:[%s10725_s1 + $0x6c0] ss:$16 sps:$4 sm:$0xff]  }
  0xa3   :  { %1737 = vmatpush1.bf16.msra.mxu0 %v7649_v58  ;;  %1901 = vmatpush1.bf16.msra.mxu1 %v7652_v59  ;;  %v7736_v58 = vld [vmem:[%s10725_s1 + $0x6c8] ss:$16 sps:$4 sm:$0xff]   ;;  %v7741_v59 = vld [vmem:[%s10725_s1 + $0x6e4] ss:$16 sps:$4 sm:$0xff]  }
  0xa4   :  { %1738 = vmatprep.subr.bf16.mxu0 %v7657_v60  ;;  %1902 = vmatprep.subr.bf16.mxu1 %v7660_v61  ;;  %v7744_v60 = vld [vmem:[%s10725_s1 + $0x6ec] ss:$16 sps:$4 sm:$0xff]   ;;  %v7739_v61 = vld [vmem:[%s10725_s1 + $0x6e0] ss:$16 sps:$4 sm:$0xff]  }
  0xa7   :  { %1739 = vmatpush1.bf16.msra.mxu0 %v7655_v62  ;;  %1903 = vmatpush1.bf16.msra.mxu1 %v7658_v63  ;;  %v7742_v62 = vld [vmem:[%s10725_s1 + $0x6e8] ss:$16 sps:$4 sm:$0xff]   ;;  %v7747_v63 = vld [vmem:[%s10725_s1 + $0x704] ss:$16 sps:$4 sm:$0xff]  }
  0xa8   :  { %1740 = vmatprep.subr.bf16.mxu0 %v7663_v0  ;;  %1904 = vmatprep.subr.bf16.mxu1 %v7666_v1  ;;  %v7750_v0 = vld [vmem:[%s10725_s1 + $0x70c] ss:$16 sps:$4 sm:$0xff]   ;;  %v7745_v1 = vld [vmem:[%s10725_s1 + $0x700] ss:$16 sps:$4 sm:$0xff]  }
  0xab   :  { %1741 = vmatpush1.bf16.msra.mxu0 %v7661_v2  ;;  %1905 = vmatpush1.bf16.msra.mxu1 %v7664_v3  ;;  %v7748_v2 = vld [vmem:[%s10725_s1 + $0x708] ss:$16 sps:$4 sm:$0xff]   ;;  %v7753_v3 = vld [vmem:[%s10725_s1 + $0x724] ss:$16 sps:$4 sm:$0xff]  }
  0xac   :  { %1742 = vmatprep.subr.bf16.mxu0 %v7669_v4  ;;  %1906 = vmatprep.subr.bf16.mxu1 %v7672_v5  ;;  %v7756_v4 = vld [vmem:[%s10725_s1 + $0x72c] ss:$16 sps:$4 sm:$0xff]   ;;  %v7751_v5 = vld [vmem:[%s10725_s1 + $0x720] ss:$16 sps:$4 sm:$0xff]  }
  0xaf   :  { %1743 = vmatpush1.bf16.msra.mxu0 %v7667_v6  ;;  %1907 = vmatpush1.bf16.msra.mxu1 %v7670_v7  ;;  %v7754_v6 = vld [vmem:[%s10725_s1 + $0x728] ss:$16 sps:$4 sm:$0xff]   ;;  %v7759_v7 = vld [vmem:[%s10725_s1 + $0x744] ss:$16 sps:$4 sm:$0xff]  }
  0xb0   :  { %1744 = vmatprep.subr.bf16.mxu0 %v7675_v8  ;;  %1908 = vmatprep.subr.bf16.mxu1 %v7678_v10  ;;  %v7762_v8 = vld [vmem:[%s10725_s1 + $0x74c] ss:$16 sps:$4 sm:$0xff]   ;;  %v7757_v10 = vld [vmem:[%s10725_s1 + $0x740] ss:$16 sps:$4 sm:$0xff]  }
  0xb3   :  { %1745 = vmatpush1.bf16.msra.mxu0 %v7673_v11  ;;  %1909 = vmatpush1.bf16.msra.mxu1 %v7676_v13  ;;  %v7760_v11 = vld [vmem:[%s10725_s1 + $0x748] ss:$16 sps:$4 sm:$0xff]   ;;  %v7765_v13 = vld [vmem:[%s10725_s1 + $0x764] ss:$16 sps:$4 sm:$0xff]  }
  0xb4   :  { %1746 = vmatprep.subr.bf16.mxu0 %v7681_v14  ;;  %1910 = vmatprep.subr.bf16.mxu1 %v7684_v15  ;;  %v7768_v14 = vld [vmem:[%s10725_s1 + $0x76c] ss:$16 sps:$4 sm:$0xff]   ;;  %v7763_v15 = vld [vmem:[%s10725_s1 + $0x760] ss:$16 sps:$4 sm:$0xff]  }
  0xb7   :  { %1747 = vmatpush1.bf16.msra.mxu0 %v7679_v16  ;;  %1911 = vmatpush1.bf16.msra.mxu1 %v7682_v18  ;;  %v7766_v16 = vld [vmem:[%s10725_s1 + $0x768] ss:$16 sps:$4 sm:$0xff]   ;;  %v7771_v18 = vld [vmem:[%s10725_s1 + $0x784] ss:$16 sps:$4 sm:$0xff]  }
  0xb8   :  { %1748 = vmatprep.subr.bf16.mxu0 %v7687_v19  ;;  %1912 = vmatprep.subr.bf16.mxu1 %v7690_v20  ;;  %v7774_v19 = vld [vmem:[%s10725_s1 + $0x78c] ss:$16 sps:$4 sm:$0xff]   ;;  %v7769_v20 = vld [vmem:[%s10725_s1 + $0x780] ss:$16 sps:$4 sm:$0xff]  }
  0xbb   :  { %1749 = vmatpush1.bf16.msra.mxu0 %v7685_v22  ;;  %1913 = vmatpush1.bf16.msra.mxu1 %v7688_v23  ;;  %v7777_v22 = vld [vmem:[%s10725_s1 + $0x7a4] ss:$16 sps:$4 sm:$0xff]   ;;  %v7780_v23 = vld [vmem:[%s10725_s1 + $0x7ac] ss:$16 sps:$4 sm:$0xff]  }
  0xbc   :  { %1750 = vmatprep.subr.bf16.mxu0 %v7693_v24  ;;  %1914 = vmatprep.subr.bf16.mxu1 %v7696_v12  ;;  %v7775_v24 = vld [vmem:[%s10725_s1 + $0x7a0] ss:$16 sps:$4 sm:$0xff]   ;;  %v7778_v12 = vld [vmem:[%s10725_s1 + $0x7a8] ss:$16 sps:$4 sm:$0xff]  }
  0xbf   :  { %1751 = vmatpush1.bf16.msra.mxu0 %v7691_v26  ;;  %1915 = vmatpush1.bf16.msra.mxu1 %v7694_v9  ;;  %v7783_v26 = vld [vmem:[%s10725_s1 + $0x7c4] ss:$16 sps:$4 sm:$0xff]   ;;  %v7786_v9 = vld [vmem:[%s10725_s1 + $0x7cc] ss:$16 sps:$4 sm:$0xff]  }
  0xc0   :  { %1761 = vmatprep.subr.bf16.mxu0 %v7699_v27  ;;  %1925 = vmatprep.subr.bf16.mxu1 %v7702_v28  ;;  %v7781_v27 = vld [vmem:[%s10725_s1 + $0x7c0] ss:$16 sps:$4 sm:$0xff]   ;;  %v7784_v28 = vld [vmem:[%s10725_s1 + $0x7c8] ss:$16 sps:$4 sm:$0xff]  }
  0xc2   :  { %1753 = vmatmul.mubr.bf16.vlgmr.msra.gmra.mrb[0].mxu0 %v76_v32  ;;  %1917 = vmatmul.mubr.bf16.vlgmr.msra.gmra.mrb[0].mxu1 %v76_v32  ;;  %v7790_v32 = vld [vmem:[%s10725_s1 + $0x7e8] ss:$16 sps:$4 sm:$0xff]  }
  0xc3   :  { %1762 = vmatpush1.bf16.msra.mxu0 %v7697_v29  ;;  %1926 = vmatpush1.bf16.msra.mxu1 %v7700_v30  ;;  %v7789_v29 = vld [vmem:[%s10725_s1 + $0x7e4] ss:$16 sps:$4 sm:$0xff]   ;;  %v7792_v30 = vld [vmem:[%s10725_s1 + $0x7ec] ss:$16 sps:$4 sm:$0xff]  }
  0xc4   :  { %1763 = vmatprep.subr.bf16.mxu0 %v7705_v33  ;;  %1927 = vmatprep.subr.bf16.mxu1 %v7708_v34  ;;  %v7795_v33 = vld [vmem:[%s10727_s3 + $0x4] ss:$8 sps:$4 sm:$0xff]   ;;  %v78_v34 = vpack.c.bf16 %v8531_v25, %v8531_v25 }
  0xc5   :  { %1793 = vmatprep.mubr.bf16.mxu0 %v79_v36  ;;  %1957 = vmatprep.mubr.bf16.mxu1 %v79_v36  ;;  %v7796_v36 = vld [vmem:[%s10727_s3 + $0x10] ss:$8 sps:$4 sm:$0xff]   ;;  %v7801_v25 = vld [vmem:[%s10727_s3 + $0x24] ss:$8 sps:$4 sm:$0xff]  }
  0xc7   :  { %1764 = vmatpush1.bf16.msra.mxu0 %v7703_v35  ;;  %1928 = vmatpush1.bf16.msra.mxu1 %v7706_v17  ;;  %v7793_v35 = vld [vmem:[%s10727_s3] ss:$8 sps:$4 sm:$0xff]   ;;  %v7798_v17 = vld [vmem:[%s10727_s3 + $0x14] ss:$8 sps:$4 sm:$0xff]  }
  0xc8   :  { %1765 = vmatprep.subr.bf16.mxu0 %v7711_v37  ;;  %1929 = vmatprep.subr.bf16.mxu1 %v7714_v38  ;;  %v7799_v37 = vld [vmem:[%s10727_s3 + $0x20] ss:$8 sps:$4 sm:$0xff]   ;;  %v7804_v38 = vld [vmem:[%s10727_s3 + $0x34] ss:$8 sps:$4 sm:$0xff]  }
  0xcb   :  { %1766 = vmatpush1.bf16.msra.mxu0 %v7709_v39  ;;  %1930 = vmatpush1.bf16.msra.mxu1 %v7712_v40  ;;  %v7802_v39 = vld [vmem:[%s10727_s3 + $0x30] ss:$8 sps:$4 sm:$0xff]   ;;  %v7807_v40 = vld [vmem:[%s10727_s3 + $0x44] ss:$8 sps:$4 sm:$0xff]  }
  0xcc   :  { %1767 = vmatprep.subr.bf16.mxu0 %v7717_v41  ;;  %1931 = vmatprep.subr.bf16.mxu1 %v7720_v42  ;;  %v7805_v41 = vld [vmem:[%s10727_s3 + $0x40] ss:$8 sps:$4 sm:$0xff]   ;;  %v7810_v42 = vld [vmem:[%s10727_s3 + $0x54] ss:$8 sps:$4 sm:$0xff]  }
  0xcf   :  { %1768 = vmatpush1.bf16.msra.mxu0 %v7715_v44  ;;  %1932 = vmatpush1.bf16.msra.mxu1 %v7718_v45  ;;  %v7808_v44 = vld [vmem:[%s10727_s3 + $0x50] ss:$8 sps:$4 sm:$0xff]   ;;  %v7813_v45 = vld [vmem:[%s10727_s3 + $0x64] ss:$8 sps:$4 sm:$0xff]  }
  0xd0   :  { %1769 = vmatprep.subr.bf16.mxu0 %v7723_v46  ;;  %1933 = vmatprep.subr.bf16.mxu1 %v7726_v47  ;;  %v7811_v46 = vld [vmem:[%s10727_s3 + $0x60] ss:$8 sps:$4 sm:$0xff]   ;;  %v7816_v47 = vld [vmem:[%s10727_s3 + $0x74] ss:$8 sps:$4 sm:$0xff]  }
  0xd3   :  { %1770 = vmatpush1.bf16.msra.mxu0 %v7721_v48  ;;  %1934 = vmatpush1.bf16.msra.mxu1 %v7724_v50  ;;  %v7814_v48 = vld [vmem:[%s10727_s3 + $0x70] ss:$8 sps:$4 sm:$0xff]   ;;  %v7819_v50 = vld [vmem:[%s10727_s3 + $0x84] ss:$8 sps:$4 sm:$0xff]  }
  0xd4   :  { %1771 = vmatprep.subr.bf16.mxu0 %v7729_v51  ;;  %1935 = vmatprep.subr.bf16.mxu1 %v7732_v52  ;;  %v7817_v51 = vld [vmem:[%s10727_s3 + $0x80] ss:$8 sps:$4 sm:$0xff]   ;;  %v7822_v52 = vld [vmem:[%s10727_s3 + $0x94] ss:$8 sps:$4 sm:$0xff]  }
  0xd7   :  { %1772 = vmatpush1.bf16.msra.mxu0 %v7727_v53  ;;  %1936 = vmatpush1.bf16.msra.mxu1 %v7730_v54  ;;  %v7820_v53 = vld [vmem:[%s10727_s3 + $0x90] ss:$8 sps:$4 sm:$0xff]   ;;  %v7825_v54 = vld [vmem:[%s10727_s3 + $0xa4] ss:$8 sps:$4 sm:$0xff]  }
  0xd8   :  { %1773 = vmatprep.subr.bf16.mxu0 %v7735_v55  ;;  %1937 = vmatprep.subr.bf16.mxu1 %v7738_v56  ;;  %v7823_v55 = vld [vmem:[%s10727_s3 + $0xa0] ss:$8 sps:$4 sm:$0xff]   ;;  %v7828_v56 = vld [vmem:[%s10727_s3 + $0xb4] ss:$8 sps:$4 sm:$0xff]  }
  0xdb   :  { %1774 = vmatpush1.bf16.msra.mxu0 %v7733_v57  ;;  %1938 = vmatpush1.bf16.msra.mxu1 %v7736_v58  ;;  %v7826_v57 = vld [vmem:[%s10727_s3 + $0xb0] ss:$8 sps:$4 sm:$0xff]   ;;  %v7831_v58 = vld [vmem:[%s10727_s3 + $0xc4] ss:$8 sps:$4 sm:$0xff]  }
  0xdc   :  { %1775 = vmatprep.subr.bf16.mxu0 %v7741_v59  ;;  %1939 = vmatprep.subr.bf16.mxu1 %v7744_v60  ;;  %v7829_v59 = vld [vmem:[%s10727_s3 + $0xc0] ss:$8 sps:$4 sm:$0xff]   ;;  %v7834_v60 = vld [vmem:[%s10727_s3 + $0xd4] ss:$8 sps:$4 sm:$0xff]  }
  0xdf   :  { %1776 = vmatpush1.bf16.msra.mxu0 %v7739_v61  ;;  %1940 = vmatpush1.bf16.msra.mxu1 %v7742_v62  ;;  %v7832_v61 = vld [vmem:[%s10727_s3 + $0xd0] ss:$8 sps:$4 sm:$0xff]   ;;  %v7837_v62 = vld [vmem:[%s10727_s3 + $0xe4] ss:$8 sps:$4 sm:$0xff]  }
  0xe0   :  { %1777 = vmatprep.subr.bf16.mxu0 %v7747_v63  ;;  %1941 = vmatprep.subr.bf16.mxu1 %v7750_v0  ;;  %v7835_v63 = vld [vmem:[%s10727_s3 + $0xe0] ss:$8 sps:$4 sm:$0xff]   ;;  %v7840_v0 = vld [vmem:[%s10727_s3 + $0xf4] ss:$8 sps:$4 sm:$0xff]  }
  0xe3   :  { %1778 = vmatpush1.bf16.msra.mxu0 %v7745_v1  ;;  %1942 = vmatpush1.bf16.msra.mxu1 %v7748_v2  ;;  %v7838_v1 = vld [vmem:[%s10727_s3 + $0xf0] ss:$8 sps:$4 sm:$0xff]   ;;  %v7843_v2 = vld [vmem:[%s10727_s3 + $0x104] ss:$8 sps:$4 sm:$0xff]  }
  0xe4   :  { %1779 = vmatprep.subr.bf16.mxu0 %v7753_v3  ;;  %1943 = vmatprep.subr.bf16.mxu1 %v7756_v4  ;;  %v2456_v3 = vld [vmem:[%s10728_s5] sm:$0xff] }
  0xe5   :  { %v2472_v4 = vld [vmem:[%s10728_s5 + $0x80] sm:$0xff] }
  0xe7   :  { %1780 = vmatpush1.bf16.msra.mxu0 %v7751_v5  ;;  %1944 = vmatpush1.bf16.msra.mxu1 %v7754_v6  ;;  %v6860_v5 = vcombine.low %v2456_v3, %v2472_v4  ;;  %v6861_v6 = vcombine.high %v2456_v3, %v2472_v4 }
  0xe8   :  { %1781 = vmatprep.subr.bf16.mxu0 %v7759_v7  ;;  %1945 = vmatprep.subr.bf16.mxu1 %v7762_v8  ;;  %v2488_v7 = vld [vmem:[%s10728_s5 + $0x100] sm:$0xff] }
  0xe9   :  { %v2504_v8 = vld [vmem:[%s10728_s5 + $0x180] sm:$0xff] }
  0xeb   :  { %1782 = vmatpush1.bf16.msra.mxu0 %v7757_v10  ;;  %1946 = vmatpush1.bf16.msra.mxu1 %v7760_v11  ;;  %v6893_v10 = vcombine.high %v2488_v7, %v2504_v8  ;;  %v6892_v11 = vcombine.low %v2488_v7, %v2504_v8 }
  0xec   :  { %1783 = vmatprep.subr.bf16.mxu0 %v7765_v13  ;;  %1947 = vmatprep.subr.bf16.mxu1 %v7768_v14  ;;  %v2520_v13 = vld [vmem:[%s10728_s5 + $0x200] sm:$0xff] }
  0xed   :  { %v2536_v14 = vld [vmem:[%s10728_s5 + $0x280] sm:$0xff] }
  0xef   :  { %1784 = vmatpush1.bf16.msra.mxu0 %v7763_v15  ;;  %1948 = vmatpush1.bf16.msra.mxu1 %v7766_v16  ;;  %v6925_v15 = vcombine.high %v2520_v13, %v2536_v14  ;;  %v6924_v16 = vcombine.low %v2520_v13, %v2536_v14 }
  0xf0   :  { %1785 = vmatprep.subr.bf16.mxu0 %v7771_v18  ;;  %1949 = vmatprep.subr.bf16.mxu1 %v7774_v19  ;;  %v2552_v18 = vld [vmem:[%s10728_s5 + $0x300] sm:$0xff] }
  0xf1   :  { %v2568_v19 = vld [vmem:[%s10728_s5 + $0x380] sm:$0xff] }
  0xf3   :  { %1786 = vmatpush1.bf16.msra.mxu0 %v7769_v20  ;;  %1950 = vmatpush1.bf16.msra.mxu1 %v7772_v21  ;;  %v6957_v20 = vcombine.high %v2552_v18, %v2568_v19  ;;  %v6956_v21 = vcombine.low %v2552_v18, %v2568_v19 }
  0xf4   :  { %1787 = vmatprep.subr.bf16.mxu0 %v7777_v22  ;;  %1951 = vmatprep.subr.bf16.mxu1 %v7780_v23  ;;  %v2584_v22 = vld [vmem:[%s10728_s5 + $0x400] sm:$0xff] }
  0xf5   :  { %v2600_v23 = vld [vmem:[%s10728_s5 + $0x480] sm:$0xff] }
  0xf7   :  { %1788 = vmatpush1.bf16.msra.mxu0 %v7775_v24  ;;  %1952 = vmatpush1.bf16.msra.mxu1 %v7778_v12  ;;  %v6989_v24 = vcombine.high %v2584_v22, %v2600_v23  ;;  %v6988_v12 = vcombine.low %v2584_v22, %v2600_v23  ;;  %v7841_v22 = vld [vmem:[%s10727_s3 + $0x100] ss:$8 sps:$4 sm:$0xff]  }
  0xf8   :  { %1789 = vmatprep.subr.bf16.mxu0 %v7783_v26  ;;  %1953 = vmatprep.subr.bf16.mxu1 %v7786_v9  ;;  %v2616_v26 = vld [vmem:[%s10728_s5 + $0x500] sm:$0xff] }
  0xf9   :  { %v2632_v9 = vld [vmem:[%s10728_s5 + $0x580] sm:$0xff] }
  0xfb   :  { %1790 = vmatpush1.bf16.msra.mxu0 %v7781_v27  ;;  %1954 = vmatpush1.bf16.msra.mxu1 %v7784_v28  ;;  %v7021_v27 = vcombine.high %v2616_v26, %v2632_v9  ;;  %v7020_v28 = vcombine.low %v2616_v26, %v2632_v9  ;;  %v7844_v26 = vld [vmem:[%s10727_s3 + $0x110] ss:$8 sps:$4 sm:$0xff]   ;;  %v7849_v9 = vld [vmem:[%s10727_s3 + $0x124] ss:$8 sps:$4 sm:$0xff]  }
  0xfc   :  { %1791 = vmatprep.subr.bf16.mxu0 %v7789_v29  ;;  %1955 = vmatprep.subr.bf16.mxu1 %v7792_v30  ;;  %v2648_v29 = vld [vmem:[%s10728_s5 + $0x600] sm:$0xff] }
  0xfd   :  { %v2664_v30 = vld [vmem:[%s10728_s5 + $0x680] sm:$0xff] }
  0xff   :  { %1792 = vmatpush1.bf16.msra.mxu0 %v7787_v31  ;;  %1956 = vmatpush1.bf16.msra.mxu1 %v7790_v32  ;;  %v7053_v31 = vcombine.high %v2648_v29, %v2664_v30  ;;  %v7052_v32 = vcombine.low %v2648_v29, %v2664_v30  ;;  %v7850_v29 = vld [vmem:[%s10727_s3 + $0x130] ss:$8 sps:$4 sm:$0xff]   ;;  %v7855_v30 = vld [vmem:[%s10727_s3 + $0x144] ss:$8 sps:$4 sm:$0xff]  }
 0x100   :  { %2370 = vmatprep.subr.bf16.mxu0 %v7795_v33  ;;  %5696 = vmatprep.subr.bf16.mxu1 %v6861_v6  ;;  %v2680_v33 = vld [vmem:[%s10728_s5 + $0x700] sm:$0xff] }
 0x102   :  { %1794 = vmatmul.mubr.bf16.vlgmr.msra.gmra.mrb[0].mxu0 %v78_v34  ;;  %1958 = vmatmul.mubr.bf16.vlgmr.msra.gmra.mrb[0].mxu1 %v78_v34  ;;  %v2696_v34 = vld [vmem:[%s10728_s5 + $0x780] sm:$0xff] }
 0x103   :  { %2371 = vmatpush1.bf16.msra.mxu0 %v7793_v35  ;;  %5697 = vmatpush1.bf16.msra.mxu1 %v6860_v5  ;;  %v7085_v35 = vcombine.high %v2680_v33, %v2696_v34 }
 0x104   :  { %2372 = vmatprep.subr.bf16.mxu0 %v7798_v17  ;;  %5698 = vmatprep.subr.bf16.mxu1 %v6893_v10  ;;  %v7084_v17 = vcombine.low %v2680_v33, %v2696_v34  ;;  %v7856_v33 = vld [vmem:[%s10727_s3 + $0x150] ss:$8 sps:$4 sm:$0xff]   ;;  %v7861_v34 = vld [vmem:[%s10727_s3 + $0x164] ss:$8 sps:$4 sm:$0xff]  }
 0x107   :  { %2373 = vmatpush1.bf16.msra.mxu0 %v7796_v36  ;;  %5699 = vmatpush1.bf16.msra.mxu1 %v6892_v11  ;;  %v2712_v36 = vld [vmem:[%s10728_s5 + $0x800] sm:$0xff] }
 0x108   :  { %2374 = vmatprep.subr.bf16.mxu0 %v7801_v25  ;;  %5700 = vmatprep.subr.bf16.mxu1 %v6925_v15  ;;  %v2728_v25 = vld [vmem:[%s10728_s5 + $0x880] sm:$0xff] }
 0x10b   :  { %2375 = vmatpush1.bf16.msra.mxu0 %v7799_v37  ;;  %5701 = vmatpush1.bf16.msra.mxu1 %v6924_v16  ;;  %v7117_v37 = vcombine.high %v2712_v36, %v2728_v25 }
 0x10c   :  { %2376 = vmatprep.subr.bf16.mxu0 %v7804_v38  ;;  %5702 = vmatprep.subr.bf16.mxu1 %v6957_v20  ;;  %v7116_v38 = vcombine.low %v2712_v36, %v2728_v25  ;;  %v7862_v36 = vld [vmem:[%s10727_s3 + $0x170] ss:$8 sps:$4 sm:$0xff]   ;;  %v7867_v25 = vld [vmem:[%s10727_s3 + $0x184] ss:$8 sps:$4 sm:$0xff]  }
 0x10f   :  { %2377 = vmatpush1.bf16.msra.mxu0 %v7802_v39  ;;  %5703 = vmatpush1.bf16.msra.mxu1 %v6956_v21  ;;  %v2744_v39 = vld [vmem:[%s10728_s5 + $0x900] sm:$0xff] }
 0x110   :  { %2378 = vmatprep.subr.bf16.mxu0 %v7807_v40  ;;  %5704 = vmatprep.subr.bf16.mxu1 %v6989_v24  ;;  %v2760_v40 = vld [vmem:[%s10728_s5 + $0x980] sm:$0xff]  ;;  %v7846_v24 = vld [vmem:[%s10727_s3 + $0x114] ss:$8 sps:$4 sm:$0xff]  }
 0x113   :  { %2379 = vmatpush1.bf16.msra.mxu0 %v7805_v41  ;;  %5705 = vmatpush1.bf16.msra.mxu1 %v6988_v12  ;;  %v7149_v41 = vcombine.high %v2744_v39, %v2760_v40 }
 0x114   :  { %2380 = vmatprep.subr.bf16.mxu0 %v7810_v42  ;;  %5706 = vmatprep.subr.bf16.mxu1 %v7021_v27  ;;  %v7148_v42 = vcombine.low %v2744_v39, %v2760_v40  ;;  %v7847_v27 = vld [vmem:[%s10727_s3 + $0x120] ss:$8 sps:$4 sm:$0xff]   ;;  %v7868_v39 = vld [vmem:[%s10727_s3 + $0x190] ss:$8 sps:$4 sm:$0xff]   ;;  %v7873_v40 = vld [vmem:[%s10727_s3 + $0x1a4] ss:$8 sps:$4 sm:$0xff]  }
 0x117   :  { %2381 = vmatpush1.bf16.msra.mxu0 %v7808_v44  ;;  %5707 = vmatpush1.bf16.msra.mxu1 %v7020_v28  ;;  %v2776_v44 = vld [vmem:[%s10728_s5 + $0xa00] sm:$0xff]  ;;  %v7852_v28 = vld [vmem:[%s10727_s3 + $0x134] ss:$8 sps:$4 sm:$0xff]  }
 0x118   :  { %2382 = vmatprep.subr.bf16.mxu0 %v7813_v45  ;;  %5708 = vmatprep.subr.bf16.mxu1 %v7053_v31  ;;  %v2792_v45 = vld [vmem:[%s10728_s5 + $0xa80] sm:$0xff] }
 0x119   :  { %v7853_v31 = vld [vmem:[%s10727_s3 + $0x140] ss:$8 sps:$4 sm:$0xff]  }
 0x11b   :  { %2383 = vmatpush1.bf16.msra.mxu0 %v7811_v46  ;;  %5709 = vmatpush1.bf16.msra.mxu1 %v7052_v32  ;;  %v7181_v46 = vcombine.high %v2776_v44, %v2792_v45  ;;  %v7858_v32 = vld [vmem:[%s10727_s3 + $0x154] ss:$8 sps:$4 sm:$0xff]  }
 0x11c   :  { %2384 = vmatprep.subr.bf16.mxu0 %v7816_v47  ;;  %5710 = vmatprep.subr.bf16.mxu1 %v7085_v35  ;;  %v7180_v47 = vcombine.low %v2776_v44, %v2792_v45  ;;  %v7859_v35 = vld [vmem:[%s10727_s3 + $0x160] ss:$8 sps:$4 sm:$0xff]   ;;  %v7874_v44 = vld [vmem:[%s10727_s3 + $0x1b0] ss:$8 sps:$4 sm:$0xff]   ;;  %v7879_v45 = vld [vmem:[%s10727_s3 + $0x1c4] ss:$8 sps:$4 sm:$0xff]  }
 0x11f   :  { %2385 = vmatpush1.bf16.msra.mxu0 %v7814_v48  ;;  %5711 = vmatpush1.bf16.msra.mxu1 %v7084_v17  ;;  %v2808_v48 = vld [vmem:[%s10728_s5 + $0xb00] sm:$0xff]  ;;  %v7864_v17 = vld [vmem:[%s10727_s3 + $0x174] ss:$8 sps:$4 sm:$0xff]  }
 0x120   :  { %2386 = vmatprep.subr.bf16.mxu0 %v7819_v50  ;;  %5712 = vmatprep.subr.bf16.mxu1 %v7117_v37  ;;  %v2824_v50 = vld [vmem:[%s10728_s5 + $0xb80] sm:$0xff] }
 0x121   :  { %v7865_v37 = vld [vmem:[%s10727_s3 + $0x180] ss:$8 sps:$4 sm:$0xff]  }
 0x123   :  { %2387 = vmatpush1.bf16.msra.mxu0 %v7817_v51  ;;  %5713 = vmatpush1.bf16.msra.mxu1 %v7116_v38  ;;  %v7213_v51 = vcombine.high %v2808_v48, %v2824_v50  ;;  %v7870_v38 = vld [vmem:[%s10727_s3 + $0x194] ss:$8 sps:$4 sm:$0xff]  }
 0x124   :  { %2388 = vmatprep.subr.bf16.mxu0 %v7822_v52  ;;  %5714 = vmatprep.subr.bf16.mxu1 %v7149_v41  ;;  %v7212_v52 = vcombine.low %v2808_v48, %v2824_v50  ;;  %v7871_v41 = vld [vmem:[%s10727_s3 + $0x1a0] ss:$8 sps:$4 sm:$0xff]   ;;  %v7882_v48 = vld [vmem:[%s10727_s3 + $0x1d4] ss:$8 sps:$4 sm:$0xff]   ;;  %v7880_v50 = vld [vmem:[%s10727_s3 + $0x1d0] ss:$8 sps:$4 sm:$0xff]  }
 0x127   :  { %2389 = vmatpush1.bf16.msra.mxu0 %v7820_v53  ;;  %5715 = vmatpush1.bf16.msra.mxu1 %v7148_v42  ;;  %v2840_v53 = vld [vmem:[%s10728_s5 + $0xc00] sm:$0xff]  ;;  %v7876_v42 = vld [vmem:[%s10727_s3 + $0x1b4] ss:$8 sps:$4 sm:$0xff]  }
 0x128   :  { %2390 = vmatprep.subr.bf16.mxu0 %v7825_v54  ;;  %5716 = vmatprep.subr.bf16.mxu1 %v7181_v46  ;;  %v2856_v54 = vld [vmem:[%s10728_s5 + $0xc80] sm:$0xff] }
 0x129   :  { %v7877_v46 = vld [vmem:[%s10727_s3 + $0x1c0] ss:$8 sps:$4 sm:$0xff]  }
 0x12b   :  { %2391 = vmatpush1.bf16.msra.mxu0 %v7823_v55  ;;  %5717 = vmatpush1.bf16.msra.mxu1 %v7180_v47  ;;  %v7245_v55 = vcombine.high %v2840_v53, %v2856_v54  ;;  %v9018_v47 = vsub.s32 2, %v8048_v43 }
 0x12c   :  { %2392 = vmatprep.subr.bf16.mxu0 %v7828_v56  ;;  %5718 = vmatprep.subr.bf16.mxu1 %v7213_v51  ;;  %v8915_v56 = vsub.s32 0, %v8048_v43 }
 0x12f   :  { %2393 = vmatpush1.bf16.msra.mxu0 %v7826_v57  ;;  %v8920_v57 = vld [vmem:[%s10729_s2] sm:$0xf]  ;;  %5719 = vmatpush1.bf16.msra.mxu1 %v7212_v52  ;;  %v7885_v52 = vld [vmem:[%s10727_s3 + $0x1e4] ss:$8 sps:$4 sm:$0xff]  }
 0x130   :  { %2394 = vmatprep.subr.bf16.mxu0 %v7831_v58  ;;  %v8923_v58 = vsub.s32 1, %v8048_v43  ;;  %5720 = vmatprep.subr.bf16.mxu1 %v7245_v55  ;;  %v349_v51 = vrot.slane %v8920_v57, %v9018_v47  ;;  %v7888_v55 = vld [vmem:[%s10727_s3 + $0x1f4] ss:$8 sps:$4 sm:$0xff]  }
 0x133   :  { %2395 = vmatpush1.bf16.msra.mxu0 %v7829_v59  ;;  %v8926_v59 = vsub.s32 3, %v8048_v43 }
 0x134   :  { %2396 = vmatprep.subr.bf16.mxu0 %v7834_v60  ;;  %v7244_v60 = vcombine.low %v2840_v53, %v2856_v54  ;;  %v7883_v53 = vld [vmem:[%s10727_s3 + $0x1e0] ss:$8 sps:$4 sm:$0xff]  }
 0x136   :  { %5721 = vmatpush1.bf16.msra.mxu1 %v7244_v60  ;;  %v2474_v60 = vld [vmem:[%s10728_s5 + $0x90] sm:$0xff] }
 0x137   :  { %2397 = vmatpush1.bf16.msra.mxu0 %v7832_v61  ;;  %v2872_v61 = vld [vmem:[%s10728_s5 + $0xd00] sm:$0xff] }
 0x138   :  { %2398 = vmatprep.subr.bf16.mxu0 %v7837_v62  ;;  %v2888_v62 = vld [vmem:[%s10728_s5 + $0xd80] sm:$0xff] }
 0x139   :  { %v7276_v3 = vcombine.low %v2872_v61, %v2888_v62 }
 0x13b   :  { %2399 = vmatpush1.bf16.msra.mxu0 %v7835_v63  ;;  %v7277_v63 = vcombine.high %v2872_v61, %v2888_v62  ;;  %v7886_v61 = vld [vmem:[%s10727_s3 + $0x1f0] ss:$8 sps:$4 sm:$0xff]  }
 0x13c   :  { %2400 = vmatprep.subr.bf16.mxu0 %v7840_v0  ;;  %v341_v0 = vrot.slane %v8920_v57, %v8915_v56 }
 0x13d   :  { %5722 = vmatprep.subr.bf16.mxu1 %v7277_v63 }
 0x13e   :  { %5723 = vmatpush1.bf16.msra.mxu1 %v7276_v3 }
 0x13f   :  { %2401 = vmatpush1.bf16.msra.mxu0 %v7838_v1  ;;  %v345_v1 = vrot.slane %v8920_v57, %v8923_v58 }
 0x140   :  { %2411 = vmatprep.subr.bf16.mxu0 %v7843_v2  ;;  %v353_v2 = vrot.slane %v8920_v57, %v8926_v59  ;;  %v2458_v57 = vld [vmem:[%s10728_s5 + $0x10] sm:$0xff] }
 0x141   :  { %v6865_v63 = vcombine.high %v2458_v57, %v2474_v60 }
 0x1d5   :  { %v1795_v4 = vpop.f32.mrb[0].mxu0  ;;  %v8940_v5 = vpop.f32.mrb[0].mxu1 }
 0x1d6   :  { %v7372_v6 = vadd.f32 %v1795_v4, %v341_v0  ;;  %v1797_v7 = vpop.f32.mrb[1].mxu0  ;;  %v1961_v8 = vpop.f32.mrb[1].mxu1  ;;  %v7374_v54 = vadd.f32 %v8940_v5, %v349_v51  ;;  %v2490_v0 = vld [vmem:[%s10728_s5 + $0x110] sm:$0xff] }
 0x1d7   :  { %v7373_v10 = vadd.f32 %v1797_v7, %v345_v1  ;;  %v7375_v11 = vadd.f32 %v1961_v8, %v353_v2  ;;  %v1799_v13 = vpop.f32.mrb[2].mxu0  ;;  %v1963_v14 = vpop.f32.mrb[2].mxu1  ;;  %v2506_v1 = vld [vmem:[%s10728_s5 + $0x190] sm:$0xff]  ;;  %v6864_v2 = vcombine.low %v2458_v57, %v2474_v60  ;;  %v2904_v60 = vld [vmem:[%s10728_s5 + $0xe00] sm:$0xff] }
 0x1d8   :  { %v1966_v15 = vmax.f32 %v7372_v6, 0.0  ;;  %v1800_v16 = vpop.f32.mrb[3].mxu0  ;;  %v1964_v18 = vpop.f32.mrb[3].mxu1  ;;  %v1968_v62 = vmax.f32 %v7374_v54, 0.0  ;;  %v6897_v4 = vcombine.high %v2490_v0, %v2506_v1  ;;  %v2522_v5 = vld [vmem:[%s10728_s5 + $0x210] sm:$0xff]  ;;  %v6896_v7 = vcombine.low %v2490_v0, %v2506_v1 }
 0x1d9   :  { %v1967_v19 = vmax.f32 %v7373_v10, 0.0  ;;  %v1969_v20 = vmax.f32 %v7375_v11, 0.0  ;;  %v2538_v6 = vld [vmem:[%s10728_s5 + $0x290] sm:$0xff] }
 0x1da   :  { %v1970_v23 = vpack.c.bf16 %v1966_v15, %v1966_v15  ;;  %v1972_v3 = vpack.c.bf16 %v1968_v62, %v1968_v62  ;;  %v6929_v8 = vcombine.high %v2522_v5, %v2538_v6  ;;  %v2554_v10 = vld [vmem:[%s10728_s5 + $0x310] sm:$0xff]  ;;  %v6928_v13 = vcombine.low %v2522_v5, %v2538_v6  ;;  %v2952_v5 = vld [vmem:[%s10728_s5 + $0xf80] sm:$0xff] }
 0x1db   :  { %v1971_v21 = vpack.c.bf16 %v1967_v19, %v1967_v19  ;;  %v1973_v12 = vpack.c.bf16 %v1969_v20, %v1969_v20  ;;  %v2570_v11 = vld [vmem:[%s10728_s5 + $0x390] sm:$0xff] }
 0x1dc   :  { %v6961_v14 = vcombine.high %v2554_v10, %v2570_v11  ;;  %v2586_v15 = vld [vmem:[%s10728_s5 + $0x410] sm:$0xff]  ;;  %v6960_v18 = vcombine.low %v2554_v10, %v2570_v11 }
 0x1dd   :  { %2402 = vmatprep.mubr.bf16.mxu0 %v1971_v21  ;;  %v2602_v16 = vld [vmem:[%s10728_s5 + $0x490] sm:$0xff] }
 0x1de   :  { %2403 = vmatmul.mubr.bf16.vlgmr.msra.gmra.mrb[4].mxu0 %v1970_v23  ;;  %v6993_v19 = vcombine.high %v2586_v15, %v2602_v16  ;;  %v2618_v20 = vld [vmem:[%s10728_s5 + $0x510] sm:$0xff] }
 0x1df   :  { %2412 = vmatpush1.bf16.msra.mxu0 %v7841_v22  ;;  %2443 = vmatprep.mubr.bf16.mxu0 %v1973_v12  ;;  %v2634_v21 = vld [vmem:[%s10728_s5 + $0x590] sm:$0xff]  ;;  %v6992_v22 = vcombine.low %v2586_v15, %v2602_v16  ;;  %v2473_v15 = vld [vmem:[%s10728_s5 + $0x88] sm:$0xff]  ;;  %v2460_v16 = vld [vmem:[%s10728_s5 + $0x20] sm:$0xff] }
 0x1e0   :  { %2413 = vmatprep.subr.bf16.mxu0 %v7846_v24  ;;  %v7025_v23 = vcombine.high %v2618_v20, %v2634_v21  ;;  %v2650_v24 = vld [vmem:[%s10728_s5 + $0x610] sm:$0xff] }
 0x1e1   :  { %v2666_v12 = vld [vmem:[%s10728_s5 + $0x690] sm:$0xff] }
 0x1e2   :  { %v2906_v62 = vld [vmem:[%s10728_s5 + $0xe10] sm:$0xff] }
 0x1e3   :  { %2414 = vmatpush1.bf16.msra.mxu0 %v7844_v26  ;;  %v7024_v26 = vcombine.low %v2618_v20, %v2634_v21  ;;  %v2922_v0 = vld [vmem:[%s10728_s5 + $0xe90] sm:$0xff] }
 0x1e4   :  { %2415 = vmatprep.subr.bf16.mxu0 %v7849_v9  ;;  %v7057_v9 = vcombine.high %v2650_v24, %v2666_v12  ;;  %v2938_v6 = vld [vmem:[%s10728_s5 + $0xf10] sm:$0xff] }
 0x1e7   :  { %2416 = vmatpush1.bf16.msra.mxu0 %v7847_v27  ;;  %v2682_v27 = vld [vmem:[%s10728_s5 + $0x710] sm:$0xff] }
 0x1e8   :  { %2417 = vmatprep.subr.bf16.mxu0 %v7852_v28  ;;  %v2698_v28 = vld [vmem:[%s10728_s5 + $0x790] sm:$0xff] }
 0x1eb   :  { %2418 = vmatpush1.bf16.msra.mxu0 %v7850_v29  ;;  %v7056_v29 = vcombine.low %v2650_v24, %v2666_v12 }
 0x1ec   :  { %2419 = vmatprep.subr.bf16.mxu0 %v7855_v30  ;;  %v7089_v30 = vcombine.high %v2682_v27, %v2698_v28 }
 0x1ef   :  { %2420 = vmatpush1.bf16.msra.mxu0 %v7853_v31  ;;  %v2714_v31 = vld [vmem:[%s10728_s5 + $0x810] sm:$0xff] }
 0x1f0   :  { %2421 = vmatprep.subr.bf16.mxu0 %v7858_v32  ;;  %v2730_v32 = vld [vmem:[%s10728_s5 + $0x890] sm:$0xff] }
 0x1f3   :  { %2422 = vmatpush1.bf16.msra.mxu0 %v7856_v33  ;;  %v7088_v33 = vcombine.low %v2682_v27, %v2698_v28 }
 0x1f4   :  { %2423 = vmatprep.subr.bf16.mxu0 %v7861_v34  ;;  %v7121_v34 = vcombine.high %v2714_v31, %v2730_v32 }
 0x1f7   :  { %2424 = vmatpush1.bf16.msra.mxu0 %v7859_v35  ;;  %v2746_v35 = vld [vmem:[%s10728_s5 + $0x910] sm:$0xff] }
 0x1f8   :  { %2425 = vmatprep.subr.bf16.mxu0 %v7864_v17  ;;  %v2762_v17 = vld [vmem:[%s10728_s5 + $0x990] sm:$0xff] }
 0x1fb   :  { %2426 = vmatpush1.bf16.msra.mxu0 %v7862_v36  ;;  %v7120_v36 = vcombine.low %v2714_v31, %v2730_v32 }
 0x1fc   :  { %2427 = vmatprep.subr.bf16.mxu0 %v7867_v25  ;;  %v7153_v25 = vcombine.high %v2746_v35, %v2762_v17 }
 0x1ff   :  { %2428 = vmatpush1.bf16.msra.mxu0 %v7865_v37  ;;  %v2778_v37 = vld [vmem:[%s10728_s5 + $0xa10] sm:$0xff] }
 0x200   :  { %2429 = vmatprep.subr.bf16.mxu0 %v7870_v38  ;;  %v2794_v38 = vld [vmem:[%s10728_s5 + $0xa90] sm:$0xff] }
 0x203   :  { %2430 = vmatpush1.bf16.msra.mxu0 %v7868_v39  ;;  %v7152_v39 = vcombine.low %v2746_v35, %v2762_v17  ;;  %v2492_v35 = vld [vmem:[%s10728_s5 + $0x120] sm:$0xff] }
 0x204   :  { %2431 = vmatprep.subr.bf16.mxu0 %v7873_v40  ;;  %v7185_v40 = vcombine.high %v2778_v37, %v2794_v38  ;;  %v2508_v17 = vld [vmem:[%s10728_s5 + $0x1a0] sm:$0xff] }
 0x207   :  { %2432 = vmatpush1.bf16.msra.mxu0 %v7871_v41  ;;  %v2810_v41 = vld [vmem:[%s10728_s5 + $0xb10] sm:$0xff] }
 0x208   :  { %2433 = vmatprep.subr.bf16.mxu0 %v7876_v42  ;;  %v2826_v42 = vld [vmem:[%s10728_s5 + $0xb90] sm:$0xff] }
 0x20b   :  { %2434 = vmatpush1.bf16.msra.mxu0 %v7874_v44  ;;  %v7184_v44 = vcombine.low %v2778_v37, %v2794_v38  ;;  %v2521_v37 = vld [vmem:[%s10728_s5 + $0x208] sm:$0xff] }
 0x20c   :  { %2435 = vmatprep.subr.bf16.mxu0 %v7879_v45  ;;  %v7217_v45 = vcombine.high %v2810_v41, %v2826_v42 }
 0x20f   :  { %2436 = vmatpush1.bf16.msra.mxu0 %v7877_v46  ;;  %v2842_v46 = vld [vmem:[%s10728_s5 + $0xc10] sm:$0xff] }
 0x210   :  { %2437 = vmatprep.subr.bf16.mxu0 %v7882_v48  ;;  %v2858_v48 = vld [vmem:[%s10728_s5 + $0xc90] sm:$0xff] }
 0x211   :  { %v7249_v51 = vcombine.high %v2842_v46, %v2858_v48  ;;  %v7248_v54 = vcombine.low %v2842_v46, %v2858_v48 }
 0x213   :  { %2438 = vmatpush1.bf16.msra.mxu0 %v7880_v50  ;;  %v7216_v50 = vcombine.low %v2810_v41, %v2826_v42  ;;  %v2524_v41 = vld [vmem:[%s10728_s5 + $0x220] sm:$0xff] }
 0x214   :  { %2439 = vmatprep.subr.bf16.mxu0 %v7885_v52  ;;  %v2874_v52 = vld [vmem:[%s10728_s5 + $0xd10] sm:$0xff]  ;;  %v2540_v42 = vld [vmem:[%s10728_s5 + $0x2a0] sm:$0xff] }
 0x215   :  { %v6933_v48 = vcombine.high %v2524_v41, %v2540_v42 }
 0x217   :  { %2440 = vmatpush1.bf16.msra.mxu0 %v7883_v53  ;;  %v2890_v53 = vld [vmem:[%s10728_s5 + $0xd90] sm:$0xff] }
 0x218   :  { %2441 = vmatprep.subr.bf16.mxu0 %v7888_v55  ;;  %v7281_v55 = vcombine.high %v2874_v52, %v2890_v53  ;;  %v7280_v57 = vcombine.low %v2874_v52, %v2890_v53  ;;  %v2556_v52 = vld [vmem:[%s10728_s5 + $0x320] sm:$0xff] }
 0x219   :  { %v2572_v53 = vld [vmem:[%s10728_s5 + $0x3a0] sm:$0xff] }
 0x21b   :  { %2442 = vmatpush1.bf16.msra.mxu0 %v7886_v61  ;;  %v2920_v61 = vld [vmem:[%s10728_s5 + $0xe80] sm:$0xff] }
 0x21c   :  { %5778 = vmatprep.subr.bf16.mxu0 %v6865_v63  ;;  %v7309_v63 = vcombine.high %v2904_v60, %v2920_v61  ;;  %v7308_v1 = vcombine.low %v2904_v60, %v2920_v61  ;;  %v6965_v60 = vcombine.high %v2556_v52, %v2572_v53  ;;  %v2585_v61 = vld [vmem:[%s10728_s5 + $0x408] sm:$0xff] }
 0x21e   :  { %2444 = vmatmul.mubr.bf16.vlgmr.msra.gmra.mrb[4].mxu0 %v1972_v3  ;;  %v7313_v3 = vcombine.high %v2906_v62, %v2922_v0  ;;  %5724 = vmatprep.subr.bf16.mxu1 %v7309_v63  ;;  %v2588_v63 = vld [vmem:[%s10728_s5 + $0x420] sm:$0xff] }
 0x21f   :  { %5779 = vmatpush1.bf16.msra.mxu0 %v6864_v2  ;;  %v7312_v2 = vcombine.low %v2906_v62, %v2922_v0  ;;  %5725 = vmatpush1.bf16.msra.mxu1 %v7308_v1  ;;  %v2601_v62 = vld [vmem:[%s10728_s5 + $0x488] sm:$0xff]  ;;  %v2604_v0 = vld [vmem:[%s10728_s5 + $0x4a0] sm:$0xff] }
 0x220   :  { %5780 = vmatprep.subr.bf16.mxu0 %v6897_v4  ;;  %v2936_v4 = vld [vmem:[%s10728_s5 + $0xf00] sm:$0xff] }
 0x221   :  { %v7340_v10 = vcombine.low %v2936_v4, %v2952_v5 }
 0x223   :  { %5781 = vmatpush1.bf16.msra.mxu0 %v6896_v7  ;;  %v7341_v7 = vcombine.high %v2936_v4, %v2952_v5  ;;  %v6997_v4 = vcombine.high %v2588_v63, %v2604_v0  ;;  %v2617_v5 = vld [vmem:[%s10728_s5 + $0x508] sm:$0xff] }
 0x224   :  { %5782 = vmatprep.subr.bf16.mxu0 %v6929_v8  ;;  %v2954_v8 = vld [vmem:[%s10728_s5 + $0xf90] sm:$0xff] }
 0x225   :  { %v7344_v11 = vcombine.low %v2938_v6, %v2954_v8  ;;  %5726 = vmatprep.subr.bf16.mxu1 %v7341_v7  ;;  %v2620_v7 = vld [vmem:[%s10728_s5 + $0x520] sm:$0xff] }
 0x226   :  { %5727 = vmatpush1.bf16.msra.mxu1 %v7340_v10  ;;  %v6990_v10 = vcombine.low %v2585_v61, %v2601_v62 }
 0x227   :  { %5783 = vmatpush1.bf16.msra.mxu0 %v6928_v13  ;;  %v7345_v13 = vcombine.high %v2938_v6, %v2954_v8  ;;  %v2633_v6 = vld [vmem:[%s10728_s5 + $0x588] sm:$0xff]  ;;  %v2636_v8 = vld [vmem:[%s10728_s5 + $0x5a0] sm:$0xff] }
 0x228   :  { %5784 = vmatprep.subr.bf16.mxu0 %v6961_v14  ;;  %v2457_v14 = vld [vmem:[%s10728_s5 + $0x8] sm:$0xff] }
 0x229   :  { %v6862_v20 = vcombine.low %v2457_v14, %v2473_v15 }
 0x22b   :  { %5785 = vmatpush1.bf16.msra.mxu0 %v6960_v18  ;;  %v6863_v18 = vcombine.high %v2457_v14, %v2473_v15  ;;  %v7029_v14 = vcombine.high %v2620_v7, %v2636_v8  ;;  %v2649_v15 = vld [vmem:[%s10728_s5 + $0x608] sm:$0xff] }
 0x22c   :  { %5786 = vmatprep.subr.bf16.mxu0 %v6993_v19  ;;  %v2476_v19 = vld [vmem:[%s10728_s5 + $0xa0] sm:$0xff] }
 0x22d   :  { %v6868_v21 = vcombine.low %v2460_v16, %v2476_v19  ;;  %5737 = vmatprep.subr.bf16.mxu1 %v6863_v18  ;;  %v2652_v18 = vld [vmem:[%s10728_s5 + $0x620] sm:$0xff] }
 0x22f   :  { %5787 = vmatpush1.bf16.msra.mxu0 %v6992_v22  ;;  %v6869_v22 = vcombine.high %v2460_v16, %v2476_v19  ;;  %v2665_v16 = vld [vmem:[%s10728_s5 + $0x688] sm:$0xff]  ;;  %v2668_v19 = vld [vmem:[%s10728_s5 + $0x6a0] sm:$0xff] }
 0x230   :  { %5788 = vmatprep.subr.bf16.mxu0 %v7025_v23  ;;  %v2038_v23 = vld [vmem:[%s10730_s4] sm:$0x3] }
 0x231   :  { %v2043_v24 = vrot.slane %v2038_v23, %v8915_v56  ;;  %v2047_v12 = vrot.slane %v2038_v23, %v8923_v58  ;;  %v7061_v23 = vcombine.high %v2652_v18, %v2668_v19 }
 0x233   :  { %5789 = vmatpush1.bf16.msra.mxu0 %v7024_v26 }
 0x234   :  { %5790 = vmatprep.subr.bf16.mxu0 %v7057_v9 }
 0x237   :  { %5791 = vmatpush1.bf16.msra.mxu0 %v7056_v29 }
 0x238   :  { %5792 = vmatprep.subr.bf16.mxu0 %v7089_v30 }
 0x23b   :  { %5793 = vmatpush1.bf16.msra.mxu0 %v7088_v33  ;;  %v2489_v33 = vld [vmem:[%s10728_s5 + $0x108] sm:$0xff] }
 0x23c   :  { %5794 = vmatprep.subr.bf16.mxu0 %v7121_v34  ;;  %v2505_v34 = vld [vmem:[%s10728_s5 + $0x188] sm:$0xff] }
 0x23d   :  { %v6895_v38 = vcombine.high %v2489_v33, %v2505_v34 }
 0x23f   :  { %5795 = vmatpush1.bf16.msra.mxu0 %v7120_v36 }
 0x240   :  { %5796 = vmatprep.subr.bf16.mxu0 %v7153_v25 }
 0x243   :  { %5797 = vmatpush1.bf16.msra.mxu0 %v7152_v39  ;;  %v6901_v39 = vcombine.high %v2492_v35, %v2508_v17 }
 0x244   :  { %5798 = vmatprep.subr.bf16.mxu0 %v7185_v40  ;;  %v2537_v40 = vld [vmem:[%s10728_s5 + $0x288] sm:$0xff] }
 0x245   :  { %v6927_v46 = vcombine.high %v2521_v37, %v2537_v40 }
 0x247   :  { %5799 = vmatpush1.bf16.msra.mxu0 %v7184_v44  ;;  %v6894_v44 = vcombine.low %v2489_v33, %v2505_v34  ;;  %v2716_v33 = vld [vmem:[%s10728_s5 + $0x820] sm:$0xff] }
 0x248   :  { %5800 = vmatprep.subr.bf16.mxu0 %v7217_v45  ;;  %v6900_v45 = vcombine.low %v2492_v35, %v2508_v17  ;;  %v2732_v34 = vld [vmem:[%s10728_s5 + $0x8a0] sm:$0xff] }
 0x24b   :  { %5801 = vmatpush1.bf16.msra.mxu0 %v7216_v50  ;;  %v2553_v50 = vld [vmem:[%s10728_s5 + $0x308] sm:$0xff] }
 0x24c   :  { %5802 = vmatprep.subr.bf16.mxu0 %v7249_v51  ;;  %v2569_v51 = vld [vmem:[%s10728_s5 + $0x388] sm:$0xff] }
 0x24d   :  { %v6958_v1 = vcombine.low %v2553_v50, %v2569_v51 }
 0x24f   :  { %5803 = vmatpush1.bf16.msra.mxu0 %v7248_v54  ;;  %v6926_v54 = vcombine.low %v2521_v37, %v2537_v40  ;;  %v2761_v40 = vld [vmem:[%s10728_s5 + $0x988] sm:$0xff] }
 0x250   :  { %5804 = vmatprep.subr.bf16.mxu0 %v7281_v55  ;;  %v6932_v55 = vcombine.low %v2524_v41, %v2540_v42  ;;  %v2748_v41 = vld [vmem:[%s10728_s5 + $0x920] sm:$0xff] }
 0x251   :  { %v2764_v42 = vld [vmem:[%s10728_s5 + $0x9a0] sm:$0xff] }
 0x253   :  { %5805 = vmatpush1.bf16.msra.mxu0 %v7280_v57  ;;  %v6959_v57 = vcombine.high %v2553_v50, %v2569_v51  ;;  %v2777_v50 = vld [vmem:[%s10728_s5 + $0xa08] sm:$0xff] }
 0x254   :  { %5806 = vmatprep.subr.bf16.mxu0 %v7313_v3  ;;  %v6991_v3 = vcombine.high %v2585_v61, %v2601_v62  ;;  %v2793_v51 = vld [vmem:[%s10728_s5 + $0xa88] sm:$0xff] }
 0x255   :  { %v2809_v61 = vld [vmem:[%s10728_s5 + $0xb08] sm:$0xff] }
 0x256   :  { %v2825_v62 = vld [vmem:[%s10728_s5 + $0xb88] sm:$0xff] }
 0x257   :  { %5807 = vmatpush1.bf16.msra.mxu0 %v7312_v2  ;;  %v6964_v2 = vcombine.low %v2556_v52, %v2572_v53  ;;  %v2780_v52 = vld [vmem:[%s10728_s5 + $0xa20] sm:$0xff] }
 0x258   :  { %5808 = vmatprep.subr.bf16.mxu0 %v7345_v13  ;;  %v7023_v13 = vcombine.high %v2617_v5, %v2633_v6  ;;  %v2796_v53 = vld [vmem:[%s10728_s5 + $0xaa0] sm:$0xff] }
 0x25b   :  { %5809 = vmatpush1.bf16.msra.mxu0 %v7344_v11  ;;  %v6996_v11 = vcombine.low %v2588_v63, %v2604_v0  ;;  %v2812_v63 = vld [vmem:[%s10728_s5 + $0xb20] sm:$0xff] }
 0x25c   :  { %5860 = vmatprep.subr.bf16.mxu0 %v6869_v22  ;;  %v7055_v22 = vcombine.high %v2649_v15, %v2665_v16  ;;  %v2828_v0 = vld [vmem:[%s10728_s5 + $0xba0] sm:$0xff] }
 0x2f1   :  { %v2445_v26 = vpop.f32.mrb[4].mxu0 }
 0x2f2   :  { %v7376_v9 = vadd.f32 %v2445_v26, %v2043_v24  ;;  %v2447_v27 = vpop.f32.mrb[5].mxu0  ;;  %v2681_v24 = vld [vmem:[%s10728_s5 + $0x708] sm:$0xff]  ;;  %v2684_v26 = vld [vmem:[%s10728_s5 + $0x720] sm:$0xff] }
 0x2f3   :  { %v7377_v28 = vadd.f32 %v2447_v27, %v2047_v12  ;;  %v2449_v29 = vpop.f32.mrb[6].mxu0  ;;  %v2697_v12 = vld [vmem:[%s10728_s5 + $0x788] sm:$0xff]  ;;  %v7054_v27 = vcombine.low %v2649_v15, %v2665_v16 }
 0x2f4   :  { %v2452_v30 = vmax.f32 %v7376_v9, 0.0  ;;  %v2450_v31 = vpop.f32.mrb[7].mxu0  ;;  %v2700_v9 = vld [vmem:[%s10728_s5 + $0x7a0] sm:$0xff]  ;;  %v7087_v29 = vcombine.high %v2681_v24, %v2697_v12  ;;  %v7086_v35 = vcombine.low %v2681_v24, %v2697_v12  ;;  %v2873_v15 = vld [vmem:[%s10728_s5 + $0xd08] sm:$0xff] }
 0x2f5   :  { %v2453_v32 = vmax.f32 %v7377_v28, 0.0  ;;  %v7060_v28 = vcombine.low %v2652_v18, %v2668_v19  ;;  %v2713_v31 = vld [vmem:[%s10728_s5 + $0x808] sm:$0xff]  ;;  %v7092_v17 = vcombine.low %v2684_v26, %v2700_v9  ;;  %v2876_v18 = vld [vmem:[%s10728_s5 + $0xd20] sm:$0xff] }
 0x2f6   :  { %v9180_v25 = vpack.c.bf16 %v2452_v30, %v2452_v30  ;;  %v7093_v30 = vcombine.high %v2684_v26, %v2700_v9  ;;  %v2889_v16 = vld [vmem:[%s10728_s5 + $0xd88] sm:$0xff]  ;;  %v2892_v19 = vld [vmem:[%s10728_s5 + $0xda0] sm:$0xff] }
 0x2f7   :  { %v9178_v36 = vpack.c.bf16 %v2453_v32, %v2453_v32  ;;  %v2729_v32 = vld [vmem:[%s10728_s5 + $0x888] sm:$0xff]  ;;  %v2908_v26 = vld [vmem:[%s10728_s5 + $0xe20] sm:$0xff] }
 0x2f8   :  { %v7119_v37 = vcombine.high %v2713_v31, %v2729_v32  ;;  %v2905_v24 = vld [vmem:[%s10728_s5 + $0xe08] sm:$0xff]  ;;  %v2924_v9 = vld [vmem:[%s10728_s5 + $0xea0] sm:$0xff] }
 0x2f9   :  { %5728 = vmatprep.mubr.bf16.mxu1 %v9178_v36  ;;  %5810 = vmatprep.mubr.bf16.mxu0 %v9178_v36  ;;  %v2921_v12 = vld [vmem:[%s10728_s5 + $0xe88] sm:$0xff] }
 0x2fa   :  { %5729 = vmatmul.mubr.bf16.vlgmr.msra.gmra.mrb[4].mxu1 %v9180_v25  ;;  %5811 = vmatmul.mubr.bf16.vlgmr.msra.gmra.mrb[8].mxu0 %v9180_v25 }
 0x2fb   :  { %5738 = vmatpush1.bf16.msra.mxu1 %v6862_v20  ;;  %5861 = vmatpush1.bf16.msra.mxu0 %v6868_v21  ;;  %v7022_v20 = vcombine.low %v2617_v5, %v2633_v6  ;;  %v7028_v21 = vcombine.low %v2620_v7, %v2636_v8  ;;  %v2841_v5 = vld [vmem:[%s10728_s5 + $0xc08] sm:$0xff]  ;;  %v2844_v7 = vld [vmem:[%s10728_s5 + $0xc20] sm:$0xff] }
 0x2fc   :  { %5769 = vmatprep.mubr.bf16.mxu1 %v9178_v36  ;;  %5892 = vmatprep.mubr.bf16.mxu0 %v9178_v36  ;;  %v2857_v6 = vld [vmem:[%s10728_s5 + $0xc88] sm:$0xff]  ;;  %v2860_v8 = vld [vmem:[%s10728_s5 + $0xca0] sm:$0xff] }
 0x2fd   :  { %5739 = vmatprep.subr.bf16.mxu1 %v6895_v38  ;;  %5862 = vmatprep.subr.bf16.mxu0 %v6901_v39  ;;  %v7125_v38 = vcombine.high %v2716_v33, %v2732_v34  ;;  %v2745_v39 = vld [vmem:[%s10728_s5 + $0x908] sm:$0xff] }
 0x2ff   :  { %5740 = vmatpush1.bf16.msra.mxu1 %v6894_v44  ;;  %5863 = vmatpush1.bf16.msra.mxu0 %v6900_v45  ;;  %v7118_v44 = vcombine.low %v2713_v31, %v2729_v32  ;;  %v7124_v45 = vcombine.low %v2716_v33, %v2732_v34  ;;  %v2937_v31 = vld [vmem:[%s10728_s5 + $0xf08] sm:$0xff]  ;;  %v2940_v33 = vld [vmem:[%s10728_s5 + $0xf20] sm:$0xff] }
 0x300   :  { %5741 = vmatprep.subr.bf16.mxu1 %v6927_v46  ;;  %5864 = vmatprep.subr.bf16.mxu0 %v6933_v48  ;;  %v7151_v46 = vcombine.high %v2745_v39, %v2761_v40  ;;  %v7157_v48 = vcombine.high %v2748_v41, %v2764_v42  ;;  %v2953_v32 = vld [vmem:[%s10728_s5 + $0xf88] sm:$0xff]  ;;  %v2956_v34 = vld [vmem:[%s10728_s5 + $0xfa0] sm:$0xff] }
 0x303   :  { %5742 = vmatpush1.bf16.msra.mxu1 %v6926_v54  ;;  %5865 = vmatpush1.bf16.msra.mxu0 %v6932_v55  ;;  %v7150_v54 = vcombine.low %v2745_v39, %v2761_v40  ;;  %v7156_v55 = vcombine.low %v2748_v41, %v2764_v42  ;;  %v2459_v39 = vld [vmem:[%s10728_s5 + $0x18] sm:$0xff]  ;;  %v2462_v41 = vld [vmem:[%s10728_s5 + $0x30] sm:$0xff] }
 0x304   :  { %5743 = vmatprep.subr.bf16.mxu1 %v6959_v57  ;;  %5866 = vmatprep.subr.bf16.mxu0 %v6965_v60  ;;  %v7183_v57 = vcombine.high %v2777_v50, %v2793_v51  ;;  %v7189_v60 = vcombine.high %v2780_v52, %v2796_v53  ;;  %v2475_v40 = vld [vmem:[%s10728_s5 + $0x98] sm:$0xff]  ;;  %v2478_v42 = vld [vmem:[%s10728_s5 + $0xb0] sm:$0xff] }
 0x307   :  { %5744 = vmatpush1.bf16.msra.mxu1 %v6958_v1  ;;  %5867 = vmatpush1.bf16.msra.mxu0 %v6964_v2  ;;  %v7182_v1 = vcombine.low %v2777_v50, %v2793_v51  ;;  %v7188_v2 = vcombine.low %v2780_v52, %v2796_v53  ;;  %v2491_v50 = vld [vmem:[%s10728_s5 + $0x118] sm:$0xff]  ;;  %v2494_v52 = vld [vmem:[%s10728_s5 + $0x130] sm:$0xff] }
 0x308   :  { %5745 = vmatprep.subr.bf16.mxu1 %v6991_v3  ;;  %5868 = vmatprep.subr.bf16.mxu0 %v6997_v4  ;;  %v7215_v3 = vcombine.high %v2809_v61, %v2825_v62  ;;  %v7221_v4 = vcombine.high %v2812_v63, %v2828_v0  ;;  %v2507_v51 = vld [vmem:[%s10728_s5 + $0x198] sm:$0xff]  ;;  %v2510_v53 = vld [vmem:[%s10728_s5 + $0x1b0] sm:$0xff] }
 0x30b   :  { %5746 = vmatpush1.bf16.msra.mxu1 %v6990_v10  ;;  %5869 = vmatpush1.bf16.msra.mxu0 %v6996_v11  ;;  %v7214_v10 = vcombine.low %v2809_v61, %v2825_v62  ;;  %v7220_v11 = vcombine.low %v2812_v63, %v2828_v0  ;;  %v2523_v61 = vld [vmem:[%s10728_s5 + $0x218] sm:$0xff]  ;;  %v2526_v63 = vld [vmem:[%s10728_s5 + $0x230] sm:$0xff] }
 0x30c   :  { %5747 = vmatprep.subr.bf16.mxu1 %v7023_v13  ;;  %5870 = vmatprep.subr.bf16.mxu0 %v7029_v14  ;;  %v7247_v13 = vcombine.high %v2841_v5, %v2857_v6  ;;  %v7253_v14 = vcombine.high %v2844_v7, %v2860_v8  ;;  %v2539_v62 = vld [vmem:[%s10728_s5 + $0x298] sm:$0xff]  ;;  %v2542_v0 = vld [vmem:[%s10728_s5 + $0x2b0] sm:$0xff] }
 0x30f   :  { %5748 = vmatpush1.bf16.msra.mxu1 %v7022_v20  ;;  %5871 = vmatpush1.bf16.msra.mxu0 %v7028_v21  ;;  %v7246_v20 = vcombine.low %v2841_v5, %v2857_v6  ;;  %v7252_v21 = vcombine.low %v2844_v7, %v2860_v8  ;;  %v2555_v5 = vld [vmem:[%s10728_s5 + $0x318] sm:$0xff]  ;;  %v2558_v7 = vld [vmem:[%s10728_s5 + $0x330] sm:$0xff] }
 0x310   :  { %5749 = vmatprep.subr.bf16.mxu1 %v7055_v22  ;;  %5872 = vmatprep.subr.bf16.mxu0 %v7061_v23  ;;  %v7279_v22 = vcombine.high %v2873_v15, %v2889_v16  ;;  %v7285_v23 = vcombine.high %v2876_v18, %v2892_v19  ;;  %v2571_v6 = vld [vmem:[%s10728_s5 + $0x398] sm:$0xff]  ;;  %v2574_v8 = vld [vmem:[%s10728_s5 + $0x3b0] sm:$0xff] }
 0x313   :  { %5750 = vmatpush1.bf16.msra.mxu1 %v7054_v27  ;;  %5873 = vmatpush1.bf16.msra.mxu0 %v7060_v28  ;;  %v7278_v27 = vcombine.low %v2873_v15, %v2889_v16  ;;  %v7284_v28 = vcombine.low %v2876_v18, %v2892_v19  ;;  %v2587_v15 = vld [vmem:[%s10728_s5 + $0x418] sm:$0xff]  ;;  %v2590_v18 = vld [vmem:[%s10728_s5 + $0x430] sm:$0xff] }
 0x314   :  { %5751 = vmatprep.subr.bf16.mxu1 %v7087_v29  ;;  %5874 = vmatprep.subr.bf16.mxu0 %v7093_v30  ;;  %v7311_v29 = vcombine.high %v2905_v24, %v2921_v12  ;;  %v7317_v30 = vcombine.high %v2908_v26, %v2924_v9  ;;  %v2603_v16 = vld [vmem:[%s10728_s5 + $0x498] sm:$0xff]  ;;  %v2606_v19 = vld [vmem:[%s10728_s5 + $0x4b0] sm:$0xff] }
 0x317   :  { %5752 = vmatpush1.bf16.msra.mxu1 %v7086_v35  ;;  %5875 = vmatpush1.bf16.msra.mxu0 %v7092_v17  ;;  %v7310_v35 = vcombine.low %v2905_v24, %v2921_v12  ;;  %v7316_v17 = vcombine.low %v2908_v26, %v2924_v9  ;;  %v2619_v24 = vld [vmem:[%s10728_s5 + $0x518] sm:$0xff]  ;;  %v2622_v26 = vld [vmem:[%s10728_s5 + $0x530] sm:$0xff] }
 0x318   :  { %5753 = vmatprep.subr.bf16.mxu1 %v7119_v37  ;;  %5876 = vmatprep.subr.bf16.mxu0 %v7125_v38  ;;  %v7343_v37 = vcombine.high %v2937_v31, %v2953_v32  ;;  %v7349_v38 = vcombine.high %v2940_v33, %v2956_v34  ;;  %v2635_v12 = vld [vmem:[%s10728_s5 + $0x598] sm:$0xff]  ;;  %v2638_v9 = vld [vmem:[%s10728_s5 + $0x5b0] sm:$0xff] }
 0x31b   :  { %5754 = vmatpush1.bf16.msra.mxu1 %v7118_v44  ;;  %5877 = vmatpush1.bf16.msra.mxu0 %v7124_v45  ;;  %v7342_v44 = vcombine.low %v2937_v31, %v2953_v32  ;;  %v7348_v45 = vcombine.low %v2940_v33, %v2956_v34  ;;  %v2651_v31 = vld [vmem:[%s10728_s5 + $0x618] sm:$0xff]  ;;  %v2654_v33 = vld [vmem:[%s10728_s5 + $0x630] sm:$0xff] }
 0x31c   :  { %5755 = vmatprep.subr.bf16.mxu1 %v7151_v46  ;;  %5878 = vmatprep.subr.bf16.mxu0 %v7157_v48  ;;  %v6867_v46 = vcombine.high %v2459_v39, %v2475_v40  ;;  %v6873_v48 = vcombine.high %v2462_v41, %v2478_v42  ;;  %v2667_v32 = vld [vmem:[%s10728_s5 + $0x698] sm:$0xff]  ;;  %v2670_v34 = vld [vmem:[%s10728_s5 + $0x6b0] sm:$0xff] }
 0x31f   :  { %5756 = vmatpush1.bf16.msra.mxu1 %v7150_v54  ;;  %5879 = vmatpush1.bf16.msra.mxu0 %v7156_v55  ;;  %v6866_v54 = vcombine.low %v2459_v39, %v2475_v40  ;;  %v6872_v55 = vcombine.low %v2462_v41, %v2478_v42  ;;  %v2683_v39 = vld [vmem:[%s10728_s5 + $0x718] sm:$0xff]  ;;  %v2686_v41 = vld [vmem:[%s10728_s5 + $0x730] sm:$0xff] }
 0x320   :  { %5757 = vmatprep.subr.bf16.mxu1 %v7183_v57  ;;  %5880 = vmatprep.subr.bf16.mxu0 %v7189_v60  ;;  %v6899_v57 = vcombine.high %v2491_v50, %v2507_v51  ;;  %v6905_v60 = vcombine.high %v2494_v52, %v2510_v53  ;;  %v2699_v40 = vld [vmem:[%s10728_s5 + $0x798] sm:$0xff]  ;;  %v2702_v42 = vld [vmem:[%s10728_s5 + $0x7b0] sm:$0xff] }
 0x323   :  { %5758 = vmatpush1.bf16.msra.mxu1 %v7182_v1  ;;  %5881 = vmatpush1.bf16.msra.mxu0 %v7188_v2  ;;  %v6898_v1 = vcombine.low %v2491_v50, %v2507_v51  ;;  %v6904_v2 = vcombine.low %v2494_v52, %v2510_v53  ;;  %v2715_v50 = vld [vmem:[%s10728_s5 + $0x818] sm:$0xff]  ;;  %v2718_v52 = vld [vmem:[%s10728_s5 + $0x830] sm:$0xff] }
 0x324   :  { %5759 = vmatprep.subr.bf16.mxu1 %v7215_v3  ;;  %5882 = vmatprep.subr.bf16.mxu0 %v7221_v4  ;;  %v6931_v3 = vcombine.high %v2523_v61, %v2539_v62  ;;  %v6937_v4 = vcombine.high %v2526_v63, %v2542_v0  ;;  %v2731_v51 = vld [vmem:[%s10728_s5 + $0x898] sm:$0xff]  ;;  %v2734_v53 = vld [vmem:[%s10728_s5 + $0x8b0] sm:$0xff] }
 0x327   :  { %5760 = vmatpush1.bf16.msra.mxu1 %v7214_v10  ;;  %5883 = vmatpush1.bf16.msra.mxu0 %v7220_v11  ;;  %v6930_v10 = vcombine.low %v2523_v61, %v2539_v62  ;;  %v6936_v11 = vcombine.low %v2526_v63, %v2542_v0  ;;  %v2747_v61 = vld [vmem:[%s10728_s5 + $0x918] sm:$0xff]  ;;  %v2750_v63 = vld [vmem:[%s10728_s5 + $0x930] sm:$0xff] }
 0x328   :  { %5761 = vmatprep.subr.bf16.mxu1 %v7247_v13  ;;  %5884 = vmatprep.subr.bf16.mxu0 %v7253_v14  ;;  %v6963_v13 = vcombine.high %v2555_v5, %v2571_v6  ;;  %v6969_v14 = vcombine.high %v2558_v7, %v2574_v8  ;;  %v2763_v62 = vld [vmem:[%s10728_s5 + $0x998] sm:$0xff]  ;;  %v2766_v0 = vld [vmem:[%s10728_s5 + $0x9b0] sm:$0xff] }
 0x32b   :  { %5762 = vmatpush1.bf16.msra.mxu1 %v7246_v20  ;;  %5885 = vmatpush1.bf16.msra.mxu0 %v7252_v21  ;;  %v6962_v20 = vcombine.low %v2555_v5, %v2571_v6  ;;  %v6968_v21 = vcombine.low %v2558_v7, %v2574_v8  ;;  %v2779_v5 = vld [vmem:[%s10728_s5 + $0xa18] sm:$0xff]  ;;  %v2782_v7 = vld [vmem:[%s10728_s5 + $0xa30] sm:$0xff] }
 0x32c   :  { %5763 = vmatprep.subr.bf16.mxu1 %v7279_v22  ;;  %5886 = vmatprep.subr.bf16.mxu0 %v7285_v23  ;;  %v6995_v22 = vcombine.high %v2587_v15, %v2603_v16  ;;  %v7001_v23 = vcombine.high %v2590_v18, %v2606_v19  ;;  %v2795_v6 = vld [vmem:[%s10728_s5 + $0xa98] sm:$0xff]  ;;  %v2798_v8 = vld [vmem:[%s10728_s5 + $0xab0] sm:$0xff] }
 0x32f   :  { %5764 = vmatpush1.bf16.msra.mxu1 %v7278_v27  ;;  %5887 = vmatpush1.bf16.msra.mxu0 %v7284_v28  ;;  %v6994_v27 = vcombine.low %v2587_v15, %v2603_v16  ;;  %v7000_v28 = vcombine.low %v2590_v18, %v2606_v19  ;;  %v2811_v15 = vld [vmem:[%s10728_s5 + $0xb18] sm:$0xff]  ;;  %v2814_v18 = vld [vmem:[%s10728_s5 + $0xb30] sm:$0xff] }
 0x330   :  { %5765 = vmatprep.subr.bf16.mxu1 %v7311_v29  ;;  %5888 = vmatprep.subr.bf16.mxu0 %v7317_v30  ;;  %v7027_v29 = vcombine.high %v2619_v24, %v2635_v12  ;;  %v7033_v30 = vcombine.high %v2622_v26, %v2638_v9  ;;  %v2827_v16 = vld [vmem:[%s10728_s5 + $0xb98] sm:$0xff]  ;;  %v2830_v19 = vld [vmem:[%s10728_s5 + $0xbb0] sm:$0xff] }
 0x333   :  { %5766 = vmatpush1.bf16.msra.mxu1 %v7310_v35  ;;  %5889 = vmatpush1.bf16.msra.mxu0 %v7316_v17  ;;  %v7026_v35 = vcombine.low %v2619_v24, %v2635_v12  ;;  %v7032_v17 = vcombine.low %v2622_v26, %v2638_v9  ;;  %v2843_v24 = vld [vmem:[%s10728_s5 + $0xc18] sm:$0xff]  ;;  %v2846_v26 = vld [vmem:[%s10728_s5 + $0xc30] sm:$0xff] }
 0x334   :  { %5767 = vmatprep.subr.bf16.mxu1 %v7343_v37  ;;  %5890 = vmatprep.subr.bf16.mxu0 %v7349_v38  ;;  %v7059_v37 = vcombine.high %v2651_v31, %v2667_v32  ;;  %v7065_v38 = vcombine.high %v2654_v33, %v2670_v34  ;;  %v2859_v12 = vld [vmem:[%s10728_s5 + $0xc98] sm:$0xff]  ;;  %v2862_v9 = vld [vmem:[%s10728_s5 + $0xcb0] sm:$0xff] }
 0x337   :  { %5768 = vmatpush1.bf16.msra.mxu1 %v7342_v44  ;;  %5891 = vmatpush1.bf16.msra.mxu0 %v7348_v45  ;;  %v7058_v44 = vcombine.low %v2651_v31, %v2667_v32  ;;  %v7064_v45 = vcombine.low %v2654_v33, %v2670_v34  ;;  %v2875_v31 = vld [vmem:[%s10728_s5 + $0xd18] sm:$0xff]  ;;  %v2878_v33 = vld [vmem:[%s10728_s5 + $0xd30] sm:$0xff] }
 0x338   :  { %5819 = vmatprep.subr.bf16.mxu1 %v6867_v46  ;;  %5942 = vmatprep.subr.bf16.mxu0 %v6873_v48  ;;  %v7091_v46 = vcombine.high %v2683_v39, %v2699_v40  ;;  %v7097_v48 = vcombine.high %v2686_v41, %v2702_v42  ;;  %v2891_v32 = vld [vmem:[%s10728_s5 + $0xd98] sm:$0xff]  ;;  %v2894_v34 = vld [vmem:[%s10728_s5 + $0xdb0] sm:$0xff] }
 0x33a   :  { %5770 = vmatmul.mubr.bf16.vlgmr.msra.gmra.mrb[8].mxu1 %v9180_v25  ;;  %5893 = vmatmul.mubr.bf16.vlgmr.msra.gmra.mrb[12].mxu0 %v9180_v25 }
 0x33b   :  { %5820 = vmatpush1.bf16.msra.mxu1 %v6866_v54  ;;  %5851 = vmatprep.mubr.bf16.mxu1 %v9178_v36  ;;  %v7090_v54 = vcombine.low %v2683_v39, %v2699_v40  ;;  %v2907_v39 = vld [vmem:[%s10728_s5 + $0xe18] sm:$0xff] }
 0x33c   :  { %5943 = vmatpush1.bf16.msra.mxu0 %v6872_v55  ;;  %5974 = vmatprep.mubr.bf16.mxu0 %v9178_v36  ;;  %v7096_v55 = vcombine.low %v2686_v41, %v2702_v42  ;;  %v2923_v40 = vld [vmem:[%s10728_s5 + $0xe98] sm:$0xff]  ;;  %v2910_v41 = vld [vmem:[%s10728_s5 + $0xe30] sm:$0xff] }
 0x33d   :  { %5821 = vmatprep.subr.bf16.mxu1 %v6899_v57  ;;  %5944 = vmatprep.subr.bf16.mxu0 %v6905_v60  ;;  %v7123_v57 = vcombine.high %v2715_v50, %v2731_v51  ;;  %v7129_v60 = vcombine.high %v2718_v52, %v2734_v53  ;;  %v2926_v42 = vld [vmem:[%s10728_s5 + $0xeb0] sm:$0xff] }
 0x33f   :  { %5822 = vmatpush1.bf16.msra.mxu1 %v6898_v1  ;;  %v7122_v1 = vcombine.low %v2715_v50, %v2731_v51  ;;  %v2939_v50 = vld [vmem:[%s10728_s5 + $0xf18] sm:$0xff] }
 0x340   :  { %5945 = vmatpush1.bf16.msra.mxu0 %v6904_v2  ;;  %5823 = vmatprep.subr.bf16.mxu1 %v6931_v3  ;;  %v7128_v2 = vcombine.low %v2718_v52, %v2734_v53  ;;  %v7155_v3 = vcombine.high %v2747_v61, %v2763_v62  ;;  %v2955_v51 = vld [vmem:[%s10728_s5 + $0xf98] sm:$0xff]  ;;  %v2942_v52 = vld [vmem:[%s10728_s5 + $0xf30] sm:$0xff] }
 0x341   :  { %5946 = vmatprep.subr.bf16.mxu0 %v6937_v4  ;;  %v7161_v4 = vcombine.high %v2750_v63, %v2766_v0  ;;  %v2958_v53 = vld [vmem:[%s10728_s5 + $0xfb0] sm:$0xff] }
 0x343   :  { %5824 = vmatpush1.bf16.msra.mxu1 %v6930_v10  ;;  %v7154_v10 = vcombine.low %v2747_v61, %v2763_v62  ;;  %v2461_v61 = vld [vmem:[%s10728_s5 + $0x28] sm:$0xff] }
 0x344   :  { %5947 = vmatpush1.bf16.msra.mxu0 %v6936_v11  ;;  %5825 = vmatprep.subr.bf16.mxu1 %v6963_v13  ;;  %v7160_v11 = vcombine.low %v2750_v63, %v2766_v0  ;;  %v7187_v13 = vcombine.high %v2779_v5, %v2795_v6  ;;  %v2477_v62 = vld [vmem:[%s10728_s5 + $0xa8] sm:$0xff]  ;;  %v2464_v63 = vld [vmem:[%s10728_s5 + $0x40] sm:$0xff] }
 0x345   :  { %5948 = vmatprep.subr.bf16.mxu0 %v6969_v14  ;;  %v7193_v14 = vcombine.high %v2782_v7, %v2798_v8  ;;  %v2480_v0 = vld [vmem:[%s10728_s5 + $0xc0] sm:$0xff] }
 0x347   :  { %5826 = vmatpush1.bf16.msra.mxu1 %v6962_v20  ;;  %v7186_v20 = vcombine.low %v2779_v5, %v2795_v6  ;;  %v2493_v5 = vld [vmem:[%s10728_s5 + $0x128] sm:$0xff] }
 0x348   :  { %5949 = vmatpush1.bf16.msra.mxu0 %v6968_v21  ;;  %5827 = vmatprep.subr.bf16.mxu1 %v6995_v22  ;;  %v7192_v21 = vcombine.low %v2782_v7, %v2798_v8  ;;  %v7219_v22 = vcombine.high %v2811_v15, %v2827_v16  ;;  %v2509_v6 = vld [vmem:[%s10728_s5 + $0x1a8] sm:$0xff]  ;;  %v6870_v7 = vcombine.low %v2461_v61, %v2477_v62  ;;  %v2496_v8 = vld [vmem:[%s10728_s5 + $0x140] sm:$0xff] }
 0x349   :  { %5950 = vmatprep.subr.bf16.mxu0 %v7001_v23  ;;  %v7225_v23 = vcombine.high %v2814_v18, %v2830_v19 }
 0x34b   :  { %5828 = vmatpush1.bf16.msra.mxu1 %v6994_v27  ;;  %v7218_v27 = vcombine.low %v2811_v15, %v2827_v16  ;;  %v2541_v15 = vld [vmem:[%s10728_s5 + $0x2a8] sm:$0xff] }
 0x34c   :  { %5951 = vmatpush1.bf16.msra.mxu0 %v7000_v28  ;;  %5829 = vmatprep.subr.bf16.mxu1 %v7027_v29  ;;  %v7224_v28 = vcombine.low %v2814_v18, %v2830_v19  ;;  %v7251_v29 = vcombine.high %v2843_v24, %v2859_v12  ;;  %v2528_v18 = vld [vmem:[%s10728_s5 + $0x240] sm:$0xff] }
 0x34d   :  { %5952 = vmatprep.subr.bf16.mxu0 %v7033_v30  ;;  %v7257_v30 = vcombine.high %v2846_v26, %v2862_v9  ;;  %v2544_v19 = vld [vmem:[%s10728_s5 + $0x2c0] sm:$0xff] }
 0x34f   :  { %5830 = vmatpush1.bf16.msra.mxu1 %v7026_v35  ;;  %v7250_v35 = vcombine.low %v2843_v24, %v2859_v12  ;;  %v2557_v24 = vld [vmem:[%s10728_s5 + $0x328] sm:$0xff] }
 0x350   :  { %5953 = vmatpush1.bf16.msra.mxu0 %v7032_v17  ;;  %5831 = vmatprep.subr.bf16.mxu1 %v7059_v37  ;;  %v7256_v17 = vcombine.low %v2846_v26, %v2862_v9  ;;  %v7283_v37 = vcombine.high %v2875_v31, %v2891_v32  ;;  %v2573_v12 = vld [vmem:[%s10728_s5 + $0x3a8] sm:$0xff]  ;;  %v2560_v26 = vld [vmem:[%s10728_s5 + $0x340] sm:$0xff] }
 0x351   :  { %5954 = vmatprep.subr.bf16.mxu0 %v7065_v38  ;;  %v7289_v38 = vcombine.high %v2878_v33, %v2894_v34  ;;  %v2576_v9 = vld [vmem:[%s10728_s5 + $0x3c0] sm:$0xff] }
 0x353   :  { %5832 = vmatpush1.bf16.msra.mxu1 %v7058_v44  ;;  %v7282_v44 = vcombine.low %v2875_v31, %v2891_v32  ;;  %v2589_v31 = vld [vmem:[%s10728_s5 + $0x428] sm:$0xff] }
 0x354   :  { %5955 = vmatpush1.bf16.msra.mxu0 %v7064_v45  ;;  %5833 = vmatprep.subr.bf16.mxu1 %v7091_v46  ;;  %v7288_v45 = vcombine.low %v2878_v33, %v2894_v34  ;;  %v7315_v46 = vcombine.high %v2907_v39, %v2923_v40  ;;  %v2605_v32 = vld [vmem:[%s10728_s5 + $0x4a8] sm:$0xff]  ;;  %v2592_v33 = vld [vmem:[%s10728_s5 + $0x440] sm:$0xff] }
 0x355   :  { %5956 = vmatprep.subr.bf16.mxu0 %v7097_v48  ;;  %v7321_v48 = vcombine.high %v2910_v41, %v2926_v42  ;;  %v2608_v34 = vld [vmem:[%s10728_s5 + $0x4c0] sm:$0xff] }
 0x357   :  { %5834 = vmatpush1.bf16.msra.mxu1 %v7090_v54  ;;  %v7314_v54 = vcombine.low %v2907_v39, %v2923_v40  ;;  %v2621_v39 = vld [vmem:[%s10728_s5 + $0x528] sm:$0xff] }
 0x358   :  { %5957 = vmatpush1.bf16.msra.mxu0 %v7096_v55  ;;  %5835 = vmatprep.subr.bf16.mxu1 %v7123_v57  ;;  %v7320_v55 = vcombine.low %v2910_v41, %v2926_v42  ;;  %v7347_v57 = vcombine.high %v2939_v50, %v2955_v51  ;;  %v2637_v40 = vld [vmem:[%s10728_s5 + $0x5a8] sm:$0xff]  ;;  %v2624_v41 = vld [vmem:[%s10728_s5 + $0x540] sm:$0xff] }
 0x359   :  { %5958 = vmatprep.subr.bf16.mxu0 %v7129_v60  ;;  %v7353_v60 = vcombine.high %v2942_v52, %v2958_v53  ;;  %v2640_v42 = vld [vmem:[%s10728_s5 + $0x5c0] sm:$0xff] }
 0x35b   :  { %5836 = vmatpush1.bf16.msra.mxu1 %v7122_v1  ;;  %v7346_v1 = vcombine.low %v2939_v50, %v2955_v51  ;;  %v2653_v50 = vld [vmem:[%s10728_s5 + $0x628] sm:$0xff] }
 0x35c   :  { %5959 = vmatpush1.bf16.msra.mxu0 %v7128_v2  ;;  %5837 = vmatprep.subr.bf16.mxu1 %v7155_v3  ;;  %v7352_v2 = vcombine.low %v2942_v52, %v2958_v53  ;;  %v6871_v3 = vcombine.high %v2461_v61, %v2477_v62  ;;  %v2669_v51 = vld [vmem:[%s10728_s5 + $0x6a8] sm:$0xff]  ;;  %v2656_v52 = vld [vmem:[%s10728_s5 + $0x640] sm:$0xff] }
 0x35d   :  { %5960 = vmatprep.subr.bf16.mxu0 %v7161_v4  ;;  %v6877_v4 = vcombine.high %v2464_v63, %v2480_v0  ;;  %v2672_v53 = vld [vmem:[%s10728_s5 + $0x6c0] sm:$0xff]  ;;  %v2685_v61 = vld [vmem:[%s10728_s5 + $0x728] sm:$0xff] }
 0x35e   :  { %v2701_v62 = vld [vmem:[%s10728_s5 + $0x7a8] sm:$0xff] }
 0x35f   :  { %5838 = vmatpush1.bf16.msra.mxu1 %v7154_v10  ;;  %v2512_v10 = vld [vmem:[%s10728_s5 + $0x1c0] sm:$0xff] }
 0x360   :  { %5961 = vmatpush1.bf16.msra.mxu0 %v7160_v11  ;;  %5839 = vmatprep.subr.bf16.mxu1 %v7187_v13  ;;  %v6876_v11 = vcombine.low %v2464_v63, %v2480_v0  ;;  %v6903_v13 = vcombine.high %v2493_v5, %v2509_v6  ;;  %v6909_v16 = vcombine.high %v2496_v8, %v2512_v10  ;;  %v2688_v63 = vld [vmem:[%s10728_s5 + $0x740] sm:$0xff] }
 0x361   :  { %5962 = vmatprep.subr.bf16.mxu0 %v7193_v14  ;;  %v2525_v14 = vld [vmem:[%s10728_s5 + $0x228] sm:$0xff]  ;;  %v2704_v0 = vld [vmem:[%s10728_s5 + $0x7c0] sm:$0xff] }
 0x363   :  { %5840 = vmatpush1.bf16.msra.mxu1 %v7186_v20  ;;  %v6902_v20 = vcombine.low %v2493_v5, %v2509_v6  ;;  %v2717_v5 = vld [vmem:[%s10728_s5 + $0x828] sm:$0xff] }
 0x364   :  { %5963 = vmatpush1.bf16.msra.mxu0 %v7192_v21  ;;  %5841 = vmatprep.subr.bf16.mxu1 %v7219_v22  ;;  %v6908_v21 = vcombine.low %v2496_v8, %v2512_v10  ;;  %v6935_v22 = vcombine.high %v2525_v14, %v2541_v15  ;;  %v2733_v6 = vld [vmem:[%s10728_s5 + $0x8a8] sm:$0xff]  ;;  %v2736_v8 = vld [vmem:[%s10728_s5 + $0x8c0] sm:$0xff]  ;;  %v7094_v10 = vcombine.low %v2685_v61, %v2701_v62 }
 0x365   :  { %5964 = vmatprep.subr.bf16.mxu0 %v7225_v23  ;;  %v6941_v23 = vcombine.high %v2528_v18, %v2544_v19 }
 0x367   :  { %5842 = vmatpush1.bf16.msra.mxu1 %v7218_v27  ;;  %v6934_v27 = vcombine.low %v2525_v14, %v2541_v15  ;;  %v2749_v15 = vld [vmem:[%s10728_s5 + $0x928] sm:$0xff] }
 0x368   :  { %5965 = vmatpush1.bf16.msra.mxu0 %v7224_v28  ;;  %5843 = vmatprep.subr.bf16.mxu1 %v7251_v29  ;;  %v6940_v28 = vcombine.low %v2528_v18, %v2544_v19  ;;  %v6967_v29 = vcombine.high %v2557_v24, %v2573_v12  ;;  %v2752_v18 = vld [vmem:[%s10728_s5 + $0x940] sm:$0xff] }
 0x369   :  { %5966 = vmatprep.subr.bf16.mxu0 %v7257_v30  ;;  %v6973_v30 = vcombine.high %v2560_v26, %v2576_v9  ;;  %v2768_v19 = vld [vmem:[%s10728_s5 + $0x9c0] sm:$0xff] }
 0x36b   :  { %5844 = vmatpush1.bf16.msra.mxu1 %v7250_v35  ;;  %v6966_v35 = vcombine.low %v2557_v24, %v2573_v12  ;;  %v2781_v24 = vld [vmem:[%s10728_s5 + $0xa28] sm:$0xff] }
 0x36c   :  { %5967 = vmatpush1.bf16.msra.mxu0 %v7256_v17  ;;  %5845 = vmatprep.subr.bf16.mxu1 %v7283_v37  ;;  %v6972_v17 = vcombine.low %v2560_v26, %v2576_v9  ;;  %v6999_v37 = vcombine.high %v2589_v31, %v2605_v32  ;;  %v2797_v12 = vld [vmem:[%s10728_s5 + $0xaa8] sm:$0xff]  ;;  %v2784_v26 = vld [vmem:[%s10728_s5 + $0xa40] sm:$0xff] }
 0x36d   :  { %5968 = vmatprep.subr.bf16.mxu0 %v7289_v38  ;;  %v7005_v38 = vcombine.high %v2592_v33, %v2608_v34  ;;  %v2800_v9 = vld [vmem:[%s10728_s5 + $0xac0] sm:$0xff] }
 0x36f   :  { %5846 = vmatpush1.bf16.msra.mxu1 %v7282_v44  ;;  %v6998_v44 = vcombine.low %v2589_v31, %v2605_v32  ;;  %v2813_v31 = vld [vmem:[%s10728_s5 + $0xb28] sm:$0xff] }
 0x370   :  { %5969 = vmatpush1.bf16.msra.mxu0 %v7288_v45  ;;  %5847 = vmatprep.subr.bf16.mxu1 %v7315_v46  ;;  %v7004_v45 = vcombine.low %v2592_v33, %v2608_v34  ;;  %v7031_v46 = vcombine.high %v2621_v39, %v2637_v40  ;;  %v2829_v32 = vld [vmem:[%s10728_s5 + $0xba8] sm:$0xff]  ;;  %v2816_v33 = vld [vmem:[%s10728_s5 + $0xb40] sm:$0xff] }
 0x371   :  { %5970 = vmatprep.subr.bf16.mxu0 %v7321_v48  ;;  %v7037_v48 = vcombine.high %v2624_v41, %v2640_v42  ;;  %v2832_v34 = vld [vmem:[%s10728_s5 + $0xbc0] sm:$0xff] }
 0x373   :  { %5848 = vmatpush1.bf16.msra.mxu1 %v7314_v54  ;;  %v7030_v54 = vcombine.low %v2621_v39, %v2637_v40  ;;  %v2845_v39 = vld [vmem:[%s10728_s5 + $0xc28] sm:$0xff] }
 0x374   :  { %5971 = vmatpush1.bf16.msra.mxu0 %v7320_v55  ;;  %5849 = vmatprep.subr.bf16.mxu1 %v7347_v57  ;;  %v7036_v55 = vcombine.low %v2624_v41, %v2640_v42  ;;  %v7063_v57 = vcombine.high %v2653_v50, %v2669_v51  ;;  %v2861_v40 = vld [vmem:[%s10728_s5 + $0xca8] sm:$0xff]  ;;  %v2848_v41 = vld [vmem:[%s10728_s5 + $0xc40] sm:$0xff] }
 0x375   :  { %5972 = vmatprep.subr.bf16.mxu0 %v7353_v60  ;;  %v7069_v60 = vcombine.high %v2656_v52, %v2672_v53  ;;  %v2864_v42 = vld [vmem:[%s10728_s5 + $0xcc0] sm:$0xff] }
 0x377   :  { %5850 = vmatpush1.bf16.msra.mxu1 %v7346_v1  ;;  %v7062_v1 = vcombine.low %v2653_v50, %v2669_v51  ;;  %v2877_v50 = vld [vmem:[%s10728_s5 + $0xd28] sm:$0xff] }
 0x378   :  { %5973 = vmatpush1.bf16.msra.mxu0 %v7352_v2  ;;  %5901 = vmatprep.subr.bf16.mxu1 %v6871_v3  ;;  %v7068_v2 = vcombine.low %v2656_v52, %v2672_v53  ;;  %v7095_v3 = vcombine.high %v2685_v61, %v2701_v62  ;;  %v2893_v51 = vld [vmem:[%s10728_s5 + $0xda8] sm:$0xff]  ;;  %v2880_v52 = vld [vmem:[%s10728_s5 + $0xd40] sm:$0xff] }
 0x379   :  { %6024 = vmatprep.subr.bf16.mxu0 %v6877_v4  ;;  %v7101_v4 = vcombine.high %v2688_v63, %v2704_v0  ;;  %v2896_v53 = vld [vmem:[%s10728_s5 + $0xdc0] sm:$0xff]  ;;  %v2909_v61 = vld [vmem:[%s10728_s5 + $0xe28] sm:$0xff] }
 0x37a   :  { %5852 = vmatmul.mubr.bf16.vlgmr.msra.gmra.mrb[12].mxu1 %v9180_v25  ;;  %v2925_v62 = vld [vmem:[%s10728_s5 + $0xea8] sm:$0xff] }
 0x37b   :  { %5975 = vmatmul.mubr.bf16.vlgmr.msra.gmra.mrb[16].mxu0 %v9180_v25  ;;  %5902 = vmatpush1.bf16.msra.mxu1 %v6870_v7  ;;  %v2720_v7 = vld [vmem:[%s10728_s5 + $0x840] sm:$0xff] }
 0x37c   :  { %5933 = vmatprep.mubr.bf16.mxu1 %v9178_v36  ;;  %6025 = vmatpush1.bf16.msra.mxu0 %v6876_v11  ;;  %v7100_v11 = vcombine.low %v2688_v63, %v2704_v0  ;;  %v7133_v14 = vcombine.high %v2720_v7, %v2736_v8  ;;  %v2912_v63 = vld [vmem:[%s10728_s5 + $0xe40] sm:$0xff] }
 0x37d   :  { %6056 = vmatprep.mubr.bf16.mxu0 %v9178_v36  ;;  %5903 = vmatprep.subr.bf16.mxu1 %v6903_v13  ;;  %v7127_v13 = vcombine.high %v2717_v5, %v2733_v6  ;;  %v2928_v0 = vld [vmem:[%s10728_s5 + $0xec0] sm:$0xff] }
 0x37e   :  { %6026 = vmatprep.subr.bf16.mxu0 %v6909_v16  ;;  %v2765_v16 = vld [vmem:[%s10728_s5 + $0x9a8] sm:$0xff] }
 0x37f   :  { %5904 = vmatpush1.bf16.msra.mxu1 %v6902_v20  ;;  %v7126_v20 = vcombine.low %v2717_v5, %v2733_v6  ;;  %v2941_v5 = vld [vmem:[%s10728_s5 + $0xf28] sm:$0xff] }
 0x380   :  { %6027 = vmatpush1.bf16.msra.mxu0 %v6908_v21  ;;  %5905 = vmatprep.subr.bf16.mxu1 %v6935_v22  ;;  %v7132_v21 = vcombine.low %v2720_v7, %v2736_v8  ;;  %v7159_v22 = vcombine.high %v2749_v15, %v2765_v16  ;;  %v2957_v6 = vld [vmem:[%s10728_s5 + $0xfa8] sm:$0xff]  ;;  %v2944_v7 = vld [vmem:[%s10728_s5 + $0xf40] sm:$0xff] }
 0x381   :  { %6028 = vmatprep.subr.bf16.mxu0 %v6941_v23  ;;  %v7165_v23 = vcombine.high %v2752_v18, %v2768_v19  ;;  %v2960_v8 = vld [vmem:[%s10728_s5 + $0xfc0] sm:$0xff] }
 0x383   :  { %5906 = vmatpush1.bf16.msra.mxu1 %v6934_v27  ;;  %v7158_v27 = vcombine.low %v2749_v15, %v2765_v16  ;;  %v2463_v15 = vld [vmem:[%s10728_s5 + $0x38] sm:$0xff] }
 0x384   :  { %6029 = vmatpush1.bf16.msra.mxu0 %v6940_v28  ;;  %5907 = vmatprep.subr.bf16.mxu1 %v6967_v29  ;;  %v7164_v28 = vcombine.low %v2752_v18, %v2768_v19  ;;  %v7191_v29 = vcombine.high %v2781_v24, %v2797_v12  ;;  %v2479_v16 = vld [vmem:[%s10728_s5 + $0xb8] sm:$0xff]  ;;  %v2466_v18 = vld [vmem:[%s10728_s5 + $0x50] sm:$0xff] }
 0x385   :  { %6030 = vmatprep.subr.bf16.mxu0 %v6973_v30  ;;  %v7197_v30 = vcombine.high %v2784_v26, %v2800_v9  ;;  %v2482_v19 = vld [vmem:[%s10728_s5 + $0xd0] sm:$0xff] }
 0x387   :  { %5908 = vmatpush1.bf16.msra.mxu1 %v6966_v35  ;;  %v7190_v35 = vcombine.low %v2781_v24, %v2797_v12  ;;  %v2495_v24 = vld [vmem:[%s10728_s5 + $0x138] sm:$0xff] }
 0x388   :  { %6031 = vmatpush1.bf16.msra.mxu0 %v6972_v17  ;;  %5909 = vmatprep.subr.bf16.mxu1 %v6999_v37  ;;  %v7196_v17 = vcombine.low %v2784_v26, %v2800_v9  ;;  %v7223_v37 = vcombine.high %v2813_v31, %v2829_v32  ;;  %v2511_v12 = vld [vmem:[%s10728_s5 + $0x1b8] sm:$0xff]  ;;  %v6874_v26 = vcombine.low %v2463_v15, %v2479_v16  ;;  %v2498_v9 = vld [vmem:[%s10728_s5 + $0x150] sm:$0xff] }
 0x389   :  { %6032 = vmatprep.subr.bf16.mxu0 %v7005_v38  ;;  %v7229_v38 = vcombine.high %v2816_v33, %v2832_v34 }
 0x38b   :  { %5910 = vmatpush1.bf16.msra.mxu1 %v6998_v44  ;;  %v7222_v44 = vcombine.low %v2813_v31, %v2829_v32  ;;  %v2543_v31 = vld [vmem:[%s10728_s5 + $0x2b8] sm:$0xff] }
 0x38c   :  { %6033 = vmatpush1.bf16.msra.mxu0 %v7004_v45  ;;  %5911 = vmatprep.subr.bf16.mxu1 %v7031_v46  ;;  %v7228_v45 = vcombine.low %v2816_v33, %v2832_v34  ;;  %v7255_v46 = vcombine.high %v2845_v39, %v2861_v40  ;;  %v2530_v33 = vld [vmem:[%s10728_s5 + $0x250] sm:$0xff] }
 0x38d   :  { %6034 = vmatprep.subr.bf16.mxu0 %v7037_v48  ;;  %v7261_v48 = vcombine.high %v2848_v41, %v2864_v42  ;;  %v2546_v34 = vld [vmem:[%s10728_s5 + $0x2d0] sm:$0xff] }
 0x38f   :  { %5912 = vmatpush1.bf16.msra.mxu1 %v7030_v54  ;;  %v7254_v54 = vcombine.low %v2845_v39, %v2861_v40  ;;  %v2559_v39 = vld [vmem:[%s10728_s5 + $0x338] sm:$0xff] }
 0x390   :  { %6035 = vmatpush1.bf16.msra.mxu0 %v7036_v55  ;;  %5913 = vmatprep.subr.bf16.mxu1 %v7063_v57  ;;  %v7260_v55 = vcombine.low %v2848_v41, %v2864_v42  ;;  %v7287_v57 = vcombine.high %v2877_v50, %v2893_v51  ;;  %v2575_v40 = vld [vmem:[%s10728_s5 + $0x3b8] sm:$0xff]  ;;  %v2562_v41 = vld [vmem:[%s10728_s5 + $0x350] sm:$0xff] }
 0x391   :  { %6036 = vmatprep.subr.bf16.mxu0 %v7069_v60  ;;  %v7293_v60 = vcombine.high %v2880_v52, %v2896_v53  ;;  %v2578_v42 = vld [vmem:[%s10728_s5 + $0x3d0] sm:$0xff] }
 0x393   :  { %5914 = vmatpush1.bf16.msra.mxu1 %v7062_v1  ;;  %v7286_v1 = vcombine.low %v2877_v50, %v2893_v51  ;;  %v2591_v50 = vld [vmem:[%s10728_s5 + $0x438] sm:$0xff] }
 0x394   :  { %6037 = vmatpush1.bf16.msra.mxu0 %v7068_v2  ;;  %5915 = vmatprep.subr.bf16.mxu1 %v7095_v3  ;;  %v7292_v2 = vcombine.low %v2880_v52, %v2896_v53  ;;  %v7319_v3 = vcombine.high %v2909_v61, %v2925_v62  ;;  %v2607_v51 = vld [vmem:[%s10728_s5 + $0x4b8] sm:$0xff]  ;;  %v2594_v52 = vld [vmem:[%s10728_s5 + $0x450] sm:$0xff] }
 0x395   :  { %6038 = vmatprep.subr.bf16.mxu0 %v7101_v4  ;;  %v7325_v4 = vcombine.high %v2912_v63, %v2928_v0  ;;  %v2610_v53 = vld [vmem:[%s10728_s5 + $0x4d0] sm:$0xff] }
 0x397   :  { %5916 = vmatpush1.bf16.msra.mxu1 %v7094_v10  ;;  %v7318_v10 = vcombine.low %v2909_v61, %v2925_v62  ;;  %v2623_v61 = vld [vmem:[%s10728_s5 + $0x538] sm:$0xff] }
 0x398   :  { %6039 = vmatpush1.bf16.msra.mxu0 %v7100_v11  ;;  %5917 = vmatprep.subr.bf16.mxu1 %v7127_v13  ;;  %v7324_v11 = vcombine.low %v2912_v63, %v2928_v0  ;;  %v7351_v13 = vcombine.high %v2941_v5, %v2957_v6  ;;  %v2639_v62 = vld [vmem:[%s10728_s5 + $0x5b8] sm:$0xff]  ;;  %v9819_v63 = vsub.s32 4, %v8048_v43  ;;  %v2626_v0 = vld [vmem:[%s10728_s5 + $0x550] sm:$0xff] }
 0x399   :  { %6040 = vmatprep.subr.bf16.mxu0 %v7133_v14  ;;  %v7357_v14 = vcombine.high %v2944_v7, %v2960_v8 }
 0x39b   :  { %5918 = vmatpush1.bf16.msra.mxu1 %v7126_v20  ;;  %v7350_v20 = vcombine.low %v2941_v5, %v2957_v6  ;;  %v7008_v5 = vcombine.low %v2594_v52, %v2610_v53  ;;  %v7035_v6 = vcombine.high %v2623_v61, %v2639_v62 }
 0x39c   :  { %6041 = vmatpush1.bf16.msra.mxu0 %v7132_v21  ;;  %5919 = vmatprep.subr.bf16.mxu1 %v7159_v22  ;;  %v7356_v21 = vcombine.low %v2944_v7, %v2960_v8  ;;  %v6875_v22 = vcombine.high %v2463_v15, %v2479_v16  ;;  %v2655_v8 = vld [vmem:[%s10728_s5 + $0x638] sm:$0xff]  ;;  %v2674_v15 = vld [vmem:[%s10728_s5 + $0x6d0] sm:$0xff]  ;;  %v7034_v16 = vcombine.low %v2623_v61, %v2639_v62 }
 0x39d   :  { %6042 = vmatprep.subr.bf16.mxu0 %v7165_v23  ;;  %v6881_v23 = vcombine.high %v2466_v18, %v2482_v19  ;;  %v2770_v61 = vld [vmem:[%s10728_s5 + $0x9d0] sm:$0xff] }
 0x39f   :  { %5920 = vmatpush1.bf16.msra.mxu1 %v7158_v27  ;;  %v2514_v27 = vld [vmem:[%s10728_s5 + $0x1d0] sm:$0xff] }
 0x3a0   :  { %6043 = vmatpush1.bf16.msra.mxu0 %v7164_v28  ;;  %5921 = vmatprep.subr.bf16.mxu1 %v7191_v29  ;;  %v6880_v28 = vcombine.low %v2466_v18, %v2482_v19  ;;  %v6907_v29 = vcombine.high %v2495_v24, %v2511_v12  ;;  %v6913_v32 = vcombine.high %v2498_v9, %v2514_v27 }
 0x3a1   :  { %6044 = vmatprep.subr.bf16.mxu0 %v7197_v30  ;;  %v2527_v30 = vld [vmem:[%s10728_s5 + $0x238] sm:$0xff] }
 0x3a3   :  { %5922 = vmatpush1.bf16.msra.mxu1 %v7190_v35  ;;  %v6906_v35 = vcombine.low %v2495_v24, %v2511_v12  ;;  %v2687_v12 = vld [vmem:[%s10728_s5 + $0x738] sm:$0xff] }
 0x3a4   :  { %6045 = vmatpush1.bf16.msra.mxu0 %v7196_v17  ;;  %5923 = vmatprep.subr.bf16.mxu1 %v7223_v37  ;;  %v6912_v17 = vcombine.low %v2498_v9, %v2514_v27  ;;  %v6939_v37 = vcombine.high %v2527_v30, %v2543_v31 }
 0x3a5   :  { %6046 = vmatprep.subr.bf16.mxu0 %v7229_v38  ;;  %v6945_v38 = vcombine.high %v2530_v33, %v2546_v34 }
 0x3a7   :  { %5924 = vmatpush1.bf16.msra.mxu1 %v7222_v44  ;;  %v6938_v44 = vcombine.low %v2527_v30, %v2543_v31  ;;  %v2690_v30 = vld [vmem:[%s10728_s5 + $0x750] sm:$0xff] }
 0x3a8   :  { %6047 = vmatpush1.bf16.msra.mxu0 %v7228_v45  ;;  %5925 = vmatprep.subr.bf16.mxu1 %v7255_v46  ;;  %v6944_v45 = vcombine.low %v2530_v33, %v2546_v34  ;;  %v6971_v46 = vcombine.high %v2559_v39, %v2575_v40  ;;  %v2706_v31 = vld [vmem:[%s10728_s5 + $0x7d0] sm:$0xff] }
 0x3a9   :  { %6048 = vmatprep.subr.bf16.mxu0 %v7261_v48  ;;  %v6977_v48 = vcombine.high %v2562_v41, %v2578_v42 }
 0x3ab   :  { %5926 = vmatpush1.bf16.msra.mxu1 %v7254_v54  ;;  %v6970_v54 = vcombine.low %v2559_v39, %v2575_v40 }
 0x3ac   :  { %6049 = vmatpush1.bf16.msra.mxu0 %v7260_v55  ;;  %5927 = vmatprep.subr.bf16.mxu1 %v7287_v57  ;;  %v6976_v55 = vcombine.low %v2562_v41, %v2578_v42  ;;  %v7003_v57 = vcombine.high %v2591_v50, %v2607_v51 }
 0x3ad   :  { %6050 = vmatprep.subr.bf16.mxu0 %v7293_v60  ;;  %v7009_v60 = vcombine.high %v2594_v52, %v2610_v53  ;;  %v7104_v52 = vcombine.low %v2690_v30, %v2706_v31 }
 0x3af   :  { %5928 = vmatpush1.bf16.msra.mxu1 %v7286_v1  ;;  %v2642_v1 = vld [vmem:[%s10728_s5 + $0x5d0] sm:$0xff] }
 0x3b0   :  { %6051 = vmatpush1.bf16.msra.mxu0 %v7292_v2  ;;  %5929 = vmatprep.subr.bf16.mxu1 %v7319_v3  ;;  %v7002_v2 = vcombine.low %v2591_v50, %v2607_v51  ;;  %v9830_v3 = vld [vmem:[%s10731_s6] sm:$0xff]  ;;  %v7041_v7 = vcombine.high %v2626_v0, %v2642_v1  ;;  %v2738_v50 = vld [vmem:[%s10728_s5 + $0x8d0] sm:$0xff] }
 0x3b1   :  { %6052 = vmatprep.subr.bf16.mxu0 %v7325_v4  ;;  %v9833_v4 = vsub.s32 5, %v8048_v43  ;;  %v2983_v18 = vrot.slane %v9830_v3, %v8923_v58 }
 0x3b3   :  { %5930 = vmatpush1.bf16.msra.mxu1 %v7318_v10  ;;  %v2671_v10 = vld [vmem:[%s10728_s5 + $0x6b8] sm:$0xff]  ;;  %v2999_v19 = vrot.slane %v9830_v3, %v9833_v4 }
 0x3b4   :  { %6053 = vmatpush1.bf16.msra.mxu0 %v7324_v11  ;;  %5931 = vmatprep.subr.bf16.mxu1 %v7351_v13  ;;  %v2979_v11 = vrot.slane %v9830_v3, %v8915_v56  ;;  %v2995_v13 = vrot.slane %v9830_v3, %v9819_v63 }
 0x3b5   :  { %6054 = vmatprep.subr.bf16.mxu0 %v7357_v14  ;;  %v2658_v14 = vld [vmem:[%s10728_s5 + $0x650] sm:$0xff] }
 0x3b6   :  { %v7073_v24 = vcombine.high %v2658_v14, %v2674_v15  ;;  %v7072_v39 = vcombine.low %v2658_v14, %v2674_v15  ;;  %v2815_v15 = vld [vmem:[%s10728_s5 + $0xb38] sm:$0xff] }
 0x3b7   :  { %5932 = vmatpush1.bf16.msra.mxu1 %v7350_v20  ;;  %v7040_v20 = vcombine.low %v2626_v0, %v2642_v1 }
 0x3b8   :  { %6055 = vmatpush1.bf16.msra.mxu0 %v7356_v21  ;;  %5983 = vmatprep.subr.bf16.mxu1 %v6875_v22  ;;  %v7067_v21 = vcombine.high %v2655_v8, %v2671_v10 }
 0x3b9   :  { %6106 = vmatprep.subr.bf16.mxu0 %v6881_v23 }
 0x3ba   :  { %5934 = vmatmul.mubr.bf16.vlgmr.msra.gmra.mrb[16].mxu1 %v9180_v25 }
 0x3bb   :  { %6057 = vmatmul.mubr.bf16.vlgmr.msra.gmra.mrb[20].mxu0 %v9180_v25  ;;  %5984 = vmatpush1.bf16.msra.mxu1 %v6874_v26  ;;  %v2703_v26 = vld [vmem:[%s10728_s5 + $0x7b8] sm:$0xff] }
 0x3bc   :  { %6015 = vmatprep.mubr.bf16.mxu1 %v9178_v36  ;;  %6107 = vmatpush1.bf16.msra.mxu0 %v6880_v28  ;;  %v7099_v40 = vcombine.high %v2687_v12, %v2703_v26  ;;  %v7098_v51 = vcombine.low %v2687_v12, %v2703_v26  ;;  %v2863_v12 = vld [vmem:[%s10728_s5 + $0xcb8] sm:$0xff]  ;;  %v2850_v26 = vld [vmem:[%s10728_s5 + $0xc50] sm:$0xff] }
 0x3bd   :  { %6138 = vmatprep.mubr.bf16.mxu0 %v9178_v36  ;;  %5985 = vmatprep.subr.bf16.mxu1 %v6907_v29 }
 0x3be   :  { %6108 = vmatprep.subr.bf16.mxu0 %v6913_v32 }
 0x3bf   :  { %5986 = vmatpush1.bf16.msra.mxu1 %v6906_v35 }
 0x3c0   :  { %6109 = vmatpush1.bf16.msra.mxu0 %v6912_v17  ;;  %5987 = vmatprep.subr.bf16.mxu1 %v6939_v37  ;;  %v7066_v17 = vcombine.low %v2655_v8, %v2671_v10  ;;  %v2802_v8 = vld [vmem:[%s10728_s5 + $0xad0] sm:$0xff] }
 0x3c1   :  { %6110 = vmatprep.subr.bf16.mxu0 %v6945_v38 }
 0x3c3   :  { %5988 = vmatpush1.bf16.msra.mxu1 %v6938_v44  ;;  %v7105_v44 = vcombine.high %v2690_v30, %v2706_v31 }
 0x3c4   :  { %6111 = vmatpush1.bf16.msra.mxu0 %v6944_v45  ;;  %5989 = vmatprep.subr.bf16.mxu1 %v6971_v46  ;;  %v2719_v45 = vld [vmem:[%s10728_s5 + $0x838] sm:$0xff] }
 0x3c5   :  { %6112 = vmatprep.subr.bf16.mxu0 %v6977_v48  ;;  %v2735_v46 = vld [vmem:[%s10728_s5 + $0x8b8] sm:$0xff]  ;;  %v2722_v48 = vld [vmem:[%s10728_s5 + $0x850] sm:$0xff] }
 0x3c6   :  { %v7131_v53 = vcombine.high %v2719_v45, %v2735_v46  ;;  %v7130_v62 = vcombine.low %v2719_v45, %v2735_v46  ;;  %v7136_v0 = vcombine.low %v2722_v48, %v2738_v50  ;;  %v2911_v46 = vld [vmem:[%s10728_s5 + $0xe38] sm:$0xff] }
 0x3c7   :  { %5990 = vmatpush1.bf16.msra.mxu1 %v6970_v54  ;;  %v7137_v54 = vcombine.high %v2722_v48, %v2738_v50  ;;  %v2927_v48 = vld [vmem:[%s10728_s5 + $0xeb8] sm:$0xff]  ;;  %v2914_v50 = vld [vmem:[%s10728_s5 + $0xe50] sm:$0xff] }
 0x3c8   :  { %6113 = vmatpush1.bf16.msra.mxu0 %v6976_v55  ;;  %5991 = vmatprep.subr.bf16.mxu1 %v7003_v57  ;;  %v2751_v55 = vld [vmem:[%s10728_s5 + $0x938] sm:$0xff] }
 0x3c9   :  { %6114 = vmatprep.subr.bf16.mxu0 %v7009_v60  ;;  %v2767_v57 = vld [vmem:[%s10728_s5 + $0x9b8] sm:$0xff]  ;;  %v2754_v60 = vld [vmem:[%s10728_s5 + $0x950] sm:$0xff] }
 0x3ca   :  { %v7163_v1 = vcombine.high %v2751_v55, %v2767_v57  ;;  %v7162_v10 = vcombine.low %v2751_v55, %v2767_v57  ;;  %v2943_v57 = vld [vmem:[%s10728_s5 + $0xf38] sm:$0xff] }
 0x3cb   :  { %5992 = vmatpush1.bf16.msra.mxu1 %v7002_v2  ;;  %v7169_v2 = vcombine.high %v2754_v60, %v2770_v61 }
 0x3cc   :  { %6115 = vmatpush1.bf16.msra.mxu0 %v7008_v5  ;;  %5993 = vmatprep.subr.bf16.mxu1 %v7035_v6  ;;  %v2783_v5 = vld [vmem:[%s10728_s5 + $0xa38] sm:$0xff] }
 0x3cd   :  { %v5730_v22 = vpop.f32.mrb[4].mxu1  ;;  %v5812_v23 = vpop.f32.mrb[8].mxu0  ;;  %6116 = vmatprep.subr.bf16.mxu0 %v7041_v7  ;;  %v2799_v6 = vld [vmem:[%s10728_s5 + $0xab8] sm:$0xff]  ;;  %v2786_v7 = vld [vmem:[%s10728_s5 + $0xa50] sm:$0xff] }
 0x3ce   :  { %v9861_v9 = vadd.f32 %v5730_v22, %v2979_v11  ;;  %v9863_v27 = vadd.f32 %v5812_v23, %v2995_v13  ;;  %v5732_v28 = vpop.f32.mrb[5].mxu1  ;;  %v5814_v29 = vpop.f32.mrb[9].mxu0  ;;  %v7168_v11 = vcombine.low %v2754_v60, %v2770_v61  ;;  %v7195_v13 = vcombine.high %v2783_v5, %v2799_v6  ;;  %v2959_v60 = vld [vmem:[%s10728_s5 + $0xfb8] sm:$0xff]  ;;  %v2946_v61 = vld [vmem:[%s10728_s5 + $0xf50] sm:$0xff] }
 0x3cf   :  { %v9871_v32 = vadd.f32 %v5732_v28, %v2983_v18  ;;  %v9873_v33 = vadd.f32 %v5814_v29, %v2999_v19  ;;  %5994 = vmatpush1.bf16.msra.mxu1 %v7034_v16  ;;  %v5734_v34 = vpop.f32.mrb[6].mxu1  ;;  %v5816_v35 = vpop.f32.mrb[10].mxu0  ;;  %v7201_v14 = vcombine.high %v2786_v7, %v2802_v8  ;;  %v2831_v16 = vld [vmem:[%s10728_s5 + $0xbb8] sm:$0xff]  ;;  %v2818_v18 = vld [vmem:[%s10728_s5 + $0xb50] sm:$0xff] }
 0x3d0   :  { %6117 = vmatpush1.bf16.msra.mxu0 %v7040_v20  ;;  %v5735_v37 = vpop.f32.mrb[7].mxu1  ;;  %v5817_v38 = vpop.f32.mrb[11].mxu0  ;;  %5995 = vmatprep.subr.bf16.mxu1 %v7067_v21  ;;  %v2834_v19 = vld [vmem:[%s10728_s5 + $0xbd0] sm:$0xff]  ;;  %v7194_v20 = vcombine.low %v2783_v5, %v2799_v6  ;;  %v7200_v21 = vcombine.low %v2786_v7, %v2802_v8  ;;  %v7227_v22 = vcombine.high %v2815_v15, %v2831_v16  ;;  %v2879_v35 = vld [vmem:[%s10728_s5 + $0xd38] sm:$0xff]  ;;  %v2465_v6 = vld [vmem:[%s10728_s5 + $0x48] sm:$0xff] }
 0x3d1   :  { %v6384_v41 = vcombine.low %v9861_v9, %v9871_v32  ;;  %v6401_v42 = vcombine.low %v9863_v27, %v9873_v33  ;;  %6118 = vmatprep.subr.bf16.mxu0 %v7073_v24  ;;  %v7233_v23 = vcombine.high %v2818_v18, %v2834_v19  ;;  %v2847_v24 = vld [vmem:[%s10728_s5 + $0xc38] sm:$0xff]  ;;  %v2866_v28 = vld [vmem:[%s10728_s5 + $0xcd0] sm:$0xff]  ;;  %v7226_v29 = vcombine.low %v2815_v15, %v2831_v16  ;;  %v2481_v7 = vld [vmem:[%s10728_s5 + $0xc8] sm:$0xff] }
 0x3d2   :  { %v7232_v30 = vcombine.low %v2818_v18, %v2834_v19  ;;  %v7259_v31 = vcombine.high %v2847_v24, %v2863_v12  ;;  %v7265_v34 = vcombine.high %v2850_v26, %v2866_v28  ;;  %v2882_v37 = vld [vmem:[%s10728_s5 + $0xd50] sm:$0xff]  ;;  %v2468_v8 = vld [vmem:[%s10728_s5 + $0x60] sm:$0xff]  ;;  %v2497_v16 = vld [vmem:[%s10728_s5 + $0x148] sm:$0xff]  ;;  %v6878_v19 = vcombine.low %v2465_v6, %v2481_v7 }
 0x3d3   :  { %5996 = vmatpush1.bf16.msra.mxu1 %v7066_v17  ;;  %v2895_v17 = vld [vmem:[%s10728_s5 + $0xdb8] sm:$0xff]  ;;  %v2898_v38 = vld [vmem:[%s10728_s5 + $0xdd0] sm:$0xff]  ;;  %v2513_v18 = vld [vmem:[%s10728_s5 + $0x1c8] sm:$0xff] }
 0x3d4   :  { %6119 = vmatpush1.bf16.msra.mxu0 %v7072_v39  ;;  %5997 = vmatprep.subr.bf16.mxu1 %v7099_v40  ;;  %v7258_v39 = vcombine.low %v2847_v24, %v2863_v12  ;;  %v7264_v40 = vcombine.low %v2850_v26, %v2866_v28  ;;  %v7297_v45 = vcombine.high %v2882_v37, %v2898_v38  ;;  %v2529_v24 = vld [vmem:[%s10728_s5 + $0x248] sm:$0xff]  ;;  %v2532_v28 = vld [vmem:[%s10728_s5 + $0x260] sm:$0xff]  ;;  %v2771_v27 = vld [vmem:[%s10728_s5 + $0x9d8] sm:$0xff] }
 0x3d5   :  { %6120 = vmatprep.subr.bf16.mxu0 %v7105_v44  ;;  %v7291_v44 = vcombine.high %v2879_v35, %v2895_v17  ;;  %v2545_v12 = vld [vmem:[%s10728_s5 + $0x2c8] sm:$0xff]  ;;  %v2756_v32 = vld [vmem:[%s10728_s5 + $0x960] sm:$0xff]  ;;  %v2758_v33 = vld [vmem:[%s10728_s5 + $0x970] sm:$0xff] }
 0x3d6   :  { %v2769_v9 = vld [vmem:[%s10728_s5 + $0x9c8] sm:$0xff] }
 0x3d7   :  { %5998 = vmatpush1.bf16.msra.mxu1 %v7098_v51  ;;  %v2930_v51 = vld [vmem:[%s10728_s5 + $0xed0] sm:$0xff] }
 0x3d8   :  { %6121 = vmatpush1.bf16.msra.mxu0 %v7104_v52  ;;  %5999 = vmatprep.subr.bf16.mxu1 %v7131_v53  ;;  %v7290_v52 = vcombine.low %v2879_v35, %v2895_v17  ;;  %v7296_v53 = vcombine.low %v2882_v37, %v2898_v38  ;;  %v7329_v55 = vcombine.high %v2914_v50, %v2930_v51  ;;  %v2561_v17 = vld [vmem:[%s10728_s5 + $0x348] sm:$0xff]  ;;  %v2564_v38 = vld [vmem:[%s10728_s5 + $0x360] sm:$0xff] }
 0x3d9   :  { %6122 = vmatprep.subr.bf16.mxu0 %v7137_v54  ;;  %v7323_v54 = vcombine.high %v2911_v46, %v2927_v48  ;;  %v2577_v37 = vld [vmem:[%s10728_s5 + $0x3c8] sm:$0xff] }
 0x3db   :  { %6000 = vmatpush1.bf16.msra.mxu1 %v7130_v62  ;;  %v2962_v62 = vld [vmem:[%s10728_s5 + $0xfd0] sm:$0xff] }
 0x3dc   :  { %6123 = vmatpush1.bf16.msra.mxu0 %v7136_v0  ;;  %6001 = vmatprep.subr.bf16.mxu1 %v7163_v1  ;;  %v7322_v0 = vcombine.low %v2911_v46, %v2927_v48  ;;  %v7328_v1 = vcombine.low %v2914_v50, %v2930_v51  ;;  %v7361_v5 = vcombine.high %v2946_v61, %v2962_v62  ;;  %v2593_v48 = vld [vmem:[%s10728_s5 + $0x448] sm:$0xff]  ;;  %v2596_v51 = vld [vmem:[%s10728_s5 + $0x460] sm:$0xff] }
 0x3dd   :  { %6124 = vmatprep.subr.bf16.mxu0 %v7169_v2  ;;  %v7355_v2 = vcombine.high %v2943_v57, %v2959_v60  ;;  %v2609_v50 = vld [vmem:[%s10728_s5 + $0x4c8] sm:$0xff] }
 0x3df   :  { %6002 = vmatpush1.bf16.msra.mxu1 %v7162_v10  ;;  %v2484_v10 = vld [vmem:[%s10728_s5 + $0xe0] sm:$0xff] }
 0x3e0   :  { %6125 = vmatpush1.bf16.msra.mxu0 %v7168_v11  ;;  %6003 = vmatprep.subr.bf16.mxu1 %v7195_v13  ;;  %v7354_v11 = vcombine.low %v2943_v57, %v2959_v60  ;;  %v7360_v13 = vcombine.low %v2946_v61, %v2962_v62  ;;  %v6885_v15 = vcombine.high %v2468_v8, %v2484_v10  ;;  %v2625_v60 = vld [vmem:[%s10728_s5 + $0x548] sm:$0xff]  ;;  %v2628_v62 = vld [vmem:[%s10728_s5 + $0x560] sm:$0xff] }
 0x3e1   :  { %6126 = vmatprep.subr.bf16.mxu0 %v7201_v14  ;;  %v6879_v14 = vcombine.high %v2465_v6, %v2481_v7  ;;  %v2641_v61 = vld [vmem:[%s10728_s5 + $0x5c8] sm:$0xff] }
 0x3e2   :  { %v7039_v6 = vcombine.high %v2625_v60, %v2641_v61 }
 0x3e3   :  { %6004 = vmatpush1.bf16.msra.mxu1 %v7194_v20  ;;  %v2500_v20 = vld [vmem:[%s10728_s5 + $0x160] sm:$0xff] }
 0x3e4   :  { %6127 = vmatpush1.bf16.msra.mxu0 %v7200_v21  ;;  %6005 = vmatprep.subr.bf16.mxu1 %v7227_v22  ;;  %v2516_v21 = vld [vmem:[%s10728_s5 + $0x1e0] sm:$0xff]  ;;  %v6884_v22 = vcombine.low %v2468_v8, %v2484_v10  ;;  %v2657_v8 = vld [vmem:[%s10728_s5 + $0x648] sm:$0xff] }
 0x3e5   :  { %6128 = vmatprep.subr.bf16.mxu0 %v7233_v23  ;;  %v6911_v23 = vcombine.high %v2497_v16, %v2513_v18  ;;  %v6917_v26 = vcombine.high %v2500_v20, %v2516_v21  ;;  %v2673_v10 = vld [vmem:[%s10728_s5 + $0x6c8] sm:$0xff] }
 0x3e7   :  { %6006 = vmatpush1.bf16.msra.mxu1 %v7226_v29  ;;  %v2548_v29 = vld [vmem:[%s10728_s5 + $0x2e0] sm:$0xff] }
 0x3e8   :  { %6129 = vmatpush1.bf16.msra.mxu0 %v7232_v30  ;;  %6007 = vmatprep.subr.bf16.mxu1 %v7259_v31  ;;  %v6910_v30 = vcombine.low %v2497_v16, %v2513_v18  ;;  %v6916_v31 = vcombine.low %v2500_v20, %v2516_v21  ;;  %v6949_v35 = vcombine.high %v2532_v28, %v2548_v29 }
 0x3e9   :  { %6130 = vmatprep.subr.bf16.mxu0 %v7265_v34  ;;  %v6943_v34 = vcombine.high %v2529_v24, %v2545_v12  ;;  %v2991_v16 = vrot.slane %v9830_v3, %v8926_v59  ;;  %v7071_v21 = vcombine.high %v2657_v8, %v2673_v10 }
 0x3eb   :  { %6008 = vmatpush1.bf16.msra.mxu1 %v7258_v39  ;;  %v2580_v39 = vld [vmem:[%s10728_s5 + $0x3e0] sm:$0xff] }
 0x3ec   :  { %6131 = vmatpush1.bf16.msra.mxu0 %v7264_v40  ;;  %6009 = vmatprep.subr.bf16.mxu1 %v7291_v44  ;;  %v6942_v40 = vcombine.low %v2529_v24, %v2545_v12  ;;  %v6948_v44 = vcombine.low %v2532_v28, %v2548_v29  ;;  %v6981_v46 = vcombine.high %v2564_v38, %v2580_v39  ;;  %v2689_v12 = vld [vmem:[%s10728_s5 + $0x748] sm:$0xff] }
 0x3ed   :  { %6132 = vmatprep.subr.bf16.mxu0 %v7297_v45  ;;  %v6975_v45 = vcombine.high %v2561_v17, %v2577_v37 }
 0x3ef   :  { %6010 = vmatpush1.bf16.msra.mxu1 %v7290_v52  ;;  %v2612_v52 = vld [vmem:[%s10728_s5 + $0x4e0] sm:$0xff] }
 0x3f0   :  { %6133 = vmatpush1.bf16.msra.mxu0 %v7296_v53  ;;  %6011 = vmatprep.subr.bf16.mxu1 %v7323_v54  ;;  %v6974_v53 = vcombine.low %v2561_v17, %v2577_v37  ;;  %v6980_v54 = vcombine.low %v2564_v38, %v2580_v39  ;;  %v7013_v57 = vcombine.high %v2596_v51, %v2612_v52 }
 0x3f1   :  { %6134 = vmatprep.subr.bf16.mxu0 %v7329_v55  ;;  %v7007_v55 = vcombine.high %v2593_v48, %v2609_v50 }
 0x3f3   :  { %6012 = vmatpush1.bf16.msra.mxu1 %v7322_v0  ;;  %v2644_v0 = vld [vmem:[%s10728_s5 + $0x5e0] sm:$0xff] }
 0x3f4   :  { %6135 = vmatpush1.bf16.msra.mxu0 %v7328_v1  ;;  %6013 = vmatprep.subr.bf16.mxu1 %v7355_v2  ;;  %v7006_v1 = vcombine.low %v2593_v48, %v2609_v50  ;;  %v10054_v2 = vld [vmem:[%s10731_s6 + $0x8] sm:$0xff]  ;;  %v7045_v7 = vcombine.high %v2628_v62, %v2644_v0  ;;  %v7044_v20 = vcombine.low %v2628_v62, %v2644_v0 }
 0x3f5   :  { %6136 = vmatprep.subr.bf16.mxu0 %v7361_v5  ;;  %v7012_v5 = vcombine.low %v2596_v51, %v2612_v52  ;;  %v3015_v18 = vrot.slane %v10054_v2, %v8923_v58 }
 0x3f7   :  { %6014 = vmatpush1.bf16.msra.mxu1 %v7354_v11  ;;  %v2987_v11 = vrot.slane %v9830_v3, %v9018_v47 }
 0x3f8   :  { %6137 = vmatpush1.bf16.msra.mxu0 %v7360_v13  ;;  %6065 = vmatprep.subr.bf16.mxu1 %v6879_v14  ;;  %v3011_v13 = vrot.slane %v10054_v2, %v8915_v56  ;;  %v2660_v14 = vld [vmem:[%s10728_s5 + $0x660] sm:$0xff] }
 0x3f9   :  { %6188 = vmatprep.subr.bf16.mxu0 %v6885_v15  ;;  %v2676_v15 = vld [vmem:[%s10728_s5 + $0x6e0] sm:$0xff] }
 0x3fa   :  { %6016 = vmatmul.mubr.bf16.vlgmr.msra.gmra.mrb[20].mxu1 %v9180_v25  ;;  %v7077_v24 = vcombine.high %v2660_v14, %v2676_v15 }
 0x3fb   :  { %6139 = vmatmul.mubr.bf16.vlgmr.msra.gmra.mrb[24].mxu0 %v9180_v25  ;;  %6066 = vmatpush1.bf16.msra.mxu1 %v6878_v19  ;;  %v7038_v19 = vcombine.low %v2625_v60, %v2641_v61  ;;  %v6392_v60 = vrot.slane %v6384_v41, %v8066_v49  ;;  %v2772_v41 = vld [vmem:[%s10728_s5 + $0x9e0] sm:$0xff] }
 0x3fc   :  { %6097 = vmatprep.mubr.bf16.mxu1 %v9178_v36  ;;  %6189 = vmatpush1.bf16.msra.mxu0 %v6884_v22 }
 0x3fd   :  { %6220 = vmatprep.mubr.bf16.mxu0 %v9178_v36  ;;  %6067 = vmatprep.subr.bf16.mxu1 %v6911_v23 }
 0x3fe   :  { %6190 = vmatprep.subr.bf16.mxu0 %v6917_v26  ;;  %v2705_v26 = vld [vmem:[%s10728_s5 + $0x7c8] sm:$0xff] }
 0x3ff   :  { %6068 = vmatpush1.bf16.msra.mxu1 %v6910_v30  ;;  %v7103_v48 = vcombine.high %v2689_v12, %v2705_v26  ;;  %v7102_v62 = vcombine.low %v2689_v12, %v2705_v26  ;;  %v2820_v12 = vld [vmem:[%s10728_s5 + $0xb60] sm:$0xff] }
 0x400   :  { %6191 = vmatpush1.bf16.msra.mxu0 %v6916_v31  ;;  %6069 = vmatprep.subr.bf16.mxu1 %v6943_v34  ;;  %v2692_v34 = vld [vmem:[%s10728_s5 + $0x760] sm:$0xff] }
 0x401   :  { %6192 = vmatprep.subr.bf16.mxu0 %v6949_v35  ;;  %v2708_v35 = vld [vmem:[%s10728_s5 + $0x7e0] sm:$0xff] }
 0x402   :  { %v7109_v52 = vcombine.high %v2692_v34, %v2708_v35  ;;  %v7108_v0 = vcombine.low %v2692_v34, %v2708_v35  ;;  %v2836_v26 = vld [vmem:[%s10728_s5 + $0xbe0] sm:$0xff]  ;;  %v2849_v35 = vld [vmem:[%s10728_s5 + $0xc48] sm:$0xff] }
 0x403   :  { %6070 = vmatpush1.bf16.msra.mxu1 %v6942_v40  ;;  %v7070_v40 = vcombine.low %v2657_v8, %v2673_v10  ;;  %v7237_v34 = vcombine.high %v2820_v12, %v2836_v26 }
 0x404   :  { %6193 = vmatpush1.bf16.msra.mxu0 %v6948_v44  ;;  %6071 = vmatprep.subr.bf16.mxu1 %v6975_v45 }
 0x405   :  { %6194 = vmatprep.subr.bf16.mxu0 %v6981_v46  ;;  %v7076_v46 = vcombine.low %v2660_v14, %v2676_v15  ;;  %v2785_v14 = vld [vmem:[%s10728_s5 + $0xa48] sm:$0xff] }
 0x406   :  { %v2801_v15 = vld [vmem:[%s10728_s5 + $0xac8] sm:$0xff] }
 0x407   :  { %6072 = vmatpush1.bf16.msra.mxu1 %v6974_v53  ;;  %v2721_v53 = vld [vmem:[%s10728_s5 + $0x848] sm:$0xff] }
 0x408   :  { %6195 = vmatpush1.bf16.msra.mxu0 %v6980_v54  ;;  %6073 = vmatprep.subr.bf16.mxu1 %v7007_v55  ;;  %v2737_v54 = vld [vmem:[%s10728_s5 + $0x8c8] sm:$0xff]  ;;  %v2724_v55 = vld [vmem:[%s10728_s5 + $0x860] sm:$0xff] }
 0x409   :  { %6196 = vmatprep.subr.bf16.mxu0 %v7013_v57  ;;  %v2740_v57 = vld [vmem:[%s10728_s5 + $0x8e0] sm:$0xff]  ;;  %v7134_v8 = vcombine.low %v2721_v53, %v2737_v54 }
 0x40a   :  { %v7140_v10 = vcombine.low %v2724_v55, %v2740_v57 }
 0x40b   :  { %6074 = vmatpush1.bf16.msra.mxu1 %v7006_v1  ;;  %v7135_v1 = vcombine.high %v2721_v53, %v2737_v54  ;;  %v2900_v53 = vld [vmem:[%s10728_s5 + $0xde0] sm:$0xff] }
 0x40c   :  { %6197 = vmatpush1.bf16.msra.mxu0 %v7012_v5  ;;  %6075 = vmatprep.subr.bf16.mxu1 %v7039_v6  ;;  %v7141_v6 = vcombine.high %v2724_v55, %v2740_v57 }
 0x40d   :  { %v5771_v22 = vpop.f32.mrb[8].mxu1  ;;  %v5894_v23 = vpop.f32.mrb[12].mxu0  ;;  %6198 = vmatprep.subr.bf16.mxu0 %v7045_v7  ;;  %v2753_v7 = vld [vmem:[%s10728_s5 + $0x948] sm:$0xff] }
 0x40e   :  { %v5772_v28 = vadd.f32 %v5771_v22, %v2987_v11  ;;  %v10082_v29 = vadd.f32 %v5894_v23, %v3011_v13  ;;  %v5773_v30 = vpop.f32.mrb[9].mxu1  ;;  %v5896_v31 = vpop.f32.mrb[13].mxu0  ;;  %v7167_v11 = vcombine.high %v2753_v7, %v2769_v9  ;;  %v7173_v13 = vcombine.high %v2756_v32, %v2772_v41  ;;  %v2817_v23 = vld [vmem:[%s10728_s5 + $0xb48] sm:$0xff] }
 0x40f   :  { %v5774_v17 = vadd.f32 %v5773_v30, %v2991_v16  ;;  %v10090_v37 = vadd.f32 %v5896_v31, %v3015_v18  ;;  %v5775_v38 = vpop.f32.mrb[10].mxu1  ;;  %v5898_v39 = vpop.f32.mrb[14].mxu0  ;;  %6076 = vmatpush1.bf16.msra.mxu1 %v7038_v19  ;;  %v2788_v16 = vld [vmem:[%s10728_s5 + $0xa60] sm:$0xff]  ;;  %v7166_v19 = vcombine.low %v2753_v7, %v2769_v9 }
 0x410   :  { %6199 = vmatpush1.bf16.msra.mxu0 %v7044_v20  ;;  %v5776_v44 = vpop.f32.mrb[11].mxu1  ;;  %v5899_v45 = vpop.f32.mrb[15].mxu0  ;;  %6077 = vmatprep.subr.bf16.mxu1 %v7071_v21  ;;  %v2804_v18 = vld [vmem:[%s10728_s5 + $0xae0] sm:$0xff]  ;;  %v7172_v20 = vcombine.low %v2756_v32, %v2772_v41  ;;  %v7199_v21 = vcombine.high %v2785_v14, %v2801_v15  ;;  %v2945_v32 = vld [vmem:[%s10728_s5 + $0xf48] sm:$0xff] }
 0x411   :  { %v6385_v50 = vcombine.low %v5772_v28, %v5774_v17  ;;  %v6418_v51 = vcombine.low %v10082_v29, %v10090_v37  ;;  %6200 = vmatprep.subr.bf16.mxu0 %v7077_v24  ;;  %v7205_v22 = vcombine.high %v2788_v16, %v2804_v18  ;;  %v2833_v24 = vld [vmem:[%s10728_s5 + $0xbc8] sm:$0xff]  ;;  %v7198_v28 = vcombine.low %v2785_v14, %v2801_v15  ;;  %v2852_v38 = vld [vmem:[%s10728_s5 + $0xc60] sm:$0xff] }
 0x412   :  { %v7204_v30 = vcombine.low %v2788_v16, %v2804_v18  ;;  %v7231_v31 = vcombine.high %v2817_v23, %v2833_v24  ;;  %v2865_v17 = vld [vmem:[%s10728_s5 + $0xcc8] sm:$0xff]  ;;  %v2868_v39 = vld [vmem:[%s10728_s5 + $0xce0] sm:$0xff]  ;;  %v7236_v44 = vcombine.low %v2820_v12, %v2836_v26  ;;  %v2467_v16 = vld [vmem:[%s10728_s5 + $0x58] sm:$0xff] }
 0x413   :  { %v6399_v61 = vrot.slane %v6385_v50, %v8066_v49  ;;  %6078 = vmatpush1.bf16.msra.mxu1 %v7070_v40  ;;  %v7230_v40 = vcombine.low %v2817_v23, %v2833_v24  ;;  %v7263_v45 = vcombine.high %v2849_v35, %v2865_v17  ;;  %v2897_v50 = vld [vmem:[%s10728_s5 + $0xdc8] sm:$0xff]  ;;  %v7262_v54 = vcombine.low %v2849_v35, %v2865_v17  ;;  %v2483_v18 = vld [vmem:[%s10728_s5 + $0xd8] sm:$0xff] }
 0x414   :  { %6201 = vmatpush1.bf16.msra.mxu0 %v7076_v46  ;;  %6079 = vmatprep.subr.bf16.mxu1 %v7103_v48  ;;  %v7269_v46 = vcombine.high %v2852_v38, %v2868_v39  ;;  %v2881_v48 = vld [vmem:[%s10728_s5 + $0xd48] sm:$0xff]  ;;  %v7268_v55 = vcombine.low %v2852_v38, %v2868_v39  ;;  %v6883_v23 = vcombine.high %v2467_v16, %v2483_v18  ;;  %v2499_v12 = vld [vmem:[%s10728_s5 + $0x158] sm:$0xff] }
 0x415   :  { %v6400_v5 = vcombine.low %v6392_v60, %v6399_v61  ;;  %6202 = vmatprep.subr.bf16.mxu0 %v7109_v52  ;;  %v2884_v52 = vld [vmem:[%s10728_s5 + $0xd60] sm:$0xff]  ;;  %v7295_v57 = vcombine.high %v2881_v48, %v2897_v50  ;;  %v2913_v61 = vld [vmem:[%s10728_s5 + $0xe48] sm:$0xff]  ;;  %v2515_v26 = vld [vmem:[%s10728_s5 + $0x1d8] sm:$0xff] }
 0x416   :  { %v7301_v60 = vcombine.high %v2884_v52, %v2900_v53  ;;  %v2961_v41 = vld [vmem:[%s10728_s5 + $0xfc8] sm:$0xff]  ;;  %v6915_v35 = vcombine.high %v2499_v12, %v2515_v26  ;;  %v2531_v17 = vld [vmem:[%s10728_s5 + $0x258] sm:$0xff] }
 0x417   :  { %6528 = vst [vmem:[%s10732_s7] sm:$0xff] %v6400_v5  ;;  %6080 = vmatpush1.bf16.msra.mxu1 %v7102_v62  ;;  %v2929_v62 = vld [vmem:[%s10728_s5 + $0xec8] sm:$0xff]  ;;  %v7294_v5 = vcombine.low %v2881_v48, %v2897_v50  ;;  %v7359_v14 = vcombine.high %v2945_v32, %v2961_v41  ;;  %v2547_v38 = vld [vmem:[%s10728_s5 + $0x2d8] sm:$0xff] }
 0x418   :  { %6203 = vmatpush1.bf16.msra.mxu0 %v7108_v0  ;;  %6081 = vmatprep.subr.bf16.mxu1 %v7135_v1  ;;  %v2916_v0 = vld [vmem:[%s10728_s5 + $0xe60] sm:$0xff]  ;;  %v7327_v7 = vcombine.high %v2913_v61, %v2929_v62  ;;  %v6947_v48 = vcombine.high %v2531_v17, %v2547_v38 }
 0x419   :  { %6204 = vmatprep.subr.bf16.mxu0 %v7141_v6  ;;  %v2932_v1 = vld [vmem:[%s10728_s5 + $0xee0] sm:$0xff]  ;;  %v7300_v6 = vcombine.low %v2884_v52, %v2900_v53  ;;  %v2563_v52 = vld [vmem:[%s10728_s5 + $0x358] sm:$0xff] }
 0x41a   :  { %v7333_v9 = vcombine.high %v2916_v0, %v2932_v1  ;;  %v2579_v53 = vld [vmem:[%s10728_s5 + $0x3d8] sm:$0xff] }
 0x41b   :  { %6082 = vmatpush1.bf16.msra.mxu1 %v7134_v8  ;;  %v2948_v8 = vld [vmem:[%s10728_s5 + $0xf60] sm:$0xff] }
 0x41c   :  { %6205 = vmatpush1.bf16.msra.mxu0 %v7140_v10  ;;  %6083 = vmatprep.subr.bf16.mxu1 %v7167_v11  ;;  %v2964_v10 = vld [vmem:[%s10728_s5 + $0xfe0] sm:$0xff]  ;;  %v7326_v11 = vcombine.low %v2913_v61, %v2929_v62  ;;  %v6979_v61 = vcombine.high %v2563_v52, %v2579_v53 }
 0x41d   :  { %6206 = vmatprep.subr.bf16.mxu0 %v7173_v13  ;;  %v7332_v13 = vcombine.low %v2916_v0, %v2932_v1  ;;  %v7365_v15 = vcombine.high %v2948_v8, %v2964_v10  ;;  %v2595_v0 = vld [vmem:[%s10728_s5 + $0x458] sm:$0xff] }
 0x41e   :  { %v2611_v1 = vld [vmem:[%s10728_s5 + $0x4d8] sm:$0xff] }
 0x41f   :  { %6084 = vmatpush1.bf16.msra.mxu1 %v7166_v19  ;;  %v2470_v19 = vld [vmem:[%s10728_s5 + $0x70] sm:$0xff] }
 0x420   :  { %6207 = vmatpush1.bf16.msra.mxu0 %v7172_v20  ;;  %6085 = vmatprep.subr.bf16.mxu1 %v7199_v21  ;;  %v2486_v20 = vld [vmem:[%s10728_s5 + $0xf0] sm:$0xff]  ;;  %v7358_v21 = vcombine.low %v2945_v32, %v2961_v41  ;;  %v7011_v32 = vcombine.high %v2595_v0, %v2611_v1 }
 0x421   :  { %6208 = vmatprep.subr.bf16.mxu0 %v7205_v22  ;;  %v7364_v22 = vcombine.low %v2948_v8, %v2964_v10  ;;  %v6889_v24 = vcombine.high %v2470_v19, %v2486_v20  ;;  %v2627_v8 = vld [vmem:[%s10728_s5 + $0x558] sm:$0xff] }
 0x422   :  { %v2643_v10 = vld [vmem:[%s10728_s5 + $0x5d8] sm:$0xff] }
 0x423   :  { %6086 = vmatpush1.bf16.msra.mxu1 %v7198_v28  ;;  %v6882_v28 = vcombine.low %v2467_v16, %v2483_v18  ;;  %v10278_v16 = vsub.s32 7, %v8048_v43 }
 0x424   :  { %6209 = vmatpush1.bf16.msra.mxu0 %v7204_v30  ;;  %6087 = vmatprep.subr.bf16.mxu1 %v7231_v31  ;;  %v2502_v30 = vld [vmem:[%s10728_s5 + $0x170] sm:$0xff] }
 0x425   :  { %6210 = vmatprep.subr.bf16.mxu0 %v7237_v34  ;;  %v2518_v31 = vld [vmem:[%s10728_s5 + $0x1f0] sm:$0xff]  ;;  %v6888_v34 = vcombine.low %v2470_v19, %v2486_v20  ;;  %v7043_v19 = vcombine.high %v2627_v8, %v2643_v10 }
 0x426   :  { %v6921_v39 = vcombine.high %v2502_v30, %v2518_v31 }
 0x427   :  { %6088 = vmatpush1.bf16.msra.mxu1 %v7230_v40  ;;  %v2534_v40 = vld [vmem:[%s10728_s5 + $0x270] sm:$0xff] }
 0x428   :  { %6211 = vmatpush1.bf16.msra.mxu0 %v7236_v44  ;;  %6089 = vmatprep.subr.bf16.mxu1 %v7263_v45  ;;  %v2550_v44 = vld [vmem:[%s10728_s5 + $0x2f0] sm:$0xff]  ;;  %v6914_v45 = vcombine.low %v2499_v12, %v2515_v26  ;;  %v3027_v12 = vrot.slane %v10054_v2, %v9819_v63  ;;  %v3007_v26 = vrot.slane %v9830_v3, %v10278_v16 }
 0x429   :  { %6212 = vmatprep.subr.bf16.mxu0 %v7269_v46  ;;  %v6920_v46 = vcombine.low %v2502_v30, %v2518_v31  ;;  %v6953_v50 = vcombine.high %v2534_v40, %v2550_v44  ;;  %v3031_v30 = vrot.slane %v10054_v2, %v9833_v4 }
 0x42b   :  { %6090 = vmatpush1.bf16.msra.mxu1 %v7262_v54  ;;  %v2566_v54 = vld [vmem:[%s10728_s5 + $0x370] sm:$0xff] }
 0x42c   :  { %6213 = vmatpush1.bf16.msra.mxu0 %v7268_v55  ;;  %6091 = vmatprep.subr.bf16.mxu1 %v7295_v57  ;;  %v2582_v55 = vld [vmem:[%s10728_s5 + $0x3f0] sm:$0xff]  ;;  %v6946_v57 = vcombine.low %v2531_v17, %v2547_v38  ;;  %v2691_v38 = vld [vmem:[%s10728_s5 + $0x758] sm:$0xff] }
 0x42d   :  { %6214 = vmatprep.subr.bf16.mxu0 %v7301_v60  ;;  %v6952_v60 = vcombine.low %v2534_v40, %v2550_v44  ;;  %v6985_v62 = vcombine.high %v2566_v54, %v2582_v55 }
 0x42f   :  { %6092 = vmatpush1.bf16.msra.mxu1 %v7294_v5  ;;  %v2598_v5 = vld [vmem:[%s10728_s5 + $0x470] sm:$0xff] }
 0x430   :  { %6215 = vmatpush1.bf16.msra.mxu0 %v7300_v6  ;;  %6093 = vmatprep.subr.bf16.mxu1 %v7327_v7  ;;  %v2614_v6 = vld [vmem:[%s10728_s5 + $0x4f0] sm:$0xff]  ;;  %v6978_v7 = vcombine.low %v2563_v52, %v2579_v53 }
 0x431   :  { %6216 = vmatprep.subr.bf16.mxu0 %v7333_v9  ;;  %v6984_v9 = vcombine.low %v2566_v54, %v2582_v55  ;;  %v7017_v41 = vcombine.high %v2598_v5, %v2614_v6  ;;  %v7016_v18 = vcombine.low %v2598_v5, %v2614_v6  ;;  %v2723_v6 = vld [vmem:[%s10728_s5 + $0x858] sm:$0xff] }
 0x433   :  { %6094 = vmatpush1.bf16.msra.mxu1 %v7326_v11  ;;  %v10269_v11 = vsub.s32 6, %v8048_v43  ;;  %v2662_v43 = vld [vmem:[%s10728_s5 + $0x670] sm:$0xff] }
 0x434   :  { %6217 = vmatpush1.bf16.msra.mxu0 %v7332_v13  ;;  %6095 = vmatprep.subr.bf16.mxu1 %v7359_v14  ;;  %v2630_v13 = vld [vmem:[%s10728_s5 + $0x570] sm:$0xff] }
 0x435   :  { %6218 = vmatprep.subr.bf16.mxu0 %v7365_v15  ;;  %v2646_v14 = vld [vmem:[%s10728_s5 + $0x5f0] sm:$0xff]  ;;  %v7010_v15 = vcombine.low %v2595_v0, %v2611_v1 }
 0x436   :  { %v7049_v20 = vcombine.high %v2630_v13, %v2646_v14  ;;  %v7048_v31 = vcombine.low %v2630_v13, %v2646_v14 }
 0x437   :  { %6096 = vmatpush1.bf16.msra.mxu1 %v7358_v21  ;;  %v2659_v21 = vld [vmem:[%s10728_s5 + $0x658] sm:$0xff] }
 0x438   :  { %6219 = vmatpush1.bf16.msra.mxu0 %v7364_v22  ;;  %6147 = vmatprep.subr.bf16.mxu1 %v6883_v23  ;;  %v2675_v22 = vld [vmem:[%s10728_s5 + $0x6d8] sm:$0xff]  ;;  %v3003_v23 = vrot.slane %v9830_v3, %v10269_v11 }
 0x439   :  { %6270 = vmatprep.subr.bf16.mxu0 %v6889_v24  ;;  %v2678_v24 = vld [vmem:[%s10728_s5 + $0x6f0] sm:$0xff]  ;;  %v7074_v54 = vcombine.low %v2659_v21, %v2675_v22 }
 0x43a   :  { %6098 = vmatmul.mubr.bf16.vlgmr.msra.gmra.mrb[24].mxu1 %v9180_v25  ;;  %v7081_v17 = vcombine.high %v2662_v43, %v2678_v24 }
 0x43b   :  { %6221 = vmatmul.mubr.bf16.vlgmr.msra.gmra.mrb[28].mxu0 %v9180_v25  ;;  %6148 = vmatpush1.bf16.msra.mxu1 %v6882_v28  ;;  %v7042_v28 = vcombine.low %v2627_v8, %v2643_v10  ;;  %v6409_v8 = vrot.slane %v6401_v42, %v8066_v49  ;;  %v2774_v42 = vld [vmem:[%s10728_s5 + $0x9f0] sm:$0xff] }
 0x43c   :  { %6179 = vmatprep.mubr.bf16.mxu1 %v9178_v36  ;;  %6271 = vmatpush1.bf16.msra.mxu0 %v6888_v34  ;;  %v7075_v34 = vcombine.high %v2659_v21, %v2675_v22 }
 0x43d   :  { %6302 = vmatprep.mubr.bf16.mxu0 %v9178_v36  ;;  %6149 = vmatprep.subr.bf16.mxu1 %v6915_v35 }
 0x43e   :  { %6272 = vmatprep.subr.bf16.mxu0 %v6921_v39  ;;  %v2707_v39 = vld [vmem:[%s10728_s5 + $0x7d8] sm:$0xff] }
 0x43f   :  { %6150 = vmatpush1.bf16.msra.mxu1 %v6914_v45  ;;  %v2694_v45 = vld [vmem:[%s10728_s5 + $0x770] sm:$0xff]  ;;  %v7106_v13 = vcombine.low %v2691_v38, %v2707_v39 }
 0x440   :  { %6273 = vmatpush1.bf16.msra.mxu0 %v6920_v46  ;;  %6151 = vmatprep.subr.bf16.mxu1 %v6947_v48  ;;  %v2710_v46 = vld [vmem:[%s10728_s5 + $0x7f0] sm:$0xff] }
 0x441   :  { %6274 = vmatprep.subr.bf16.mxu0 %v6953_v50  ;;  %v7113_v5 = vcombine.high %v2694_v45, %v2710_v46  ;;  %v7112_v14 = vcombine.low %v2694_v45, %v2710_v46 }
 0x443   :  { %6152 = vmatpush1.bf16.msra.mxu1 %v6946_v57 }
 0x444   :  { %6275 = vmatpush1.bf16.msra.mxu0 %v6952_v60  ;;  %6153 = vmatprep.subr.bf16.mxu1 %v6979_v61  ;;  %v7080_v61 = vcombine.low %v2662_v43, %v2678_v24  ;;  %v7177_v43 = vcombine.high %v2758_v33, %v2774_v42  ;;  %v2787_v24 = vld [vmem:[%s10728_s5 + $0xa58] sm:$0xff] }
 0x445   :  { %6276 = vmatprep.subr.bf16.mxu0 %v6985_v62  ;;  %v7107_v62 = vcombine.high %v2691_v38, %v2707_v39  ;;  %v2835_v38 = vld [vmem:[%s10728_s5 + $0xbd8] sm:$0xff]  ;;  %v2822_v39 = vld [vmem:[%s10728_s5 + $0xb70] sm:$0xff] }
 0x447   :  { %6154 = vmatpush1.bf16.msra.mxu1 %v6978_v7  ;;  %v2739_v7 = vld [vmem:[%s10728_s5 + $0x8d8] sm:$0xff] }
 0x448   :  { %6277 = vmatpush1.bf16.msra.mxu0 %v6984_v9  ;;  %6155 = vmatprep.subr.bf16.mxu1 %v7011_v32  ;;  %v2726_v32 = vld [vmem:[%s10728_s5 + $0x870] sm:$0xff]  ;;  %v7138_v21 = vcombine.low %v2723_v6, %v2739_v7 }
 0x449   :  { %6278 = vmatprep.subr.bf16.mxu0 %v7017_v41  ;;  %v2742_v41 = vld [vmem:[%s10728_s5 + $0x8f0] sm:$0xff] }
 0x44a   :  { %v7144_v22 = vcombine.low %v2726_v32, %v2742_v41 }
 0x44b   :  { %6156 = vmatpush1.bf16.msra.mxu1 %v7010_v15  ;;  %v7139_v15 = vcombine.high %v2723_v6, %v2739_v7  ;;  %v2902_v6 = vld [vmem:[%s10728_s5 + $0xdf0] sm:$0xff] }
 0x44c   :  { %6279 = vmatpush1.bf16.msra.mxu0 %v7016_v18  ;;  %6157 = vmatprep.subr.bf16.mxu1 %v7043_v19  ;;  %v7145_v19 = vcombine.high %v2726_v32, %v2742_v41 }
 0x44d   :  { %v5853_v35 = vpop.f32.mrb[12].mxu1  ;;  %6280 = vmatprep.subr.bf16.mxu0 %v7049_v20  ;;  %v2755_v20 = vld [vmem:[%s10728_s5 + $0x958] sm:$0xff] }
 0x44e   :  { %v5854_v3 = vadd.f32 %v5853_v35, %v3003_v23  ;;  %v5976_v40 = vpop.f32.mrb[16].mxu0  ;;  %v5855_v44 = vpop.f32.mrb[13].mxu1  ;;  %v7171_v23 = vcombine.high %v2755_v20, %v2771_v27 }
 0x44f   :  { %v10312_v48 = vadd.f32 %v5976_v40, %v3027_v12  ;;  %v5856_v50 = vadd.f32 %v5855_v44, %v3007_v26  ;;  %v5978_v52 = vpop.f32.mrb[17].mxu0  ;;  %v5857_v53 = vpop.f32.mrb[14].mxu1  ;;  %6158 = vmatpush1.bf16.msra.mxu1 %v7042_v28  ;;  %v2803_v12 = vld [vmem:[%s10728_s5 + $0xad8] sm:$0xff]  ;;  %v2790_v26 = vld [vmem:[%s10728_s5 + $0xa70] sm:$0xff] }
 0x450   :  { %v10314_v55 = vadd.f32 %v5978_v52, %v3031_v30  ;;  %v5980_v57 = vpop.f32.mrb[18].mxu0  ;;  %6281 = vmatpush1.bf16.msra.mxu0 %v7048_v31  ;;  %v5858_v60 = vpop.f32.mrb[15].mxu1  ;;  %6159 = vmatprep.subr.bf16.mxu1 %v7075_v34  ;;  %v2806_v28 = vld [vmem:[%s10728_s5 + $0xaf0] sm:$0xff]  ;;  %v7170_v30 = vcombine.low %v2755_v20, %v2771_v27  ;;  %v7176_v31 = vcombine.low %v2758_v33, %v2774_v42  ;;  %v2867_v52 = vld [vmem:[%s10728_s5 + $0xcd8] sm:$0xff] }
 0x451   :  { %v6402_v0 = vcombine.low %v5854_v3, %v5856_v50  ;;  %v5981_v1 = vpop.f32.mrb[19].mxu0  ;;  %6282 = vmatprep.subr.bf16.mxu0 %v7081_v17  ;;  %v7203_v34 = vcombine.high %v2787_v24, %v2803_v12  ;;  %v7209_v35 = vcombine.high %v2790_v26, %v2806_v28  ;;  %v2819_v17 = vld [vmem:[%s10728_s5 + $0xb58] sm:$0xff]  ;;  %v2838_v3 = vld [vmem:[%s10728_s5 + $0xbf0] sm:$0xff]  ;;  %v7202_v40 = vcombine.low %v2787_v24, %v2803_v12 }
 0x452   :  { %v6435_v9 = vcombine.low %v10312_v48, %v10314_v55  ;;  %v7208_v44 = vcombine.low %v2790_v26, %v2806_v28  ;;  %v7235_v45 = vcombine.high %v2819_v17, %v2835_v38  ;;  %v7241_v46 = vcombine.high %v2822_v39, %v2838_v3  ;;  %v2851_v50 = vld [vmem:[%s10728_s5 + $0xc58] sm:$0xff]  ;;  %v2854_v53 = vld [vmem:[%s10728_s5 + $0xc70] sm:$0xff]  ;;  %v2469_v26 = vld [vmem:[%s10728_s5 + $0x68] sm:$0xff] }
 0x453   :  { %v6416_v10 = vrot.slane %v6402_v0, %v8066_v49  ;;  %6160 = vmatpush1.bf16.msra.mxu1 %v7074_v54  ;;  %v2870_v54 = vld [vmem:[%s10728_s5 + $0xcf0] sm:$0xff]  ;;  %v7234_v57 = vcombine.low %v2819_v17, %v2835_v38  ;;  %v7240_v60 = vcombine.low %v2822_v39, %v2838_v3  ;;  %v2883_v0 = vld [vmem:[%s10728_s5 + $0xd58] sm:$0xff]  ;;  %v7266_v7 = vcombine.low %v2851_v50, %v2867_v52  ;;  %v2485_v28 = vld [vmem:[%s10728_s5 + $0xe8] sm:$0xff] }
 0x454   :  { %6283 = vmatpush1.bf16.msra.mxu0 %v7080_v61  ;;  %6161 = vmatprep.subr.bf16.mxu1 %v7107_v62  ;;  %v7267_v61 = vcombine.high %v2851_v50, %v2867_v52  ;;  %v7273_v62 = vcombine.high %v2854_v53, %v2870_v54  ;;  %v2899_v1 = vld [vmem:[%s10728_s5 + $0xdd8] sm:$0xff]  ;;  %v7272_v32 = vcombine.low %v2854_v53, %v2870_v54  ;;  %v2517_v17 = vld [vmem:[%s10728_s5 + $0x1e8] sm:$0xff] }
 0x455   :  { %v6417_v18 = vcombine.low %v6409_v8, %v6416_v10  ;;  %6284 = vmatprep.subr.bf16.mxu0 %v7113_v5  ;;  %v2886_v5 = vld [vmem:[%s10728_s5 + $0xd70] sm:$0xff]  ;;  %v7299_v41 = vcombine.high %v2883_v0, %v2899_v1  ;;  %v2915_v10 = vld [vmem:[%s10728_s5 + $0xe58] sm:$0xff]  ;;  %v6886_v38 = vcombine.low %v2469_v26, %v2485_v28  ;;  %v2533_v3 = vld [vmem:[%s10728_s5 + $0x268] sm:$0xff] }
 0x456   :  { %v7305_v8 = vcombine.high %v2886_v5, %v2902_v6  ;;  %v2947_v33 = vld [vmem:[%s10728_s5 + $0xf58] sm:$0xff]  ;;  %v2581_v50 = vld [vmem:[%s10728_s5 + $0x3e8] sm:$0xff] }
 0x457   :  { %6529 = vst [vmem:[%s10732_s7 + $0x8] sm:$0xff] %v6417_v18  ;;  %6162 = vmatpush1.bf16.msra.mxu1 %v7106_v13  ;;  %v2931_v13 = vld [vmem:[%s10728_s5 + $0xed8] sm:$0xff]  ;;  %v7298_v18 = vcombine.low %v2883_v0, %v2899_v1  ;;  %v2597_v54 = vld [vmem:[%s10728_s5 + $0x468] sm:$0xff] }
 0x458   :  { %6285 = vmatpush1.bf16.msra.mxu0 %v7112_v14  ;;  %6163 = vmatprep.subr.bf16.mxu1 %v7139_v15  ;;  %v2918_v14 = vld [vmem:[%s10728_s5 + $0xe70] sm:$0xff]  ;;  %v7331_v20 = vcombine.high %v2915_v10, %v2931_v13  ;;  %v2963_v42 = vld [vmem:[%s10728_s5 + $0xfd8] sm:$0xff]  ;;  %v2645_v0 = vld [vmem:[%s10728_s5 + $0x5e8] sm:$0xff] }
 0x459   :  { %6286 = vmatprep.subr.bf16.mxu0 %v7145_v19  ;;  %v2934_v15 = vld [vmem:[%s10728_s5 + $0xef0] sm:$0xff]  ;;  %v7304_v19 = vcombine.low %v2886_v5, %v2902_v6  ;;  %v7363_v24 = vcombine.high %v2947_v33, %v2963_v42 }
 0x45a   :  { %v7337_v27 = vcombine.high %v2918_v14, %v2934_v15  ;;  %v10464_v5 = vld [vmem:[%s10731_s6 + $0x10] sm:$0xff] }
 0x45b   :  { %6164 = vmatpush1.bf16.msra.mxu1 %v7138_v21  ;;  %v2950_v21 = vld [vmem:[%s10728_s5 + $0xf70] sm:$0xff] }
 0x45c   :  { %6287 = vmatpush1.bf16.msra.mxu0 %v7144_v22  ;;  %6165 = vmatprep.subr.bf16.mxu1 %v7171_v23  ;;  %v2966_v22 = vld [vmem:[%s10728_s5 + $0xff0] sm:$0xff]  ;;  %v7330_v23 = vcombine.low %v2915_v10, %v2931_v13  ;;  %v3023_v10 = vrot.slane %v10054_v2, %v8926_v59 }
 0x45d   :  { %6288 = vmatprep.subr.bf16.mxu0 %v7177_v43  ;;  %v7336_v43 = vcombine.low %v2918_v14, %v2934_v15  ;;  %v7369_v12 = vcombine.high %v2950_v21, %v2966_v22  ;;  %v3047_v14 = vrot.slane %v10464_v5, %v8923_v58 }
 0x45f   :  { %6166 = vmatpush1.bf16.msra.mxu1 %v7170_v30  ;;  %v7362_v30 = vcombine.low %v2947_v33, %v2963_v42 }
 0x460   :  { %6289 = vmatpush1.bf16.msra.mxu0 %v7176_v31  ;;  %6167 = vmatprep.subr.bf16.mxu1 %v7203_v34  ;;  %v7368_v31 = vcombine.low %v2950_v21, %v2966_v22  ;;  %v6887_v34 = vcombine.high %v2469_v26, %v2485_v28 }
 0x461   :  { %6290 = vmatprep.subr.bf16.mxu0 %v7209_v35  ;;  %v2501_v35 = vld [vmem:[%s10728_s5 + $0x168] sm:$0xff] }
 0x462   :  { %v6919_v39 = vcombine.high %v2501_v35, %v2517_v17 }
 0x463   :  { %6168 = vmatpush1.bf16.msra.mxu1 %v7202_v40  ;;  %v2549_v40 = vld [vmem:[%s10728_s5 + $0x2e8] sm:$0xff] }
 0x464   :  { %6291 = vmatpush1.bf16.msra.mxu0 %v7208_v44  ;;  %6169 = vmatprep.subr.bf16.mxu1 %v7235_v45  ;;  %v6918_v44 = vcombine.low %v2501_v35, %v2517_v17  ;;  %v6951_v45 = vcombine.high %v2533_v3, %v2549_v40  ;;  %v6950_v52 = vcombine.low %v2533_v3, %v2549_v40  ;;  %v2741_v35 = vld [vmem:[%s10728_s5 + $0x8e8] sm:$0xff] }
 0x465   :  { %6292 = vmatprep.subr.bf16.mxu0 %v7241_v46  ;;  %v2565_v46 = vld [vmem:[%s10728_s5 + $0x368] sm:$0xff] }
 0x466   :  { %v6983_v53 = vcombine.high %v2565_v46, %v2581_v50 }
 0x467   :  { %6170 = vmatpush1.bf16.msra.mxu1 %v7234_v57  ;;  %v2613_v57 = vld [vmem:[%s10728_s5 + $0x4e8] sm:$0xff] }
 0x468   :  { %6293 = vmatpush1.bf16.msra.mxu0 %v7240_v60  ;;  %6171 = vmatprep.subr.bf16.mxu1 %v7267_v61  ;;  %v6982_v60 = vcombine.low %v2565_v46, %v2581_v50  ;;  %v7015_v61 = vcombine.high %v2597_v54, %v2613_v57  ;;  %v7014_v1 = vcombine.low %v2597_v54, %v2613_v57  ;;  %v2773_v46 = vld [vmem:[%s10728_s5 + $0x9e8] sm:$0xff] }
 0x469   :  { %6294 = vmatprep.subr.bf16.mxu0 %v7273_v62  ;;  %v2629_v62 = vld [vmem:[%s10728_s5 + $0x568] sm:$0xff] }
 0x46a   :  { %v7047_v6 = vcombine.high %v2629_v62, %v2645_v0  ;;  %v7046_v13 = vcombine.low %v2629_v62, %v2645_v0  ;;  %v2805_v50 = vld [vmem:[%s10728_s5 + $0xae8] sm:$0xff] }
 0x46b   :  { %6172 = vmatpush1.bf16.msra.mxu1 %v7266_v7  ;;  %v2661_v7 = vld [vmem:[%s10728_s5 + $0x668] sm:$0xff] }
 0x46c   :  { %6295 = vmatpush1.bf16.msra.mxu0 %v7272_v32  ;;  %6173 = vmatprep.subr.bf16.mxu1 %v7299_v41  ;;  %v2677_v32 = vld [vmem:[%s10728_s5 + $0x6e8] sm:$0xff]  ;;  %v3019_v41 = vrot.slane %v10054_v2, %v9018_v47 }
 0x46d   :  { %6296 = vmatprep.subr.bf16.mxu0 %v7305_v8  ;;  %v3043_v8 = vrot.slane %v10464_v5, %v8915_v56  ;;  %v7079_v15 = vcombine.high %v2661_v7, %v2677_v32  ;;  %v2821_v54 = vld [vmem:[%s10728_s5 + $0xb68] sm:$0xff] }
 0x46e   :  { %v2837_v57 = vld [vmem:[%s10728_s5 + $0xbe8] sm:$0xff] }
 0x46f   :  { %6174 = vmatpush1.bf16.msra.mxu1 %v7298_v18  ;;  %v2853_v62 = vld [vmem:[%s10728_s5 + $0xc68] sm:$0xff] }
 0x470   :  { %6297 = vmatpush1.bf16.msra.mxu0 %v7304_v19  ;;  %6175 = vmatprep.subr.bf16.mxu1 %v7331_v20  ;;  %v2693_v19 = vld [vmem:[%s10728_s5 + $0x768] sm:$0xff] }
 0x471   :  { %6298 = vmatprep.subr.bf16.mxu0 %v7337_v27  ;;  %v2709_v20 = vld [vmem:[%s10728_s5 + $0x7e8] sm:$0xff] }
 0x472   :  { %v7111_v28 = vcombine.high %v2693_v19, %v2709_v20  ;;  %v7110_v3 = vcombine.low %v2693_v19, %v2709_v20  ;;  %v2869_v0 = vld [vmem:[%s10728_s5 + $0xce8] sm:$0xff] }
 0x473   :  { %6176 = vmatpush1.bf16.msra.mxu1 %v7330_v23  ;;  %v2965_v19 = vld [vmem:[%s10728_s5 + $0xfe8] sm:$0xff] }
 0x474   :  { %6299 = vmatpush1.bf16.msra.mxu0 %v7336_v43  ;;  %6177 = vmatprep.subr.bf16.mxu1 %v7363_v24  ;;  %v7078_v43 = vcombine.low %v2661_v7, %v2677_v32  ;;  %v2885_v7 = vld [vmem:[%s10728_s5 + $0xd68] sm:$0xff] }
 0x475   :  { %6300 = vmatprep.subr.bf16.mxu0 %v7369_v12  ;;  %v2901_v32 = vld [vmem:[%s10728_s5 + $0xde8] sm:$0xff] }
 0x477   :  { %6178 = vmatpush1.bf16.msra.mxu1 %v7362_v30 }
 0x478   :  { %6301 = vmatpush1.bf16.msra.mxu0 %v7368_v31  ;;  %6229 = vmatprep.subr.bf16.mxu1 %v6887_v34  ;;  %v2725_v34 = vld [vmem:[%s10728_s5 + $0x868] sm:$0xff] }
 0x479   :  { %v7143_v40 = vcombine.high %v2725_v34, %v2741_v35  ;;  %v7142_v29 = vcombine.low %v2725_v34, %v2741_v35  ;;  %v2567_v35 = vld [vmem:[%s10728_s5 + $0x378] sm:$0xff] }
 0x47a   :  { %6180 = vmatmul.mubr.bf16.vlgmr.msra.gmra.mrb[28].mxu1 %v9180_v25 }
 0x47b   :  { %6303 = vmatmul.mubr.bf16.vlgmr.msra.gmra.mrb[32].mxu0 %v9180_v25  ;;  %6230 = vmatpush1.bf16.msra.mxu1 %v6886_v38  ;;  %v6426_v38 = vrot.slane %v6418_v51, %v8066_v49  ;;  %v2789_v51 = vld [vmem:[%s10728_s5 + $0xa68] sm:$0xff] }
 0x47c   :  { %6261 = vmatprep.mubr.bf16.mxu1 %v9178_v36  ;;  %6231 = vmatprep.subr.bf16.mxu1 %v6919_v39 }
 0x47f   :  { %6232 = vmatpush1.bf16.msra.mxu1 %v6918_v44 }
 0x480   :  { %6233 = vmatprep.subr.bf16.mxu1 %v6951_v45  ;;  %v2757_v45 = vld [vmem:[%s10728_s5 + $0x968] sm:$0xff] }
 0x481   :  { %v7175_v37 = vcombine.high %v2757_v45, %v2773_v46 }
 0x483   :  { %6234 = vmatpush1.bf16.msra.mxu1 %v6950_v52  ;;  %v7174_v52 = vcombine.low %v2757_v45, %v2773_v46  ;;  %v2631_v46 = vld [vmem:[%s10728_s5 + $0x578] sm:$0xff] }
 0x484   :  { %6235 = vmatprep.subr.bf16.mxu1 %v6983_v53  ;;  %v7207_v53 = vcombine.high %v2789_v51, %v2805_v50 }
 0x487   :  { %6236 = vmatpush1.bf16.msra.mxu1 %v6982_v60  ;;  %v7206_v60 = vcombine.low %v2789_v51, %v2805_v50  ;;  %v2663_v50 = vld [vmem:[%s10728_s5 + $0x678] sm:$0xff] }
 0x488   :  { %6237 = vmatprep.subr.bf16.mxu1 %v7015_v61  ;;  %v7239_v61 = vcombine.high %v2821_v54, %v2837_v57 }
 0x48b   :  { %6238 = vmatpush1.bf16.msra.mxu1 %v7014_v1  ;;  %v7238_v1 = vcombine.low %v2821_v54, %v2837_v57  ;;  %v3059_v57 = vrot.slane %v10464_v5, %v9819_v63 }
 0x48c   :  { %6239 = vmatprep.subr.bf16.mxu1 %v7047_v6  ;;  %v7271_v6 = vcombine.high %v2853_v62, %v2869_v0 }
 0x48d   :  { %v5935_v18 = vpop.f32.mrb[16].mxu1 }
 0x48e   :  { %v5936_v27 = vadd.f32 %v5935_v18, %v3019_v41  ;;  %v6058_v33 = vpop.f32.mrb[20].mxu0  ;;  %v5937_v42 = vpop.f32.mrb[17].mxu1  ;;  %v7270_v41 = vcombine.low %v2853_v62, %v2869_v0  ;;  %v2949_v18 = vld [vmem:[%s10728_s5 + $0xf68] sm:$0xff]  ;;  %v3063_v62 = vrot.slane %v10464_v5, %v9833_v4 }
 0x48f   :  { %v10486_v21 = vadd.f32 %v6058_v33, %v3043_v8  ;;  %v5938_v2 = vadd.f32 %v5937_v42, %v3023_v10  ;;  %v6060_v22 = vpop.f32.mrb[21].mxu0  ;;  %v5939_v23 = vpop.f32.mrb[18].mxu1  ;;  %6240 = vmatpush1.bf16.msra.mxu1 %v7046_v13  ;;  %v7303_v8 = vcombine.high %v2885_v7, %v2901_v32  ;;  %v2917_v10 = vld [vmem:[%s10728_s5 + $0xe68] sm:$0xff]  ;;  %v2471_v33 = vld [vmem:[%s10728_s5 + $0x78] sm:$0xff] }
 0x490   :  { %v10488_v24 = vadd.f32 %v6060_v22, %v3047_v14  ;;  %v6062_v12 = vpop.f32.mrb[22].mxu0  ;;  %v5940_v26 = vpop.f32.mrb[19].mxu1  ;;  %6241 = vmatprep.subr.bf16.mxu1 %v7079_v15  ;;  %v2933_v13 = vld [vmem:[%s10728_s5 + $0xee8] sm:$0xff]  ;;  %v7302_v14 = vcombine.low %v2885_v7, %v2901_v32  ;;  %v2487_v42 = vld [vmem:[%s10728_s5 + $0xf8] sm:$0xff] }
 0x491   :  { %v6419_v30 = vcombine.low %v5936_v27, %v5938_v2  ;;  %v6063_v31 = vpop.f32.mrb[23].mxu0  ;;  %v7335_v15 = vcombine.high %v2917_v10, %v2933_v13  ;;  %v7334_v20 = vcombine.low %v2917_v10, %v2933_v13  ;;  %v7367_v27 = vcombine.high %v2949_v18, %v2965_v19  ;;  %v2503_v23 = vld [vmem:[%s10728_s5 + $0x178] sm:$0xff] }
 0x492   :  { %v6452_v17 = vcombine.low %v10486_v21, %v10488_v24  ;;  %v7366_v2 = vcombine.low %v2949_v18, %v2965_v19  ;;  %v6891_v22 = vcombine.high %v2471_v33, %v2487_v42  ;;  %v6890_v12 = vcombine.low %v2471_v33, %v2487_v42  ;;  %v2711_v7 = vld [vmem:[%s10728_s5 + $0x7f8] sm:$0xff] }
 0x493   :  { %v6433_v39 = vrot.slane %v6419_v30, %v8066_v49  ;;  %6242 = vmatpush1.bf16.msra.mxu1 %v7078_v43  ;;  %v2519_v43 = vld [vmem:[%s10728_s5 + $0x1f8] sm:$0xff] }
 0x494   :  { %6243 = vmatprep.subr.bf16.mxu1 %v7111_v28  ;;  %v6923_v26 = vcombine.high %v2503_v23, %v2519_v43  ;;  %v2535_v28 = vld [vmem:[%s10728_s5 + $0x278] sm:$0xff]  ;;  %v6922_v31 = vcombine.low %v2503_v23, %v2519_v43 }
 0x495   :  { %v6434_v44 = vcombine.low %v6426_v38, %v6433_v39  ;;  %v2551_v30 = vld [vmem:[%s10728_s5 + $0x2f8] sm:$0xff] }
 0x496   :  { %v6955_v34 = vcombine.high %v2535_v28, %v2551_v30  ;;  %v2583_v38 = vld [vmem:[%s10728_s5 + $0x3f8] sm:$0xff]  ;;  %v6954_v39 = vcombine.low %v2535_v28, %v2551_v30 }
 0x497   :  { %6530 = vst [vmem:[%s10732_s7 + $0x10] sm:$0xff] %v6434_v44  ;;  %6244 = vmatpush1.bf16.msra.mxu1 %v7110_v3  ;;  %v6987_v3 = vcombine.high %v2567_v35, %v2583_v38  ;;  %v6986_v44 = vcombine.low %v2567_v35, %v2583_v38  ;;  %v2743_v23 = vld [vmem:[%s10728_s5 + $0x8f8] sm:$0xff] }
 0x498   :  { %6245 = vmatprep.subr.bf16.mxu1 %v7143_v40  ;;  %v2599_v40 = vld [vmem:[%s10728_s5 + $0x478] sm:$0xff] }
 0x499   :  { %v2775_v35 = vld [vmem:[%s10728_s5 + $0x9f8] sm:$0xff] }
 0x49a   :  { %v2807_v38 = vld [vmem:[%s10728_s5 + $0xaf8] sm:$0xff] }
 0x49b   :  { %6246 = vmatpush1.bf16.msra.mxu1 %v7142_v29  ;;  %v2647_v29 = vld [vmem:[%s10728_s5 + $0x5f8] sm:$0xff] }
 0x49c   :  { %6247 = vmatprep.subr.bf16.mxu1 %v7175_v37  ;;  %v7051_v51 = vcombine.high %v2631_v46, %v2647_v29 }
 0x49f   :  { %6248 = vmatpush1.bf16.msra.mxu1 %v7174_v52  ;;  %v2679_v52 = vld [vmem:[%s10728_s5 + $0x6f8] sm:$0xff] }
 0x4a0   :  { %6249 = vmatprep.subr.bf16.mxu1 %v7207_v53  ;;  %v7889_v53 = vld [vmem:[%s10731_s6 + $0x8] sm:$0xff]  ;;  %v7083_v0 = vcombine.high %v2663_v50, %v2679_v52  ;;  %v7082_v18 = vcombine.low %v2663_v50, %v2679_v52  ;;  %v2887_v50 = vld [vmem:[%s10728_s5 + $0xd78] sm:$0xff] }
 0x4a1   :  { %v3035_v54 = vrot.slane %v7889_v53, %v10269_v11  ;;  %v2903_v52 = vld [vmem:[%s10728_s5 + $0xdf8] sm:$0xff] }
 0x4a3   :  { %6250 = vmatpush1.bf16.msra.mxu1 %v7206_v60  ;;  %v3039_v60 = vrot.slane %v7889_v53, %v10278_v16 }
 0x4a4   :  { %6251 = vmatprep.subr.bf16.mxu1 %v7239_v61  ;;  %v7050_v61 = vcombine.low %v2631_v46, %v2647_v29  ;;  %v2855_v46 = vld [vmem:[%s10728_s5 + $0xc78] sm:$0xff] }
 0x4a5   :  { %v2871_v29 = vld [vmem:[%s10728_s5 + $0xcf8] sm:$0xff] }
 0x4a6   :  { %v7274_v53 = vcombine.low %v2855_v46, %v2871_v29 }
 0x4a7   :  { %6252 = vmatpush1.bf16.msra.mxu1 %v7238_v1 }
 0x4a8   :  { %6253 = vmatprep.subr.bf16.mxu1 %v7271_v6  ;;  %v2695_v6 = vld [vmem:[%s10728_s5 + $0x778] sm:$0xff] }
 0x4a9   :  { %v7115_v33 = vcombine.high %v2695_v6, %v2711_v7  ;;  %v7114_v28 = vcombine.low %v2695_v6, %v2711_v7 }
 0x4ab   :  { %6254 = vmatpush1.bf16.msra.mxu1 %v7270_v41 }
 0x4ac   :  { %6255 = vmatprep.subr.bf16.mxu1 %v7303_v8 }
 0x4af   :  { %6256 = vmatpush1.bf16.msra.mxu1 %v7302_v14 }
 0x4b0   :  { %6257 = vmatprep.subr.bf16.mxu1 %v7335_v15 }
 0x4b3   :  { %6258 = vmatpush1.bf16.msra.mxu1 %v7334_v20 }
 0x4b4   :  { %6259 = vmatprep.subr.bf16.mxu1 %v7367_v27 }
 0x4b7   :  { %6260 = vmatpush1.bf16.msra.mxu1 %v7366_v2 }
 0x4b8   :  { %6311 = vmatprep.subr.bf16.mxu1 %v6891_v22  ;;  %v2727_v22 = vld [vmem:[%s10728_s5 + $0x878] sm:$0xff] }
 0x4b9   :  { %v7147_v30 = vcombine.high %v2727_v22, %v2743_v23  ;;  %v7146_v48 = vcombine.low %v2727_v22, %v2743_v23 }
 0x4ba   :  { %6262 = vmatmul.mubr.bf16.vlgmr.msra.gmra.mrb[32].mxu1 %v9180_v25 }
 0x4bb   :  { %6312 = vmatpush1.bf16.msra.mxu1 %v6890_v12  ;;  %6343 = vmatprep.mubr.bf16.mxu1 %v9178_v36  ;;  %v2615_v36 = vld [vmem:[%s10728_s5 + $0x4f8] sm:$0xff]  ;;  %v6443_v12 = vrot.slane %v6435_v9, %v8066_v49 }
 0x4bc   :  { %6313 = vmatprep.subr.bf16.mxu1 %v6923_v26  ;;  %v7019_v45 = vcombine.high %v2599_v40, %v2615_v36  ;;  %v7018_v37 = vcombine.low %v2599_v40, %v2615_v36  ;;  %v2791_v9 = vld [vmem:[%s10728_s5 + $0xa78] sm:$0xff] }
 0x4bd   :  { %v2823_v40 = vld [vmem:[%s10728_s5 + $0xb78] sm:$0xff] }
 0x4be   :  { %v2839_v36 = vld [vmem:[%s10728_s5 + $0xbf8] sm:$0xff] }
 0x4bf   :  { %6314 = vmatpush1.bf16.msra.mxu1 %v6922_v31 }
 0x4c0   :  { %6315 = vmatprep.subr.bf16.mxu1 %v6955_v34  ;;  %v2759_v34 = vld [vmem:[%s10728_s5 + $0x978] sm:$0xff] }
 0x4c1   :  { %v7179_v55 = vcombine.high %v2759_v34, %v2775_v35 }
 0x4c3   :  { %6316 = vmatpush1.bf16.msra.mxu1 %v6954_v39  ;;  %v7178_v39 = vcombine.low %v2759_v34, %v2775_v35  ;;  %v3067_v35 = vrot.slane %v10464_v5, %v10269_v11 }
 0x4c4   :  { %6317 = vmatprep.subr.bf16.mxu1 %v6987_v3  ;;  %v7211_v3 = vcombine.high %v2791_v9, %v2807_v38 }
 0x4c7   :  { %6318 = vmatpush1.bf16.msra.mxu1 %v6986_v44  ;;  %v7210_v44 = vcombine.low %v2791_v9, %v2807_v38 }
 0x4c8   :  { %6319 = vmatprep.subr.bf16.mxu1 %v7019_v45  ;;  %v7243_v45 = vcombine.high %v2823_v40, %v2839_v36 }
 0x4cb   :  { %6320 = vmatpush1.bf16.msra.mxu1 %v7018_v37  ;;  %v7242_v37 = vcombine.low %v2823_v40, %v2839_v36 }
 0x4cc   :  { %6321 = vmatprep.subr.bf16.mxu1 %v7051_v51  ;;  %v7275_v51 = vcombine.high %v2855_v46, %v2871_v29 }
 0x4cd   :  { %v6017_v1 = vpop.f32.mrb[20].mxu1 }
 0x4ce   :  { %v6018_v32 = vadd.f32 %v6017_v1, %v3035_v54  ;;  %v6140_v41 = vpop.f32.mrb[24].mxu0  ;;  %v6019_v8 = vpop.f32.mrb[21].mxu1  ;;  %v7307_v54 = vcombine.high %v2887_v50, %v2903_v52  ;;  %v2967_v1 = vld [vmem:[%s10728_s5 + $0xff8] sm:$0xff] }
 0x4cf   :  { %v10607_v10 = vadd.f32 %v6140_v41, %v3059_v57  ;;  %v6020_v13 = vadd.f32 %v6019_v8, %v3039_v60  ;;  %v6142_v14 = vpop.f32.mrb[25].mxu0  ;;  %v6021_v15 = vpop.f32.mrb[22].mxu1  ;;  %6322 = vmatpush1.bf16.msra.mxu1 %v7050_v61  ;;  %v2919_v57 = vld [vmem:[%s10728_s5 + $0xe78] sm:$0xff]  ;;  %v7306_v61 = vcombine.low %v2887_v50, %v2903_v52  ;;  %v3051_v8 = vrot.slane %v10464_v5, %v9018_v47 }
 0x4d0   :  { %v10609_v19 = vadd.f32 %v6142_v14, %v3063_v62  ;;  %v6144_v20 = vpop.f32.mrb[26].mxu0  ;;  %v6022_v27 = vpop.f32.mrb[23].mxu1  ;;  %6323 = vmatprep.subr.bf16.mxu1 %v7083_v0  ;;  %v2935_v60 = vld [vmem:[%s10728_s5 + $0xef8] sm:$0xff]  ;;  %v3055_v14 = vrot.slane %v10464_v5, %v8926_v59 }
 0x4d1   :  { %v6436_v42 = vcombine.low %v6018_v32, %v6020_v13  ;;  %v6145_v2 = vpop.f32.mrb[27].mxu0  ;;  %v7339_v62 = vcombine.high %v2919_v57, %v2935_v60  ;;  %v2951_v0 = vld [vmem:[%s10728_s5 + $0xf78] sm:$0xff]  ;;  %v7338_v6 = vcombine.low %v2919_v57, %v2935_v60 }
 0x4d2   :  { %v6469_v43 = vcombine.low %v10607_v10, %v10609_v19  ;;  %v7371_v7 = vcombine.high %v2951_v0, %v2967_v1  ;;  %v7370_v32 = vcombine.low %v2951_v0, %v2967_v1  ;;  %v10673_v41 = vld [vmem:[%s10731_s6 + $0x18] sm:$0xff] }
 0x4d3   :  { %v6450_v26 = vrot.slane %v6436_v42, %v8066_v49  ;;  %6324 = vmatpush1.bf16.msra.mxu1 %v7082_v18  ;;  %v3075_v13 = vrot.slane %v10673_v41, %v8915_v56  ;;  %v3079_v15 = vrot.slane %v10673_v41, %v8923_v58  ;;  %v3095_v21 = vrot.slane %v10673_v41, %v9833_v4 }
 0x4d4   :  { %6325 = vmatprep.subr.bf16.mxu1 %v7115_v33  ;;  %v3083_v50 = vrot.slane %v10673_v41, %v9018_v47  ;;  %v3087_v52 = vrot.slane %v10673_v41, %v8926_v59  ;;  %v3099_v47 = vrot.slane %v10673_v41, %v10269_v11  ;;  %v3103_v59 = vrot.slane %v10673_v41, %v10278_v16 }
 0x4d5   :  { %v6451_v31 = vcombine.low %v6443_v12, %v6450_v26 }
 0x4d7   :  { %6531 = vst [vmem:[%s10732_s7 + $0x18] sm:$0xff] %v6451_v31  ;;  %6326 = vmatpush1.bf16.msra.mxu1 %v7114_v28  ;;  %v6460_v31 = vrot.slane %v6452_v17, %v8066_v49 }
 0x4d8   :  { %6327 = vmatprep.subr.bf16.mxu1 %v7147_v30 }
 0x4db   :  { %6328 = vmatpush1.bf16.msra.mxu1 %v7146_v48  ;;  %v3091_v48 = vrot.slane %v10673_v41, %v9819_v63 }
 0x4dc   :  { %6329 = vmatprep.subr.bf16.mxu1 %v7179_v55  ;;  %v3071_v55 = vrot.slane %v10464_v5, %v10278_v16  ;;  %v6477_v5 = vrot.slane %v6469_v43, %v8066_v49 }
 0x4df   :  { %6330 = vmatpush1.bf16.msra.mxu1 %v7178_v39 }
 0x4e0   :  { %6331 = vmatprep.subr.bf16.mxu1 %v7211_v3 }
 0x4e3   :  { %6332 = vmatpush1.bf16.msra.mxu1 %v7210_v44 }
 0x4e4   :  { %6333 = vmatprep.subr.bf16.mxu1 %v7243_v45 }
 0x4e7   :  { %6334 = vmatpush1.bf16.msra.mxu1 %v7242_v37 }
 0x4e8   :  { %6335 = vmatprep.subr.bf16.mxu1 %v7275_v51 }
 0x4eb   :  { %6336 = vmatpush1.bf16.msra.mxu1 %v7274_v53 }
 0x4ec   :  { %6337 = vmatprep.subr.bf16.mxu1 %v7307_v54 }
 0x4ef   :  { %6338 = vmatpush1.bf16.msra.mxu1 %v7306_v61 }
 0x4f0   :  { %6339 = vmatprep.subr.bf16.mxu1 %v7339_v62 }
 0x4f3   :  { %6340 = vmatpush1.bf16.msra.mxu1 %v7338_v6 }
 0x4f4   :  { %6341 = vmatprep.subr.bf16.mxu1 %v7371_v7 }
 0x4f7   :  { %6342 = vmatpush1.bf16.msra.mxu1 %v7370_v32 }
 0x4fa   :  { %6344 = vmatmul.mubr.bf16.vlgmr.msra.gmra.mrb[36].mxu1 %v9180_v25 }
 0x50d   :  { %v6099_v18 = vpop.f32.mrb[24].mxu1 }
 0x50e   :  { %v6100_v20 = vadd.f32 %v6099_v18, %v3051_v8  ;;  %v6222_v25 = vpop.f32.mrb[28].mxu0  ;;  %v6101_v27 = vpop.f32.mrb[25].mxu1 }
 0x50f   :  { %v6223_v33 = vadd.f32 %v6222_v25, %v3075_v13  ;;  %v6102_v42 = vadd.f32 %v6101_v27, %v3055_v14  ;;  %v6224_v2 = vpop.f32.mrb[29].mxu0  ;;  %v6103_v22 = vpop.f32.mrb[26].mxu1 }
 0x510   :  { %v6225_v23 = vadd.f32 %v6224_v2, %v3079_v15  ;;  %v6226_v12 = vpop.f32.mrb[30].mxu0  ;;  %v6104_v26 = vpop.f32.mrb[27].mxu1 }
 0x511   :  { %v6453_v28 = vcombine.low %v6100_v20, %v6102_v42  ;;  %v6227_v30 = vpop.f32.mrb[31].mxu0 }
 0x512   :  { %v6486_v56 = vcombine.low %v6223_v33, %v6225_v23 }
 0x513   :  { %v6467_v58 = vrot.slane %v6453_v28, %v8066_v49 }
 0x514   :  { %v6494_v43 = vrot.slane %v6486_v56, %v8066_v49 }
 0x515   :  { %v6468_v34 = vcombine.low %v6460_v31, %v6467_v58 }
 0x517   :  { %6532 = vst [vmem:[%s10732_s7 + $0x20] sm:$0xff] %v6468_v34 }
 0x54d   :  { %v6181_v24 = vpop.f32.mrb[28].mxu1 }
 0x54e   :  { %v6182_v17 = vadd.f32 %v6181_v24, %v3067_v35  ;;  %v6304_v9 = vpop.f32.mrb[32].mxu0  ;;  %v6183_v38 = vpop.f32.mrb[29].mxu1 }
 0x54f   :  { %v6305_v39 = vadd.f32 %v6304_v9, %v3091_v48  ;;  %v6184_v3 = vadd.f32 %v6183_v38, %v3071_v55  ;;  %v6306_v40 = vpop.f32.mrb[33].mxu0  ;;  %v6185_v36 = vpop.f32.mrb[30].mxu1 }
 0x550   :  { %v6307_v44 = vadd.f32 %v6306_v40, %v3095_v21  ;;  %v6308_v45 = vpop.f32.mrb[34].mxu0  ;;  %v6186_v46 = vpop.f32.mrb[31].mxu1 }
 0x551   :  { %v6470_v29 = vcombine.low %v6182_v17, %v6184_v3  ;;  %v6309_v37 = vpop.f32.mrb[35].mxu0 }
 0x552   :  { %v6503_v63 = vcombine.low %v6305_v39, %v6307_v44 }
 0x553   :  { %v6484_v4 = vrot.slane %v6470_v29, %v8066_v49 }
 0x554   :  { %v6511_v15 = vrot.slane %v6503_v63, %v8066_v49 }
 0x555   :  { %v6485_v51 = vcombine.low %v6477_v5, %v6484_v4 }
 0x557   :  { %6533 = vst [vmem:[%s10732_s7 + $0x28] sm:$0xff] %v6485_v51 }
 0x58d   :  { %v6263_v53 = vpop.f32.mrb[32].mxu1 }
 0x58e   :  { %v6264_v54 = vadd.f32 %v6263_v53, %v3083_v50  ;;  %v6265_v57 = vpop.f32.mrb[33].mxu1 }
 0x58f   :  { %v6266_v60 = vadd.f32 %v6265_v57, %v3087_v52  ;;  %v6267_v61 = vpop.f32.mrb[34].mxu1 }
 0x590   :  { %v6268_v10 = vpop.f32.mrb[35].mxu1 }
 0x591   :  { %v6487_v19 = vcombine.low %v6264_v54, %v6266_v60 }
 0x593   :  { %v6501_v62 = vrot.slane %v6487_v19, %v8066_v49 }
 0x595   :  { %v6502_v0 = vcombine.low %v6494_v43, %v6501_v62 }
 0x597   :  { %6534 = vst [vmem:[%s10732_s7 + $0x30] sm:$0xff] %v6502_v0 }
 0x5cd   :  { %v6345_v1 = vpop.f32.mrb[36].mxu1 }
 0x5ce   :  { %v6346_v6 = vadd.f32 %v6345_v1, %v3099_v47  ;;  %v6347_v7 = vpop.f32.mrb[37].mxu1 }
 0x5cf   :  { %v6348_v32 = vadd.f32 %v6347_v7, %v3103_v59  ;;  %v6349_v8 = vpop.f32.mrb[38].mxu1 }
 0x5d0   :  { %v6350_v13 = vpop.f32.mrb[39].mxu1 }
 0x5d1   :  { %v6504_v14 = vcombine.low %v6346_v6, %v6348_v32 }
 0x5d3   :  { %v6518_v18 = vrot.slane %v6504_v14, %v8066_v49 }
 0x5d5   :  { %v6519_v20 = vcombine.low %v6511_v15, %v6518_v18 }
 0x5d7   :  { %6535 = vst [vmem:[%s10732_s7 + $0x38] sm:$0xff] %v6519_v20 }

</bundles_post_ra>
